<compile_context>
chip_gen: v7x
topology: tpu7x:2x2x1
jax: 0.10.0
libtpu: 0.0.40
codegen_flags: <defaults>
</compile_context>

<pallas_src>
import functools

import jax
import jax.numpy as jnp
import numpy as np
from jax.experimental import pallas as pl
from jax.experimental.pallas import tpu as pltpu

LN_EPS = 1e-6
_INV_SQRT2 = 0.7071067811865476


# ----------------------------- in-kernel helpers -----------------------------

def _ln_groups(x, a_mat, g_t, b_t):
    """LayerNorm over per-token channel groups in the packed (rows, W*C) layout.

    a_mat is an (L, L) block-diagonal group-averaging matrix (1/C within each
    channel group), so `x @ a_mat` broadcasts each token's channel mean to all
    of its lanes without leaving the lane-dense layout."""
    mu = jnp.dot(x, a_mat, preferred_element_type=jnp.float32)
    d = x - mu
    var = jnp.dot(d * d, a_mat, preferred_element_type=jnp.float32)
    return d * jax.lax.rsqrt(var + LN_EPS) * g_t + b_t


def _convnext_layer_body(x, lrefs, a_mat, H, W, C):
    """One ConvNextLayer on a packed (H, W*C) image kept entirely in VMEM."""
    (dwwm_ref, dwb_ref, lng_ref, lnb_ref,
     w1_ref, b1_ref, w2_ref, b2_ref, gamma_ref) = lrefs
    L = W * C

    # ---- depthwise 7x7, pad 3.  Rows: 3-row zero halo built in VMEM.
    #      Columns: lane rolls by dx*C (XLU); out-of-image columns are zeroed by
    #      masks folded into the pre-tiled (49, L) weights.
    zpad = jnp.zeros((3, L), jnp.float32)
    xp = jnp.concatenate([zpad, x, zpad], axis=0)            # (H + 6, L)
    wall = dwwm_ref[...]                                     # (49, L) mask-folded
    acc = jnp.zeros((H, L), jnp.float32)
    for dx in range(7):
        s = dx - 3
        if abs(s) >= W:                  # tap column never lands inside image
            continue
        shift = (-s * C) % L
        xr = pltpu.roll(xp, shift=shift, axis=1) if shift else xp
        for dy in range(7):
            t = dy * 7 + dx
            acc = acc + xr[dy:dy + H, :] * wall[t:t + 1, :]
    y = acc + dwb_ref[...]

    # ---- LayerNorm (over C) -> MLP on block-diagonal bf16 weights (f32 acc)
    #      -> exact GELU -> layer_scale -> residual, all lane-dense.
    yn = _ln_groups(y, a_mat, lng_ref[...], lnb_ref[...])
    h = jnp.dot(yn.astype(jnp.bfloat16), w1_ref[...],
                preferred_element_type=jnp.float32) + b1_ref[...]
    # exact GELU (matches PyTorch); tanh/EUP approximation would be cheaper.
    h = 0.5 * h * (1.0 + jax.lax.erf(h * _INV_SQRT2))
    o = jnp.dot(h.astype(jnp.bfloat16), w2_ref[...],
                preferred_element_type=jnp.float32) + b2_ref[...]
    return x + gamma_ref[...] * o


# ------------------------------- stage kernels --------------------------------

def _stage_first_kernel(*refs, H, W, C, n_layers):
    """Patch-embed conv (k=s=patch) + channels_first LN + ConvNext layer(s)."""
    pix_ref, mpe_ref, spe_ref, peb_ref, a_ref, peg_ref, pelnb_ref = refs[:7]
    out_ref = refs[-1]
    layer_refs = refs[7:-1]

    pix = pix_ref[0]                                         # (Himg, Wimg*Cin)
    k = mpe_ref.shape[0]
    fs = [jnp.dot(pix, mpe_ref[dy], preferred_element_type=jnp.float32)
          for dy in range(k)]
    f = jnp.concatenate(fs, axis=0)                          # (k*Himg, L)
    x = jnp.dot(spe_ref[...], f,
                preferred_element_type=jnp.float32) + peb_ref[...]     # (H, L)
    a_mat = a_ref[...]
    x = _ln_groups(x, a_mat, peg_ref[...], pelnb_ref[...])
    for li in range(n_layers):
        x = _convnext_layer_body(x, layer_refs[li * 9:(li + 1) * 9],
                                 a_mat, H, W, C)
    out_ref[0] = x


def _stage_down_kernel(*refs, H, W, C, n_layers):
    """Downsample LN + 2x2/s2 conv + ConvNext layer(s), fused in one kernel."""
    (x_ref, ap_ref, dsg_ref, dsb_ref, mds_ref, sds_ref,
     dsbias_ref, a_ref) = refs[:8]
    out_ref = refs[-1]
    layer_refs = refs[8:-1]

    xin = x_ref[0]                                           # (Hp, Wp*Cp)
    xn = _ln_groups(xin, ap_ref[...], dsg_ref[...], dsb_ref[...])
    f0 = jnp.dot(xn, mds_ref[0], preferred_element_type=jnp.float32)
    f1 = jnp.dot(xn, mds_ref[1], preferred_element_type=jnp.float32)
    f = jnp.concatenate([f0, f1], axis=0)                    # (2*Hp, L)
    x = jnp.dot(sds_ref[...], f,
                preferred_element_type=jnp.float32) + dsbias_ref[...]  # (H, L)
    a_mat = a_ref[...]
    for li in range(n_layers):
        x = _convnext_layer_body(x, layer_refs[li * 9:(li + 1) * 9],
                                 a_mat, H, W, C)
    out_ref[0] = x


def _run_stage(kernel_fn, x_batched, const_args, out_hl):
    B = x_batched.shape[0]
    H_out, L_out = out_hl
    in_specs = [pl.BlockSpec((1,) + tuple(x_batched.shape[1:]),
                             lambda b: (b, 0, 0))]
    for a in const_args:
        if a.ndim == 2:
            in_specs.append(pl.BlockSpec(tuple(a.shape), lambda b: (0, 0)))
        else:
            in_specs.append(pl.BlockSpec(tuple(a.shape), lambda b: (0, 0, 0)))
    return pl.pallas_call(
        kernel_fn,
        out_shape=jax.ShapeDtypeStruct((B, H_out, L_out), jnp.float32),
        grid=(B,),
        in_specs=in_specs,
        out_specs=pl.BlockSpec((1, H_out, L_out), lambda b: (b, 0, 0)),
        compiler_params=pltpu.CompilerParams(
            dimension_semantics=("parallel",)),     # 2-wide -> both v7x TCs
    )(x_batched, *const_args)


# ------------------------------- module forward --------------------------------

def convnext_hf_wrapper_forward(pixel_values_nchw, prep):
    x_nhwc = jnp.transpose(pixel_values_nchw.astype(jnp.float32), (0, 2, 3, 1))
    B, Himg, Wimg, Cin = x_nhwc.shape
    x = x_nhwc.reshape(B, Himg, Wimg * Cin)          # packed pixel rows
    feats = []
    for si, st in enumerate(prep["stages"]):
        H, W, C, L = st["H"], st["W"], st["C"], st["L"]
        kern_fn = _stage_first_kernel if si == 0 else _stage_down_kernel
        kern = functools.partial(kern_fn, H=H, W=W, C=C, n_layers=st["n_layers"])
        x = _run_stage(kern, x, st["consts"], (H, L))
        # hidden_states[1:] of ConvNextModel: NCHW float32 feature maps
        feats.append(jnp.transpose(x.reshape(B, H, W, C), (0, 3, 1, 2)))
    return feats


# --------------------- packed-weight preparation (one-time) --------------------

def _group_avg_matrix(W, C):
    L = W * C
    a = np.zeros((L, L), np.float32)
    for w in range(W):
        a[w * C:(w + 1) * C, w * C:(w + 1) * C] = 1.0 / C
    return a


def _tile_vec(v, W):
    return np.tile(np.asarray(v, np.float32), W).reshape(1, -1)


def _pack_dw(dw_w, dw_b, W):
    """(7,7,C) depthwise weight -> (49, W*C) rows, column-validity masks folded."""
    C = dw_w.shape[-1]
    wpk = np.zeros((49, W * C), np.float32)
    for dy in range(7):
        for dx in range(7):
            s = dx - 3
            for w in range(W):
                if 0 <= w + s < W:
                    wpk[dy * 7 + dx, w * C:(w + 1) * C] = dw_w[dy, dx, :]
    return wpk, _tile_vec(dw_b, W)


def _block_diag_tile(w, W):
    """(Ci, Co) per-token Linear -> (W*Ci, W*Co) block-diagonal packed Linear."""
    ci, co = w.shape
    out = np.zeros((W * ci, W * co), np.float32)
    for i in range(W):
        out[i * ci:(i + 1) * ci, i * co:(i + 1) * co] = w
    return out


def _patch_conv_matrices(conv_w, W_in):
    """(k,k,Cin,Cout) stride-k conv -> (k, W_in*Cin, (W_in//k)*Cout) placement
    matrices; M[dy] maps a packed input row onto the packed output row for the
    vertical tap dy."""
    k, _, cin, cout = conv_w.shape
    w_out = W_in // k
    ms = np.zeros((k, W_in * cin, w_out * cout), np.float32)
    for dy in range(k):
        for wi in range(W_in):
            j, dx = wi // k, wi % k
            ms[dy, wi * cin:(wi + 1) * cin, j * cout:(j + 1) * cout] = conv_w[dy, dx]
    return ms


def _row_select_matrix(H_out, H_in, k):
    s = np.zeros((H_out, k * H_in), np.float32)
    for i in range(H_out):
        for dy in range(k):
            s[i, dy * H_in + k * i + dy] = 1.0
    return s


def prepare_params(params, image_hw, patch_size=4):
    Himg, Wimg = image_hw
    pe_w = np.asarray(params["pe_w"])                # (k, k, Cin, C0)  HWIO
    prep_stages = []
    H, W = Himg // patch_size, Wimg // patch_size
    prev_H = prev_W = prev_C = None
    for si, st in enumerate(params["stages"]):
        C = int(np.asarray(st["layers"][0]["dw_b"]).shape[0])
        if si == 0:
            consts = [
                jnp.asarray(_patch_conv_matrices(pe_w, Wimg)),
                jnp.asarray(_row_select_matrix(H, Himg, patch_size)),
                jnp.asarray(_tile_vec(params["pe_b"], W)),
                jnp.asarray(_group_avg_matrix(W, C)),
                jnp.asarray(_tile_vec(params["pe_ln_g"], W)),
                jnp.asarray(_tile_vec(params["pe_ln_b"], W)),
            ]
        else:
            H, W = prev_H // 2, prev_W // 2
            consts = [
                jnp.asarray(_group_avg_matrix(prev_W, prev_C)),
                jnp.asarray(_tile_vec(st["ds_ln_g"], prev_W)),
                jnp.asarray(_tile_vec(st["ds_ln_b"], prev_W)),
                jnp.asarray(_patch_conv_matrices(np.asarray(st["ds_w"]), prev_W)),
                jnp.asarray(_row_select_matrix(H, prev_H, 2)),
                jnp.asarray(_tile_vec(st["ds_b"], W)),
                jnp.asarray(_group_avg_matrix(W, C)),
            ]
        for lp in st["layers"]:
            wpk, bpk = _pack_dw(np.asarray(lp["dw_w"]), np.asarray(lp["dw_b"]), W)
            consts += [
                jnp.asarray(wpk),
                jnp.asarray(bpk),
                jnp.asarray(_tile_vec(lp["ln_g"], W)),
                jnp.asarray(_tile_vec(lp["ln_b"], W)),
                jnp.asarray(_block_diag_tile(np.asarray(lp["w1"]), W)).astype(jnp.bfloat16),
                jnp.asarray(_tile_vec(lp["b1"], W)),
                jnp.asarray(_block_diag_tile(np.asarray(lp["w2"]), W)).astype(jnp.bfloat16),
                jnp.asarray(_tile_vec(lp["b2"], W)),
                jnp.asarray(_tile_vec(lp["gamma"], W)),
            ]
        prep_stages.append({"consts": tuple(consts), "H": H, "W": W, "C": C,
                            "L": W * C, "n_layers": len(st["layers"])})
        prev_H, prev_W, prev_C = H, W, C
    return {"stages": prep_stages}


# ---------------------------- deterministic params -----------------------------

def init_params(key, hidden_sizes=(8, 16, 32, 64), depths=(1, 1, 1, 1), in_ch=3,
                patch_size=4, layer_scale_init=1.0, w_scale=0.1):
    # NOTE: layer_scale_init is 1e-6 in real ConvNext; 1.0 here so the MLP
    # branch is numerically visible for the in-script correctness check.
    k = key

    def nxt():
        nonlocal k
        k, sub = jax.random.split(k)
        return sub

    params = {
        "pe_w": w_scale * jax.random.normal(
            nxt(), (patch_size, patch_size, in_ch, hidden_sizes[0]), jnp.float32),
        "pe_b": 0.02 * jax.random.normal(nxt(), (hidden_sizes[0],), jnp.float32),
        "pe_ln_g": 1.0 + 0.05 * jax.random.normal(nxt(), (hidden_sizes[0],), jnp.float32),
        "pe_ln_b": 0.02 * jax.random.normal(nxt(), (hidden_sizes[0],), jnp.float32),
        "stages": [],
    }
    prev = hidden_sizes[0]
    for i, (C, d) in enumerate(zip(hidden_sizes, depths)):
        st = {}
        if i > 0:
            st["ds_ln_g"] = 1.0 + 0.05 * jax.random.normal(nxt(), (prev,), jnp.float32)
            st["ds_ln_b"] = 0.02 * jax.random.normal(nxt(), (prev,), jnp.float32)
            st["ds_w"] = w_scale * jax.random.normal(nxt(), (2, 2, prev, C), jnp.float32)
            st["ds_b"] = 0.02 * jax.random.normal(nxt(), (C,), jnp.float32)
        layers = []
        for _ in range(d):
            layers.append({
                "dw_w": w_scale * jax.random.normal(nxt(), (7, 7, C), jnp.float32),
                "dw_b": 0.02 * jax.random.normal(nxt(), (C,), jnp.float32),
                "ln_g": 1.0 + 0.05 * jax.random.normal(nxt(), (C,), jnp.float32),
                "ln_b": 0.02 * jax.random.normal(nxt(), (C,), jnp.float32),
                "w1": w_scale * jax.random.normal(nxt(), (C, 4 * C), jnp.float32),
                "b1": 0.02 * jax.random.normal(nxt(), (4 * C,), jnp.float32),
                "w2": w_scale * jax.random.normal(nxt(), (4 * C, C), jnp.float32),
                "b2": 0.02 * jax.random.normal(nxt(), (C,), jnp.float32),
                "gamma": jnp.full((C,), layer_scale_init, jnp.float32),
            })
        st["layers"] = layers
        params["stages"].append(st)
        prev = C
    return params


# --------------------------- pure-JAX reference model ---------------------------

def _ln_ref(x, g, b):
    mu = jnp.mean(x, axis=-1, keepdims=True)
    var = jnp.mean(jnp.square(x - mu), axis=-1, keepdims=True)
    return (x - mu) * jax.lax.rsqrt(var + LN_EPS) * g + b


def ref_forward(pixel_nchw, params):
    HIGH = jax.lax.Precision.HIGHEST
    dn = ("NHWC", "HWIO", "NHWC")
    x = jnp.transpose(pixel_nchw.astype(jnp.float32), (0, 2, 3, 1))
    x = jax.lax.conv_general_dilated(x, params["pe_w"], (4, 4), "VALID",
                                     dimension_numbers=dn,
                                     precision=HIGH) + params["pe_b"]
    x = _ln_ref(x, params["pe_ln_g"], params["pe_ln_b"])
    feats = []
    for i, st in enumerate(params["stages"]):
        if i > 0:
            x = _ln_ref(x, st["ds_ln_g"], st["ds_ln_b"])
            x = jax.lax.conv_general_dilated(x, st["ds_w"], (2, 2), "VALID",
                                             dimension_numbers=dn,
                                             precision=HIGH) + st["ds_b"]
        C = x.shape[-1]
        for lp in st["layers"]:
            inp = x
            dw = lp["dw_w"].reshape(7, 7, 1, C)
            y = jax.lax.conv_general_dilated(x, dw, (1, 1), ((3, 3), (3, 3)),
                                             dimension_numbers=dn,
                                             feature_group_count=C,
                                             precision=HIGH) + lp["dw_b"]
            y = _ln_ref(y, lp["ln_g"], lp["ln_b"])
            y = jnp.dot(y, lp["w1"], precision=HIGH) + lp["b1"]
            y = 0.5 * y * (1.0 + jax.lax.erf(y * _INV_SQRT2))
            y = jnp.dot(y, lp["w2"], precision=HIGH) + lp["b2"]
            x = inp + lp["gamma"] * y
        feats.append(jnp.transpose(x, (0, 3, 1, 2)).astype(jnp.float32))
    return feats


# -------------------------------------- main ------------------------------------

if __name__ == "__main__":
    key = jax.random.PRNGKey(0)
    kp, kx = jax.random.split(key)

    hidden_sizes = (8, 16, 32, 64)
    depths = (1, 1, 1, 1)
    B, Cin, Himg, Wimg = 2, 3, 64, 64          # NCHW pixel_values, as in PyTorch

    raw_params = init_params(kp, hidden_sizes=hidden_sizes, depths=depths,
                             in_ch=Cin, patch_size=4)
    prep = prepare_params(raw_params, (Himg, Wimg), patch_size=4)
    pixel_values = jax.random.normal(kx, (B, Cin, Himg, Wimg), jnp.float32)

    fwd = jax.jit(lambda px: convnext_hf_wrapper_forward(px, prep))
    feats = fwd(pixel_values)
    feats = [jax.block_until_ready(f) for f in feats]

    ref_fn = jax.jit(lambda px: ref_forward(px, raw_params))
    ref_feats = [jax.block_until_ready(f) for f in ref_fn(pixel_values)]

    # same structural assertions as the PyTorch forward (strides 4/8/16/32),
    # plus a numerical check against the pure-JAX reference (bf16 MLP weights
    # and f32-emulated MXU passes give ~1e-3-scale deviations at most).
    assert len(feats) == 4
    for i, (f, r) in enumerate(zip(feats, ref_feats)):
        stride = 4 * (2 ** i)
        assert f.shape == (B, hidden_sizes[i], Himg // stride, Wimg // stride), f.shape
        assert f.dtype == jnp.float32
        assert f.shape[-1] == Wimg / stride
        err = float(jnp.max(jnp.abs(f - r)))
        assert err < 3e-2, f"stage {i}: max abs diff vs reference = {err}"

    print("KERNEL_OK")
</pallas_src>

<mosaic_0001>
module attributes {stable_mosaic.version = 11 : i64} {
  func.func @_stage_down_kernel(%arg0: i32, %arg1: memref<1x16x128xf32, #tpu.memory_space<vmem>>, %arg2: memref<128x128xf32, #tpu.memory_space<vmem>>, %arg3: memref<1x128xf32, #tpu.memory_space<vmem>>, %arg4: memref<1x128xf32, #tpu.memory_space<vmem>>, %arg5: memref<2x128x128xf32, #tpu.memory_space<vmem>>, %arg6: memref<8x32xf32, #tpu.memory_space<vmem>>, %arg7: memref<1x128xf32, #tpu.memory_space<vmem>>, %arg8: memref<128x128xf32, #tpu.memory_space<vmem>>, %arg9: memref<49x128xf32, #tpu.memory_space<vmem>>, %arg10: memref<1x128xf32, #tpu.memory_space<vmem>>, %arg11: memref<1x128xf32, #tpu.memory_space<vmem>>, %arg12: memref<1x128xf32, #tpu.memory_space<vmem>>, %arg13: memref<128x512xbf16, #tpu.memory_space<vmem>>, %arg14: memref<1x512xf32, #tpu.memory_space<vmem>>, %arg15: memref<512x128xbf16, #tpu.memory_space<vmem>>, %arg16: memref<1x128xf32, #tpu.memory_space<vmem>>, %arg17: memref<1x128xf32, #tpu.memory_space<vmem>>, %arg18: memref<1x8x128xf32, #tpu.memory_space<vmem>>) attributes {dimension_semantics = [#tpu.dimension_semantics<parallel>], iteration_bounds = array<i64: 2>, scalar_prefetch = 0 : i64, scratch_operands = 0 : i64, tpu.core_type = #tpu.core_type<tc>, window_params = [{transform_indices = @transform_0, window_bounds = array<i64: 1, 16, 128>}, {pipeline_mode = #tpu.pipeline_mode<synchronous>, transform_indices = @transform_1, window_bounds = array<i64: 128, 128>}, {pipeline_mode = #tpu.pipeline_mode<synchronous>, transform_indices = @transform_2, window_bounds = array<i64: 1, 128>}, {pipeline_mode = #tpu.pipeline_mode<synchronous>, transform_indices = @transform_3, window_bounds = array<i64: 1, 128>}, {pipeline_mode = #tpu.pipeline_mode<synchronous>, transform_indices = @transform_4, window_bounds = array<i64: 2, 128, 128>}, {pipeline_mode = #tpu.pipeline_mode<synchronous>, transform_indices = @transform_5, window_bounds = array<i64: 8, 32>}, {pipeline_mode = #tpu.pipeline_mode<synchronous>, transform_indices = @transform_6, window_bounds = array<i64: 1, 128>}, {pipeline_mode = #tpu.pipeline_mode<synchronous>, transform_indices = @transform_7, window_bounds = array<i64: 128, 128>}, {pipeline_mode = #tpu.pipeline_mode<synchronous>, transform_indices = @transform_8, window_bounds = array<i64: 49, 128>}, {pipeline_mode = #tpu.pipeline_mode<synchronous>, transform_indices = @transform_9, window_bounds = array<i64: 1, 128>}, {pipeline_mode = #tpu.pipeline_mode<synchronous>, transform_indices = @transform_10, window_bounds = array<i64: 1, 128>}, {pipeline_mode = #tpu.pipeline_mode<synchronous>, transform_indices = @transform_11, window_bounds = array<i64: 1, 128>}, {pipeline_mode = #tpu.pipeline_mode<synchronous>, transform_indices = @transform_12, window_bounds = array<i64: 128, 512>}, {pipeline_mode = #tpu.pipeline_mode<synchronous>, transform_indices = @transform_13, window_bounds = array<i64: 1, 512>}, {pipeline_mode = #tpu.pipeline_mode<synchronous>, transform_indices = @transform_14, window_bounds = array<i64: 512, 128>}, {pipeline_mode = #tpu.pipeline_mode<synchronous>, transform_indices = @transform_15, window_bounds = array<i64: 1, 128>}, {pipeline_mode = #tpu.pipeline_mode<synchronous>, transform_indices = @transform_16, window_bounds = array<i64: 1, 128>}, {transform_indices = @transform_17, window_bounds = array<i64: 1, 8, 128>}]} {
    %c0 = arith.constant 0 : index
    %c0_0 = arith.constant 0 : index
    %c0_1 = arith.constant 0 : index
    %0 = vector.load %arg1[%c0, %c0_0, %c0_1] : memref<1x16x128xf32, #tpu.memory_space<vmem>>, vector<1x16x128xf32>
    %1 = vector.shape_cast %0 : vector<1x16x128xf32> to vector<16x128xf32>
    %c0_2 = arith.constant 0 : index
    %c0_3 = arith.constant 0 : index
    %2 = vector.load %arg2[%c0_2, %c0_3] : memref<128x128xf32, #tpu.memory_space<vmem>>, vector<128x128xf32>
    %c0_4 = arith.constant 0 : index
    %c0_5 = arith.constant 0 : index
    %3 = vector.load %arg3[%c0_4, %c0_5] : memref<1x128xf32, #tpu.memory_space<vmem>>, vector<1x128xf32>
    %c0_6 = arith.constant 0 : index
    %c0_7 = arith.constant 0 : index
    %4 = vector.load %arg4[%c0_6, %c0_7] : memref<1x128xf32, #tpu.memory_space<vmem>>, vector<1x128xf32>
    %cst = arith.constant dense<0.000000e+00> : vector<16x128xf32>
    %5 = tpu.matmul %1, %2, %cst {dimension_numbers = #tpu.dot_dimension_numbers<[1], [0], [0], [1], [0, 0, 1, 1], [], []>} : vector<16x128xf32>, vector<128x128xf32>, vector<16x128xf32> -> vector<16x128xf32>
    %6 = arith.subf %1, %5 : vector<16x128xf32>
    %7 = arith.mulf %6, %6 : vector<16x128xf32>
    %cst_8 = arith.constant dense<0.000000e+00> : vector<16x128xf32>
    %8 = tpu.matmul %7, %2, %cst_8 {dimension_numbers = #tpu.dot_dimension_numbers<[1], [0], [0], [1], [0, 0, 1, 1], [], []>} : vector<16x128xf32>, vector<128x128xf32>, vector<16x128xf32> -> vector<16x128xf32>
    %cst_9 = arith.constant 9.99999997E-7 : f32
    %9 = vector.broadcast %cst_9 : f32 to vector<16x128xf32>
    %10 = arith.addf %8, %9 : vector<16x128xf32>
    %11 = math.rsqrt %10 : vector<16x128xf32>
    %12 = arith.mulf %6, %11 : vector<16x128xf32>
    %13 = vector.broadcast %3 : vector<1x128xf32> to vector<16x128xf32>
    %14 = arith.mulf %12, %13 : vector<16x128xf32>
    %15 = vector.broadcast %4 : vector<1x128xf32> to vector<16x128xf32>
    %16 = arith.addf %14, %15 : vector<16x128xf32>
    %c0_10 = arith.constant 0 : index
    %c0_11 = arith.constant 0 : index
    %c0_12 = arith.constant 0 : index
    %17 = vector.load %arg5[%c0_10, %c0_11, %c0_12] : memref<2x128x128xf32, #tpu.memory_space<vmem>>, vector<1x128x128xf32>
    %18 = vector.shape_cast %17 : vector<1x128x128xf32> to vector<128x128xf32>
    %cst_13 = arith.constant dense<0.000000e+00> : vector<16x128xf32>
    %19 = tpu.matmul %16, %18, %cst_13 {dimension_numbers = #tpu.dot_dimension_numbers<[1], [0], [0], [1], [0, 0, 1, 1], [], []>} : vector<16x128xf32>, vector<128x128xf32>, vector<16x128xf32> -> vector<16x128xf32>
    %c1 = arith.constant 1 : index
    %c0_14 = arith.constant 0 : index
    %c0_15 = arith.constant 0 : index
    %20 = vector.load %arg5[%c1, %c0_14, %c0_15] : memref<2x128x128xf32, #tpu.memory_space<vmem>>, vector<1x128x128xf32>
    %21 = vector.shape_cast %20 : vector<1x128x128xf32> to vector<128x128xf32>
    %cst_16 = arith.constant dense<0.000000e+00> : vector<16x128xf32>
    %22 = tpu.matmul %16, %21, %cst_16 {dimension_numbers = #tpu.dot_dimension_numbers<[1], [0], [0], [1], [0, 0, 1, 1], [], []>} : vector<16x128xf32>, vector<128x128xf32>, vector<16x128xf32> -> vector<16x128xf32>
    %23 = tpu.concatenate %19, %22 in 0 : vector<16x128xf32>, vector<16x128xf32> -> vector<32x128xf32>
    %c0_17 = arith.constant 0 : index
    %c0_18 = arith.constant 0 : index
    %24 = vector.load %arg6[%c0_17, %c0_18] : memref<8x32xf32, #tpu.memory_space<vmem>>, vector<8x32xf32>
    %cst_19 = arith.constant dense<0.000000e+00> : vector<8x128xf32>
    %25 = tpu.matmul %24, %23, %cst_19 {dimension_numbers = #tpu.dot_dimension_numbers<[1], [0], [0], [1], [0, 0, 1, 1], [], []>} : vector<8x32xf32>, vector<32x128xf32>, vector<8x128xf32> -> vector<8x128xf32>
    %c0_20 = arith.constant 0 : index
    %c0_21 = arith.constant 0 : index
    %26 = vector.load %arg7[%c0_20, %c0_21] : memref<1x128xf32, #tpu.memory_space<vmem>>, vector<1x128xf32>
    %27 = vector.broadcast %26 : vector<1x128xf32> to vector<8x128xf32>
    %28 = arith.addf %25, %27 : vector<8x128xf32>
    %c0_22 = arith.constant 0 : index
    %c0_23 = arith.constant 0 : index
    %29 = vector.load %arg8[%c0_22, %c0_23] : memref<128x128xf32, #tpu.memory_space<vmem>>, vector<128x128xf32>
    %cst_24 = arith.constant 0.000000e+00 : f32
    %30 = vector.broadcast %cst_24 : f32 to vector<3x128xf32>
    %31 = tpu.concatenate %30, %28, %30 in 0 : vector<3x128xf32>, vector<8x128xf32>, vector<3x128xf32> -> vector<14x128xf32>
    %c0_25 = arith.constant 0 : index
    %c0_26 = arith.constant 0 : index
    %32 = vector.load %arg9[%c0_25, %c0_26] : memref<49x128xf32, #tpu.memory_space<vmem>>, vector<49x128xf32>
    %cst_27 = arith.constant 0.000000e+00 : f32
    %33 = vector.broadcast %cst_27 : f32 to vector<8x128xf32>
    %c48_i32 = arith.constant 48 : i32
    %34 = tpu.dynamic_rotate %31 by %c48_i32 dim 1 : vector<14x128xf32>, i32 -> vector<14x128xf32>
    %35 = vector.extract_strided_slice %34 {offsets = [0, 0], sizes = [8, 128], strides = [1, 1]} : vector<14x128xf32> to vector<8x128xf32>
    %36 = vector.extract_strided_slice %32 {offsets = [0, 0], sizes = [1, 128], strides = [1, 1]} : vector<49x128xf32> to vector<1x128xf32>
    %37 = vector.broadcast %36 : vector<1x128xf32> to vector<8x128xf32>
    %38 = arith.mulf %35, %37 : vector<8x128xf32>
    %39 = arith.addf %33, %38 : vector<8x128xf32>
    %40 = vector.extract_strided_slice %34 {offsets = [1, 0], sizes = [8, 128], strides = [1, 1]} : vector<14x128xf32> to vector<8x128xf32>
    %41 = vector.extract_strided_slice %32 {offsets = [7, 0], sizes = [1, 128], strides = [1, 1]} : vector<49x128xf32> to vector<1x128xf32>
    %42 = vector.broadcast %41 : vector<1x128xf32> to vector<8x128xf32>
    %43 = arith.mulf %40, %42 : vector<8x128xf32>
    %44 = arith.addf %39, %43 : vector<8x128xf32>
    %45 = vector.extract_strided_slice %34 {offsets = [2, 0], sizes = [8, 128], strides = [1, 1]} : vector<14x128xf32> to vector<8x128xf32>
    %46 = vector.extract_strided_slice %32 {offsets = [14, 0], sizes = [1, 128], strides = [1, 1]} : vector<49x128xf32> to vector<1x128xf32>
    %47 = vector.broadcast %46 : vector<1x128xf32> to vector<8x128xf32>
    %48 = arith.mulf %45, %47 : vector<8x128xf32>
    %49 = arith.addf %44, %48 : vector<8x128xf32>
    %50 = vector.extract_strided_slice %34 {offsets = [3, 0], sizes = [8, 128], strides = [1, 1]} : vector<14x128xf32> to vector<8x128xf32>
    %51 = vector.extract_strided_slice %32 {offsets = [21, 0], sizes = [1, 128], strides = [1, 1]} : vector<49x128xf32> to vector<1x128xf32>
    %52 = vector.broadcast %51 : vector<1x128xf32> to vector<8x128xf32>
    %53 = arith.mulf %50, %52 : vector<8x128xf32>
    %54 = arith.addf %49, %53 : vector<8x128xf32>
    %55 = vector.extract_strided_slice %34 {offsets = [4, 0], sizes = [8, 128], strides = [1, 1]} : vector<14x128xf32> to vector<8x128xf32>
    %56 = vector.extract_strided_slice %32 {offsets = [28, 0], sizes = [1, 128], strides = [1, 1]} : vector<49x128xf32> to vector<1x128xf32>
    %57 = vector.broadcast %56 : vector<1x128xf32> to vector<8x128xf32>
    %58 = arith.mulf %55, %57 : vector<8x128xf32>
    %59 = arith.addf %54, %58 : vector<8x128xf32>
    %60 = vector.extract_strided_slice %34 {offsets = [5, 0], sizes = [8, 128], strides = [1, 1]} : vector<14x128xf32> to vector<8x128xf32>
    %61 = vector.extract_strided_slice %32 {offsets = [35, 0], sizes = [1, 128], strides = [1, 1]} : vector<49x128xf32> to vector<1x128xf32>
    %62 = vector.broadcast %61 : vector<1x128xf32> to vector<8x128xf32>
    %63 = arith.mulf %60, %62 : vector<8x128xf32>
    %64 = arith.addf %59, %63 : vector<8x128xf32>
    %65 = vector.extract_strided_slice %34 {offsets = [6, 0], sizes = [8, 128], strides = [1, 1]} : vector<14x128xf32> to vector<8x128xf32>
    %66 = vector.extract_strided_slice %32 {offsets = [42, 0], sizes = [1, 128], strides = [1, 1]} : vector<49x128xf32> to vector<1x128xf32>
    %67 = vector.broadcast %66 : vector<1x128xf32> to vector<8x128xf32>
    %68 = arith.mulf %65, %67 : vector<8x128xf32>
    %69 = arith.addf %64, %68 : vector<8x128xf32>
    %c32_i32 = arith.constant 32 : i32
    %70 = tpu.dynamic_rotate %31 by %c32_i32 dim 1 : vector<14x128xf32>, i32 -> vector<14x128xf32>
    %71 = vector.extract_strided_slice %70 {offsets = [0, 0], sizes = [8, 128], strides = [1, 1]} : vector<14x128xf32> to vector<8x128xf32>
    %72 = vector.extract_strided_slice %32 {offsets = [1, 0], sizes = [1, 128], strides = [1, 1]} : vector<49x128xf32> to vector<1x128xf32>
    %73 = vector.broadcast %72 : vector<1x128xf32> to vector<8x128xf32>
    %74 = arith.mulf %71, %73 : vector<8x128xf32>
    %75 = arith.addf %69, %74 : vector<8x128xf32>
    %76 = vector.extract_strided_slice %70 {offsets = [1, 0], sizes = [8, 128], strides = [1, 1]} : vector<14x128xf32> to vector<8x128xf32>
    %77 = vector.extract_strided_slice %32 {offsets = [8, 0], sizes = [1, 128], strides = [1, 1]} : vector<49x128xf32> to vector<1x128xf32>
    %78 = vector.broadcast %77 : vector<1x128xf32> to vector<8x128xf32>
    %79 = arith.mulf %76, %78 : vector<8x128xf32>
    %80 = arith.addf %75, %79 : vector<8x128xf32>
    %81 = vector.extract_strided_slice %70 {offsets = [2, 0], sizes = [8, 128], strides = [1, 1]} : vector<14x128xf32> to vector<8x128xf32>
    %82 = vector.extract_strided_slice %32 {offsets = [15, 0], sizes = [1, 128], strides = [1, 1]} : vector<49x128xf32> to vector<1x128xf32>
    %83 = vector.broadcast %82 : vector<1x128xf32> to vector<8x128xf32>
    %84 = arith.mulf %81, %83 : vector<8x128xf32>
    %85 = arith.addf %80, %84 : vector<8x128xf32>
    %86 = vector.extract_strided_slice %70 {offsets = [3, 0], sizes = [8, 128], strides = [1, 1]} : vector<14x128xf32> to vector<8x128xf32>
    %87 = vector.extract_strided_slice %32 {offsets = [22, 0], sizes = [1, 128], strides = [1, 1]} : vector<49x128xf32> to vector<1x128xf32>
    %88 = vector.broadcast %87 : vector<1x128xf32> to vector<8x128xf32>
    %89 = arith.mulf %86, %88 : vector<8x128xf32>
    %90 = arith.addf %85, %89 : vector<8x128xf32>
    %91 = vector.extract_strided_slice %70 {offsets = [4, 0], sizes = [8, 128], strides = [1, 1]} : vector<14x128xf32> to vector<8x128xf32>
    %92 = vector.extract_strided_slice %32 {offsets = [29, 0], sizes = [1, 128], strides = [1, 1]} : vector<49x128xf32> to vector<1x128xf32>
    %93 = vector.broadcast %92 : vector<1x128xf32> to vector<8x128xf32>
    %94 = arith.mulf %91, %93 : vector<8x128xf32>
    %95 = arith.addf %90, %94 : vector<8x128xf32>
    %96 = vector.extract_strided_slice %70 {offsets = [5, 0], sizes = [8, 128], strides = [1, 1]} : vector<14x128xf32> to vector<8x128xf32>
    %97 = vector.extract_strided_slice %32 {offsets = [36, 0], sizes = [1, 128], strides = [1, 1]} : vector<49x128xf32> to vector<1x128xf32>
    %98 = vector.broadcast %97 : vector<1x128xf32> to vector<8x128xf32>
    %99 = arith.mulf %96, %98 : vector<8x128xf32>
    %100 = arith.addf %95, %99 : vector<8x128xf32>
    %101 = vector.extract_strided_slice %70 {offsets = [6, 0], sizes = [8, 128], strides = [1, 1]} : vector<14x128xf32> to vector<8x128xf32>
    %102 = vector.extract_strided_slice %32 {offsets = [43, 0], sizes = [1, 128], strides = [1, 1]} : vector<49x128xf32> to vector<1x128xf32>
    %103 = vector.broadcast %102 : vector<1x128xf32> to vector<8x128xf32>
    %104 = arith.mulf %101, %103 : vector<8x128xf32>
    %105 = arith.addf %100, %104 : vector<8x128xf32>
    %c16_i32 = arith.constant 16 : i32
    %106 = tpu.dynamic_rotate %31 by %c16_i32 dim 1 : vector<14x128xf32>, i32 -> vector<14x128xf32>
    %107 = vector.extract_strided_slice %106 {offsets = [0, 0], sizes = [8, 128], strides = [1, 1]} : vector<14x128xf32> to vector<8x128xf32>
    %108 = vector.extract_strided_slice %32 {offsets = [2, 0], sizes = [1, 128], strides = [1, 1]} : vector<49x128xf32> to vector<1x128xf32>
    %109 = vector.broadcast %108 : vector<1x128xf32> to vector<8x128xf32>
    %110 = arith.mulf %107, %109 : vector<8x128xf32>
    %111 = arith.addf %105, %110 : vector<8x128xf32>
    %112 = vector.extract_strided_slice %106 {offsets = [1, 0], sizes = [8, 128], strides = [1, 1]} : vector<14x128xf32> to vector<8x128xf32>
    %113 = vector.extract_strided_slice %32 {offsets = [9, 0], sizes = [1, 128], strides = [1, 1]} : vector<49x128xf32> to vector<1x128xf32>
    %114 = vector.broadcast %113 : vector<1x128xf32> to vector<8x128xf32>
    %115 = arith.mulf %112, %114 : vector<8x128xf32>
    %116 = arith.addf %111, %115 : vector<8x128xf32>
    %117 = vector.extract_strided_slice %106 {offsets = [2, 0], sizes = [8, 128], strides = [1, 1]} : vector<14x128xf32> to vector<8x128xf32>
    %118 = vector.extract_strided_slice %32 {offsets = [16, 0], sizes = [1, 128], strides = [1, 1]} : vector<49x128xf32> to vector<1x128xf32>
    %119 = vector.broadcast %118 : vector<1x128xf32> to vector<8x128xf32>
    %120 = arith.mulf %117, %119 : vector<8x128xf32>
    %121 = arith.addf %116, %120 : vector<8x128xf32>
    %122 = vector.extract_strided_slice %106 {offsets = [3, 0], sizes = [8, 128], strides = [1, 1]} : vector<14x128xf32> to vector<8x128xf32>
    %123 = vector.extract_strided_slice %32 {offsets = [23, 0], sizes = [1, 128], strides = [1, 1]} : vector<49x128xf32> to vector<1x128xf32>
    %124 = vector.broadcast %123 : vector<1x128xf32> to vector<8x128xf32>
    %125 = arith.mulf %122, %124 : vector<8x128xf32>
    %126 = arith.addf %121, %125 : vector<8x128xf32>
    %127 = vector.extract_strided_slice %106 {offsets = [4, 0], sizes = [8, 128], strides = [1, 1]} : vector<14x128xf32> to vector<8x128xf32>
    %128 = vector.extract_strided_slice %32 {offsets = [30, 0], sizes = [1, 128], strides = [1, 1]} : vector<49x128xf32> to vector<1x128xf32>
    %129 = vector.broadcast %128 : vector<1x128xf32> to vector<8x128xf32>
    %130 = arith.mulf %127, %129 : vector<8x128xf32>
    %131 = arith.addf %126, %130 : vector<8x128xf32>
    %132 = vector.extract_strided_slice %106 {offsets = [5, 0], sizes = [8, 128], strides = [1, 1]} : vector<14x128xf32> to vector<8x128xf32>
    %133 = vector.extract_strided_slice %32 {offsets = [37, 0], sizes = [1, 128], strides = [1, 1]} : vector<49x128xf32> to vector<1x128xf32>
    %134 = vector.broadcast %133 : vector<1x128xf32> to vector<8x128xf32>
    %135 = arith.mulf %132, %134 : vector<8x128xf32>
    %136 = arith.addf %131, %135 : vector<8x128xf32>
    %137 = vector.extract_strided_slice %106 {offsets = [6, 0], sizes = [8, 128], strides = [1, 1]} : vector<14x128xf32> to vector<8x128xf32>
    %138 = vector.extract_strided_slice %32 {offsets = [44, 0], sizes = [1, 128], strides = [1, 1]} : vector<49x128xf32> to vector<1x128xf32>
    %139 = vector.broadcast %138 : vector<1x128xf32> to vector<8x128xf32>
    %140 = arith.mulf %137, %139 : vector<8x128xf32>
    %141 = arith.addf %136, %140 : vector<8x128xf32>
    %142 = vector.extract_strided_slice %31 {offsets = [0, 0], sizes = [8, 128], strides = [1, 1]} : vector<14x128xf32> to vector<8x128xf32>
    %143 = vector.extract_strided_slice %32 {offsets = [3, 0], sizes = [1, 128], strides = [1, 1]} : vector<49x128xf32> to vector<1x128xf32>
    %144 = vector.broadcast %143 : vector<1x128xf32> to vector<8x128xf32>
    %145 = arith.mulf %142, %144 : vector<8x128xf32>
    %146 = arith.addf %141, %145 : vector<8x128xf32>
    %147 = vector.extract_strided_slice %31 {offsets = [1, 0], sizes = [8, 128], strides = [1, 1]} : vector<14x128xf32> to vector<8x128xf32>
    %148 = vector.extract_strided_slice %32 {offsets = [10, 0], sizes = [1, 128], strides = [1, 1]} : vector<49x128xf32> to vector<1x128xf32>
    %149 = vector.broadcast %148 : vector<1x128xf32> to vector<8x128xf32>
    %150 = arith.mulf %147, %149 : vector<8x128xf32>
    %151 = arith.addf %146, %150 : vector<8x128xf32>
    %152 = vector.extract_strided_slice %31 {offsets = [2, 0], sizes = [8, 128], strides = [1, 1]} : vector<14x128xf32> to vector<8x128xf32>
    %153 = vector.extract_strided_slice %32 {offsets = [17, 0], sizes = [1, 128], strides = [1, 1]} : vector<49x128xf32> to vector<1x128xf32>
    %154 = vector.broadcast %153 : vector<1x128xf32> to vector<8x128xf32>
    %155 = arith.mulf %152, %154 : vector<8x128xf32>
    %156 = arith.addf %151, %155 : vector<8x128xf32>
    %157 = vector.extract_strided_slice %31 {offsets = [3, 0], sizes = [8, 128], strides = [1, 1]} : vector<14x128xf32> to vector<8x128xf32>
    %158 = vector.extract_strided_slice %32 {offsets = [24, 0], sizes = [1, 128], strides = [1, 1]} : vector<49x128xf32> to vector<1x128xf32>
    %159 = vector.broadcast %158 : vector<1x128xf32> to vector<8x128xf32>
    %160 = arith.mulf %157, %159 : vector<8x128xf32>
    %161 = arith.addf %156, %160 : vector<8x128xf32>
    %162 = vector.extract_strided_slice %31 {offsets = [4, 0], sizes = [8, 128], strides = [1, 1]} : vector<14x128xf32> to vector<8x128xf32>
    %163 = vector.extract_strided_slice %32 {offsets = [31, 0], sizes = [1, 128], strides = [1, 1]} : vector<49x128xf32> to vector<1x128xf32>
    %164 = vector.broadcast %163 : vector<1x128xf32> to vector<8x128xf32>
    %165 = arith.mulf %162, %164 : vector<8x128xf32>
    %166 = arith.addf %161, %165 : vector<8x128xf32>
    %167 = vector.extract_strided_slice %31 {offsets = [5, 0], sizes = [8, 128], strides = [1, 1]} : vector<14x128xf32> to vector<8x128xf32>
    %168 = vector.extract_strided_slice %32 {offsets = [38, 0], sizes = [1, 128], strides = [1, 1]} : vector<49x128xf32> to vector<1x128xf32>
    %169 = vector.broadcast %168 : vector<1x128xf32> to vector<8x128xf32>
    %170 = arith.mulf %167, %169 : vector<8x128xf32>
    %171 = arith.addf %166, %170 : vector<8x128xf32>
    %172 = vector.extract_strided_slice %31 {offsets = [6, 0], sizes = [8, 128], strides = [1, 1]} : vector<14x128xf32> to vector<8x128xf32>
    %173 = vector.extract_strided_slice %32 {offsets = [45, 0], sizes = [1, 128], strides = [1, 1]} : vector<49x128xf32> to vector<1x128xf32>
    %174 = vector.broadcast %173 : vector<1x128xf32> to vector<8x128xf32>
    %175 = arith.mulf %172, %174 : vector<8x128xf32>
    %176 = arith.addf %171, %175 : vector<8x128xf32>
    %c112_i32 = arith.constant 112 : i32
    %177 = tpu.dynamic_rotate %31 by %c112_i32 dim 1 : vector<14x128xf32>, i32 -> vector<14x128xf32>
    %178 = vector.extract_strided_slice %177 {offsets = [0, 0], sizes = [8, 128], strides = [1, 1]} : vector<14x128xf32> to vector<8x128xf32>
    %179 = vector.extract_strided_slice %32 {offsets = [4, 0], sizes = [1, 128], strides = [1, 1]} : vector<49x128xf32> to vector<1x128xf32>
    %180 = vector.broadcast %179 : vector<1x128xf32> to vector<8x128xf32>
    %181 = arith.mulf %178, %180 : vector<8x128xf32>
    %182 = arith.addf %176, %181 : vector<8x128xf32>
    %183 = vector.extract_strided_slice %177 {offsets = [1, 0], sizes = [8, 128], strides = [1, 1]} : vector<14x128xf32> to vector<8x128xf32>
    %184 = vector.extract_strided_slice %32 {offsets = [11, 0], sizes = [1, 128], strides = [1, 1]} : vector<49x128xf32> to vector<1x128xf32>
    %185 = vector.broadcast %184 : vector<1x128xf32> to vector<8x128xf32>
    %186 = arith.mulf %183, %185 : vector<8x128xf32>
    %187 = arith.addf %182, %186 : vector<8x128xf32>
    %188 = vector.extract_strided_slice %177 {offsets = [2, 0], sizes = [8, 128], strides = [1, 1]} : vector<14x128xf32> to vector<8x128xf32>
    %189 = vector.extract_strided_slice %32 {offsets = [18, 0], sizes = [1, 128], strides = [1, 1]} : vector<49x128xf32> to vector<1x128xf32>
    %190 = vector.broadcast %189 : vector<1x128xf32> to vector<8x128xf32>
    %191 = arith.mulf %188, %190 : vector<8x128xf32>
    %192 = arith.addf %187, %191 : vector<8x128xf32>
    %193 = vector.extract_strided_slice %177 {offsets = [3, 0], sizes = [8, 128], strides = [1, 1]} : vector<14x128xf32> to vector<8x128xf32>
    %194 = vector.extract_strided_slice %32 {offsets = [25, 0], sizes = [1, 128], strides = [1, 1]} : vector<49x128xf32> to vector<1x128xf32>
    %195 = vector.broadcast %194 : vector<1x128xf32> to vector<8x128xf32>
    %196 = arith.mulf %193, %195 : vector<8x128xf32>
    %197 = arith.addf %192, %196 : vector<8x128xf32>
    %198 = vector.extract_strided_slice %177 {offsets = [4, 0], sizes = [8, 128], strides = [1, 1]} : vector<14x128xf32> to vector<8x128xf32>
    %199 = vector.extract_strided_slice %32 {offsets = [32, 0], sizes = [1, 128], strides = [1, 1]} : vector<49x128xf32> to vector<1x128xf32>
    %200 = vector.broadcast %199 : vector<1x128xf32> to vector<8x128xf32>
    %201 = arith.mulf %198, %200 : vector<8x128xf32>
    %202 = arith.addf %197, %201 : vector<8x128xf32>
    %203 = vector.extract_strided_slice %177 {offsets = [5, 0], sizes = [8, 128], strides = [1, 1]} : vector<14x128xf32> to vector<8x128xf32>
    %204 = vector.extract_strided_slice %32 {offsets = [39, 0], sizes = [1, 128], strides = [1, 1]} : vector<49x128xf32> to vector<1x128xf32>
    %205 = vector.broadcast %204 : vector<1x128xf32> to vector<8x128xf32>
    %206 = arith.mulf %203, %205 : vector<8x128xf32>
    %207 = arith.addf %202, %206 : vector<8x128xf32>
    %208 = vector.extract_strided_slice %177 {offsets = [6, 0], sizes = [8, 128], strides = [1, 1]} : vector<14x128xf32> to vector<8x128xf32>
    %209 = vector.extract_strided_slice %32 {offsets = [46, 0], sizes = [1, 128], strides = [1, 1]} : vector<49x128xf32> to vector<1x128xf32>
    %210 = vector.broadcast %209 : vector<1x128xf32> to vector<8x128xf32>
    %211 = arith.mulf %208, %210 : vector<8x128xf32>
    %212 = arith.addf %207, %211 : vector<8x128xf32>
    %c96_i32 = arith.constant 96 : i32
    %213 = tpu.dynamic_rotate %31 by %c96_i32 dim 1 : vector<14x128xf32>, i32 -> vector<14x128xf32>
    %214 = vector.extract_strided_slice %213 {offsets = [0, 0], sizes = [8, 128], strides = [1, 1]} : vector<14x128xf32> to vector<8x128xf32>
    %215 = vector.extract_strided_slice %32 {offsets = [5, 0], sizes = [1, 128], strides = [1, 1]} : vector<49x128xf32> to vector<1x128xf32>
    %216 = vector.broadcast %215 : vector<1x128xf32> to vector<8x128xf32>
    %217 = arith.mulf %214, %216 : vector<8x128xf32>
    %218 = arith.addf %212, %217 : vector<8x128xf32>
    %219 = vector.extract_strided_slice %213 {offsets = [1, 0], sizes = [8, 128], strides = [1, 1]} : vector<14x128xf32> to vector<8x128xf32>
    %220 = vector.extract_strided_slice %32 {offsets = [12, 0], sizes = [1, 128], strides = [1, 1]} : vector<49x128xf32> to vector<1x128xf32>
    %221 = vector.broadcast %220 : vector<1x128xf32> to vector<8x128xf32>
    %222 = arith.mulf %219, %221 : vector<8x128xf32>
    %223 = arith.addf %218, %222 : vector<8x128xf32>
    %224 = vector.extract_strided_slice %213 {offsets = [2, 0], sizes = [8, 128], strides = [1, 1]} : vector<14x128xf32> to vector<8x128xf32>
    %225 = vector.extract_strided_slice %32 {offsets = [19, 0], sizes = [1, 128], strides = [1, 1]} : vector<49x128xf32> to vector<1x128xf32>
    %226 = vector.broadcast %225 : vector<1x128xf32> to vector<8x128xf32>
    %227 = arith.mulf %224, %226 : vector<8x128xf32>
    %228 = arith.addf %223, %227 : vector<8x128xf32>
    %229 = vector.extract_strided_slice %213 {offsets = [3, 0], sizes = [8, 128], strides = [1, 1]} : vector<14x128xf32> to vector<8x128xf32>
    %230 = vector.extract_strided_slice %32 {offsets = [26, 0], sizes = [1, 128], strides = [1, 1]} : vector<49x128xf32> to vector<1x128xf32>
    %231 = vector.broadcast %230 : vector<1x128xf32> to vector<8x128xf32>
    %232 = arith.mulf %229, %231 : vector<8x128xf32>
    %233 = arith.addf %228, %232 : vector<8x128xf32>
    %234 = vector.extract_strided_slice %213 {offsets = [4, 0], sizes = [8, 128], strides = [1, 1]} : vector<14x128xf32> to vector<8x128xf32>
    %235 = vector.extract_strided_slice %32 {offsets = [33, 0], sizes = [1, 128], strides = [1, 1]} : vector<49x128xf32> to vector<1x128xf32>
    %236 = vector.broadcast %235 : vector<1x128xf32> to vector<8x128xf32>
    %237 = arith.mulf %234, %236 : vector<8x128xf32>
    %238 = arith.addf %233, %237 : vector<8x128xf32>
    %239 = vector.extract_strided_slice %213 {offsets = [5, 0], sizes = [8, 128], strides = [1, 1]} : vector<14x128xf32> to vector<8x128xf32>
    %240 = vector.extract_strided_slice %32 {offsets = [40, 0], sizes = [1, 128], strides = [1, 1]} : vector<49x128xf32> to vector<1x128xf32>
    %241 = vector.broadcast %240 : vector<1x128xf32> to vector<8x128xf32>
    %242 = arith.mulf %239, %241 : vector<8x128xf32>
    %243 = arith.addf %238, %242 : vector<8x128xf32>
    %244 = vector.extract_strided_slice %213 {offsets = [6, 0], sizes = [8, 128], strides = [1, 1]} : vector<14x128xf32> to vector<8x128xf32>
    %245 = vector.extract_strided_slice %32 {offsets = [47, 0], sizes = [1, 128], strides = [1, 1]} : vector<49x128xf32> to vector<1x128xf32>
    %246 = vector.broadcast %245 : vector<1x128xf32> to vector<8x128xf32>
    %247 = arith.mulf %244, %246 : vector<8x128xf32>
    %248 = arith.addf %243, %247 : vector<8x128xf32>
    %c80_i32 = arith.constant 80 : i32
    %249 = tpu.dynamic_rotate %31 by %c80_i32 dim 1 : vector<14x128xf32>, i32 -> vector<14x128xf32>
    %250 = vector.extract_strided_slice %249 {offsets = [0, 0], sizes = [8, 128], strides = [1, 1]} : vector<14x128xf32> to vector<8x128xf32>
    %251 = vector.extract_strided_slice %32 {offsets = [6, 0], sizes = [1, 128], strides = [1, 1]} : vector<49x128xf32> to vector<1x128xf32>
    %252 = vector.broadcast %251 : vector<1x128xf32> to vector<8x128xf32>
    %253 = arith.mulf %250, %252 : vector<8x128xf32>
    %254 = arith.addf %248, %253 : vector<8x128xf32>
    %255 = vector.extract_strided_slice %249 {offsets = [1, 0], sizes = [8, 128], strides = [1, 1]} : vector<14x128xf32> to vector<8x128xf32>
    %256 = vector.extract_strided_slice %32 {offsets = [13, 0], sizes = [1, 128], strides = [1, 1]} : vector<49x128xf32> to vector<1x128xf32>
    %257 = vector.broadcast %256 : vector<1x128xf32> to vector<8x128xf32>
    %258 = arith.mulf %255, %257 : vector<8x128xf32>
    %259 = arith.addf %254, %258 : vector<8x128xf32>
    %260 = vector.extract_strided_slice %249 {offsets = [2, 0], sizes = [8, 128], strides = [1, 1]} : vector<14x128xf32> to vector<8x128xf32>
    %261 = vector.extract_strided_slice %32 {offsets = [20, 0], sizes = [1, 128], strides = [1, 1]} : vector<49x128xf32> to vector<1x128xf32>
    %262 = vector.broadcast %261 : vector<1x128xf32> to vector<8x128xf32>
    %263 = arith.mulf %260, %262 : vector<8x128xf32>
    %264 = arith.addf %259, %263 : vector<8x128xf32>
    %265 = vector.extract_strided_slice %249 {offsets = [3, 0], sizes = [8, 128], strides = [1, 1]} : vector<14x128xf32> to vector<8x128xf32>
    %266 = vector.extract_strided_slice %32 {offsets = [27, 0], sizes = [1, 128], strides = [1, 1]} : vector<49x128xf32> to vector<1x128xf32>
    %267 = vector.broadcast %266 : vector<1x128xf32> to vector<8x128xf32>
    %268 = arith.mulf %265, %267 : vector<8x128xf32>
    %269 = arith.addf %264, %268 : vector<8x128xf32>
    %270 = vector.extract_strided_slice %249 {offsets = [4, 0], sizes = [8, 128], strides = [1, 1]} : vector<14x128xf32> to vector<8x128xf32>
    %271 = vector.extract_strided_slice %32 {offsets = [34, 0], sizes = [1, 128], strides = [1, 1]} : vector<49x128xf32> to vector<1x128xf32>
    %272 = vector.broadcast %271 : vector<1x128xf32> to vector<8x128xf32>
    %273 = arith.mulf %270, %272 : vector<8x128xf32>
    %274 = arith.addf %269, %273 : vector<8x128xf32>
    %275 = vector.extract_strided_slice %249 {offsets = [5, 0], sizes = [8, 128], strides = [1, 1]} : vector<14x128xf32> to vector<8x128xf32>
    %276 = vector.extract_strided_slice %32 {offsets = [41, 0], sizes = [1, 128], strides = [1, 1]} : vector<49x128xf32> to vector<1x128xf32>
    %277 = vector.broadcast %276 : vector<1x128xf32> to vector<8x128xf32>
    %278 = arith.mulf %275, %277 : vector<8x128xf32>
    %279 = arith.addf %274, %278 : vector<8x128xf32>
    %280 = vector.extract_strided_slice %249 {offsets = [6, 0], sizes = [8, 128], strides = [1, 1]} : vector<14x128xf32> to vector<8x128xf32>
    %281 = vector.extract_strided_slice %32 {offsets = [48, 0], sizes = [1, 128], strides = [1, 1]} : vector<49x128xf32> to vector<1x128xf32>
    %282 = vector.broadcast %281 : vector<1x128xf32> to vector<8x128xf32>
    %283 = arith.mulf %280, %282 : vector<8x128xf32>
    %284 = arith.addf %279, %283 : vector<8x128xf32>
    %c0_28 = arith.constant 0 : index
    %c0_29 = arith.constant 0 : index
    %285 = vector.load %arg10[%c0_28, %c0_29] : memref<1x128xf32, #tpu.memory_space<vmem>>, vector<1x128xf32>
    %286 = vector.broadcast %285 : vector<1x128xf32> to vector<8x128xf32>
    %287 = arith.addf %284, %286 : vector<8x128xf32>
    %c0_30 = arith.constant 0 : index
    %c0_31 = arith.constant 0 : index
    %288 = vector.load %arg11[%c0_30, %c0_31] : memref<1x128xf32, #tpu.memory_space<vmem>>, vector<1x128xf32>
    %c0_32 = arith.constant 0 : index
    %c0_33 = arith.constant 0 : index
    %289 = vector.load %arg12[%c0_32, %c0_33] : memref<1x128xf32, #tpu.memory_space<vmem>>, vector<1x128xf32>
    %cst_34 = arith.constant dense<0.000000e+00> : vector<8x128xf32>
    %290 = tpu.matmul %287, %29, %cst_34 {dimension_numbers = #tpu.dot_dimension_numbers<[1], [0], [0], [1], [0, 0, 1, 1], [], []>} : vector<8x128xf32>, vector<128x128xf32>, vector<8x128xf32> -> vector<8x128xf32>
    %291 = arith.subf %287, %290 : vector<8x128xf32>
    %292 = arith.mulf %291, %291 : vector<8x128xf32>
    %cst_35 = arith.constant dense<0.000000e+00> : vector<8x128xf32>
    %293 = tpu.matmul %292, %29, %cst_35 {dimension_numbers = #tpu.dot_dimension_numbers<[1], [0], [0], [1], [0, 0, 1, 1], [], []>} : vector<8x128xf32>, vector<128x128xf32>, vector<8x128xf32> -> vector<8x128xf32>
    %cst_36 = arith.constant 9.99999997E-7 : f32
    %294 = vector.broadcast %cst_36 : f32 to vector<8x128xf32>
    %295 = arith.addf %293, %294 : vector<8x128xf32>
    %296 = math.rsqrt %295 : vector<8x128xf32>
    %297 = arith.mulf %291, %296 : vector<8x128xf32>
    %298 = vector.broadcast %288 : vector<1x128xf32> to vector<8x128xf32>
    %299 = arith.mulf %297, %298 : vector<8x128xf32>
    %300 = vector.broadcast %289 : vector<1x128xf32> to vector<8x128xf32>
    %301 = arith.addf %299, %300 : vector<8x128xf32>
    %302 = arith.truncf %301 : vector<8x128xf32> to vector<8x128xbf16>
    %c0_37 = arith.constant 0 : index
    %c0_38 = arith.constant 0 : index
    %303 = vector.load %arg13[%c0_37, %c0_38] : memref<128x512xbf16, #tpu.memory_space<vmem>>, vector<128x512xbf16>
    %cst_39 = arith.constant dense<0.000000e+00> : vector<8x512xf32>
    %304 = tpu.matmul %302, %303, %cst_39 {dimension_numbers = #tpu.dot_dimension_numbers<[1], [0], [0], [1], [0, 0, 1, 1], [], []>} : vector<8x128xbf16>, vector<128x512xbf16>, vector<8x512xf32> -> vector<8x512xf32>
    %c0_40 = arith.constant 0 : index
    %c0_41 = arith.constant 0 : index
    %305 = vector.load %arg14[%c0_40, %c0_41] : memref<1x512xf32, #tpu.memory_space<vmem>>, vector<1x512xf32>
    %306 = vector.broadcast %305 : vector<1x512xf32> to vector<8x512xf32>
    %307 = arith.addf %304, %306 : vector<8x512xf32>
    %cst_42 = arith.constant 5.000000e-01 : f32
    %308 = vector.broadcast %cst_42 : f32 to vector<8x512xf32>
    %309 = arith.mulf %308, %307 : vector<8x512xf32>
    %cst_43 = arith.constant 0.707106769 : f32
    %310 = vector.broadcast %cst_43 : f32 to vector<8x512xf32>
    %311 = arith.mulf %307, %310 : vector<8x512xf32>
    %312 = math.erf %311 : vector<8x512xf32>
    %cst_44 = arith.constant 1.000000e+00 : f32
    %313 = vector.broadcast %cst_44 : f32 to vector<8x512xf32>
    %314 = arith.addf %313, %312 : vector<8x512xf32>
    %315 = arith.mulf %309, %314 : vector<8x512xf32>
    %316 = arith.truncf %315 : vector<8x512xf32> to vector<8x512xbf16>
    %c0_45 = arith.constant 0 : index
    %c0_46 = arith.constant 0 : index
    %317 = vector.load %arg15[%c0_45, %c0_46] : memref<512x128xbf16, #tpu.memory_space<vmem>>, vector<512x128xbf16>
    %cst_47 = arith.constant dense<0.000000e+00> : vector<8x128xf32>
    %318 = tpu.matmul %316, %317, %cst_47 {dimension_numbers = #tpu.dot_dimension_numbers<[1], [0], [0], [1], [0, 0, 1, 1], [], []>} : vector<8x512xbf16>, vector<512x128xbf16>, vector<8x128xf32> -> vector<8x128xf32>
    %c0_48 = arith.constant 0 : index
    %c0_49 = arith.constant 0 : index
    %319 = vector.load %arg16[%c0_48, %c0_49] : memref<1x128xf32, #tpu.memory_space<vmem>>, vector<1x128xf32>
    %320 = vector.broadcast %319 : vector<1x128xf32> to vector<8x128xf32>
    %321 = arith.addf %318, %320 : vector<8x128xf32>
    %c0_50 = arith.constant 0 : index
    %c0_51 = arith.constant 0 : index
    %322 = vector.load %arg17[%c0_50, %c0_51] : memref<1x128xf32, #tpu.memory_space<vmem>>, vector<1x128xf32>
    %323 = vector.broadcast %322 : vector<1x128xf32> to vector<8x128xf32>
    %324 = arith.mulf %323, %321 : vector<8x128xf32>
    %325 = arith.addf %28, %324 : vector<8x128xf32>
    %c0_52 = arith.constant 0 : index
    %c0_53 = arith.constant 0 : index
    %c0_54 = arith.constant 0 : index
    %326 = vector.load %arg18[%c0_52, %c0_53, %c0_54] : memref<1x8x128xf32, #tpu.memory_space<vmem>>, vector<1x8x128xf32>
    %327 = vector.shape_cast %326 : vector<1x8x128xf32> to vector<8x128xf32>
    %328 = vector.shape_cast %325 : vector<8x128xf32> to vector<1x8x128xf32>
    tpu.vector_store %arg18[%c0_52, %c0_53, %c0_54], %328 {strides = array<i32>} : memref<1x8x128xf32, #tpu.memory_space<vmem>>, vector<1x8x128xf32>,
    return
  }
  func.func @transform_0(%arg0: i32) -> (i32, i32, i32) {
    %c0_i32 = arith.constant 0 : i32
    %c0_i32_0 = arith.constant 0 : i32
    %c0_i32_1 = arith.constant 0 : i32
    return %arg0, %c0_i32, %c0_i32_0 : i32, i32, i32
  }
  func.func @transform_1(%arg0: i32) -> (i32, i32) {
    %c0_i32 = arith.constant 0 : i32
    %c0_i32_0 = arith.constant 0 : i32
    %c0_i32_1 = arith.constant 0 : i32
    return %c0_i32, %c0_i32_0 : i32, i32
  }
  func.func @transform_2(%arg0: i32) -> (i32, i32) {
    %c0_i32 = arith.constant 0 : i32
    %c0_i32_0 = arith.constant 0 : i32
    %c0_i32_1 = arith.constant 0 : i32
    return %c0_i32, %c0_i32_0 : i32, i32
  }
  func.func @transform_3(%arg0: i32) -> (i32, i32) {
    %c0_i32 = arith.constant 0 : i32
    %c0_i32_0 = arith.constant 0 : i32
    %c0_i32_1 = arith.constant 0 : i32
    return %c0_i32, %c0_i32_0 : i32, i32
  }
  func.func @transform_4(%arg0: i32) -> (i32, i32, i32) {
    %c0_i32 = arith.constant 0 : i32
    %c0_i32_0 = arith.constant 0 : i32
    %c0_i32_1 = arith.constant 0 : i32
    %c0_i32_2 = arith.constant 0 : i32
    return %c0_i32, %c0_i32_0, %c0_i32_1 : i32, i32, i32
  }
  func.func @transform_5(%arg0: i32) -> (i32, i32) {
    %c0_i32 = arith.constant 0 : i32
    %c0_i32_0 = arith.constant 0 : i32
    %c0_i32_1 = arith.constant 0 : i32
    return %c0_i32, %c0_i32_0 : i32, i32
  }
  func.func @transform_6(%arg0: i32) -> (i32, i32) {
    %c0_i32 = arith.constant 0 : i32
    %c0_i32_0 = arith.constant 0 : i32
    %c0_i32_1 = arith.constant 0 : i32
    return %c0_i32, %c0_i32_0 : i32, i32
  }
  func.func @transform_7(%arg0: i32) -> (i32, i32) {
    %c0_i32 = arith.constant 0 : i32
    %c0_i32_0 = arith.constant 0 : i32
    %c0_i32_1 = arith.constant 0 : i32
    return %c0_i32, %c0_i32_0 : i32, i32
  }
  func.func @transform_8(%arg0: i32) -> (i32, i32) {
    %c0_i32 = arith.constant 0 : i32
    %c0_i32_0 = arith.constant 0 : i32
    %c0_i32_1 = arith.constant 0 : i32
    return %c0_i32, %c0_i32_0 : i32, i32
  }
  func.func @transform_9(%arg0: i32) -> (i32, i32) {
    %c0_i32 = arith.constant 0 : i32
    %c0_i32_0 = arith.constant 0 : i32
    %c0_i32_1 = arith.constant 0 : i32
    return %c0_i32, %c0_i32_0 : i32, i32
  }
  func.func @transform_10(%arg0: i32) -> (i32, i32) {
    %c0_i32 = arith.constant 0 : i32
    %c0_i32_0 = arith.constant 0 : i32
    %c0_i32_1 = arith.constant 0 : i32
    return %c0_i32, %c0_i32_0 : i32, i32
  }
  func.func @transform_11(%arg0: i32) -> (i32, i32) {
    %c0_i32 = arith.constant 0 : i32
    %c0_i32_0 = arith.constant 0 : i32
    %c0_i32_1 = arith.constant 0 : i32
    return %c0_i32, %c0_i32_0 : i32, i32
  }
  func.func @transform_12(%arg0: i32) -> (i32, i32) {
    %c0_i32 = arith.constant 0 : i32
    %c0_i32_0 = arith.constant 0 : i32
    %c0_i32_1 = arith.constant 0 : i32
    return %c0_i32, %c0_i32_0 : i32, i32
  }
  func.func @transform_13(%arg0: i32) -> (i32, i32) {
    %c0_i32 = arith.constant 0 : i32
    %c0_i32_0 = arith.constant 0 : i32
    %c0_i32_1 = arith.constant 0 : i32
    return %c0_i32, %c0_i32_0 : i32, i32
  }
  func.func @transform_14(%arg0: i32) -> (i32, i32) {
    %c0_i32 = arith.constant 0 : i32
    %c0_i32_0 = arith.constant 0 : i32
    %c0_i32_1 = arith.constant 0 : i32
    return %c0_i32, %c0_i32_0 : i32, i32
  }
  func.func @transform_15(%arg0: i32) -> (i32, i32) {
    %c0_i32 = arith.constant 0 : i32
    %c0_i32_0 = arith.constant 0 : i32
    %c0_i32_1 = arith.constant 0 : i32
    return %c0_i32, %c0_i32_0 : i32, i32
  }
  func.func @transform_16(%arg0: i32) -> (i32, i32) {
    %c0_i32 = arith.constant 0 : i32
    %c0_i32_0 = arith.constant 0 : i32
    %c0_i32_1 = arith.constant 0 : i32
    return %c0_i32, %c0_i32_0 : i32, i32
  }
  func.func @transform_17(%arg0: i32) -> (i32, i32, i32) {
    %c0_i32 = arith.constant 0 : i32
    %c0_i32_0 = arith.constant 0 : i32
    %c0_i32_1 = arith.constant 0 : i32
    return %arg0, %c0_i32, %c0_i32_0 : i32, i32, i32
  }
}

module attributes {stable_mosaic.version = 11 : i64} {
  func.func @_stage_down_kernel(%arg0: i32, %arg1: memref<1x4x128xf32, #tpu.memory_space<vmem>>, %arg2: memref<128x128xf32, #tpu.memory_space<vmem>>, %arg3: memref<1x128xf32, #tpu.memory_space<vmem>>, %arg4: memref<1x128xf32, #tpu.memory_space<vmem>>, %arg5: memref<2x128x128xf32, #tpu.memory_space<vmem>>, %arg6: memref<2x8xf32, #tpu.memory_space<vmem>>, %arg7: memref<1x128xf32, #tpu.memory_space<vmem>>, %arg8: memref<128x128xf32, #tpu.memory_space<vmem>>, %arg9: memref<49x128xf32, #tpu.memory_space<vmem>>, %arg10: memref<1x128xf32, #tpu.memory_space<vmem>>, %arg11: memref<1x128xf32, #tpu.memory_space<vmem>>, %arg12: memref<1x128xf32, #tpu.memory_space<vmem>>, %arg13: memref<128x512xbf16, #tpu.memory_space<vmem>>, %arg14: memref<1x512xf32, #tpu.memory_space<vmem>>, %arg15: memref<512x128xbf16, #tpu.memory_space<vmem>>, %arg16: memref<1x128xf32, #tpu.memory_space<vmem>>, %arg17: memref<1x128xf32, #tpu.memory_space<vmem>>, %arg18: memref<1x2x128xf32, #tpu.memory_space<vmem>>) attributes {dimension_semantics = [#tpu.dimension_semantics<parallel>], iteration_bounds = array<i64: 2>, scalar_prefetch = 0 : i64, scratch_operands = 0 : i64, tpu.core_type = #tpu.core_type<tc>, window_params = [{transform_indices = @transform_0, window_bounds = array<i64: 1, 4, 128>}, {pipeline_mode = #tpu.pipeline_mode<synchronous>, transform_indices = @transform_1, window_bounds = array<i64: 128, 128>}, {pipeline_mode = #tpu.pipeline_mode<synchronous>, transform_indices = @transform_2, window_bounds = array<i64: 1, 128>}, {pipeline_mode = #tpu.pipeline_mode<synchronous>, transform_indices = @transform_3, window_bounds = array<i64: 1, 128>}, {pipeline_mode = #tpu.pipeline_mode<synchronous>, transform_indices = @transform_4, window_bounds = array<i64: 2, 128, 128>}, {pipeline_mode = #tpu.pipeline_mode<synchronous>, transform_indices = @transform_5, window_bounds = array<i64: 2, 8>}, {pipeline_mode = #tpu.pipeline_mode<synchronous>, transform_indices = @transform_6, window_bounds = array<i64: 1, 128>}, {pipeline_mode = #tpu.pipeline_mode<synchronous>, transform_indices = @transform_7, window_bounds = array<i64: 128, 128>}, {pipeline_mode = #tpu.pipeline_mode<synchronous>, transform_indices = @transform_8, window_bounds = array<i64: 49, 128>}, {pipeline_mode = #tpu.pipeline_mode<synchronous>, transform_indices = @transform_9, window_bounds = array<i64: 1, 128>}, {pipeline_mode = #tpu.pipeline_mode<synchronous>, transform_indices = @transform_10, window_bounds = array<i64: 1, 128>}, {pipeline_mode = #tpu.pipeline_mode<synchronous>, transform_indices = @transform_11, window_bounds = array<i64: 1, 128>}, {pipeline_mode = #tpu.pipeline_mode<synchronous>, transform_indices = @transform_12, window_bounds = array<i64: 128, 512>}, {pipeline_mode = #tpu.pipeline_mode<synchronous>, transform_indices = @transform_13, window_bounds = array<i64: 1, 512>}, {pipeline_mode = #tpu.pipeline_mode<synchronous>, transform_indices = @transform_14, window_bounds = array<i64: 512, 128>}, {pipeline_mode = #tpu.pipeline_mode<synchronous>, transform_indices = @transform_15, window_bounds = array<i64: 1, 128>}, {pipeline_mode = #tpu.pipeline_mode<synchronous>, transform_indices = @transform_16, window_bounds = array<i64: 1, 128>}, {transform_indices = @transform_17, window_bounds = array<i64: 1, 2, 128>}]} {
    %c0 = arith.constant 0 : index
    %c0_0 = arith.constant 0 : index
    %c0_1 = arith.constant 0 : index
    %0 = vector.load %arg1[%c0, %c0_0, %c0_1] : memref<1x4x128xf32, #tpu.memory_space<vmem>>, vector<1x4x128xf32>
    %1 = vector.shape_cast %0 : vector<1x4x128xf32> to vector<4x128xf32>
    %c0_2 = arith.constant 0 : index
    %c0_3 = arith.constant 0 : index
    %2 = vector.load %arg2[%c0_2, %c0_3] : memref<128x128xf32, #tpu.memory_space<vmem>>, vector<128x128xf32>
    %c0_4 = arith.constant 0 : index
    %c0_5 = arith.constant 0 : index
    %3 = vector.load %arg3[%c0_4, %c0_5] : memref<1x128xf32, #tpu.memory_space<vmem>>, vector<1x128xf32>
    %c0_6 = arith.constant 0 : index
    %c0_7 = arith.constant 0 : index
    %4 = vector.load %arg4[%c0_6, %c0_7] : memref<1x128xf32, #tpu.memory_space<vmem>>, vector<1x128xf32>
    %cst = arith.constant dense<0.000000e+00> : vector<4x128xf32>
    %5 = tpu.matmul %1, %2, %cst {dimension_numbers = #tpu.dot_dimension_numbers<[1], [0], [0], [1], [0, 0, 1, 1], [], []>} : vector<4x128xf32>, vector<128x128xf32>, vector<4x128xf32> -> vector<4x128xf32>
    %6 = arith.subf %1, %5 : vector<4x128xf32>
    %7 = arith.mulf %6, %6 : vector<4x128xf32>
    %cst_8 = arith.constant dense<0.000000e+00> : vector<4x128xf32>
    %8 = tpu.matmul %7, %2, %cst_8 {dimension_numbers = #tpu.dot_dimension_numbers<[1], [0], [0], [1], [0, 0, 1, 1], [], []>} : vector<4x128xf32>, vector<128x128xf32>, vector<4x128xf32> -> vector<4x128xf32>
    %cst_9 = arith.constant 9.99999997E-7 : f32
    %9 = vector.broadcast %cst_9 : f32 to vector<4x128xf32>
    %10 = arith.addf %8, %9 : vector<4x128xf32>
    %11 = math.rsqrt %10 : vector<4x128xf32>
    %12 = arith.mulf %6, %11 : vector<4x128xf32>
    %13 = vector.broadcast %3 : vector<1x128xf32> to vector<4x128xf32>
    %14 = arith.mulf %12, %13 : vector<4x128xf32>
    %15 = vector.broadcast %4 : vector<1x128xf32> to vector<4x128xf32>
    %16 = arith.addf %14, %15 : vector<4x128xf32>
    %c0_10 = arith.constant 0 : index
    %c0_11 = arith.constant 0 : index
    %c0_12 = arith.constant 0 : index
    %17 = vector.load %arg5[%c0_10, %c0_11, %c0_12] : memref<2x128x128xf32, #tpu.memory_space<vmem>>, vector<1x128x128xf32>
    %18 = vector.shape_cast %17 : vector<1x128x128xf32> to vector<128x128xf32>
    %cst_13 = arith.constant dense<0.000000e+00> : vector<4x128xf32>
    %19 = tpu.matmul %16, %18, %cst_13 {dimension_numbers = #tpu.dot_dimension_numbers<[1], [0], [0], [1], [0, 0, 1, 1], [], []>} : vector<4x128xf32>, vector<128x128xf32>, vector<4x128xf32> -> vector<4x128xf32>
    %c1 = arith.constant 1 : index
    %c0_14 = arith.constant 0 : index
    %c0_15 = arith.constant 0 : index
    %20 = vector.load %arg5[%c1, %c0_14, %c0_15] : memref<2x128x128xf32, #tpu.memory_space<vmem>>, vector<1x128x128xf32>
    %21 = vector.shape_cast %20 : vector<1x128x128xf32> to vector<128x128xf32>
    %cst_16 = arith.constant dense<0.000000e+00> : vector<4x128xf32>
    %22 = tpu.matmul %16, %21, %cst_16 {dimension_numbers = #tpu.dot_dimension_numbers<[1], [0], [0], [1], [0, 0, 1, 1], [], []>} : vector<4x128xf32>, vector<128x128xf32>, vector<4x128xf32> -> vector<4x128xf32>
    %23 = tpu.concatenate %19, %22 in 0 : vector<4x128xf32>, vector<4x128xf32> -> vector<8x128xf32>
    %c0_17 = arith.constant 0 : index
    %c0_18 = arith.constant 0 : index
    %24 = vector.load %arg6[%c0_17, %c0_18] : memref<2x8xf32, #tpu.memory_space<vmem>>, vector<2x8xf32>
    %cst_19 = arith.constant dense<0.000000e+00> : vector<2x128xf32>
    %25 = tpu.matmul %24, %23, %cst_19 {dimension_numbers = #tpu.dot_dimension_numbers<[1], [0], [0], [1], [0, 0, 1, 1], [], []>} : vector<2x8xf32>, vector<8x128xf32>, vector<2x128xf32> -> vector<2x128xf32>
    %c0_20 = arith.constant 0 : index
    %c0_21 = arith.constant 0 : index
    %26 = vector.load %arg7[%c0_20, %c0_21] : memref<1x128xf32, #tpu.memory_space<vmem>>, vector<1x128xf32>
    %27 = vector.broadcast %26 : vector<1x128xf32> to vector<2x128xf32>
    %28 = arith.addf %25, %27 : vector<2x128xf32>
    %c0_22 = arith.constant 0 : index
    %c0_23 = arith.constant 0 : index
    %29 = vector.load %arg8[%c0_22, %c0_23] : memref<128x128xf32, #tpu.memory_space<vmem>>, vector<128x128xf32>
    %cst_24 = arith.constant 0.000000e+00 : f32
    %30 = vector.broadcast %cst_24 : f32 to vector<3x128xf32>
    %31 = tpu.concatenate %30, %28, %30 in 0 : vector<3x128xf32>, vector<2x128xf32>, vector<3x128xf32> -> vector<8x128xf32>
    %c0_25 = arith.constant 0 : index
    %c0_26 = arith.constant 0 : index
    %32 = vector.load %arg9[%c0_25, %c0_26] : memref<49x128xf32, #tpu.memory_space<vmem>>, vector<49x128xf32>
    %cst_27 = arith.constant 0.000000e+00 : f32
    %33 = vector.broadcast %cst_27 : f32 to vector<2x128xf32>
    %c64_i32 = arith.constant 64 : i32
    %34 = tpu.dynamic_rotate %31 by %c64_i32 dim 1 : vector<8x128xf32>, i32 -> vector<8x128xf32>
    %35 = vector.extract_strided_slice %34 {offsets = [0, 0], sizes = [2, 128], strides = [1, 1]} : vector<8x128xf32> to vector<2x128xf32>
    %36 = vector.extract_strided_slice %32 {offsets = [2, 0], sizes = [1, 128], strides = [1, 1]} : vector<49x128xf32> to vector<1x128xf32>
    %37 = vector.broadcast %36 : vector<1x128xf32> to vector<2x128xf32>
    %38 = arith.mulf %35, %37 : vector<2x128xf32>
    %39 = arith.addf %33, %38 : vector<2x128xf32>
    %40 = vector.extract_strided_slice %34 {offsets = [1, 0], sizes = [2, 128], strides = [1, 1]} : vector<8x128xf32> to vector<2x128xf32>
    %41 = vector.extract_strided_slice %32 {offsets = [9, 0], sizes = [1, 128], strides = [1, 1]} : vector<49x128xf32> to vector<1x128xf32>
    %42 = vector.broadcast %41 : vector<1x128xf32> to vector<2x128xf32>
    %43 = arith.mulf %40, %42 : vector<2x128xf32>
    %44 = arith.addf %39, %43 : vector<2x128xf32>
    %45 = vector.extract_strided_slice %34 {offsets = [2, 0], sizes = [2, 128], strides = [1, 1]} : vector<8x128xf32> to vector<2x128xf32>
    %46 = vector.extract_strided_slice %32 {offsets = [16, 0], sizes = [1, 128], strides = [1, 1]} : vector<49x128xf32> to vector<1x128xf32>
    %47 = vector.broadcast %46 : vector<1x128xf32> to vector<2x128xf32>
    %48 = arith.mulf %45, %47 : vector<2x128xf32>
    %49 = arith.addf %44, %48 : vector<2x128xf32>
    %50 = vector.extract_strided_slice %34 {offsets = [3, 0], sizes = [2, 128], strides = [1, 1]} : vector<8x128xf32> to vector<2x128xf32>
    %51 = vector.extract_strided_slice %32 {offsets = [23, 0], sizes = [1, 128], strides = [1, 1]} : vector<49x128xf32> to vector<1x128xf32>
    %52 = vector.broadcast %51 : vector<1x128xf32> to vector<2x128xf32>
    %53 = arith.mulf %50, %52 : vector<2x128xf32>
    %54 = arith.addf %49, %53 : vector<2x128xf32>
    %55 = vector.extract_strided_slice %34 {offsets = [4, 0], sizes = [2, 128], strides = [1, 1]} : vector<8x128xf32> to vector<2x128xf32>
    %56 = vector.extract_strided_slice %32 {offsets = [30, 0], sizes = [1, 128], strides = [1, 1]} : vector<49x128xf32> to vector<1x128xf32>
    %57 = vector.broadcast %56 : vector<1x128xf32> to vector<2x128xf32>
    %58 = arith.mulf %55, %57 : vector<2x128xf32>
    %59 = arith.addf %54, %58 : vector<2x128xf32>
    %60 = vector.extract_strided_slice %34 {offsets = [5, 0], sizes = [2, 128], strides = [1, 1]} : vector<8x128xf32> to vector<2x128xf32>
    %61 = vector.extract_strided_slice %32 {offsets = [37, 0], sizes = [1, 128], strides = [1, 1]} : vector<49x128xf32> to vector<1x128xf32>
    %62 = vector.broadcast %61 : vector<1x128xf32> to vector<2x128xf32>
    %63 = arith.mulf %60, %62 : vector<2x128xf32>
    %64 = arith.addf %59, %63 : vector<2x128xf32>
    %65 = vector.extract_strided_slice %34 {offsets = [6, 0], sizes = [2, 128], strides = [1, 1]} : vector<8x128xf32> to vector<2x128xf32>
    %66 = vector.extract_strided_slice %32 {offsets = [44, 0], sizes = [1, 128], strides = [1, 1]} : vector<49x128xf32> to vector<1x128xf32>
    %67 = vector.broadcast %66 : vector<1x128xf32> to vector<2x128xf32>
    %68 = arith.mulf %65, %67 : vector<2x128xf32>
    %69 = arith.addf %64, %68 : vector<2x128xf32>
    %70 = vector.extract_strided_slice %31 {offsets = [0, 0], sizes = [2, 128], strides = [1, 1]} : vector<8x128xf32> to vector<2x128xf32>
    %71 = vector.extract_strided_slice %32 {offsets = [3, 0], sizes = [1, 128], strides = [1, 1]} : vector<49x128xf32> to vector<1x128xf32>
    %72 = vector.broadcast %71 : vector<1x128xf32> to vector<2x128xf32>
    %73 = arith.mulf %70, %72 : vector<2x128xf32>
    %74 = arith.addf %69, %73 : vector<2x128xf32>
    %75 = vector.extract_strided_slice %31 {offsets = [1, 0], sizes = [2, 128], strides = [1, 1]} : vector<8x128xf32> to vector<2x128xf32>
    %76 = vector.extract_strided_slice %32 {offsets = [10, 0], sizes = [1, 128], strides = [1, 1]} : vector<49x128xf32> to vector<1x128xf32>
    %77 = vector.broadcast %76 : vector<1x128xf32> to vector<2x128xf32>
    %78 = arith.mulf %75, %77 : vector<2x128xf32>
    %79 = arith.addf %74, %78 : vector<2x128xf32>
    %80 = vector.extract_strided_slice %31 {offsets = [2, 0], sizes = [2, 128], strides = [1, 1]} : vector<8x128xf32> to vector<2x128xf32>
    %81 = vector.extract_strided_slice %32 {offsets = [17, 0], sizes = [1, 128], strides = [1, 1]} : vector<49x128xf32> to vector<1x128xf32>
    %82 = vector.broadcast %81 : vector<1x128xf32> to vector<2x128xf32>
    %83 = arith.mulf %80, %82 : vector<2x128xf32>
    %84 = arith.addf %79, %83 : vector<2x128xf32>
    %85 = vector.extract_strided_slice %31 {offsets = [3, 0], sizes = [2, 128], strides = [1, 1]} : vector<8x128xf32> to vector<2x128xf32>
    %86 = vector.extract_strided_slice %32 {offsets = [24, 0], sizes = [1, 128], strides = [1, 1]} : vector<49x128xf32> to vector<1x128xf32>
    %87 = vector.broadcast %86 : vector<1x128xf32> to vector<2x128xf32>
    %88 = arith.mulf %85, %87 : vector<2x128xf32>
    %89 = arith.addf %84, %88 : vector<2x128xf32>
    %90 = vector.extract_strided_slice %31 {offsets = [4, 0], sizes = [2, 128], strides = [1, 1]} : vector<8x128xf32> to vector<2x128xf32>
    %91 = vector.extract_strided_slice %32 {offsets = [31, 0], sizes = [1, 128], strides = [1, 1]} : vector<49x128xf32> to vector<1x128xf32>
    %92 = vector.broadcast %91 : vector<1x128xf32> to vector<2x128xf32>
    %93 = arith.mulf %90, %92 : vector<2x128xf32>
    %94 = arith.addf %89, %93 : vector<2x128xf32>
    %95 = vector.extract_strided_slice %31 {offsets = [5, 0], sizes = [2, 128], strides = [1, 1]} : vector<8x128xf32> to vector<2x128xf32>
    %96 = vector.extract_strided_slice %32 {offsets = [38, 0], sizes = [1, 128], strides = [1, 1]} : vector<49x128xf32> to vector<1x128xf32>
    %97 = vector.broadcast %96 : vector<1x128xf32> to vector<2x128xf32>
    %98 = arith.mulf %95, %97 : vector<2x128xf32>
    %99 = arith.addf %94, %98 : vector<2x128xf32>
    %100 = vector.extract_strided_slice %31 {offsets = [6, 0], sizes = [2, 128], strides = [1, 1]} : vector<8x128xf32> to vector<2x128xf32>
    %101 = vector.extract_strided_slice %32 {offsets = [45, 0], sizes = [1, 128], strides = [1, 1]} : vector<49x128xf32> to vector<1x128xf32>
    %102 = vector.broadcast %101 : vector<1x128xf32> to vector<2x128xf32>
    %103 = arith.mulf %100, %102 : vector<2x128xf32>
    %104 = arith.addf %99, %103 : vector<2x128xf32>
    %c64_i32_28 = arith.constant 64 : i32
    %105 = tpu.dynamic_rotate %31 by %c64_i32_28 dim 1 : vector<8x128xf32>, i32 -> vector<8x128xf32>
    %106 = vector.extract_strided_slice %105 {offsets = [0, 0], sizes = [2, 128], strides = [1, 1]} : vector<8x128xf32> to vector<2x128xf32>
    %107 = vector.extract_strided_slice %32 {offsets = [4, 0], sizes = [1, 128], strides = [1, 1]} : vector<49x128xf32> to vector<1x128xf32>
    %108 = vector.broadcast %107 : vector<1x128xf32> to vector<2x128xf32>
    %109 = arith.mulf %106, %108 : vector<2x128xf32>
    %110 = arith.addf %104, %109 : vector<2x128xf32>
    %111 = vector.extract_strided_slice %105 {offsets = [1, 0], sizes = [2, 128], strides = [1, 1]} : vector<8x128xf32> to vector<2x128xf32>
    %112 = vector.extract_strided_slice %32 {offsets = [11, 0], sizes = [1, 128], strides = [1, 1]} : vector<49x128xf32> to vector<1x128xf32>
    %113 = vector.broadcast %112 : vector<1x128xf32> to vector<2x128xf32>
    %114 = arith.mulf %111, %113 : vector<2x128xf32>
    %115 = arith.addf %110, %114 : vector<2x128xf32>
    %116 = vector.extract_strided_slice %105 {offsets = [2, 0], sizes = [2, 128], strides = [1, 1]} : vector<8x128xf32> to vector<2x128xf32>
    %117 = vector.extract_strided_slice %32 {offsets = [18, 0], sizes = [1, 128], strides = [1, 1]} : vector<49x128xf32> to vector<1x128xf32>
    %118 = vector.broadcast %117 : vector<1x128xf32> to vector<2x128xf32>
    %119 = arith.mulf %116, %118 : vector<2x128xf32>
    %120 = arith.addf %115, %119 : vector<2x128xf32>
    %121 = vector.extract_strided_slice %105 {offsets = [3, 0], sizes = [2, 128], strides = [1, 1]} : vector<8x128xf32> to vector<2x128xf32>
    %122 = vector.extract_strided_slice %32 {offsets = [25, 0], sizes = [1, 128], strides = [1, 1]} : vector<49x128xf32> to vector<1x128xf32>
    %123 = vector.broadcast %122 : vector<1x128xf32> to vector<2x128xf32>
    %124 = arith.mulf %121, %123 : vector<2x128xf32>
    %125 = arith.addf %120, %124 : vector<2x128xf32>
    %126 = vector.extract_strided_slice %105 {offsets = [4, 0], sizes = [2, 128], strides = [1, 1]} : vector<8x128xf32> to vector<2x128xf32>
    %127 = vector.extract_strided_slice %32 {offsets = [32, 0], sizes = [1, 128], strides = [1, 1]} : vector<49x128xf32> to vector<1x128xf32>
    %128 = vector.broadcast %127 : vector<1x128xf32> to vector<2x128xf32>
    %129 = arith.mulf %126, %128 : vector<2x128xf32>
    %130 = arith.addf %125, %129 : vector<2x128xf32>
    %131 = vector.extract_strided_slice %105 {offsets = [5, 0], sizes = [2, 128], strides = [1, 1]} : vector<8x128xf32> to vector<2x128xf32>
    %132 = vector.extract_strided_slice %32 {offsets = [39, 0], sizes = [1, 128], strides = [1, 1]} : vector<49x128xf32> to vector<1x128xf32>
    %133 = vector.broadcast %132 : vector<1x128xf32> to vector<2x128xf32>
    %134 = arith.mulf %131, %133 : vector<2x128xf32>
    %135 = arith.addf %130, %134 : vector<2x128xf32>
    %136 = vector.extract_strided_slice %105 {offsets = [6, 0], sizes = [2, 128], strides = [1, 1]} : vector<8x128xf32> to vector<2x128xf32>
    %137 = vector.extract_strided_slice %32 {offsets = [46, 0], sizes = [1, 128], strides = [1, 1]} : vector<49x128xf32> to vector<1x128xf32>
    %138 = vector.broadcast %137 : vector<1x128xf32> to vector<2x128xf32>
    %139 = arith.mulf %136, %138 : vector<2x128xf32>
    %140 = arith.addf %135, %139 : vector<2x128xf32>
    %c0_29 = arith.constant 0 : index
    %c0_30 = arith.constant 0 : index
    %141 = vector.load %arg10[%c0_29, %c0_30] : memref<1x128xf32, #tpu.memory_space<vmem>>, vector<1x128xf32>
    %142 = vector.broadcast %141 : vector<1x128xf32> to vector<2x128xf32>
    %143 = arith.addf %140, %142 : vector<2x128xf32>
    %c0_31 = arith.constant 0 : index
    %c0_32 = arith.constant 0 : index
    %144 = vector.load %arg11[%c0_31, %c0_32] : memref<1x128xf32, #tpu.memory_space<vmem>>, vector<1x128xf32>
    %c0_33 = arith.constant 0 : index
    %c0_34 = arith.constant 0 : index
    %145 = vector.load %arg12[%c0_33, %c0_34] : memref<1x128xf32, #tpu.memory_space<vmem>>, vector<1x128xf32>
    %cst_35 = arith.constant dense<0.000000e+00> : vector<2x128xf32>
    %146 = tpu.matmul %143, %29, %cst_35 {dimension_numbers = #tpu.dot_dimension_numbers<[1], [0], [0], [1], [0, 0, 1, 1], [], []>} : vector<2x128xf32>, vector<128x128xf32>, vector<2x128xf32> -> vector<2x128xf32>
    %147 = arith.subf %143, %146 : vector<2x128xf32>
    %148 = arith.mulf %147, %147 : vector<2x128xf32>
    %cst_36 = arith.constant dense<0.000000e+00> : vector<2x128xf32>
    %149 = tpu.matmul %148, %29, %cst_36 {dimension_numbers = #tpu.dot_dimension_numbers<[1], [0], [0], [1], [0, 0, 1, 1], [], []>} : vector<2x128xf32>, vector<128x128xf32>, vector<2x128xf32> -> vector<2x128xf32>
    %cst_37 = arith.constant 9.99999997E-7 : f32
    %150 = vector.broadcast %cst_37 : f32 to vector<2x128xf32>
    %151 = arith.addf %149, %150 : vector<2x128xf32>
    %152 = math.rsqrt %151 : vector<2x128xf32>
    %153 = arith.mulf %147, %152 : vector<2x128xf32>
    %154 = vector.broadcast %144 : vector<1x128xf32> to vector<2x128xf32>
    %155 = arith.mulf %153, %154 : vector<2x128xf32>
    %156 = vector.broadcast %145 : vector<1x128xf32> to vector<2x128xf32>
    %157 = arith.addf %155, %156 : vector<2x128xf32>
    %158 = arith.truncf %157 : vector<2x128xf32> to vector<2x128xbf16>
    %c0_38 = arith.constant 0 : index
    %c0_39 = arith.constant 0 : index
    %159 = vector.load %arg13[%c0_38, %c0_39] : memref<128x512xbf16, #tpu.memory_space<vmem>>, vector<128x512xbf16>
    %cst_40 = arith.constant dense<0.000000e+00> : vector<2x512xf32>
    %160 = tpu.matmul %158, %159, %cst_40 {dimension_numbers = #tpu.dot_dimension_numbers<[1], [0], [0], [1], [0, 0, 1, 1], [], []>} : vector<2x128xbf16>, vector<128x512xbf16>, vector<2x512xf32> -> vector<2x512xf32>
    %c0_41 = arith.constant 0 : index
    %c0_42 = arith.constant 0 : index
    %161 = vector.load %arg14[%c0_41, %c0_42] : memref<1x512xf32, #tpu.memory_space<vmem>>, vector<1x512xf32>
    %162 = vector.broadcast %161 : vector<1x512xf32> to vector<2x512xf32>
    %163 = arith.addf %160, %162 : vector<2x512xf32>
    %cst_43 = arith.constant 5.000000e-01 : f32
    %164 = vector.broadcast %cst_43 : f32 to vector<2x512xf32>
    %165 = arith.mulf %164, %163 : vector<2x512xf32>
    %cst_44 = arith.constant 0.707106769 : f32
    %166 = vector.broadcast %cst_44 : f32 to vector<2x512xf32>
    %167 = arith.mulf %163, %166 : vector<2x512xf32>
    %168 = math.erf %167 : vector<2x512xf32>
    %cst_45 = arith.constant 1.000000e+00 : f32
    %169 = vector.broadcast %cst_45 : f32 to vector<2x512xf32>
    %170 = arith.addf %169, %168 : vector<2x512xf32>
    %171 = arith.mulf %165, %170 : vector<2x512xf32>
    %172 = arith.truncf %171 : vector<2x512xf32> to vector<2x512xbf16>
    %c0_46 = arith.constant 0 : index
    %c0_47 = arith.constant 0 : index
    %173 = vector.load %arg15[%c0_46, %c0_47] : memref<512x128xbf16, #tpu.memory_space<vmem>>, vector<512x128xbf16>
    %cst_48 = arith.constant dense<0.000000e+00> : vector<2x128xf32>
    %174 = tpu.matmul %172, %173, %cst_48 {dimension_numbers = #tpu.dot_dimension_numbers<[1], [0], [0], [1], [0, 0, 1, 1], [], []>} : vector<2x512xbf16>, vector<512x128xbf16>, vector<2x128xf32> -> vector<2x128xf32>
    %c0_49 = arith.constant 0 : index
    %c0_50 = arith.constant 0 : index
    %175 = vector.load %arg16[%c0_49, %c0_50] : memref<1x128xf32, #tpu.memory_space<vmem>>, vector<1x128xf32>
    %176 = vector.broadcast %175 : vector<1x128xf32> to vector<2x128xf32>
    %177 = arith.addf %174, %176 : vector<2x128xf32>
    %c0_51 = arith.constant 0 : index
    %c0_52 = arith.constant 0 : index
    %178 = vector.load %arg17[%c0_51, %c0_52] : memref<1x128xf32, #tpu.memory_space<vmem>>, vector<1x128xf32>
    %179 = vector.broadcast %178 : vector<1x128xf32> to vector<2x128xf32>
    %180 = arith.mulf %179, %177 : vector<2x128xf32>
    %181 = arith.addf %28, %180 : vector<2x128xf32>
    %c0_53 = arith.constant 0 : index
    %c0_54 = arith.constant 0 : index
    %c0_55 = arith.constant 0 : index
    %182 = vector.load %arg18[%c0_53, %c0_54, %c0_55] : memref<1x2x128xf32, #tpu.memory_space<vmem>>, vector<1x2x128xf32>
    %183 = vector.shape_cast %182 : vector<1x2x128xf32> to vector<2x128xf32>
    %184 = vector.shape_cast %181 : vector<2x128xf32> to vector<1x2x128xf32>
    tpu.vector_store %arg18[%c0_53, %c0_54, %c0_55], %184 {strides = array<i32>} : memref<1x2x128xf32, #tpu.memory_space<vmem>>, vector<1x2x128xf32>,
    return
  }
  func.func @transform_0(%arg0: i32) -> (i32, i32, i32) {
    %c0_i32 = arith.constant 0 : i32
    %c0_i32_0 = arith.constant 0 : i32
    %c0_i32_1 = arith.constant 0 : i32
    return %arg0, %c0_i32, %c0_i32_0 : i32, i32, i32
  }
  func.func @transform_1(%arg0: i32) -> (i32, i32) {
    %c0_i32 = arith.constant 0 : i32
    %c0_i32_0 = arith.constant 0 : i32
    %c0_i32_1 = arith.constant 0 : i32
    return %c0_i32, %c0_i32_0 : i32, i32
  }
  func.func @transform_2(%arg0: i32) -> (i32, i32) {
    %c0_i32 = arith.constant 0 : i32
    %c0_i32_0 = arith.constant 0 : i32
    %c0_i32_1 = arith.constant 0 : i32
    return %c0_i32, %c0_i32_0 : i32, i32
  }
  func.func @transform_3(%arg0: i32) -> (i32, i32) {
    %c0_i32 = arith.constant 0 : i32
    %c0_i32_0 = arith.constant 0 : i32
    %c0_i32_1 = arith.constant 0 : i32
    return %c0_i32, %c0_i32_0 : i32, i32
  }
  func.func @transform_4(%arg0: i32) -> (i32, i32, i32) {
    %c0_i32 = arith.constant 0 : i32
    %c0_i32_0 = arith.constant 0 : i32
    %c0_i32_1 = arith.constant 0 : i32
    %c0_i32_2 = arith.constant 0 : i32
    return %c0_i32, %c0_i32_0, %c0_i32_1 : i32, i32, i32
  }
  func.func @transform_5(%arg0: i32) -> (i32, i32) {
    %c0_i32 = arith.constant 0 : i32
    %c0_i32_0 = arith.constant 0 : i32
    %c0_i32_1 = arith.constant 0 : i32
    return %c0_i32, %c0_i32_0 : i32, i32
  }
  func.func @transform_6(%arg0: i32) -> (i32, i32) {
    %c0_i32 = arith.constant 0 : i32
    %c0_i32_0 = arith.constant 0 : i32
    %c0_i32_1 = arith.constant 0 : i32
    return %c0_i32, %c0_i32_0 : i32, i32
  }
  func.func @transform_7(%arg0: i32) -> (i32, i32) {
    %c0_i32 = arith.constant 0 : i32
    %c0_i32_0 = arith.constant 0 : i32
    %c0_i32_1 = arith.constant 0 : i32
    return %c0_i32, %c0_i32_0 : i32, i32
  }
  func.func @transform_8(%arg0: i32) -> (i32, i32) {
    %c0_i32 = arith.constant 0 : i32
    %c0_i32_0 = arith.constant 0 : i32
    %c0_i32_1 = arith.constant 0 : i32
    return %c0_i32, %c0_i32_0 : i32, i32
  }
  func.func @transform_9(%arg0: i32) -> (i32, i32) {
    %c0_i32 = arith.constant 0 : i32
    %c0_i32_0 = arith.constant 0 : i32
    %c0_i32_1 = arith.constant 0 : i32
    return %c0_i32, %c0_i32_0 : i32, i32
  }
  func.func @transform_10(%arg0: i32) -> (i32, i32) {
    %c0_i32 = arith.constant 0 : i32
    %c0_i32_0 = arith.constant 0 : i32
    %c0_i32_1 = arith.constant 0 : i32
    return %c0_i32, %c0_i32_0 : i32, i32
  }
  func.func @transform_11(%arg0: i32) -> (i32, i32) {
    %c0_i32 = arith.constant 0 : i32
    %c0_i32_0 = arith.constant 0 : i32
    %c0_i32_1 = arith.constant 0 : i32
    return %c0_i32, %c0_i32_0 : i32, i32
  }
  func.func @transform_12(%arg0: i32) -> (i32, i32) {
    %c0_i32 = arith.constant 0 : i32
    %c0_i32_0 = arith.constant 0 : i32
    %c0_i32_1 = arith.constant 0 : i32
    return %c0_i32, %c0_i32_0 : i32, i32
  }
  func.func @transform_13(%arg0: i32) -> (i32, i32) {
    %c0_i32 = arith.constant 0 : i32
    %c0_i32_0 = arith.constant 0 : i32
    %c0_i32_1 = arith.constant 0 : i32
    return %c0_i32, %c0_i32_0 : i32, i32
  }
  func.func @transform_14(%arg0: i32) -> (i32, i32) {
    %c0_i32 = arith.constant 0 : i32
    %c0_i32_0 = arith.constant 0 : i32
    %c0_i32_1 = arith.constant 0 : i32
    return %c0_i32, %c0_i32_0 : i32, i32
  }
  func.func @transform_15(%arg0: i32) -> (i32, i32) {
    %c0_i32 = arith.constant 0 : i32
    %c0_i32_0 = arith.constant 0 : i32
    %c0_i32_1 = arith.constant 0 : i32
    return %c0_i32, %c0_i32_0 : i32, i32
  }
  func.func @transform_16(%arg0: i32) -> (i32, i32) {
    %c0_i32 = arith.constant 0 : i32
    %c0_i32_0 = arith.constant 0 : i32
    %c0_i32_1 = arith.constant 0 : i32
    return %c0_i32, %c0_i32_0 : i32, i32
  }
  func.func @transform_17(%arg0: i32) -> (i32, i32, i32) {
    %c0_i32 = arith.constant 0 : i32
    %c0_i32_0 = arith.constant 0 : i32
    %c0_i32_1 = arith.constant 0 : i32
    return %arg0, %c0_i32, %c0_i32_0 : i32, i32, i32
  }
}

module attributes {stable_mosaic.version = 11 : i64} {
  func.func @_stage_down_kernel(%arg0: i32, %arg1: memref<1x8x128xf32, #tpu.memory_space<vmem>>, %arg2: memref<128x128xf32, #tpu.memory_space<vmem>>, %arg3: memref<1x128xf32, #tpu.memory_space<vmem>>, %arg4: memref<1x128xf32, #tpu.memory_space<vmem>>, %arg5: memref<2x128x128xf32, #tpu.memory_space<vmem>>, %arg6: memref<4x16xf32, #tpu.memory_space<vmem>>, %arg7: memref<1x128xf32, #tpu.memory_space<vmem>>, %arg8: memref<128x128xf32, #tpu.memory_space<vmem>>, %arg9: memref<49x128xf32, #tpu.memory_space<vmem>>, %arg10: memref<1x128xf32, #tpu.memory_space<vmem>>, %arg11: memref<1x128xf32, #tpu.memory_space<vmem>>, %arg12: memref<1x128xf32, #tpu.memory_space<vmem>>, %arg13: memref<128x512xbf16, #tpu.memory_space<vmem>>, %arg14: memref<1x512xf32, #tpu.memory_space<vmem>>, %arg15: memref<512x128xbf16, #tpu.memory_space<vmem>>, %arg16: memref<1x128xf32, #tpu.memory_space<vmem>>, %arg17: memref<1x128xf32, #tpu.memory_space<vmem>>, %arg18: memref<1x4x128xf32, #tpu.memory_space<vmem>>) attributes {dimension_semantics = [#tpu.dimension_semantics<parallel>], iteration_bounds = array<i64: 2>, scalar_prefetch = 0 : i64, scratch_operands = 0 : i64, tpu.core_type = #tpu.core_type<tc>, window_params = [{transform_indices = @transform_0, window_bounds = array<i64: 1, 8, 128>}, {pipeline_mode = #tpu.pipeline_mode<synchronous>, transform_indices = @transform_1, window_bounds = array<i64: 128, 128>}, {pipeline_mode = #tpu.pipeline_mode<synchronous>, transform_indices = @transform_2, window_bounds = array<i64: 1, 128>}, {pipeline_mode = #tpu.pipeline_mode<synchronous>, transform_indices = @transform_3, window_bounds = array<i64: 1, 128>}, {pipeline_mode = #tpu.pipeline_mode<synchronous>, transform_indices = @transform_4, window_bounds = array<i64: 2, 128, 128>}, {pipeline_mode = #tpu.pipeline_mode<synchronous>, transform_indices = @transform_5, window_bounds = array<i64: 4, 16>}, {pipeline_mode = #tpu.pipeline_mode<synchronous>, transform_indices = @transform_6, window_bounds = array<i64: 1, 128>}, {pipeline_mode = #tpu.pipeline_mode<synchronous>, transform_indices = @transform_7, window_bounds = array<i64: 128, 128>}, {pipeline_mode = #tpu.pipeline_mode<synchronous>, transform_indices = @transform_8, window_bounds = array<i64: 49, 128>}, {pipeline_mode = #tpu.pipeline_mode<synchronous>, transform_indices = @transform_9, window_bounds = array<i64: 1, 128>}, {pipeline_mode = #tpu.pipeline_mode<synchronous>, transform_indices = @transform_10, window_bounds = array<i64: 1, 128>}, {pipeline_mode = #tpu.pipeline_mode<synchronous>, transform_indices = @transform_11, window_bounds = array<i64: 1, 128>}, {pipeline_mode = #tpu.pipeline_mode<synchronous>, transform_indices = @transform_12, window_bounds = array<i64: 128, 512>}, {pipeline_mode = #tpu.pipeline_mode<synchronous>, transform_indices = @transform_13, window_bounds = array<i64: 1, 512>}, {pipeline_mode = #tpu.pipeline_mode<synchronous>, transform_indices = @transform_14, window_bounds = array<i64: 512, 128>}, {pipeline_mode = #tpu.pipeline_mode<synchronous>, transform_indices = @transform_15, window_bounds = array<i64: 1, 128>}, {pipeline_mode = #tpu.pipeline_mode<synchronous>, transform_indices = @transform_16, window_bounds = array<i64: 1, 128>}, {transform_indices = @transform_17, window_bounds = array<i64: 1, 4, 128>}]} {
    %c0 = arith.constant 0 : index
    %c0_0 = arith.constant 0 : index
    %c0_1 = arith.constant 0 : index
    %0 = vector.load %arg1[%c0, %c0_0, %c0_1] : memref<1x8x128xf32, #tpu.memory_space<vmem>>, vector<1x8x128xf32>
    %1 = vector.shape_cast %0 : vector<1x8x128xf32> to vector<8x128xf32>
    %c0_2 = arith.constant 0 : index
    %c0_3 = arith.constant 0 : index
    %2 = vector.load %arg2[%c0_2, %c0_3] : memref<128x128xf32, #tpu.memory_space<vmem>>, vector<128x128xf32>
    %c0_4 = arith.constant 0 : index
    %c0_5 = arith.constant 0 : index
    %3 = vector.load %arg3[%c0_4, %c0_5] : memref<1x128xf32, #tpu.memory_space<vmem>>, vector<1x128xf32>
    %c0_6 = arith.constant 0 : index
    %c0_7 = arith.constant 0 : index
    %4 = vector.load %arg4[%c0_6, %c0_7] : memref<1x128xf32, #tpu.memory_space<vmem>>, vector<1x128xf32>
    %cst = arith.constant dense<0.000000e+00> : vector<8x128xf32>
    %5 = tpu.matmul %1, %2, %cst {dimension_numbers = #tpu.dot_dimension_numbers<[1], [0], [0], [1], [0, 0, 1, 1], [], []>} : vector<8x128xf32>, vector<128x128xf32>, vector<8x128xf32> -> vector<8x128xf32>
    %6 = arith.subf %1, %5 : vector<8x128xf32>
    %7 = arith.mulf %6, %6 : vector<8x128xf32>
    %cst_8 = arith.constant dense<0.000000e+00> : vector<8x128xf32>
    %8 = tpu.matmul %7, %2, %cst_8 {dimension_numbers = #tpu.dot_dimension_numbers<[1], [0], [0], [1], [0, 0, 1, 1], [], []>} : vector<8x128xf32>, vector<128x128xf32>, vector<8x128xf32> -> vector<8x128xf32>
    %cst_9 = arith.constant 9.99999997E-7 : f32
    %9 = vector.broadcast %cst_9 : f32 to vector<8x128xf32>
    %10 = arith.addf %8, %9 : vector<8x128xf32>
    %11 = math.rsqrt %10 : vector<8x128xf32>
    %12 = arith.mulf %6, %11 : vector<8x128xf32>
    %13 = vector.broadcast %3 : vector<1x128xf32> to vector<8x128xf32>
    %14 = arith.mulf %12, %13 : vector<8x128xf32>
    %15 = vector.broadcast %4 : vector<1x128xf32> to vector<8x128xf32>
    %16 = arith.addf %14, %15 : vector<8x128xf32>
    %c0_10 = arith.constant 0 : index
    %c0_11 = arith.constant 0 : index
    %c0_12 = arith.constant 0 : index
    %17 = vector.load %arg5[%c0_10, %c0_11, %c0_12] : memref<2x128x128xf32, #tpu.memory_space<vmem>>, vector<1x128x128xf32>
    %18 = vector.shape_cast %17 : vector<1x128x128xf32> to vector<128x128xf32>
    %cst_13 = arith.constant dense<0.000000e+00> : vector<8x128xf32>
    %19 = tpu.matmul %16, %18, %cst_13 {dimension_numbers = #tpu.dot_dimension_numbers<[1], [0], [0], [1], [0, 0, 1, 1], [], []>} : vector<8x128xf32>, vector<128x128xf32>, vector<8x128xf32> -> vector<8x128xf32>
    %c1 = arith.constant 1 : index
    %c0_14 = arith.constant 0 : index
    %c0_15 = arith.constant 0 : index
    %20 = vector.load %arg5[%c1, %c0_14, %c0_15] : memref<2x128x128xf32, #tpu.memory_space<vmem>>, vector<1x128x128xf32>
    %21 = vector.shape_cast %20 : vector<1x128x128xf32> to vector<128x128xf32>
    %cst_16 = arith.constant dense<0.000000e+00> : vector<8x128xf32>
    %22 = tpu.matmul %16, %21, %cst_16 {dimension_numbers = #tpu.dot_dimension_numbers<[1], [0], [0], [1], [0, 0, 1, 1], [], []>} : vector<8x128xf32>, vector<128x128xf32>, vector<8x128xf32> -> vector<8x128xf32>
    %23 = tpu.concatenate %19, %22 in 0 : vector<8x128xf32>, vector<8x128xf32> -> vector<16x128xf32>
    %c0_17 = arith.constant 0 : index
    %c0_18 = arith.constant 0 : index
    %24 = vector.load %arg6[%c0_17, %c0_18] : memref<4x16xf32, #tpu.memory_space<vmem>>, vector<4x16xf32>
    %cst_19 = arith.constant dense<0.000000e+00> : vector<4x128xf32>
    %25 = tpu.matmul %24, %23, %cst_19 {dimension_numbers = #tpu.dot_dimension_numbers<[1], [0], [0], [1], [0, 0, 1, 1], [], []>} : vector<4x16xf32>, vector<16x128xf32>, vector<4x128xf32> -> vector<4x128xf32>
    %c0_20 = arith.constant 0 : index
    %c0_21 = arith.constant 0 : index
    %26 = vector.load %arg7[%c0_20, %c0_21] : memref<1x128xf32, #tpu.memory_space<vmem>>, vector<1x128xf32>
    %27 = vector.broadcast %26 : vector<1x128xf32> to vector<4x128xf32>
    %28 = arith.addf %25, %27 : vector<4x128xf32>
    %c0_22 = arith.constant 0 : index
    %c0_23 = arith.constant 0 : index
    %29 = vector.load %arg8[%c0_22, %c0_23] : memref<128x128xf32, #tpu.memory_space<vmem>>, vector<128x128xf32>
    %cst_24 = arith.constant 0.000000e+00 : f32
    %30 = vector.broadcast %cst_24 : f32 to vector<3x128xf32>
    %31 = tpu.concatenate %30, %28, %30 in 0 : vector<3x128xf32>, vector<4x128xf32>, vector<3x128xf32> -> vector<10x128xf32>
    %c0_25 = arith.constant 0 : index
    %c0_26 = arith.constant 0 : index
    %32 = vector.load %arg9[%c0_25, %c0_26] : memref<49x128xf32, #tpu.memory_space<vmem>>, vector<49x128xf32>
    %cst_27 = arith.constant 0.000000e+00 : f32
    %33 = vector.broadcast %cst_27 : f32 to vector<4x128xf32>
    %c96_i32 = arith.constant 96 : i32
    %34 = tpu.dynamic_rotate %31 by %c96_i32 dim 1 : vector<10x128xf32>, i32 -> vector<10x128xf32>
    %35 = vector.extract_strided_slice %34 {offsets = [0, 0], sizes = [4, 128], strides = [1, 1]} : vector<10x128xf32> to vector<4x128xf32>
    %36 = vector.extract_strided_slice %32 {offsets = [0, 0], sizes = [1, 128], strides = [1, 1]} : vector<49x128xf32> to vector<1x128xf32>
    %37 = vector.broadcast %36 : vector<1x128xf32> to vector<4x128xf32>
    %38 = arith.mulf %35, %37 : vector<4x128xf32>
    %39 = arith.addf %33, %38 : vector<4x128xf32>
    %40 = vector.extract_strided_slice %34 {offsets = [1, 0], sizes = [4, 128], strides = [1, 1]} : vector<10x128xf32> to vector<4x128xf32>
    %41 = vector.extract_strided_slice %32 {offsets = [7, 0], sizes = [1, 128], strides = [1, 1]} : vector<49x128xf32> to vector<1x128xf32>
    %42 = vector.broadcast %41 : vector<1x128xf32> to vector<4x128xf32>
    %43 = arith.mulf %40, %42 : vector<4x128xf32>
    %44 = arith.addf %39, %43 : vector<4x128xf32>
    %45 = vector.extract_strided_slice %34 {offsets = [2, 0], sizes = [4, 128], strides = [1, 1]} : vector<10x128xf32> to vector<4x128xf32>
    %46 = vector.extract_strided_slice %32 {offsets = [14, 0], sizes = [1, 128], strides = [1, 1]} : vector<49x128xf32> to vector<1x128xf32>
    %47 = vector.broadcast %46 : vector<1x128xf32> to vector<4x128xf32>
    %48 = arith.mulf %45, %47 : vector<4x128xf32>
    %49 = arith.addf %44, %48 : vector<4x128xf32>
    %50 = vector.extract_strided_slice %34 {offsets = [3, 0], sizes = [4, 128], strides = [1, 1]} : vector<10x128xf32> to vector<4x128xf32>
    %51 = vector.extract_strided_slice %32 {offsets = [21, 0], sizes = [1, 128], strides = [1, 1]} : vector<49x128xf32> to vector<1x128xf32>
    %52 = vector.broadcast %51 : vector<1x128xf32> to vector<4x128xf32>
    %53 = arith.mulf %50, %52 : vector<4x128xf32>
    %54 = arith.addf %49, %53 : vector<4x128xf32>
    %55 = vector.extract_strided_slice %34 {offsets = [4, 0], sizes = [4, 128], strides = [1, 1]} : vector<10x128xf32> to vector<4x128xf32>
    %56 = vector.extract_strided_slice %32 {offsets = [28, 0], sizes = [1, 128], strides = [1, 1]} : vector<49x128xf32> to vector<1x128xf32>
    %57 = vector.broadcast %56 : vector<1x128xf32> to vector<4x128xf32>
    %58 = arith.mulf %55, %57 : vector<4x128xf32>
    %59 = arith.addf %54, %58 : vector<4x128xf32>
    %60 = vector.extract_strided_slice %34 {offsets = [5, 0], sizes = [4, 128], strides = [1, 1]} : vector<10x128xf32> to vector<4x128xf32>
    %61 = vector.extract_strided_slice %32 {offsets = [35, 0], sizes = [1, 128], strides = [1, 1]} : vector<49x128xf32> to vector<1x128xf32>
    %62 = vector.broadcast %61 : vector<1x128xf32> to vector<4x128xf32>
    %63 = arith.mulf %60, %62 : vector<4x128xf32>
    %64 = arith.addf %59, %63 : vector<4x128xf32>
    %65 = vector.extract_strided_slice %34 {offsets = [6, 0], sizes = [4, 128], strides = [1, 1]} : vector<10x128xf32> to vector<4x128xf32>
    %66 = vector.extract_strided_slice %32 {offsets = [42, 0], sizes = [1, 128], strides = [1, 1]} : vector<49x128xf32> to vector<1x128xf32>
    %67 = vector.broadcast %66 : vector<1x128xf32> to vector<4x128xf32>
    %68 = arith.mulf %65, %67 : vector<4x128xf32>
    %69 = arith.addf %64, %68 : vector<4x128xf32>
    %c64_i32 = arith.constant 64 : i32
    %70 = tpu.dynamic_rotate %31 by %c64_i32 dim 1 : vector<10x128xf32>, i32 -> vector<10x128xf32>
    %71 = vector.extract_strided_slice %70 {offsets = [0, 0], sizes = [4, 128], strides = [1, 1]} : vector<10x128xf32> to vector<4x128xf32>
    %72 = vector.extract_strided_slice %32 {offsets = [1, 0], sizes = [1, 128], strides = [1, 1]} : vector<49x128xf32> to vector<1x128xf32>
    %73 = vector.broadcast %72 : vector<1x128xf32> to vector<4x128xf32>
    %74 = arith.mulf %71, %73 : vector<4x128xf32>
    %75 = arith.addf %69, %74 : vector<4x128xf32>
    %76 = vector.extract_strided_slice %70 {offsets = [1, 0], sizes = [4, 128], strides = [1, 1]} : vector<10x128xf32> to vector<4x128xf32>
    %77 = vector.extract_strided_slice %32 {offsets = [8, 0], sizes = [1, 128], strides = [1, 1]} : vector<49x128xf32> to vector<1x128xf32>
    %78 = vector.broadcast %77 : vector<1x128xf32> to vector<4x128xf32>
    %79 = arith.mulf %76, %78 : vector<4x128xf32>
    %80 = arith.addf %75, %79 : vector<4x128xf32>
    %81 = vector.extract_strided_slice %70 {offsets = [2, 0], sizes = [4, 128], strides = [1, 1]} : vector<10x128xf32> to vector<4x128xf32>
    %82 = vector.extract_strided_slice %32 {offsets = [15, 0], sizes = [1, 128], strides = [1, 1]} : vector<49x128xf32> to vector<1x128xf32>
    %83 = vector.broadcast %82 : vector<1x128xf32> to vector<4x128xf32>
    %84 = arith.mulf %81, %83 : vector<4x128xf32>
    %85 = arith.addf %80, %84 : vector<4x128xf32>
    %86 = vector.extract_strided_slice %70 {offsets = [3, 0], sizes = [4, 128], strides = [1, 1]} : vector<10x128xf32> to vector<4x128xf32>
    %87 = vector.extract_strided_slice %32 {offsets = [22, 0], sizes = [1, 128], strides = [1, 1]} : vector<49x128xf32> to vector<1x128xf32>
    %88 = vector.broadcast %87 : vector<1x128xf32> to vector<4x128xf32>
    %89 = arith.mulf %86, %88 : vector<4x128xf32>
    %90 = arith.addf %85, %89 : vector<4x128xf32>
    %91 = vector.extract_strided_slice %70 {offsets = [4, 0], sizes = [4, 128], strides = [1, 1]} : vector<10x128xf32> to vector<4x128xf32>
    %92 = vector.extract_strided_slice %32 {offsets = [29, 0], sizes = [1, 128], strides = [1, 1]} : vector<49x128xf32> to vector<1x128xf32>
    %93 = vector.broadcast %92 : vector<1x128xf32> to vector<4x128xf32>
    %94 = arith.mulf %91, %93 : vector<4x128xf32>
    %95 = arith.addf %90, %94 : vector<4x128xf32>
    %96 = vector.extract_strided_slice %70 {offsets = [5, 0], sizes = [4, 128], strides = [1, 1]} : vector<10x128xf32> to vector<4x128xf32>
    %97 = vector.extract_strided_slice %32 {offsets = [36, 0], sizes = [1, 128], strides = [1, 1]} : vector<49x128xf32> to vector<1x128xf32>
    %98 = vector.broadcast %97 : vector<1x128xf32> to vector<4x128xf32>
    %99 = arith.mulf %96, %98 : vector<4x128xf32>
    %100 = arith.addf %95, %99 : vector<4x128xf32>
    %101 = vector.extract_strided_slice %70 {offsets = [6, 0], sizes = [4, 128], strides = [1, 1]} : vector<10x128xf32> to vector<4x128xf32>
    %102 = vector.extract_strided_slice %32 {offsets = [43, 0], sizes = [1, 128], strides = [1, 1]} : vector<49x128xf32> to vector<1x128xf32>
    %103 = vector.broadcast %102 : vector<1x128xf32> to vector<4x128xf32>
    %104 = arith.mulf %101, %103 : vector<4x128xf32>
    %105 = arith.addf %100, %104 : vector<4x128xf32>
    %c32_i32 = arith.constant 32 : i32
    %106 = tpu.dynamic_rotate %31 by %c32_i32 dim 1 : vector<10x128xf32>, i32 -> vector<10x128xf32>
    %107 = vector.extract_strided_slice %106 {offsets = [0, 0], sizes = [4, 128], strides = [1, 1]} : vector<10x128xf32> to vector<4x128xf32>
    %108 = vector.extract_strided_slice %32 {offsets = [2, 0], sizes = [1, 128], strides = [1, 1]} : vector<49x128xf32> to vector<1x128xf32>
    %109 = vector.broadcast %108 : vector<1x128xf32> to vector<4x128xf32>
    %110 = arith.mulf %107, %109 : vector<4x128xf32>
    %111 = arith.addf %105, %110 : vector<4x128xf32>
    %112 = vector.extract_strided_slice %106 {offsets = [1, 0], sizes = [4, 128], strides = [1, 1]} : vector<10x128xf32> to vector<4x128xf32>
    %113 = vector.extract_strided_slice %32 {offsets = [9, 0], sizes = [1, 128], strides = [1, 1]} : vector<49x128xf32> to vector<1x128xf32>
    %114 = vector.broadcast %113 : vector<1x128xf32> to vector<4x128xf32>
    %115 = arith.mulf %112, %114 : vector<4x128xf32>
    %116 = arith.addf %111, %115 : vector<4x128xf32>
    %117 = vector.extract_strided_slice %106 {offsets = [2, 0], sizes = [4, 128], strides = [1, 1]} : vector<10x128xf32> to vector<4x128xf32>
    %118 = vector.extract_strided_slice %32 {offsets = [16, 0], sizes = [1, 128], strides = [1, 1]} : vector<49x128xf32> to vector<1x128xf32>
    %119 = vector.broadcast %118 : vector<1x128xf32> to vector<4x128xf32>
    %120 = arith.mulf %117, %119 : vector<4x128xf32>
    %121 = arith.addf %116, %120 : vector<4x128xf32>
    %122 = vector.extract_strided_slice %106 {offsets = [3, 0], sizes = [4, 128], strides = [1, 1]} : vector<10x128xf32> to vector<4x128xf32>
    %123 = vector.extract_strided_slice %32 {offsets = [23, 0], sizes = [1, 128], strides = [1, 1]} : vector<49x128xf32> to vector<1x128xf32>
    %124 = vector.broadcast %123 : vector<1x128xf32> to vector<4x128xf32>
    %125 = arith.mulf %122, %124 : vector<4x128xf32>
    %126 = arith.addf %121, %125 : vector<4x128xf32>
    %127 = vector.extract_strided_slice %106 {offsets = [4, 0], sizes = [4, 128], strides = [1, 1]} : vector<10x128xf32> to vector<4x128xf32>
    %128 = vector.extract_strided_slice %32 {offsets = [30, 0], sizes = [1, 128], strides = [1, 1]} : vector<49x128xf32> to vector<1x128xf32>
    %129 = vector.broadcast %128 : vector<1x128xf32> to vector<4x128xf32>
    %130 = arith.mulf %127, %129 : vector<4x128xf32>
    %131 = arith.addf %126, %130 : vector<4x128xf32>
    %132 = vector.extract_strided_slice %106 {offsets = [5, 0], sizes = [4, 128], strides = [1, 1]} : vector<10x128xf32> to vector<4x128xf32>
    %133 = vector.extract_strided_slice %32 {offsets = [37, 0], sizes = [1, 128], strides = [1, 1]} : vector<49x128xf32> to vector<1x128xf32>
    %134 = vector.broadcast %133 : vector<1x128xf32> to vector<4x128xf32>
    %135 = arith.mulf %132, %134 : vector<4x128xf32>
    %136 = arith.addf %131, %135 : vector<4x128xf32>
    %137 = vector.extract_strided_slice %106 {offsets = [6, 0], sizes = [4, 128], strides = [1, 1]} : vector<10x128xf32> to vector<4x128xf32>
    %138 = vector.extract_strided_slice %32 {offsets = [44, 0], sizes = [1, 128], strides = [1, 1]} : vector<49x128xf32> to vector<1x128xf32>
    %139 = vector.broadcast %138 : vector<1x128xf32> to vector<4x128xf32>
    %140 = arith.mulf %137, %139 : vector<4x128xf32>
    %141 = arith.addf %136, %140 : vector<4x128xf32>
    %142 = vector.extract_strided_slice %31 {offsets = [0, 0], sizes = [4, 128], strides = [1, 1]} : vector<10x128xf32> to vector<4x128xf32>
    %143 = vector.extract_strided_slice %32 {offsets = [3, 0], sizes = [1, 128], strides = [1, 1]} : vector<49x128xf32> to vector<1x128xf32>
    %144 = vector.broadcast %143 : vector<1x128xf32> to vector<4x128xf32>
    %145 = arith.mulf %142, %144 : vector<4x128xf32>
    %146 = arith.addf %141, %145 : vector<4x128xf32>
    %147 = vector.extract_strided_slice %31 {offsets = [1, 0], sizes = [4, 128], strides = [1, 1]} : vector<10x128xf32> to vector<4x128xf32>
    %148 = vector.extract_strided_slice %32 {offsets = [10, 0], sizes = [1, 128], strides = [1, 1]} : vector<49x128xf32> to vector<1x128xf32>
    %149 = vector.broadcast %148 : vector<1x128xf32> to vector<4x128xf32>
    %150 = arith.mulf %147, %149 : vector<4x128xf32>
    %151 = arith.addf %146, %150 : vector<4x128xf32>
    %152 = vector.extract_strided_slice %31 {offsets = [2, 0], sizes = [4, 128], strides = [1, 1]} : vector<10x128xf32> to vector<4x128xf32>
    %153 = vector.extract_strided_slice %32 {offsets = [17, 0], sizes = [1, 128], strides = [1, 1]} : vector<49x128xf32> to vector<1x128xf32>
    %154 = vector.broadcast %153 : vector<1x128xf32> to vector<4x128xf32>
    %155 = arith.mulf %152, %154 : vector<4x128xf32>
    %156 = arith.addf %151, %155 : vector<4x128xf32>
    %157 = vector.extract_strided_slice %31 {offsets = [3, 0], sizes = [4, 128], strides = [1, 1]} : vector<10x128xf32> to vector<4x128xf32>
    %158 = vector.extract_strided_slice %32 {offsets = [24, 0], sizes = [1, 128], strides = [1, 1]} : vector<49x128xf32> to vector<1x128xf32>
    %159 = vector.broadcast %158 : vector<1x128xf32> to vector<4x128xf32>
    %160 = arith.mulf %157, %159 : vector<4x128xf32>
    %161 = arith.addf %156, %160 : vector<4x128xf32>
    %162 = vector.extract_strided_slice %31 {offsets = [4, 0], sizes = [4, 128], strides = [1, 1]} : vector<10x128xf32> to vector<4x128xf32>
    %163 = vector.extract_strided_slice %32 {offsets = [31, 0], sizes = [1, 128], strides = [1, 1]} : vector<49x128xf32> to vector<1x128xf32>
    %164 = vector.broadcast %163 : vector<1x128xf32> to vector<4x128xf32>
    %165 = arith.mulf %162, %164 : vector<4x128xf32>
    %166 = arith.addf %161, %165 : vector<4x128xf32>
    %167 = vector.extract_strided_slice %31 {offsets = [5, 0], sizes = [4, 128], strides = [1, 1]} : vector<10x128xf32> to vector<4x128xf32>
    %168 = vector.extract_strided_slice %32 {offsets = [38, 0], sizes = [1, 128], strides = [1, 1]} : vector<49x128xf32> to vector<1x128xf32>
    %169 = vector.broadcast %168 : vector<1x128xf32> to vector<4x128xf32>
    %170 = arith.mulf %167, %169 : vector<4x128xf32>
    %171 = arith.addf %166, %170 : vector<4x128xf32>
    %172 = vector.extract_strided_slice %31 {offsets = [6, 0], sizes = [4, 128], strides = [1, 1]} : vector<10x128xf32> to vector<4x128xf32>
    %173 = vector.extract_strided_slice %32 {offsets = [45, 0], sizes = [1, 128], strides = [1, 1]} : vector<49x128xf32> to vector<1x128xf32>
    %174 = vector.broadcast %173 : vector<1x128xf32> to vector<4x128xf32>
    %175 = arith.mulf %172, %174 : vector<4x128xf32>
    %176 = arith.addf %171, %175 : vector<4x128xf32>
    %c96_i32_28 = arith.constant 96 : i32
    %177 = tpu.dynamic_rotate %31 by %c96_i32_28 dim 1 : vector<10x128xf32>, i32 -> vector<10x128xf32>
    %178 = vector.extract_strided_slice %177 {offsets = [0, 0], sizes = [4, 128], strides = [1, 1]} : vector<10x128xf32> to vector<4x128xf32>
    %179 = vector.extract_strided_slice %32 {offsets = [4, 0], sizes = [1, 128], strides = [1, 1]} : vector<49x128xf32> to vector<1x128xf32>
    %180 = vector.broadcast %179 : vector<1x128xf32> to vector<4x128xf32>
    %181 = arith.mulf %178, %180 : vector<4x128xf32>
    %182 = arith.addf %176, %181 : vector<4x128xf32>
    %183 = vector.extract_strided_slice %177 {offsets = [1, 0], sizes = [4, 128], strides = [1, 1]} : vector<10x128xf32> to vector<4x128xf32>
    %184 = vector.extract_strided_slice %32 {offsets = [11, 0], sizes = [1, 128], strides = [1, 1]} : vector<49x128xf32> to vector<1x128xf32>
    %185 = vector.broadcast %184 : vector<1x128xf32> to vector<4x128xf32>
    %186 = arith.mulf %183, %185 : vector<4x128xf32>
    %187 = arith.addf %182, %186 : vector<4x128xf32>
    %188 = vector.extract_strided_slice %177 {offsets = [2, 0], sizes = [4, 128], strides = [1, 1]} : vector<10x128xf32> to vector<4x128xf32>
    %189 = vector.extract_strided_slice %32 {offsets = [18, 0], sizes = [1, 128], strides = [1, 1]} : vector<49x128xf32> to vector<1x128xf32>
    %190 = vector.broadcast %189 : vector<1x128xf32> to vector<4x128xf32>
    %191 = arith.mulf %188, %190 : vector<4x128xf32>
    %192 = arith.addf %187, %191 : vector<4x128xf32>
    %193 = vector.extract_strided_slice %177 {offsets = [3, 0], sizes = [4, 128], strides = [1, 1]} : vector<10x128xf32> to vector<4x128xf32>
    %194 = vector.extract_strided_slice %32 {offsets = [25, 0], sizes = [1, 128], strides = [1, 1]} : vector<49x128xf32> to vector<1x128xf32>
    %195 = vector.broadcast %194 : vector<1x128xf32> to vector<4x128xf32>
    %196 = arith.mulf %193, %195 : vector<4x128xf32>
    %197 = arith.addf %192, %196 : vector<4x128xf32>
    %198 = vector.extract_strided_slice %177 {offsets = [4, 0], sizes = [4, 128], strides = [1, 1]} : vector<10x128xf32> to vector<4x128xf32>
    %199 = vector.extract_strided_slice %32 {offsets = [32, 0], sizes = [1, 128], strides = [1, 1]} : vector<49x128xf32> to vector<1x128xf32>
    %200 = vector.broadcast %199 : vector<1x128xf32> to vector<4x128xf32>
    %201 = arith.mulf %198, %200 : vector<4x128xf32>
    %202 = arith.addf %197, %201 : vector<4x128xf32>
    %203 = vector.extract_strided_slice %177 {offsets = [5, 0], sizes = [4, 128], strides = [1, 1]} : vector<10x128xf32> to vector<4x128xf32>
    %204 = vector.extract_strided_slice %32 {offsets = [39, 0], sizes = [1, 128], strides = [1, 1]} : vector<49x128xf32> to vector<1x128xf32>
    %205 = vector.broadcast %204 : vector<1x128xf32> to vector<4x128xf32>
    %206 = arith.mulf %203, %205 : vector<4x128xf32>
    %207 = arith.addf %202, %206 : vector<4x128xf32>
    %208 = vector.extract_strided_slice %177 {offsets = [6, 0], sizes = [4, 128], strides = [1, 1]} : vector<10x128xf32> to vector<4x128xf32>
    %209 = vector.extract_strided_slice %32 {offsets = [46, 0], sizes = [1, 128], strides = [1, 1]} : vector<49x128xf32> to vector<1x128xf32>
    %210 = vector.broadcast %209 : vector<1x128xf32> to vector<4x128xf32>
    %211 = arith.mulf %208, %210 : vector<4x128xf32>
    %212 = arith.addf %207, %211 : vector<4x128xf32>
    %c64_i32_29 = arith.constant 64 : i32
    %213 = tpu.dynamic_rotate %31 by %c64_i32_29 dim 1 : vector<10x128xf32>, i32 -> vector<10x128xf32>
    %214 = vector.extract_strided_slice %213 {offsets = [0, 0], sizes = [4, 128], strides = [1, 1]} : vector<10x128xf32> to vector<4x128xf32>
    %215 = vector.extract_strided_slice %32 {offsets = [5, 0], sizes = [1, 128], strides = [1, 1]} : vector<49x128xf32> to vector<1x128xf32>
    %216 = vector.broadcast %215 : vector<1x128xf32> to vector<4x128xf32>
    %217 = arith.mulf %214, %216 : vector<4x128xf32>
    %218 = arith.addf %212, %217 : vector<4x128xf32>
    %219 = vector.extract_strided_slice %213 {offsets = [1, 0], sizes = [4, 128], strides = [1, 1]} : vector<10x128xf32> to vector<4x128xf32>
    %220 = vector.extract_strided_slice %32 {offsets = [12, 0], sizes = [1, 128], strides = [1, 1]} : vector<49x128xf32> to vector<1x128xf32>
    %221 = vector.broadcast %220 : vector<1x128xf32> to vector<4x128xf32>
    %222 = arith.mulf %219, %221 : vector<4x128xf32>
    %223 = arith.addf %218, %222 : vector<4x128xf32>
    %224 = vector.extract_strided_slice %213 {offsets = [2, 0], sizes = [4, 128], strides = [1, 1]} : vector<10x128xf32> to vector<4x128xf32>
    %225 = vector.extract_strided_slice %32 {offsets = [19, 0], sizes = [1, 128], strides = [1, 1]} : vector<49x128xf32> to vector<1x128xf32>
    %226 = vector.broadcast %225 : vector<1x128xf32> to vector<4x128xf32>
    %227 = arith.mulf %224, %226 : vector<4x128xf32>
    %228 = arith.addf %223, %227 : vector<4x128xf32>
    %229 = vector.extract_strided_slice %213 {offsets = [3, 0], sizes = [4, 128], strides = [1, 1]} : vector<10x128xf32> to vector<4x128xf32>
    %230 = vector.extract_strided_slice %32 {offsets = [26, 0], sizes = [1, 128], strides = [1, 1]} : vector<49x128xf32> to vector<1x128xf32>
    %231 = vector.broadcast %230 : vector<1x128xf32> to vector<4x128xf32>
    %232 = arith.mulf %229, %231 : vector<4x128xf32>
    %233 = arith.addf %228, %232 : vector<4x128xf32>
    %234 = vector.extract_strided_slice %213 {offsets = [4, 0], sizes = [4, 128], strides = [1, 1]} : vector<10x128xf32> to vector<4x128xf32>
    %235 = vector.extract_strided_slice %32 {offsets = [33, 0], sizes = [1, 128], strides = [1, 1]} : vector<49x128xf32> to vector<1x128xf32>
    %236 = vector.broadcast %235 : vector<1x128xf32> to vector<4x128xf32>
    %237 = arith.mulf %234, %236 : vector<4x128xf32>
    %238 = arith.addf %233, %237 : vector<4x128xf32>
    %239 = vector.extract_strided_slice %213 {offsets = [5, 0], sizes = [4, 128], strides = [1, 1]} : vector<10x128xf32> to vector<4x128xf32>
    %240 = vector.extract_strided_slice %32 {offsets = [40, 0], sizes = [1, 128], strides = [1, 1]} : vector<49x128xf32> to vector<1x128xf32>
    %241 = vector.broadcast %240 : vector<1x128xf32> to vector<4x128xf32>
    %242 = arith.mulf %239, %241 : vector<4x128xf32>
    %243 = arith.addf %238, %242 : vector<4x128xf32>
    %244 = vector.extract_strided_slice %213 {offsets = [6, 0], sizes = [4, 128], strides = [1, 1]} : vector<10x128xf32> to vector<4x128xf32>
    %245 = vector.extract_strided_slice %32 {offsets = [47, 0], sizes = [1, 128], strides = [1, 1]} : vector<49x128xf32> to vector<1x128xf32>
    %246 = vector.broadcast %245 : vector<1x128xf32> to vector<4x128xf32>
    %247 = arith.mulf %244, %246 : vector<4x128xf32>
    %248 = arith.addf %243, %247 : vector<4x128xf32>
    %c32_i32_30 = arith.constant 32 : i32
    %249 = tpu.dynamic_rotate %31 by %c32_i32_30 dim 1 : vector<10x128xf32>, i32 -> vector<10x128xf32>
    %250 = vector.extract_strided_slice %249 {offsets = [0, 0], sizes = [4, 128], strides = [1, 1]} : vector<10x128xf32> to vector<4x128xf32>
    %251 = vector.extract_strided_slice %32 {offsets = [6, 0], sizes = [1, 128], strides = [1, 1]} : vector<49x128xf32> to vector<1x128xf32>
    %252 = vector.broadcast %251 : vector<1x128xf32> to vector<4x128xf32>
    %253 = arith.mulf %250, %252 : vector<4x128xf32>
    %254 = arith.addf %248, %253 : vector<4x128xf32>
    %255 = vector.extract_strided_slice %249 {offsets = [1, 0], sizes = [4, 128], strides = [1, 1]} : vector<10x128xf32> to vector<4x128xf32>
    %256 = vector.extract_strided_slice %32 {offsets = [13, 0], sizes = [1, 128], strides = [1, 1]} : vector<49x128xf32> to vector<1x128xf32>
    %257 = vector.broadcast %256 : vector<1x128xf32> to vector<4x128xf32>
    %258 = arith.mulf %255, %257 : vector<4x128xf32>
    %259 = arith.addf %254, %258 : vector<4x128xf32>
    %260 = vector.extract_strided_slice %249 {offsets = [2, 0], sizes = [4, 128], strides = [1, 1]} : vector<10x128xf32> to vector<4x128xf32>
    %261 = vector.extract_strided_slice %32 {offsets = [20, 0], sizes = [1, 128], strides = [1, 1]} : vector<49x128xf32> to vector<1x128xf32>
    %262 = vector.broadcast %261 : vector<1x128xf32> to vector<4x128xf32>
    %263 = arith.mulf %260, %262 : vector<4x128xf32>
    %264 = arith.addf %259, %263 : vector<4x128xf32>
    %265 = vector.extract_strided_slice %249 {offsets = [3, 0], sizes = [4, 128], strides = [1, 1]} : vector<10x128xf32> to vector<4x128xf32>
    %266 = vector.extract_strided_slice %32 {offsets = [27, 0], sizes = [1, 128], strides = [1, 1]} : vector<49x128xf32> to vector<1x128xf32>
    %267 = vector.broadcast %266 : vector<1x128xf32> to vector<4x128xf32>
    %268 = arith.mulf %265, %267 : vector<4x128xf32>
    %269 = arith.addf %264, %268 : vector<4x128xf32>
    %270 = vector.extract_strided_slice %249 {offsets = [4, 0], sizes = [4, 128], strides = [1, 1]} : vector<10x128xf32> to vector<4x128xf32>
    %271 = vector.extract_strided_slice %32 {offsets = [34, 0], sizes = [1, 128], strides = [1, 1]} : vector<49x128xf32> to vector<1x128xf32>
    %272 = vector.broadcast %271 : vector<1x128xf32> to vector<4x128xf32>
    %273 = arith.mulf %270, %272 : vector<4x128xf32>
    %274 = arith.addf %269, %273 : vector<4x128xf32>
    %275 = vector.extract_strided_slice %249 {offsets = [5, 0], sizes = [4, 128], strides = [1, 1]} : vector<10x128xf32> to vector<4x128xf32>
    %276 = vector.extract_strided_slice %32 {offsets = [41, 0], sizes = [1, 128], strides = [1, 1]} : vector<49x128xf32> to vector<1x128xf32>
    %277 = vector.broadcast %276 : vector<1x128xf32> to vector<4x128xf32>
    %278 = arith.mulf %275, %277 : vector<4x128xf32>
    %279 = arith.addf %274, %278 : vector<4x128xf32>
    %280 = vector.extract_strided_slice %249 {offsets = [6, 0], sizes = [4, 128], strides = [1, 1]} : vector<10x128xf32> to vector<4x128xf32>
    %281 = vector.extract_strided_slice %32 {offsets = [48, 0], sizes = [1, 128], strides = [1, 1]} : vector<49x128xf32> to vector<1x128xf32>
    %282 = vector.broadcast %281 : vector<1x128xf32> to vector<4x128xf32>
    %283 = arith.mulf %280, %282 : vector<4x128xf32>
    %284 = arith.addf %279, %283 : vector<4x128xf32>
    %c0_31 = arith.constant 0 : index
    %c0_32 = arith.constant 0 : index
    %285 = vector.load %arg10[%c0_31, %c0_32] : memref<1x128xf32, #tpu.memory_space<vmem>>, vector<1x128xf32>
    %286 = vector.broadcast %285 : vector<1x128xf32> to vector<4x128xf32>
    %287 = arith.addf %284, %286 : vector<4x128xf32>
    %c0_33 = arith.constant 0 : index
    %c0_34 = arith.constant 0 : index
    %288 = vector.load %arg11[%c0_33, %c0_34] : memref<1x128xf32, #tpu.memory_space<vmem>>, vector<1x128xf32>
    %c0_35 = arith.constant 0 : index
    %c0_36 = arith.constant 0 : index
    %289 = vector.load %arg12[%c0_35, %c0_36] : memref<1x128xf32, #tpu.memory_space<vmem>>, vector<1x128xf32>
    %cst_37 = arith.constant dense<0.000000e+00> : vector<4x128xf32>
    %290 = tpu.matmul %287, %29, %cst_37 {dimension_numbers = #tpu.dot_dimension_numbers<[1], [0], [0], [1], [0, 0, 1, 1], [], []>} : vector<4x128xf32>, vector<128x128xf32>, vector<4x128xf32> -> vector<4x128xf32>
    %291 = arith.subf %287, %290 : vector<4x128xf32>
    %292 = arith.mulf %291, %291 : vector<4x128xf32>
    %cst_38 = arith.constant dense<0.000000e+00> : vector<4x128xf32>
    %293 = tpu.matmul %292, %29, %cst_38 {dimension_numbers = #tpu.dot_dimension_numbers<[1], [0], [0], [1], [0, 0, 1, 1], [], []>} : vector<4x128xf32>, vector<128x128xf32>, vector<4x128xf32> -> vector<4x128xf32>
    %cst_39 = arith.constant 9.99999997E-7 : f32
    %294 = vector.broadcast %cst_39 : f32 to vector<4x128xf32>
    %295 = arith.addf %293, %294 : vector<4x128xf32>
    %296 = math.rsqrt %295 : vector<4x128xf32>
    %297 = arith.mulf %291, %296 : vector<4x128xf32>
    %298 = vector.broadcast %288 : vector<1x128xf32> to vector<4x128xf32>
    %299 = arith.mulf %297, %298 : vector<4x128xf32>
    %300 = vector.broadcast %289 : vector<1x128xf32> to vector<4x128xf32>
    %301 = arith.addf %299, %300 : vector<4x128xf32>
    %302 = arith.truncf %301 : vector<4x128xf32> to vector<4x128xbf16>
    %c0_40 = arith.constant 0 : index
    %c0_41 = arith.constant 0 : index
    %303 = vector.load %arg13[%c0_40, %c0_41] : memref<128x512xbf16, #tpu.memory_space<vmem>>, vector<128x512xbf16>
    %cst_42 = arith.constant dense<0.000000e+00> : vector<4x512xf32>
    %304 = tpu.matmul %302, %303, %cst_42 {dimension_numbers = #tpu.dot_dimension_numbers<[1], [0], [0], [1], [0, 0, 1, 1], [], []>} : vector<4x128xbf16>, vector<128x512xbf16>, vector<4x512xf32> -> vector<4x512xf32>
    %c0_43 = arith.constant 0 : index
    %c0_44 = arith.constant 0 : index
    %305 = vector.load %arg14[%c0_43, %c0_44] : memref<1x512xf32, #tpu.memory_space<vmem>>, vector<1x512xf32>
    %306 = vector.broadcast %305 : vector<1x512xf32> to vector<4x512xf32>
    %307 = arith.addf %304, %306 : vector<4x512xf32>
    %cst_45 = arith.constant 5.000000e-01 : f32
    %308 = vector.broadcast %cst_45 : f32 to vector<4x512xf32>
    %309 = arith.mulf %308, %307 : vector<4x512xf32>
    %cst_46 = arith.constant 0.707106769 : f32
    %310 = vector.broadcast %cst_46 : f32 to vector<4x512xf32>
    %311 = arith.mulf %307, %310 : vector<4x512xf32>
    %312 = math.erf %311 : vector<4x512xf32>
    %cst_47 = arith.constant 1.000000e+00 : f32
    %313 = vector.broadcast %cst_47 : f32 to vector<4x512xf32>
    %314 = arith.addf %313, %312 : vector<4x512xf32>
    %315 = arith.mulf %309, %314 : vector<4x512xf32>
    %316 = arith.truncf %315 : vector<4x512xf32> to vector<4x512xbf16>
    %c0_48 = arith.constant 0 : index
    %c0_49 = arith.constant 0 : index
    %317 = vector.load %arg15[%c0_48, %c0_49] : memref<512x128xbf16, #tpu.memory_space<vmem>>, vector<512x128xbf16>
    %cst_50 = arith.constant dense<0.000000e+00> : vector<4x128xf32>
    %318 = tpu.matmul %316, %317, %cst_50 {dimension_numbers = #tpu.dot_dimension_numbers<[1], [0], [0], [1], [0, 0, 1, 1], [], []>} : vector<4x512xbf16>, vector<512x128xbf16>, vector<4x128xf32> -> vector<4x128xf32>
    %c0_51 = arith.constant 0 : index
    %c0_52 = arith.constant 0 : index
    %319 = vector.load %arg16[%c0_51, %c0_52] : memref<1x128xf32, #tpu.memory_space<vmem>>, vector<1x128xf32>
    %320 = vector.broadcast %319 : vector<1x128xf32> to vector<4x128xf32>
    %321 = arith.addf %318, %320 : vector<4x128xf32>
    %c0_53 = arith.constant 0 : index
    %c0_54 = arith.constant 0 : index
    %322 = vector.load %arg17[%c0_53, %c0_54] : memref<1x128xf32, #tpu.memory_space<vmem>>, vector<1x128xf32>
    %323 = vector.broadcast %322 : vector<1x128xf32> to vector<4x128xf32>
    %324 = arith.mulf %323, %321 : vector<4x128xf32>
    %325 = arith.addf %28, %324 : vector<4x128xf32>
    %c0_55 = arith.constant 0 : index
    %c0_56 = arith.constant 0 : index
    %c0_57 = arith.constant 0 : index
    %326 = vector.load %arg18[%c0_55, %c0_56, %c0_57] : memref<1x4x128xf32, #tpu.memory_space<vmem>>, vector<1x4x128xf32>
    %327 = vector.shape_cast %326 : vector<1x4x128xf32> to vector<4x128xf32>
    %328 = vector.shape_cast %325 : vector<4x128xf32> to vector<1x4x128xf32>
    tpu.vector_store %arg18[%c0_55, %c0_56, %c0_57], %328 {strides = array<i32>} : memref<1x4x128xf32, #tpu.memory_space<vmem>>, vector<1x4x128xf32>,
    return
  }
  func.func @transform_0(%arg0: i32) -> (i32, i32, i32) {
    %c0_i32 = arith.constant 0 : i32
    %c0_i32_0 = arith.constant 0 : i32
    %c0_i32_1 = arith.constant 0 : i32
    return %arg0, %c0_i32, %c0_i32_0 : i32, i32, i32
  }
  func.func @transform_1(%arg0: i32) -> (i32, i32) {
    %c0_i32 = arith.constant 0 : i32
    %c0_i32_0 = arith.constant 0 : i32
    %c0_i32_1 = arith.constant 0 : i32
    return %c0_i32, %c0_i32_0 : i32, i32
  }
  func.func @transform_2(%arg0: i32) -> (i32, i32) {
    %c0_i32 = arith.constant 0 : i32
    %c0_i32_0 = arith.constant 0 : i32
    %c0_i32_1 = arith.constant 0 : i32
    return %c0_i32, %c0_i32_0 : i32, i32
  }
  func.func @transform_3(%arg0: i32) -> (i32, i32) {
    %c0_i32 = arith.constant 0 : i32
    %c0_i32_0 = arith.constant 0 : i32
    %c0_i32_1 = arith.constant 0 : i32
    return %c0_i32, %c0_i32_0 : i32, i32
  }
  func.func @transform_4(%arg0: i32) -> (i32, i32, i32) {
    %c0_i32 = arith.constant 0 : i32
    %c0_i32_0 = arith.constant 0 : i32
    %c0_i32_1 = arith.constant 0 : i32
    %c0_i32_2 = arith.constant 0 : i32
    return %c0_i32, %c0_i32_0, %c0_i32_1 : i32, i32, i32
  }
  func.func @transform_5(%arg0: i32) -> (i32, i32) {
    %c0_i32 = arith.constant 0 : i32
    %c0_i32_0 = arith.constant 0 : i32
    %c0_i32_1 = arith.constant 0 : i32
    return %c0_i32, %c0_i32_0 : i32, i32
  }
  func.func @transform_6(%arg0: i32) -> (i32, i32) {
    %c0_i32 = arith.constant 0 : i32
    %c0_i32_0 = arith.constant 0 : i32
    %c0_i32_1 = arith.constant 0 : i32
    return %c0_i32, %c0_i32_0 : i32, i32
  }
  func.func @transform_7(%arg0: i32) -> (i32, i32) {
    %c0_i32 = arith.constant 0 : i32
    %c0_i32_0 = arith.constant 0 : i32
    %c0_i32_1 = arith.constant 0 : i32
    return %c0_i32, %c0_i32_0 : i32, i32
  }
  func.func @transform_8(%arg0: i32) -> (i32, i32) {
    %c0_i32 = arith.constant 0 : i32
    %c0_i32_0 = arith.constant 0 : i32
    %c0_i32_1 = arith.constant 0 : i32
    return %c0_i32, %c0_i32_0 : i32, i32
  }
  func.func @transform_9(%arg0: i32) -> (i32, i32) {
    %c0_i32 = arith.constant 0 : i32
    %c0_i32_0 = arith.constant 0 : i32
    %c0_i32_1 = arith.constant 0 : i32
    return %c0_i32, %c0_i32_0 : i32, i32
  }
  func.func @transform_10(%arg0: i32) -> (i32, i32) {
    %c0_i32 = arith.constant 0 : i32
    %c0_i32_0 = arith.constant 0 : i32
    %c0_i32_1 = arith.constant 0 : i32
    return %c0_i32, %c0_i32_0 : i32, i32
  }
  func.func @transform_11(%arg0: i32) -> (i32, i32) {
    %c0_i32 = arith.constant 0 : i32
    %c0_i32_0 = arith.constant 0 : i32
    %c0_i32_1 = arith.constant 0 : i32
    return %c0_i32, %c0_i32_0 : i32, i32
  }
  func.func @transform_12(%arg0: i32) -> (i32, i32) {
    %c0_i32 = arith.constant 0 : i32
    %c0_i32_0 = arith.constant 0 : i32
    %c0_i32_1 = arith.constant 0 : i32
    return %c0_i32, %c0_i32_0 : i32, i32
  }
  func.func @transform_13(%arg0: i32) -> (i32, i32) {
    %c0_i32 = arith.constant 0 : i32
    %c0_i32_0 = arith.constant 0 : i32
    %c0_i32_1 = arith.constant 0 : i32
    return %c0_i32, %c0_i32_0 : i32, i32
  }
  func.func @transform_14(%arg0: i32) -> (i32, i32) {
    %c0_i32 = arith.constant 0 : i32
    %c0_i32_0 = arith.constant 0 : i32
    %c0_i32_1 = arith.constant 0 : i32
    return %c0_i32, %c0_i32_0 : i32, i32
  }
  func.func @transform_15(%arg0: i32) -> (i32, i32) {
    %c0_i32 = arith.constant 0 : i32
    %c0_i32_0 = arith.constant 0 : i32
    %c0_i32_1 = arith.constant 0 : i32
    return %c0_i32, %c0_i32_0 : i32, i32
  }
  func.func @transform_16(%arg0: i32) -> (i32, i32) {
    %c0_i32 = arith.constant 0 : i32
    %c0_i32_0 = arith.constant 0 : i32
    %c0_i32_1 = arith.constant 0 : i32
    return %c0_i32, %c0_i32_0 : i32, i32
  }
  func.func @transform_17(%arg0: i32) -> (i32, i32, i32) {
    %c0_i32 = arith.constant 0 : i32
    %c0_i32_0 = arith.constant 0 : i32
    %c0_i32_1 = arith.constant 0 : i32
    return %arg0, %c0_i32, %c0_i32_0 : i32, i32, i32
  }
}

module attributes {stable_mosaic.version = 11 : i64} {
  func.func @_stage_first_kernel(%arg0: i32, %arg1: memref<1x64x192xf32, #tpu.memory_space<vmem>>, %arg2: memref<4x192x128xf32, #tpu.memory_space<vmem>>, %arg3: memref<16x256xf32, #tpu.memory_space<vmem>>, %arg4: memref<1x128xf32, #tpu.memory_space<vmem>>, %arg5: memref<128x128xf32, #tpu.memory_space<vmem>>, %arg6: memref<1x128xf32, #tpu.memory_space<vmem>>, %arg7: memref<1x128xf32, #tpu.memory_space<vmem>>, %arg8: memref<49x128xf32, #tpu.memory_space<vmem>>, %arg9: memref<1x128xf32, #tpu.memory_space<vmem>>, %arg10: memref<1x128xf32, #tpu.memory_space<vmem>>, %arg11: memref<1x128xf32, #tpu.memory_space<vmem>>, %arg12: memref<128x512xbf16, #tpu.memory_space<vmem>>, %arg13: memref<1x512xf32, #tpu.memory_space<vmem>>, %arg14: memref<512x128xbf16, #tpu.memory_space<vmem>>, %arg15: memref<1x128xf32, #tpu.memory_space<vmem>>, %arg16: memref<1x128xf32, #tpu.memory_space<vmem>>, %arg17: memref<1x16x128xf32, #tpu.memory_space<vmem>>) attributes {dimension_semantics = [#tpu.dimension_semantics<parallel>], iteration_bounds = array<i64: 2>, scalar_prefetch = 0 : i64, scratch_operands = 0 : i64, tpu.core_type = #tpu.core_type<tc>, window_params = [{transform_indices = @transform_0, window_bounds = array<i64: 1, 64, 192>}, {pipeline_mode = #tpu.pipeline_mode<synchronous>, transform_indices = @transform_1, window_bounds = array<i64: 4, 192, 128>}, {pipeline_mode = #tpu.pipeline_mode<synchronous>, transform_indices = @transform_2, window_bounds = array<i64: 16, 256>}, {pipeline_mode = #tpu.pipeline_mode<synchronous>, transform_indices = @transform_3, window_bounds = array<i64: 1, 128>}, {pipeline_mode = #tpu.pipeline_mode<synchronous>, transform_indices = @transform_4, window_bounds = array<i64: 128, 128>}, {pipeline_mode = #tpu.pipeline_mode<synchronous>, transform_indices = @transform_5, window_bounds = array<i64: 1, 128>}, {pipeline_mode = #tpu.pipeline_mode<synchronous>, transform_indices = @transform_6, window_bounds = array<i64: 1, 128>}, {pipeline_mode = #tpu.pipeline_mode<synchronous>, transform_indices = @transform_7, window_bounds = array<i64: 49, 128>}, {pipeline_mode = #tpu.pipeline_mode<synchronous>, transform_indices = @transform_8, window_bounds = array<i64: 1, 128>}, {pipeline_mode = #tpu.pipeline_mode<synchronous>, transform_indices = @transform_9, window_bounds = array<i64: 1, 128>}, {pipeline_mode = #tpu.pipeline_mode<synchronous>, transform_indices = @transform_10, window_bounds = array<i64: 1, 128>}, {pipeline_mode = #tpu.pipeline_mode<synchronous>, transform_indices = @transform_11, window_bounds = array<i64: 128, 512>}, {pipeline_mode = #tpu.pipeline_mode<synchronous>, transform_indices = @transform_12, window_bounds = array<i64: 1, 512>}, {pipeline_mode = #tpu.pipeline_mode<synchronous>, transform_indices = @transform_13, window_bounds = array<i64: 512, 128>}, {pipeline_mode = #tpu.pipeline_mode<synchronous>, transform_indices = @transform_14, window_bounds = array<i64: 1, 128>}, {pipeline_mode = #tpu.pipeline_mode<synchronous>, transform_indices = @transform_15, window_bounds = array<i64: 1, 128>}, {transform_indices = @transform_16, window_bounds = array<i64: 1, 16, 128>}]} {
    %c0 = arith.constant 0 : index
    %c0_0 = arith.constant 0 : index
    %c0_1 = arith.constant 0 : index
    %0 = vector.load %arg1[%c0, %c0_0, %c0_1] : memref<1x64x192xf32, #tpu.memory_space<vmem>>, vector<1x64x192xf32>
    %1 = vector.shape_cast %0 : vector<1x64x192xf32> to vector<64x192xf32>
    %c0_2 = arith.constant 0 : index
    %c0_3 = arith.constant 0 : index
    %c0_4 = arith.constant 0 : index
    %2 = vector.load %arg2[%c0_2, %c0_3, %c0_4] : memref<4x192x128xf32, #tpu.memory_space<vmem>>, vector<1x192x128xf32>
    %3 = vector.shape_cast %2 : vector<1x192x128xf32> to vector<192x128xf32>
    %cst = arith.constant dense<0.000000e+00> : vector<64x128xf32>
    %4 = tpu.matmul %1, %3, %cst {dimension_numbers = #tpu.dot_dimension_numbers<[1], [0], [0], [1], [0, 0, 1, 1], [], []>} : vector<64x192xf32>, vector<192x128xf32>, vector<64x128xf32> -> vector<64x128xf32>
    %c1 = arith.constant 1 : index
    %c0_5 = arith.constant 0 : index
    %c0_6 = arith.constant 0 : index
    %5 = vector.load %arg2[%c1, %c0_5, %c0_6] : memref<4x192x128xf32, #tpu.memory_space<vmem>>, vector<1x192x128xf32>
    %6 = vector.shape_cast %5 : vector<1x192x128xf32> to vector<192x128xf32>
    %cst_7 = arith.constant dense<0.000000e+00> : vector<64x128xf32>
    %7 = tpu.matmul %1, %6, %cst_7 {dimension_numbers = #tpu.dot_dimension_numbers<[1], [0], [0], [1], [0, 0, 1, 1], [], []>} : vector<64x192xf32>, vector<192x128xf32>, vector<64x128xf32> -> vector<64x128xf32>
    %c2 = arith.constant 2 : index
    %c0_8 = arith.constant 0 : index
    %c0_9 = arith.constant 0 : index
    %8 = vector.load %arg2[%c2, %c0_8, %c0_9] : memref<4x192x128xf32, #tpu.memory_space<vmem>>, vector<1x192x128xf32>
    %9 = vector.shape_cast %8 : vector<1x192x128xf32> to vector<192x128xf32>
    %cst_10 = arith.constant dense<0.000000e+00> : vector<64x128xf32>
    %10 = tpu.matmul %1, %9, %cst_10 {dimension_numbers = #tpu.dot_dimension_numbers<[1], [0], [0], [1], [0, 0, 1, 1], [], []>} : vector<64x192xf32>, vector<192x128xf32>, vector<64x128xf32> -> vector<64x128xf32>
    %c3 = arith.constant 3 : index
    %c0_11 = arith.constant 0 : index
    %c0_12 = arith.constant 0 : index
    %11 = vector.load %arg2[%c3, %c0_11, %c0_12] : memref<4x192x128xf32, #tpu.memory_space<vmem>>, vector<1x192x128xf32>
    %12 = vector.shape_cast %11 : vector<1x192x128xf32> to vector<192x128xf32>
    %cst_13 = arith.constant dense<0.000000e+00> : vector<64x128xf32>
    %13 = tpu.matmul %1, %12, %cst_13 {dimension_numbers = #tpu.dot_dimension_numbers<[1], [0], [0], [1], [0, 0, 1, 1], [], []>} : vector<64x192xf32>, vector<192x128xf32>, vector<64x128xf32> -> vector<64x128xf32>
    %14 = tpu.concatenate %4, %7, %10, %13 in 0 : vector<64x128xf32>, vector<64x128xf32>, vector<64x128xf32>, vector<64x128xf32> -> vector<256x128xf32>
    %c0_14 = arith.constant 0 : index
    %c0_15 = arith.constant 0 : index
    %15 = vector.load %arg3[%c0_14, %c0_15] : memref<16x256xf32, #tpu.memory_space<vmem>>, vector<16x256xf32>
    %cst_16 = arith.constant dense<0.000000e+00> : vector<16x128xf32>
    %16 = tpu.matmul %15, %14, %cst_16 {dimension_numbers = #tpu.dot_dimension_numbers<[1], [0], [0], [1], [0, 0, 1, 1], [], []>} : vector<16x256xf32>, vector<256x128xf32>, vector<16x128xf32> -> vector<16x128xf32>
    %c0_17 = arith.constant 0 : index
    %c0_18 = arith.constant 0 : index
    %17 = vector.load %arg4[%c0_17, %c0_18] : memref<1x128xf32, #tpu.memory_space<vmem>>, vector<1x128xf32>
    %18 = vector.broadcast %17 : vector<1x128xf32> to vector<16x128xf32>
    %19 = arith.addf %16, %18 : vector<16x128xf32>
    %c0_19 = arith.constant 0 : index
    %c0_20 = arith.constant 0 : index
    %20 = vector.load %arg5[%c0_19, %c0_20] : memref<128x128xf32, #tpu.memory_space<vmem>>, vector<128x128xf32>
    %c0_21 = arith.constant 0 : index
    %c0_22 = arith.constant 0 : index
    %21 = vector.load %arg6[%c0_21, %c0_22] : memref<1x128xf32, #tpu.memory_space<vmem>>, vector<1x128xf32>
    %c0_23 = arith.constant 0 : index
    %c0_24 = arith.constant 0 : index
    %22 = vector.load %arg7[%c0_23, %c0_24] : memref<1x128xf32, #tpu.memory_space<vmem>>, vector<1x128xf32>
    %cst_25 = arith.constant dense<0.000000e+00> : vector<16x128xf32>
    %23 = tpu.matmul %19, %20, %cst_25 {dimension_numbers = #tpu.dot_dimension_numbers<[1], [0], [0], [1], [0, 0, 1, 1], [], []>} : vector<16x128xf32>, vector<128x128xf32>, vector<16x128xf32> -> vector<16x128xf32>
    %24 = arith.subf %19, %23 : vector<16x128xf32>
    %25 = arith.mulf %24, %24 : vector<16x128xf32>
    %cst_26 = arith.constant dense<0.000000e+00> : vector<16x128xf32>
    %26 = tpu.matmul %25, %20, %cst_26 {dimension_numbers = #tpu.dot_dimension_numbers<[1], [0], [0], [1], [0, 0, 1, 1], [], []>} : vector<16x128xf32>, vector<128x128xf32>, vector<16x128xf32> -> vector<16x128xf32>
    %cst_27 = arith.constant 9.99999997E-7 : f32
    %27 = vector.broadcast %cst_27 : f32 to vector<16x128xf32>
    %28 = arith.addf %26, %27 : vector<16x128xf32>
    %29 = math.rsqrt %28 : vector<16x128xf32>
    %30 = arith.mulf %24, %29 : vector<16x128xf32>
    %31 = vector.broadcast %21 : vector<1x128xf32> to vector<16x128xf32>
    %32 = arith.mulf %30, %31 : vector<16x128xf32>
    %33 = vector.broadcast %22 : vector<1x128xf32> to vector<16x128xf32>
    %34 = arith.addf %32, %33 : vector<16x128xf32>
    %cst_28 = arith.constant 0.000000e+00 : f32
    %35 = vector.broadcast %cst_28 : f32 to vector<3x128xf32>
    %36 = tpu.concatenate %35, %34, %35 in 0 : vector<3x128xf32>, vector<16x128xf32>, vector<3x128xf32> -> vector<22x128xf32>
    %c0_29 = arith.constant 0 : index
    %c0_30 = arith.constant 0 : index
    %37 = vector.load %arg8[%c0_29, %c0_30] : memref<49x128xf32, #tpu.memory_space<vmem>>, vector<49x128xf32>
    %cst_31 = arith.constant 0.000000e+00 : f32
    %38 = vector.broadcast %cst_31 : f32 to vector<16x128xf32>
    %c24_i32 = arith.constant 24 : i32
    %39 = tpu.dynamic_rotate %36 by %c24_i32 dim 1 : vector<22x128xf32>, i32 -> vector<22x128xf32>
    %40 = vector.extract_strided_slice %39 {offsets = [0, 0], sizes = [16, 128], strides = [1, 1]} : vector<22x128xf32> to vector<16x128xf32>
    %41 = vector.extract_strided_slice %37 {offsets = [0, 0], sizes = [1, 128], strides = [1, 1]} : vector<49x128xf32> to vector<1x128xf32>
    %42 = vector.broadcast %41 : vector<1x128xf32> to vector<16x128xf32>
    %43 = arith.mulf %40, %42 : vector<16x128xf32>
    %44 = arith.addf %38, %43 : vector<16x128xf32>
    %45 = vector.extract_strided_slice %39 {offsets = [1, 0], sizes = [16, 128], strides = [1, 1]} : vector<22x128xf32> to vector<16x128xf32>
    %46 = vector.extract_strided_slice %37 {offsets = [7, 0], sizes = [1, 128], strides = [1, 1]} : vector<49x128xf32> to vector<1x128xf32>
    %47 = vector.broadcast %46 : vector<1x128xf32> to vector<16x128xf32>
    %48 = arith.mulf %45, %47 : vector<16x128xf32>
    %49 = arith.addf %44, %48 : vector<16x128xf32>
    %50 = vector.extract_strided_slice %39 {offsets = [2, 0], sizes = [16, 128], strides = [1, 1]} : vector<22x128xf32> to vector<16x128xf32>
    %51 = vector.extract_strided_slice %37 {offsets = [14, 0], sizes = [1, 128], strides = [1, 1]} : vector<49x128xf32> to vector<1x128xf32>
    %52 = vector.broadcast %51 : vector<1x128xf32> to vector<16x128xf32>
    %53 = arith.mulf %50, %52 : vector<16x128xf32>
    %54 = arith.addf %49, %53 : vector<16x128xf32>
    %55 = vector.extract_strided_slice %39 {offsets = [3, 0], sizes = [16, 128], strides = [1, 1]} : vector<22x128xf32> to vector<16x128xf32>
    %56 = vector.extract_strided_slice %37 {offsets = [21, 0], sizes = [1, 128], strides = [1, 1]} : vector<49x128xf32> to vector<1x128xf32>
    %57 = vector.broadcast %56 : vector<1x128xf32> to vector<16x128xf32>
    %58 = arith.mulf %55, %57 : vector<16x128xf32>
    %59 = arith.addf %54, %58 : vector<16x128xf32>
    %60 = vector.extract_strided_slice %39 {offsets = [4, 0], sizes = [16, 128], strides = [1, 1]} : vector<22x128xf32> to vector<16x128xf32>
    %61 = vector.extract_strided_slice %37 {offsets = [28, 0], sizes = [1, 128], strides = [1, 1]} : vector<49x128xf32> to vector<1x128xf32>
    %62 = vector.broadcast %61 : vector<1x128xf32> to vector<16x128xf32>
    %63 = arith.mulf %60, %62 : vector<16x128xf32>
    %64 = arith.addf %59, %63 : vector<16x128xf32>
    %65 = vector.extract_strided_slice %39 {offsets = [5, 0], sizes = [16, 128], strides = [1, 1]} : vector<22x128xf32> to vector<16x128xf32>
    %66 = vector.extract_strided_slice %37 {offsets = [35, 0], sizes = [1, 128], strides = [1, 1]} : vector<49x128xf32> to vector<1x128xf32>
    %67 = vector.broadcast %66 : vector<1x128xf32> to vector<16x128xf32>
    %68 = arith.mulf %65, %67 : vector<16x128xf32>
    %69 = arith.addf %64, %68 : vector<16x128xf32>
    %70 = vector.extract_strided_slice %39 {offsets = [6, 0], sizes = [16, 128], strides = [1, 1]} : vector<22x128xf32> to vector<16x128xf32>
    %71 = vector.extract_strided_slice %37 {offsets = [42, 0], sizes = [1, 128], strides = [1, 1]} : vector<49x128xf32> to vector<1x128xf32>
    %72 = vector.broadcast %71 : vector<1x128xf32> to vector<16x128xf32>
    %73 = arith.mulf %70, %72 : vector<16x128xf32>
    %74 = arith.addf %69, %73 : vector<16x128xf32>
    %c16_i32 = arith.constant 16 : i32
    %75 = tpu.dynamic_rotate %36 by %c16_i32 dim 1 : vector<22x128xf32>, i32 -> vector<22x128xf32>
    %76 = vector.extract_strided_slice %75 {offsets = [0, 0], sizes = [16, 128], strides = [1, 1]} : vector<22x128xf32> to vector<16x128xf32>
    %77 = vector.extract_strided_slice %37 {offsets = [1, 0], sizes = [1, 128], strides = [1, 1]} : vector<49x128xf32> to vector<1x128xf32>
    %78 = vector.broadcast %77 : vector<1x128xf32> to vector<16x128xf32>
    %79 = arith.mulf %76, %78 : vector<16x128xf32>
    %80 = arith.addf %74, %79 : vector<16x128xf32>
    %81 = vector.extract_strided_slice %75 {offsets = [1, 0], sizes = [16, 128], strides = [1, 1]} : vector<22x128xf32> to vector<16x128xf32>
    %82 = vector.extract_strided_slice %37 {offsets = [8, 0], sizes = [1, 128], strides = [1, 1]} : vector<49x128xf32> to vector<1x128xf32>
    %83 = vector.broadcast %82 : vector<1x128xf32> to vector<16x128xf32>
    %84 = arith.mulf %81, %83 : vector<16x128xf32>
    %85 = arith.addf %80, %84 : vector<16x128xf32>
    %86 = vector.extract_strided_slice %75 {offsets = [2, 0], sizes = [16, 128], strides = [1, 1]} : vector<22x128xf32> to vector<16x128xf32>
    %87 = vector.extract_strided_slice %37 {offsets = [15, 0], sizes = [1, 128], strides = [1, 1]} : vector<49x128xf32> to vector<1x128xf32>
    %88 = vector.broadcast %87 : vector<1x128xf32> to vector<16x128xf32>
    %89 = arith.mulf %86, %88 : vector<16x128xf32>
    %90 = arith.addf %85, %89 : vector<16x128xf32>
    %91 = vector.extract_strided_slice %75 {offsets = [3, 0], sizes = [16, 128], strides = [1, 1]} : vector<22x128xf32> to vector<16x128xf32>
    %92 = vector.extract_strided_slice %37 {offsets = [22, 0], sizes = [1, 128], strides = [1, 1]} : vector<49x128xf32> to vector<1x128xf32>
    %93 = vector.broadcast %92 : vector<1x128xf32> to vector<16x128xf32>
    %94 = arith.mulf %91, %93 : vector<16x128xf32>
    %95 = arith.addf %90, %94 : vector<16x128xf32>
    %96 = vector.extract_strided_slice %75 {offsets = [4, 0], sizes = [16, 128], strides = [1, 1]} : vector<22x128xf32> to vector<16x128xf32>
    %97 = vector.extract_strided_slice %37 {offsets = [29, 0], sizes = [1, 128], strides = [1, 1]} : vector<49x128xf32> to vector<1x128xf32>
    %98 = vector.broadcast %97 : vector<1x128xf32> to vector<16x128xf32>
    %99 = arith.mulf %96, %98 : vector<16x128xf32>
    %100 = arith.addf %95, %99 : vector<16x128xf32>
    %101 = vector.extract_strided_slice %75 {offsets = [5, 0], sizes = [16, 128], strides = [1, 1]} : vector<22x128xf32> to vector<16x128xf32>
    %102 = vector.extract_strided_slice %37 {offsets = [36, 0], sizes = [1, 128], strides = [1, 1]} : vector<49x128xf32> to vector<1x128xf32>
    %103 = vector.broadcast %102 : vector<1x128xf32> to vector<16x128xf32>
    %104 = arith.mulf %101, %103 : vector<16x128xf32>
    %105 = arith.addf %100, %104 : vector<16x128xf32>
    %106 = vector.extract_strided_slice %75 {offsets = [6, 0], sizes = [16, 128], strides = [1, 1]} : vector<22x128xf32> to vector<16x128xf32>
    %107 = vector.extract_strided_slice %37 {offsets = [43, 0], sizes = [1, 128], strides = [1, 1]} : vector<49x128xf32> to vector<1x128xf32>
    %108 = vector.broadcast %107 : vector<1x128xf32> to vector<16x128xf32>
    %109 = arith.mulf %106, %108 : vector<16x128xf32>
    %110 = arith.addf %105, %109 : vector<16x128xf32>
    %c8_i32 = arith.constant 8 : i32
    %111 = tpu.dynamic_rotate %36 by %c8_i32 dim 1 : vector<22x128xf32>, i32 -> vector<22x128xf32>
    %112 = vector.extract_strided_slice %111 {offsets = [0, 0], sizes = [16, 128], strides = [1, 1]} : vector<22x128xf32> to vector<16x128xf32>
    %113 = vector.extract_strided_slice %37 {offsets = [2, 0], sizes = [1, 128], strides = [1, 1]} : vector<49x128xf32> to vector<1x128xf32>
    %114 = vector.broadcast %113 : vector<1x128xf32> to vector<16x128xf32>
    %115 = arith.mulf %112, %114 : vector<16x128xf32>
    %116 = arith.addf %110, %115 : vector<16x128xf32>
    %117 = vector.extract_strided_slice %111 {offsets = [1, 0], sizes = [16, 128], strides = [1, 1]} : vector<22x128xf32> to vector<16x128xf32>
    %118 = vector.extract_strided_slice %37 {offsets = [9, 0], sizes = [1, 128], strides = [1, 1]} : vector<49x128xf32> to vector<1x128xf32>
    %119 = vector.broadcast %118 : vector<1x128xf32> to vector<16x128xf32>
    %120 = arith.mulf %117, %119 : vector<16x128xf32>
    %121 = arith.addf %116, %120 : vector<16x128xf32>
    %122 = vector.extract_strided_slice %111 {offsets = [2, 0], sizes = [16, 128], strides = [1, 1]} : vector<22x128xf32> to vector<16x128xf32>
    %123 = vector.extract_strided_slice %37 {offsets = [16, 0], sizes = [1, 128], strides = [1, 1]} : vector<49x128xf32> to vector<1x128xf32>
    %124 = vector.broadcast %123 : vector<1x128xf32> to vector<16x128xf32>
    %125 = arith.mulf %122, %124 : vector<16x128xf32>
    %126 = arith.addf %121, %125 : vector<16x128xf32>
    %127 = vector.extract_strided_slice %111 {offsets = [3, 0], sizes = [16, 128], strides = [1, 1]} : vector<22x128xf32> to vector<16x128xf32>
    %128 = vector.extract_strided_slice %37 {offsets = [23, 0], sizes = [1, 128], strides = [1, 1]} : vector<49x128xf32> to vector<1x128xf32>
    %129 = vector.broadcast %128 : vector<1x128xf32> to vector<16x128xf32>
    %130 = arith.mulf %127, %129 : vector<16x128xf32>
    %131 = arith.addf %126, %130 : vector<16x128xf32>
    %132 = vector.extract_strided_slice %111 {offsets = [4, 0], sizes = [16, 128], strides = [1, 1]} : vector<22x128xf32> to vector<16x128xf32>
    %133 = vector.extract_strided_slice %37 {offsets = [30, 0], sizes = [1, 128], strides = [1, 1]} : vector<49x128xf32> to vector<1x128xf32>
    %134 = vector.broadcast %133 : vector<1x128xf32> to vector<16x128xf32>
    %135 = arith.mulf %132, %134 : vector<16x128xf32>
    %136 = arith.addf %131, %135 : vector<16x128xf32>
    %137 = vector.extract_strided_slice %111 {offsets = [5, 0], sizes = [16, 128], strides = [1, 1]} : vector<22x128xf32> to vector<16x128xf32>
    %138 = vector.extract_strided_slice %37 {offsets = [37, 0], sizes = [1, 128], strides = [1, 1]} : vector<49x128xf32> to vector<1x128xf32>
    %139 = vector.broadcast %138 : vector<1x128xf32> to vector<16x128xf32>
    %140 = arith.mulf %137, %139 : vector<16x128xf32>
    %141 = arith.addf %136, %140 : vector<16x128xf32>
    %142 = vector.extract_strided_slice %111 {offsets = [6, 0], sizes = [16, 128], strides = [1, 1]} : vector<22x128xf32> to vector<16x128xf32>
    %143 = vector.extract_strided_slice %37 {offsets = [44, 0], sizes = [1, 128], strides = [1, 1]} : vector<49x128xf32> to vector<1x128xf32>
    %144 = vector.broadcast %143 : vector<1x128xf32> to vector<16x128xf32>
    %145 = arith.mulf %142, %144 : vector<16x128xf32>
    %146 = arith.addf %141, %145 : vector<16x128xf32>
    %147 = vector.extract_strided_slice %36 {offsets = [0, 0], sizes = [16, 128], strides = [1, 1]} : vector<22x128xf32> to vector<16x128xf32>
    %148 = vector.extract_strided_slice %37 {offsets = [3, 0], sizes = [1, 128], strides = [1, 1]} : vector<49x128xf32> to vector<1x128xf32>
    %149 = vector.broadcast %148 : vector<1x128xf32> to vector<16x128xf32>
    %150 = arith.mulf %147, %149 : vector<16x128xf32>
    %151 = arith.addf %146, %150 : vector<16x128xf32>
    %152 = vector.extract_strided_slice %36 {offsets = [1, 0], sizes = [16, 128], strides = [1, 1]} : vector<22x128xf32> to vector<16x128xf32>
    %153 = vector.extract_strided_slice %37 {offsets = [10, 0], sizes = [1, 128], strides = [1, 1]} : vector<49x128xf32> to vector<1x128xf32>
    %154 = vector.broadcast %153 : vector<1x128xf32> to vector<16x128xf32>
    %155 = arith.mulf %152, %154 : vector<16x128xf32>
    %156 = arith.addf %151, %155 : vector<16x128xf32>
    %157 = vector.extract_strided_slice %36 {offsets = [2, 0], sizes = [16, 128], strides = [1, 1]} : vector<22x128xf32> to vector<16x128xf32>
    %158 = vector.extract_strided_slice %37 {offsets = [17, 0], sizes = [1, 128], strides = [1, 1]} : vector<49x128xf32> to vector<1x128xf32>
    %159 = vector.broadcast %158 : vector<1x128xf32> to vector<16x128xf32>
    %160 = arith.mulf %157, %159 : vector<16x128xf32>
    %161 = arith.addf %156, %160 : vector<16x128xf32>
    %162 = vector.extract_strided_slice %36 {offsets = [3, 0], sizes = [16, 128], strides = [1, 1]} : vector<22x128xf32> to vector<16x128xf32>
    %163 = vector.extract_strided_slice %37 {offsets = [24, 0], sizes = [1, 128], strides = [1, 1]} : vector<49x128xf32> to vector<1x128xf32>
    %164 = vector.broadcast %163 : vector<1x128xf32> to vector<16x128xf32>
    %165 = arith.mulf %162, %164 : vector<16x128xf32>
    %166 = arith.addf %161, %165 : vector<16x128xf32>
    %167 = vector.extract_strided_slice %36 {offsets = [4, 0], sizes = [16, 128], strides = [1, 1]} : vector<22x128xf32> to vector<16x128xf32>
    %168 = vector.extract_strided_slice %37 {offsets = [31, 0], sizes = [1, 128], strides = [1, 1]} : vector<49x128xf32> to vector<1x128xf32>
    %169 = vector.broadcast %168 : vector<1x128xf32> to vector<16x128xf32>
    %170 = arith.mulf %167, %169 : vector<16x128xf32>
    %171 = arith.addf %166, %170 : vector<16x128xf32>
    %172 = vector.extract_strided_slice %36 {offsets = [5, 0], sizes = [16, 128], strides = [1, 1]} : vector<22x128xf32> to vector<16x128xf32>
    %173 = vector.extract_strided_slice %37 {offsets = [38, 0], sizes = [1, 128], strides = [1, 1]} : vector<49x128xf32> to vector<1x128xf32>
    %174 = vector.broadcast %173 : vector<1x128xf32> to vector<16x128xf32>
    %175 = arith.mulf %172, %174 : vector<16x128xf32>
    %176 = arith.addf %171, %175 : vector<16x128xf32>
    %177 = vector.extract_strided_slice %36 {offsets = [6, 0], sizes = [16, 128], strides = [1, 1]} : vector<22x128xf32> to vector<16x128xf32>
    %178 = vector.extract_strided_slice %37 {offsets = [45, 0], sizes = [1, 128], strides = [1, 1]} : vector<49x128xf32> to vector<1x128xf32>
    %179 = vector.broadcast %178 : vector<1x128xf32> to vector<16x128xf32>
    %180 = arith.mulf %177, %179 : vector<16x128xf32>
    %181 = arith.addf %176, %180 : vector<16x128xf32>
    %c120_i32 = arith.constant 120 : i32
    %182 = tpu.dynamic_rotate %36 by %c120_i32 dim 1 : vector<22x128xf32>, i32 -> vector<22x128xf32>
    %183 = vector.extract_strided_slice %182 {offsets = [0, 0], sizes = [16, 128], strides = [1, 1]} : vector<22x128xf32> to vector<16x128xf32>
    %184 = vector.extract_strided_slice %37 {offsets = [4, 0], sizes = [1, 128], strides = [1, 1]} : vector<49x128xf32> to vector<1x128xf32>
    %185 = vector.broadcast %184 : vector<1x128xf32> to vector<16x128xf32>
    %186 = arith.mulf %183, %185 : vector<16x128xf32>
    %187 = arith.addf %181, %186 : vector<16x128xf32>
    %188 = vector.extract_strided_slice %182 {offsets = [1, 0], sizes = [16, 128], strides = [1, 1]} : vector<22x128xf32> to vector<16x128xf32>
    %189 = vector.extract_strided_slice %37 {offsets = [11, 0], sizes = [1, 128], strides = [1, 1]} : vector<49x128xf32> to vector<1x128xf32>
    %190 = vector.broadcast %189 : vector<1x128xf32> to vector<16x128xf32>
    %191 = arith.mulf %188, %190 : vector<16x128xf32>
    %192 = arith.addf %187, %191 : vector<16x128xf32>
    %193 = vector.extract_strided_slice %182 {offsets = [2, 0], sizes = [16, 128], strides = [1, 1]} : vector<22x128xf32> to vector<16x128xf32>
    %194 = vector.extract_strided_slice %37 {offsets = [18, 0], sizes = [1, 128], strides = [1, 1]} : vector<49x128xf32> to vector<1x128xf32>
    %195 = vector.broadcast %194 : vector<1x128xf32> to vector<16x128xf32>
    %196 = arith.mulf %193, %195 : vector<16x128xf32>
    %197 = arith.addf %192, %196 : vector<16x128xf32>
    %198 = vector.extract_strided_slice %182 {offsets = [3, 0], sizes = [16, 128], strides = [1, 1]} : vector<22x128xf32> to vector<16x128xf32>
    %199 = vector.extract_strided_slice %37 {offsets = [25, 0], sizes = [1, 128], strides = [1, 1]} : vector<49x128xf32> to vector<1x128xf32>
    %200 = vector.broadcast %199 : vector<1x128xf32> to vector<16x128xf32>
    %201 = arith.mulf %198, %200 : vector<16x128xf32>
    %202 = arith.addf %197, %201 : vector<16x128xf32>
    %203 = vector.extract_strided_slice %182 {offsets = [4, 0], sizes = [16, 128], strides = [1, 1]} : vector<22x128xf32> to vector<16x128xf32>
    %204 = vector.extract_strided_slice %37 {offsets = [32, 0], sizes = [1, 128], strides = [1, 1]} : vector<49x128xf32> to vector<1x128xf32>
    %205 = vector.broadcast %204 : vector<1x128xf32> to vector<16x128xf32>
    %206 = arith.mulf %203, %205 : vector<16x128xf32>
    %207 = arith.addf %202, %206 : vector<16x128xf32>
    %208 = vector.extract_strided_slice %182 {offsets = [5, 0], sizes = [16, 128], strides = [1, 1]} : vector<22x128xf32> to vector<16x128xf32>
    %209 = vector.extract_strided_slice %37 {offsets = [39, 0], sizes = [1, 128], strides = [1, 1]} : vector<49x128xf32> to vector<1x128xf32>
    %210 = vector.broadcast %209 : vector<1x128xf32> to vector<16x128xf32>
    %211 = arith.mulf %208, %210 : vector<16x128xf32>
    %212 = arith.addf %207, %211 : vector<16x128xf32>
    %213 = vector.extract_strided_slice %182 {offsets = [6, 0], sizes = [16, 128], strides = [1, 1]} : vector<22x128xf32> to vector<16x128xf32>
    %214 = vector.extract_strided_slice %37 {offsets = [46, 0], sizes = [1, 128], strides = [1, 1]} : vector<49x128xf32> to vector<1x128xf32>
    %215 = vector.broadcast %214 : vector<1x128xf32> to vector<16x128xf32>
    %216 = arith.mulf %213, %215 : vector<16x128xf32>
    %217 = arith.addf %212, %216 : vector<16x128xf32>
    %c112_i32 = arith.constant 112 : i32
    %218 = tpu.dynamic_rotate %36 by %c112_i32 dim 1 : vector<22x128xf32>, i32 -> vector<22x128xf32>
    %219 = vector.extract_strided_slice %218 {offsets = [0, 0], sizes = [16, 128], strides = [1, 1]} : vector<22x128xf32> to vector<16x128xf32>
    %220 = vector.extract_strided_slice %37 {offsets = [5, 0], sizes = [1, 128], strides = [1, 1]} : vector<49x128xf32> to vector<1x128xf32>
    %221 = vector.broadcast %220 : vector<1x128xf32> to vector<16x128xf32>
    %222 = arith.mulf %219, %221 : vector<16x128xf32>
    %223 = arith.addf %217, %222 : vector<16x128xf32>
    %224 = vector.extract_strided_slice %218 {offsets = [1, 0], sizes = [16, 128], strides = [1, 1]} : vector<22x128xf32> to vector<16x128xf32>
    %225 = vector.extract_strided_slice %37 {offsets = [12, 0], sizes = [1, 128], strides = [1, 1]} : vector<49x128xf32> to vector<1x128xf32>
    %226 = vector.broadcast %225 : vector<1x128xf32> to vector<16x128xf32>
    %227 = arith.mulf %224, %226 : vector<16x128xf32>
    %228 = arith.addf %223, %227 : vector<16x128xf32>
    %229 = vector.extract_strided_slice %218 {offsets = [2, 0], sizes = [16, 128], strides = [1, 1]} : vector<22x128xf32> to vector<16x128xf32>
    %230 = vector.extract_strided_slice %37 {offsets = [19, 0], sizes = [1, 128], strides = [1, 1]} : vector<49x128xf32> to vector<1x128xf32>
    %231 = vector.broadcast %230 : vector<1x128xf32> to vector<16x128xf32>
    %232 = arith.mulf %229, %231 : vector<16x128xf32>
    %233 = arith.addf %228, %232 : vector<16x128xf32>
    %234 = vector.extract_strided_slice %218 {offsets = [3, 0], sizes = [16, 128], strides = [1, 1]} : vector<22x128xf32> to vector<16x128xf32>
    %235 = vector.extract_strided_slice %37 {offsets = [26, 0], sizes = [1, 128], strides = [1, 1]} : vector<49x128xf32> to vector<1x128xf32>
    %236 = vector.broadcast %235 : vector<1x128xf32> to vector<16x128xf32>
    %237 = arith.mulf %234, %236 : vector<16x128xf32>
    %238 = arith.addf %233, %237 : vector<16x128xf32>
    %239 = vector.extract_strided_slice %218 {offsets = [4, 0], sizes = [16, 128], strides = [1, 1]} : vector<22x128xf32> to vector<16x128xf32>
    %240 = vector.extract_strided_slice %37 {offsets = [33, 0], sizes = [1, 128], strides = [1, 1]} : vector<49x128xf32> to vector<1x128xf32>
    %241 = vector.broadcast %240 : vector<1x128xf32> to vector<16x128xf32>
    %242 = arith.mulf %239, %241 : vector<16x128xf32>
    %243 = arith.addf %238, %242 : vector<16x128xf32>
    %244 = vector.extract_strided_slice %218 {offsets = [5, 0], sizes = [16, 128], strides = [1, 1]} : vector<22x128xf32> to vector<16x128xf32>
    %245 = vector.extract_strided_slice %37 {offsets = [40, 0], sizes = [1, 128], strides = [1, 1]} : vector<49x128xf32> to vector<1x128xf32>
    %246 = vector.broadcast %245 : vector<1x128xf32> to vector<16x128xf32>
    %247 = arith.mulf %244, %246 : vector<16x128xf32>
    %248 = arith.addf %243, %247 : vector<16x128xf32>
    %249 = vector.extract_strided_slice %218 {offsets = [6, 0], sizes = [16, 128], strides = [1, 1]} : vector<22x128xf32> to vector<16x128xf32>
    %250 = vector.extract_strided_slice %37 {offsets = [47, 0], sizes = [1, 128], strides = [1, 1]} : vector<49x128xf32> to vector<1x128xf32>
    %251 = vector.broadcast %250 : vector<1x128xf32> to vector<16x128xf32>
    %252 = arith.mulf %249, %251 : vector<16x128xf32>
    %253 = arith.addf %248, %252 : vector<16x128xf32>
    %c104_i32 = arith.constant 104 : i32
    %254 = tpu.dynamic_rotate %36 by %c104_i32 dim 1 : vector<22x128xf32>, i32 -> vector<22x128xf32>
    %255 = vector.extract_strided_slice %254 {offsets = [0, 0], sizes = [16, 128], strides = [1, 1]} : vector<22x128xf32> to vector<16x128xf32>
    %256 = vector.extract_strided_slice %37 {offsets = [6, 0], sizes = [1, 128], strides = [1, 1]} : vector<49x128xf32> to vector<1x128xf32>
    %257 = vector.broadcast %256 : vector<1x128xf32> to vector<16x128xf32>
    %258 = arith.mulf %255, %257 : vector<16x128xf32>
    %259 = arith.addf %253, %258 : vector<16x128xf32>
    %260 = vector.extract_strided_slice %254 {offsets = [1, 0], sizes = [16, 128], strides = [1, 1]} : vector<22x128xf32> to vector<16x128xf32>
    %261 = vector.extract_strided_slice %37 {offsets = [13, 0], sizes = [1, 128], strides = [1, 1]} : vector<49x128xf32> to vector<1x128xf32>
    %262 = vector.broadcast %261 : vector<1x128xf32> to vector<16x128xf32>
    %263 = arith.mulf %260, %262 : vector<16x128xf32>
    %264 = arith.addf %259, %263 : vector<16x128xf32>
    %265 = vector.extract_strided_slice %254 {offsets = [2, 0], sizes = [16, 128], strides = [1, 1]} : vector<22x128xf32> to vector<16x128xf32>
    %266 = vector.extract_strided_slice %37 {offsets = [20, 0], sizes = [1, 128], strides = [1, 1]} : vector<49x128xf32> to vector<1x128xf32>
    %267 = vector.broadcast %266 : vector<1x128xf32> to vector<16x128xf32>
    %268 = arith.mulf %265, %267 : vector<16x128xf32>
    %269 = arith.addf %264, %268 : vector<16x128xf32>
    %270 = vector.extract_strided_slice %254 {offsets = [3, 0], sizes = [16, 128], strides = [1, 1]} : vector<22x128xf32> to vector<16x128xf32>
    %271 = vector.extract_strided_slice %37 {offsets = [27, 0], sizes = [1, 128], strides = [1, 1]} : vector<49x128xf32> to vector<1x128xf32>
    %272 = vector.broadcast %271 : vector<1x128xf32> to vector<16x128xf32>
    %273 = arith.mulf %270, %272 : vector<16x128xf32>
    %274 = arith.addf %269, %273 : vector<16x128xf32>
    %275 = vector.extract_strided_slice %254 {offsets = [4, 0], sizes = [16, 128], strides = [1, 1]} : vector<22x128xf32> to vector<16x128xf32>
    %276 = vector.extract_strided_slice %37 {offsets = [34, 0], sizes = [1, 128], strides = [1, 1]} : vector<49x128xf32> to vector<1x128xf32>
    %277 = vector.broadcast %276 : vector<1x128xf32> to vector<16x128xf32>
    %278 = arith.mulf %275, %277 : vector<16x128xf32>
    %279 = arith.addf %274, %278 : vector<16x128xf32>
    %280 = vector.extract_strided_slice %254 {offsets = [5, 0], sizes = [16, 128], strides = [1, 1]} : vector<22x128xf32> to vector<16x128xf32>
    %281 = vector.extract_strided_slice %37 {offsets = [41, 0], sizes = [1, 128], strides = [1, 1]} : vector<49x128xf32> to vector<1x128xf32>
    %282 = vector.broadcast %281 : vector<1x128xf32> to vector<16x128xf32>
    %283 = arith.mulf %280, %282 : vector<16x128xf32>
    %284 = arith.addf %279, %283 : vector<16x128xf32>
    %285 = vector.extract_strided_slice %254 {offsets = [6, 0], sizes = [16, 128], strides = [1, 1]} : vector<22x128xf32> to vector<16x128xf32>
    %286 = vector.extract_strided_slice %37 {offsets = [48, 0], sizes = [1, 128], strides = [1, 1]} : vector<49x128xf32> to vector<1x128xf32>
    %287 = vector.broadcast %286 : vector<1x128xf32> to vector<16x128xf32>
    %288 = arith.mulf %285, %287 : vector<16x128xf32>
    %289 = arith.addf %284, %288 : vector<16x128xf32>
    %c0_32 = arith.constant 0 : index
    %c0_33 = arith.constant 0 : index
    %290 = vector.load %arg9[%c0_32, %c0_33] : memref<1x128xf32, #tpu.memory_space<vmem>>, vector<1x128xf32>
    %291 = vector.broadcast %290 : vector<1x128xf32> to vector<16x128xf32>
    %292 = arith.addf %289, %291 : vector<16x128xf32>
    %c0_34 = arith.constant 0 : index
    %c0_35 = arith.constant 0 : index
    %293 = vector.load %arg10[%c0_34, %c0_35] : memref<1x128xf32, #tpu.memory_space<vmem>>, vector<1x128xf32>
    %c0_36 = arith.constant 0 : index
    %c0_37 = arith.constant 0 : index
    %294 = vector.load %arg11[%c0_36, %c0_37] : memref<1x128xf32, #tpu.memory_space<vmem>>, vector<1x128xf32>
    %cst_38 = arith.constant dense<0.000000e+00> : vector<16x128xf32>
    %295 = tpu.matmul %292, %20, %cst_38 {dimension_numbers = #tpu.dot_dimension_numbers<[1], [0], [0], [1], [0, 0, 1, 1], [], []>} : vector<16x128xf32>, vector<128x128xf32>, vector<16x128xf32> -> vector<16x128xf32>
    %296 = arith.subf %292, %295 : vector<16x128xf32>
    %297 = arith.mulf %296, %296 : vector<16x128xf32>
    %cst_39 = arith.constant dense<0.000000e+00> : vector<16x128xf32>
    %298 = tpu.matmul %297, %20, %cst_39 {dimension_numbers = #tpu.dot_dimension_numbers<[1], [0], [0], [1], [0, 0, 1, 1], [], []>} : vector<16x128xf32>, vector<128x128xf32>, vector<16x128xf32> -> vector<16x128xf32>
    %cst_40 = arith.constant 9.99999997E-7 : f32
    %299 = vector.broadcast %cst_40 : f32 to vector<16x128xf32>
    %300 = arith.addf %298, %299 : vector<16x128xf32>
    %301 = math.rsqrt %300 : vector<16x128xf32>
    %302 = arith.mulf %296, %301 : vector<16x128xf32>
    %303 = vector.broadcast %293 : vector<1x128xf32> to vector<16x128xf32>
    %304 = arith.mulf %302, %303 : vector<16x128xf32>
    %305 = vector.broadcast %294 : vector<1x128xf32> to vector<16x128xf32>
    %306 = arith.addf %304, %305 : vector<16x128xf32>
    %307 = arith.truncf %306 : vector<16x128xf32> to vector<16x128xbf16>
    %c0_41 = arith.constant 0 : index
    %c0_42 = arith.constant 0 : index
    %308 = vector.load %arg12[%c0_41, %c0_42] : memref<128x512xbf16, #tpu.memory_space<vmem>>, vector<128x512xbf16>
    %cst_43 = arith.constant dense<0.000000e+00> : vector<16x512xf32>
    %309 = tpu.matmul %307, %308, %cst_43 {dimension_numbers = #tpu.dot_dimension_numbers<[1], [0], [0], [1], [0, 0, 1, 1], [], []>} : vector<16x128xbf16>, vector<128x512xbf16>, vector<16x512xf32> -> vector<16x512xf32>
    %c0_44 = arith.constant 0 : index
    %c0_45 = arith.constant 0 : index
    %310 = vector.load %arg13[%c0_44, %c0_45] : memref<1x512xf32, #tpu.memory_space<vmem>>, vector<1x512xf32>
    %311 = vector.broadcast %310 : vector<1x512xf32> to vector<16x512xf32>
    %312 = arith.addf %309, %311 : vector<16x512xf32>
    %cst_46 = arith.constant 5.000000e-01 : f32
    %313 = vector.broadcast %cst_46 : f32 to vector<16x512xf32>
    %314 = arith.mulf %313, %312 : vector<16x512xf32>
    %cst_47 = arith.constant 0.707106769 : f32
    %315 = vector.broadcast %cst_47 : f32 to vector<16x512xf32>
    %316 = arith.mulf %312, %315 : vector<16x512xf32>
    %317 = math.erf %316 : vector<16x512xf32>
    %cst_48 = arith.constant 1.000000e+00 : f32
    %318 = vector.broadcast %cst_48 : f32 to vector<16x512xf32>
    %319 = arith.addf %318, %317 : vector<16x512xf32>
    %320 = arith.mulf %314, %319 : vector<16x512xf32>
    %321 = arith.truncf %320 : vector<16x512xf32> to vector<16x512xbf16>
    %c0_49 = arith.constant 0 : index
    %c0_50 = arith.constant 0 : index
    %322 = vector.load %arg14[%c0_49, %c0_50] : memref<512x128xbf16, #tpu.memory_space<vmem>>, vector<512x128xbf16>
    %cst_51 = arith.constant dense<0.000000e+00> : vector<16x128xf32>
    %323 = tpu.matmul %321, %322, %cst_51 {dimension_numbers = #tpu.dot_dimension_numbers<[1], [0], [0], [1], [0, 0, 1, 1], [], []>} : vector<16x512xbf16>, vector<512x128xbf16>, vector<16x128xf32> -> vector<16x128xf32>
    %c0_52 = arith.constant 0 : index
    %c0_53 = arith.constant 0 : index
    %324 = vector.load %arg15[%c0_52, %c0_53] : memref<1x128xf32, #tpu.memory_space<vmem>>, vector<1x128xf32>
    %325 = vector.broadcast %324 : vector<1x128xf32> to vector<16x128xf32>
    %326 = arith.addf %323, %325 : vector<16x128xf32>
    %c0_54 = arith.constant 0 : index
    %c0_55 = arith.constant 0 : index
    %327 = vector.load %arg16[%c0_54, %c0_55] : memref<1x128xf32, #tpu.memory_space<vmem>>, vector<1x128xf32>
    %328 = vector.broadcast %327 : vector<1x128xf32> to vector<16x128xf32>
    %329 = arith.mulf %328, %326 : vector<16x128xf32>
    %330 = arith.addf %34, %329 : vector<16x128xf32>
    %c0_56 = arith.constant 0 : index
    %c0_57 = arith.constant 0 : index
    %c0_58 = arith.constant 0 : index
    %331 = vector.load %arg17[%c0_56, %c0_57, %c0_58] : memref<1x16x128xf32, #tpu.memory_space<vmem>>, vector<1x16x128xf32>
    %332 = vector.shape_cast %331 : vector<1x16x128xf32> to vector<16x128xf32>
    %333 = vector.shape_cast %330 : vector<16x128xf32> to vector<1x16x128xf32>
    tpu.vector_store %arg17[%c0_56, %c0_57, %c0_58], %333 {strides = array<i32>} : memref<1x16x128xf32, #tpu.memory_space<vmem>>, vector<1x16x128xf32>,
    return
  }
  func.func @transform_0(%arg0: i32) -> (i32, i32, i32) {
    %c0_i32 = arith.constant 0 : i32
    %c0_i32_0 = arith.constant 0 : i32
    %c0_i32_1 = arith.constant 0 : i32
    return %arg0, %c0_i32, %c0_i32_0 : i32, i32, i32
  }
  func.func @transform_1(%arg0: i32) -> (i32, i32, i32) {
    %c0_i32 = arith.constant 0 : i32
    %c0_i32_0 = arith.constant 0 : i32
    %c0_i32_1 = arith.constant 0 : i32
    %c0_i32_2 = arith.constant 0 : i32
    return %c0_i32, %c0_i32_0, %c0_i32_1 : i32, i32, i32
  }
  func.func @transform_2(%arg0: i32) -> (i32, i32) {
    %c0_i32 = arith.constant 0 : i32
    %c0_i32_0 = arith.constant 0 : i32
    %c0_i32_1 = arith.constant 0 : i32
    return %c0_i32, %c0_i32_0 : i32, i32
  }
  func.func @transform_3(%arg0: i32) -> (i32, i32) {
    %c0_i32 = arith.constant 0 : i32
    %c0_i32_0 = arith.constant 0 : i32
    %c0_i32_1 = arith.constant 0 : i32
    return %c0_i32, %c0_i32_0 : i32, i32
  }
  func.func @transform_4(%arg0: i32) -> (i32, i32) {
    %c0_i32 = arith.constant 0 : i32
    %c0_i32_0 = arith.constant 0 : i32
    %c0_i32_1 = arith.constant 0 : i32
    return %c0_i32, %c0_i32_0 : i32, i32
  }
  func.func @transform_5(%arg0: i32) -> (i32, i32) {
    %c0_i32 = arith.constant 0 : i32
    %c0_i32_0 = arith.constant 0 : i32
    %c0_i32_1 = arith.constant 0 : i32
    return %c0_i32, %c0_i32_0 : i32, i32
  }
  func.func @transform_6(%arg0: i32) -> (i32, i32) {
    %c0_i32 = arith.constant 0 : i32
    %c0_i32_0 = arith.constant 0 : i32
    %c0_i32_1 = arith.constant 0 : i32
    return %c0_i32, %c0_i32_0 : i32, i32
  }
  func.func @transform_7(%arg0: i32) -> (i32, i32) {
    %c0_i32 = arith.constant 0 : i32
    %c0_i32_0 = arith.constant 0 : i32
    %c0_i32_1 = arith.constant 0 : i32
    return %c0_i32, %c0_i32_0 : i32, i32
  }
  func.func @transform_8(%arg0: i32) -> (i32, i32) {
    %c0_i32 = arith.constant 0 : i32
    %c0_i32_0 = arith.constant 0 : i32
    %c0_i32_1 = arith.constant 0 : i32
    return %c0_i32, %c0_i32_0 : i32, i32
  }
  func.func @transform_9(%arg0: i32) -> (i32, i32) {
    %c0_i32 = arith.constant 0 : i32
    %c0_i32_0 = arith.constant 0 : i32
    %c0_i32_1 = arith.constant 0 : i32
    return %c0_i32, %c0_i32_0 : i32, i32
  }
  func.func @transform_10(%arg0: i32) -> (i32, i32) {
    %c0_i32 = arith.constant 0 : i32
    %c0_i32_0 = arith.constant 0 : i32
    %c0_i32_1 = arith.constant 0 : i32
    return %c0_i32, %c0_i32_0 : i32, i32
  }
  func.func @transform_11(%arg0: i32) -> (i32, i32) {
    %c0_i32 = arith.constant 0 : i32
    %c0_i32_0 = arith.constant 0 : i32
    %c0_i32_1 = arith.constant 0 : i32
    return %c0_i32, %c0_i32_0 : i32, i32
  }
  func.func @transform_12(%arg0: i32) -> (i32, i32) {
    %c0_i32 = arith.constant 0 : i32
    %c0_i32_0 = arith.constant 0 : i32
    %c0_i32_1 = arith.constant 0 : i32
    return %c0_i32, %c0_i32_0 : i32, i32
  }
  func.func @transform_13(%arg0: i32) -> (i32, i32) {
    %c0_i32 = arith.constant 0 : i32
    %c0_i32_0 = arith.constant 0 : i32
    %c0_i32_1 = arith.constant 0 : i32
    return %c0_i32, %c0_i32_0 : i32, i32
  }
  func.func @transform_14(%arg0: i32) -> (i32, i32) {
    %c0_i32 = arith.constant 0 : i32
    %c0_i32_0 = arith.constant 0 : i32
    %c0_i32_1 = arith.constant 0 : i32
    return %c0_i32, %c0_i32_0 : i32, i32
  }
  func.func @transform_15(%arg0: i32) -> (i32, i32) {
    %c0_i32 = arith.constant 0 : i32
    %c0_i32_0 = arith.constant 0 : i32
    %c0_i32_1 = arith.constant 0 : i32
    return %c0_i32, %c0_i32_0 : i32, i32
  }
  func.func @transform_16(%arg0: i32) -> (i32, i32, i32) {
    %c0_i32 = arith.constant 0 : i32
    %c0_i32_0 = arith.constant 0 : i32
    %c0_i32_1 = arith.constant 0 : i32
    return %arg0, %c0_i32, %c0_i32_0 : i32, i32, i32
  }
}

</mosaic_0001>

<bundles_post_ra>
// kernel: _lambda_.6
= control target key start
LH: loop header
LB: loop body
LE: loop exit
PB: predicated region body
PF: predicated region fallthrough
CT: control target
= control target key end

     0   :  { %s3215_s24 = smov 0   ;;  %s3976_s0 = inlined_call_operand.vmem [shape: f32[2,8,128], index: 0, kind: input, shape index: {}]   ;;  %s3977_s1 = inlined_call_operand.vmem [shape: f32[128,128], index: 1, kind: input, shape index: {}]   ;;  %s3978_s2 = inlined_call_operand.vmem [shape: f32[1,128], index: 2, kind: input, shape index: {}]   ;;  %s3979_s3 = inlined_call_operand.vmem [shape: f32[1,128], index: 3, kind: input, shape index: {}]   ;;  %s3980_s4 = inlined_call_operand.vmem [shape: f32[2,128,128], index: 4, kind: input, shape index: {}]   ;;  %s3981_s5 = inlined_call_operand.vmem [shape: f32[4,16], index: 5, kind: input, shape index: {}]   ;;  %s3982_s6 = inlined_call_operand.vmem [shape: f32[1,128], index: 6, kind: input, shape index: {}]   ;;  %s3983_s7 = inlined_call_operand.vmem [shape: f32[128,128], index: 7, kind: input, shape index: {}]   ;;  %s3984_s8 = inlined_call_operand.vmem [shape: f32[49,128], index: 8, kind: input, shape index: {}]   ;;  %s3985_s9 = inlined_call_operand.vmem [shape: f32[1,128], index: 9, kind: input, shape index: {}]   ;;  %s3986_s10 = inlined_call_operand.vmem [shape: f32[1,128], index: 10, kind: input, shape index: {}]   ;;  %s3987_s11 = inlined_call_operand.vmem [shape: f32[1,128], index: 11, kind: input, shape index: {}]   ;;  %s3988_s12 = inlined_call_operand.vmem [shape: bf16[128,512], index: 12, kind: input, shape index: {}]   ;;  %s3989_s13 = inlined_call_operand.vmem [shape: f32[1,512], index: 13, kind: input, shape index: {}]   ;;  %s3990_s14 = inlined_call_operand.vmem [shape: bf16[512,128], index: 14, kind: input, shape index: {}]   ;;  %s3991_s15 = inlined_call_operand.vmem [shape: f32[1,128], index: 15, kind: input, shape index: {}]   ;;  %s3992_s16 = inlined_call_operand.vmem [shape: f32[1,128], index: 16, kind: input, shape index: {}]   ;;  %s3993_s17 = inlined_call_operand.vmem [shape: f32[2,4,128], index: 17, kind: output, shape index: {}]  }
   0x1   :  { %3995 = sst [smem:[#allocation2_spill]] %s3976_s0 }
   0x2   :  { %3996 = sst [smem:[#allocation3_spill]] %s3977_s1 }
   0x3 LB: > { %s2391_s25 = sadd.s32 4294967295, %s3116_s24   ;;  %p2395_p0 = scmp.ge.s32.totalorder %s3116_s24, 1  ;;  %s3116_s24 = sphi %s3215_s24, %s27_s24  }
   0x4   : > { %p486_p1 = scmp.lt.s32.totalorder %s3116_s24, 3 }
   0x6   : > { %p487_p2 = pnand %p2395_p0, %p486_p1 }
   0x7   : > { %s3997_s28 = sld [smem:[#allocation3_spill]] (!%p487_p2)  ;;  %v3118_v3 = vmov (!%p487_p2), 0.0|0.0   ;;  %vm3119_vm0 = vmmov (!%p487_p2), 0   ;;  %v3120_v6 = vmov (!%p487_p2), 0.0   ;;  %p536_p3 = scmp.lt.s32.totalorder (!%p487_p2), %s2391_s25, 1  ;;  %v722_v27 = vld [vmem:[%s3980_s4] sm:$0xff] (!%p487_p2) }
   0x8   : > { %490 = sbr.rel (%p487_p2) target bundleno = 2055 (0x807), region = 88  ;;  %2856 = vmatprep.subr.bf16.mxu0 (!%p487_p2), %v3118_v3  ;;  %2671 = vmatprep.mubr.msk.f32.mxu0 (!%p487_p2), %vm3119_vm0, %v3120_v6  ;;  %s3998_s23 = sld [smem:[#allocation2_spill]] (!%p487_p2)  ;;  %v723_v28 = vld [vmem:[%s3980_s4 + $0x8] sm:$0xff] (!%p487_p2)  ;;  %v724_v30 = vld [vmem:[%s3980_s4 + $0x10] sm:$0xff] (!%p487_p2)  ;;  %v725_v31 = vld [vmem:[%s3980_s4 + $0x18] sm:$0xff] (!%p487_p2)  ;;  %vm903_vm1 = vcmask (!%p487_p2), 130048  }
   0x9   : > { %2880 = vmatprep.subr.bf16.mxu1 (!%p487_p2), %v3118_v3  ;;  %2706 = vmatprep.mubr.msk.f32.mxu1 (!%p487_p2), %vm3119_vm0, %v3120_v6  ;;  %v2905_v29 = vpack.c.bf16 (!%p487_p2), %v723_v28, %v722_v27  ;;  %v2908_v32 = vpack.c.bf16 (!%p487_p2), %v725_v31, %v724_v30  ;;  %v726_v33 = vld [vmem:[%s3980_s4 + $0x20] sm:$0xff] (!%p487_p2)  ;;  %v727_v34 = vld [vmem:[%s3980_s4 + $0x28] sm:$0xff] (!%p487_p2)  ;;  %v2402_v43 = vld [vmem:[%s3980_s4 + $0x90] sm:$0xff] (!%p487_p2)  ;;  %vm996_vm2 = vcmask (!%p487_p2), 1042432   ;;  %vm998_vm3 = vcmask (!%p487_p2), 1046528   ;;  %s3121_s29 = smov (!%p487_p2), 64  }
   0xa   : > { %v2911_v35 = vpack.c.bf16 (!%p487_p2), %v727_v34, %v726_v33  ;;  %v2400_v36 = vld [vmem:[%s3980_s4 + $0x80] sm:$0xff] (!%p487_p2)  ;;  %v2401_v37 = vld [vmem:[%s3980_s4 + $0x88] sm:$0xff] (!%p487_p2)  ;;  %v2403_v44 = vld [vmem:[%s3980_s4 + $0x98] sm:$0xff] (!%p487_p2)  ;;  %s3123_s0 = smov (!%p487_p2), 32   ;;  %vm1074_vm4 = vcmask (!%p487_p2), 1041408  }
   0xb   : > { %v2929_v41 = vpack.c.bf16 (!%p487_p2), %v2401_v37, %v2400_v36  ;;  %v2932_v45 = vpack.c.bf16 (!%p487_p2), %v2403_v44, %v2402_v43  ;;  %v2404_v46 = vld [vmem:[%s3980_s4 + $0xa0] sm:$0xff] (!%p487_p2)  ;;  %v2405_v47 = vld [vmem:[%s3980_s4 + $0xa8] sm:$0xff] (!%p487_p2)  ;;  %v728_v49 = vld [vmem:[%s3980_s4 + $0x30] sm:$0xff] (!%p487_p2) }
   0xc   : > { %v2935_v48 = vpack.c.bf16 (!%p487_p2), %v2405_v47, %v2404_v46  ;;  %v729_v50 = vld [vmem:[%s3980_s4 + $0x38] sm:$0xff] (!%p487_p2)  ;;  %v2406_v51 = vld [vmem:[%s3980_s4 + $0xb0] sm:$0xff] (!%p487_p2)  ;;  %v730_v55 = vld [vmem:[%s3980_s4 + $0x40] sm:$0xff] (!%p487_p2) }
   0xd   : > { %v546_v0 = vld [vmem:[%s3997_s28] sm:$0xff] (!%p487_p2)  ;;  %v547_v1 = vld [vmem:[%s3997_s28 + $0x8] sm:$0xff] (!%p487_p2)  ;;  %v548_v2 = vld [vmem:[%s3997_s28 + $0x10] sm:$0xff] (!%p487_p2)  ;;  %v2914_v52 = vpack.c.bf16 (!%p487_p2), %v729_v50, %v728_v49 }
   0xe   : > { %v2857_v4 = vpack.c.bf16 (!%p487_p2), %v547_v1, %v546_v0  ;;  %v549_v5 = vld [vmem:[%s3997_s28 + $0x18] sm:$0xff] (!%p487_p2)  ;;  %v550_v8 = vld [vmem:[%s3997_s28 + $0x20] sm:$0xff] (!%p487_p2)  ;;  %v551_v9 = vld [vmem:[%s3997_s28 + $0x28] sm:$0xff] (!%p487_p2) }
   0xf   : > { %v2860_v7 = vpack.c.bf16 %v549_v5, %v548_v2  ;;  %v552_v10 = vld [vmem:[%s3997_s28 + $0x30] sm:$0xff]  ;;  %v2863_v11 = vpack.c.bf16 %v551_v9, %v550_v8  ;;  %v553_v12 = vld [vmem:[%s3997_s28 + $0x38] sm:$0xff]  ;;  %v554_v13 = vld [vmem:[%s3997_s28 + $0x40] sm:$0xff]  ;;  %s4000_s25 = smov (!%p536_p3, %s2391_s25), 1 }
  0x10   : > { %2858 = vmatpush3.bf16.msra.mxu0 %v2857_v4  ;;  %2882 = vmatpush3.bf16.msra.mxu1 %v2857_v4  ;;  %v555_v14 = vld [vmem:[%s3997_s28 + $0x48] sm:$0xff]  ;;  %v2866_v15 = vpack.c.bf16 %v553_v12, %v552_v10  ;;  %v556_v16 = vld [vmem:[%s3997_s28 + $0x50] sm:$0xff]  ;;  %v557_v17 = vld [vmem:[%s3997_s28 + $0x58] sm:$0xff]  ;;  %s2396_s26 = sshll.u32 %s4000_s25, 3  ;;  %s2397_s22 = sshll.u32 %s4000_s25, 2 }
  0x11   : > { %2859 = vmatprep.subr.bf16.mxu0 %v3118_v3  ;;  %2883 = vmatprep.subr.bf16.mxu1 %v3118_v3  ;;  %v2869_v18 = vpack.c.bf16 %v555_v14, %v554_v13  ;;  %v558_v19 = vld [vmem:[%s3997_s28 + $0x60] sm:$0xff]  ;;  %v559_v20 = vld [vmem:[%s3997_s28 + $0x68] sm:$0xff]  ;;  %v2872_v21 = vpack.c.bf16 %v557_v17, %v556_v16  ;;  %v560_v22 = vld [vmem:[%s3997_s28 + $0x70] sm:$0xff]  ;;  %s539_s27 = scalar_lea.vmem %s3998_s23, %s2396_s26  ;;  %s3122_s26 = smov 96  }
  0x12   : > { %v561_v23 = vld [vmem:[%s3997_s28 + $0x78] sm:$0xff]  ;;  %v2875_v24 = vpack.c.bf16 %v559_v20, %v558_v19  ;;  %v545_v26 = vld [vmem:[%s539_s27] sm:$0xff]  ;;  %v731_v56 = vld [vmem:[%s3980_s4 + $0x48] sm:$0xff] }
  0x13   : > { %v2878_v25 = vpack.c.bf16 %v561_v23, %v560_v22  ;;  %v2407_v53 = vld [vmem:[%s3980_s4 + $0xb8] sm:$0xff]  ;;  %v2408_v57 = vld [vmem:[%s3980_s4 + $0xc0] sm:$0xff]  ;;  %v2917_v58 = vpack.c.bf16 %v731_v56, %v730_v55  ;;  %v2409_v59 = vld [vmem:[%s3980_s4 + $0xc8] sm:$0xff] }
  0x14   : > { %2861 = vmatpush3.bf16.msra.mxu0 %v2860_v7  ;;  %2885 = vmatpush3.bf16.msra.mxu1 %v2860_v7  ;;  %v2938_v54 = vpack.c.bf16 %v2407_v53, %v2406_v51  ;;  %v732_v60 = vld [vmem:[%s3980_s4 + $0x50] sm:$0xff]  ;;  %v733_v61 = vld [vmem:[%s3980_s4 + $0x58] sm:$0xff]  ;;  %v2941_v62 = vpack.c.bf16 %v2409_v59, %v2408_v57  ;;  %v734_v4 = vld [vmem:[%s3980_s4 + $0x60] sm:$0xff] }
  0x15   : > { %2862 = vmatprep.subr.bf16.mxu0 %v3118_v3  ;;  %2886 = vmatprep.subr.bf16.mxu1 %v3118_v3  ;;  %v2410_v63 = vld [vmem:[%s3980_s4 + $0xd0] sm:$0xff]  ;;  %v2411_v0 = vld [vmem:[%s3980_s4 + $0xd8] sm:$0xff]  ;;  %v2920_v1 = vpack.c.bf16 %v733_v61, %v732_v60  ;;  %v735_v5 = vld [vmem:[%s3980_s4 + $0x68] sm:$0xff] }
  0x16   : > { %v2944_v2 = vpack.c.bf16 %v2411_v0, %v2410_v63  ;;  %v2412_v7 = vld [vmem:[%s3980_s4 + $0xe0] sm:$0xff]  ;;  %v2413_v8 = vld [vmem:[%s3980_s4 + $0xe8] sm:$0xff]  ;;  %v2923_v9 = vpack.c.bf16 %v735_v5, %v734_v4  ;;  %v737_v12 = vld [vmem:[%s3980_s4 + $0x78] sm:$0xff] }
  0x17   : > { %v2947_v10 = vpack.c.bf16 %v2413_v8, %v2412_v7  ;;  %v2414_v13 = vld [vmem:[%s3980_s4 + $0xf0] sm:$0xff]  ;;  %v2415_v14 = vld [vmem:[%s3980_s4 + $0xf8] sm:$0xff]  ;;  %v2399_v23 = vld [vmem:[%s3979_s3] ss:$0 sm:$0xff] }
  0x18   : > { %2864 = vmatpush3.bf16.msra.mxu0 %v2863_v11  ;;  %2888 = vmatpush3.bf16.msra.mxu1 %v2863_v11  ;;  %v736_v11 = vld [vmem:[%s3980_s4 + $0x70] sm:$0xff]  ;;  %v2950_v16 = vpack.c.bf16 %v2415_v14, %v2414_v13  ;;  %v895_v31 = vld [vmem:[%s3981_s5] sm:$0xf]  ;;  %v980_v43 = vld [vmem:[%s3983_s7 + $0x18] sm:$0xff] }
  0x19   : > { %2865 = vmatprep.subr.bf16.mxu0 %v3118_v3  ;;  %2889 = vmatprep.subr.bf16.mxu1 %v3118_v3  ;;  %v981_v44 = vld [vmem:[%s3983_s7 + $0x20] sm:$0xff]  ;;  %v983_v47 = vld [vmem:[%s3983_s7 + $0x30] sm:$0xff]  ;;  %v986_v51 = vld [vmem:[%s3983_s7 + $0x48] sm:$0xff] }
  0x1a   : > { %v985_v50 = vld [vmem:[%s3983_s7 + $0x40] sm:$0xff]  ;;  %v987_v53 = vld [vmem:[%s3983_s7 + $0x50] sm:$0xff]  ;;  %v990_v57 = vld [vmem:[%s3983_s7 + $0x68] sm:$0xff] }
  0x1b   : > { %v989_v56 = vld [vmem:[%s3983_s7 + $0x60] sm:$0xff]  ;;  %v991_v59 = vld [vmem:[%s3983_s7 + $0x70] sm:$0xff]  ;;  %v992_v60 = vld [vmem:[%s3983_s7 + $0x78] sm:$0xff] }
  0x1c   : > { %2867 = vmatpush3.bf16.msra.mxu0 %v2866_v15  ;;  %2891 = vmatpush3.bf16.msra.mxu1 %v2866_v15  ;;  %v2926_v15 = vpack.c.bf16 %v737_v12, %v736_v11  ;;  %v2977_v61 = vpack.c.bf16 %v992_v60, %v991_v59  ;;  %v3555_v14 = vld [vmem:[%s3984_s8 + $0x18] sm:$0xff] }
  0x1d   : > { %2868 = vmatprep.subr.bf16.mxu0 %v3118_v3  ;;  %2892 = vmatprep.subr.bf16.mxu1 %v3118_v3 }
  0x20   : > { %2870 = vmatpush3.bf16.msra.mxu0 %v2869_v18  ;;  %2894 = vmatpush3.bf16.msra.mxu1 %v2869_v18 }
  0x21   : > { %2871 = vmatprep.subr.bf16.mxu0 %v3118_v3  ;;  %2895 = vmatprep.subr.bf16.mxu1 %v3118_v3 }
  0x24   : > { %2873 = vmatpush3.bf16.msra.mxu0 %v2872_v21  ;;  %2897 = vmatpush3.bf16.msra.mxu1 %v2872_v21  ;;  %v2398_v21 = vld [vmem:[%s3978_s2] ss:$0 sm:$0xff] }
  0x25   : > { %2874 = vmatprep.subr.bf16.mxu0 %v3118_v3  ;;  %2898 = vmatprep.subr.bf16.mxu1 %v3118_v3 }
  0x28   : > { %2876 = vmatpush3.bf16.msra.mxu0 %v2875_v24  ;;  %2900 = vmatpush3.bf16.msra.mxu1 %v2875_v24 }
  0x29   : > { %2877 = vmatprep.subr.bf16.mxu0 %v3118_v3  ;;  %2901 = vmatprep.subr.bf16.mxu1 %v3118_v3 }
  0x2c   : > { %2879 = vmatpush3.bf16.msra.mxu0 %v2878_v25  ;;  %2903 = vmatpush3.bf16.msra.mxu1 %v2878_v25 }
  0x2d   : > { %2904 = vmatprep.subr.bf16.mxu0 %v3118_v3  ;;  %2928 = vmatprep.subr.bf16.mxu1 %v3118_v3 }
  0x2f   : > { %2672 = vmatmul.mubr.f32.vlgmr.msra.gmra.mrb[0].mxu0 %v545_v26 }
  0x30   : > { %2741 = vmatprep.mubr.msk.f32.mxu0 %vm3119_vm0, %v3120_v6  ;;  %2906 = vmatpush3.bf16.msra.mxu0 %v2905_v29 }
  0x31   : > { %2907 = vmatprep.subr.bf16.mxu0 %v3118_v3 }
  0x34   : > { %2909 = vmatpush3.bf16.msra.mxu0 %v2908_v32  ;;  %v2416_v32 = vld [vmem:[%s3982_s6] ss:$0 sm:$0xff] }
  0x35   : > { %2910 = vmatprep.subr.bf16.mxu0 %v3118_v3 }
  0x38   : > { %2912 = vmatpush3.bf16.msra.mxu0 %v2911_v35 }
  0x39   : > { %2913 = vmatprep.subr.bf16.mxu0 %v3118_v3 }
  0x3c   : > { %2915 = vmatpush3.bf16.msra.mxu0 %v2914_v52  ;;  %v2968_v52 = vpack.c.bf16 %v986_v51, %v985_v50 }
  0x3d   : > { %2916 = vmatprep.subr.bf16.mxu0 %v3118_v3 }
  0x40   : > { %2918 = vmatpush3.bf16.msra.mxu0 %v2917_v58  ;;  %v2974_v58 = vpack.c.bf16 %v990_v57, %v989_v56 }
  0x41   : > { %2919 = vmatprep.subr.bf16.mxu0 %v3118_v3 }
  0x44   : > { %2921 = vmatpush3.bf16.msra.mxu0 %v2920_v1  ;;  %v3522_v1 = vld [vmem:[%s3984_s8] sm:$0xff] }
  0x45   : > { %2922 = vmatprep.subr.bf16.mxu0 %v3118_v3 }
  0x48   : > { %2924 = vmatpush3.bf16.msra.mxu0 %v2923_v9  ;;  %v3542_v9 = vld [vmem:[%s3984_s8 + $0x10] sm:$0xff] }
  0x49   : > { %2925 = vmatprep.subr.bf16.mxu0 %v3118_v3 }
  0x4c   : > { %2927 = vmatpush3.bf16.msra.mxu0 %v2926_v15 }
  0x4d   : > { %2952 = vmatprep.subr.bf16.mxu0 %v3118_v3 }
 0x102   : > { %v630_v38 = vpop.f32.mrb[0].mxu0 }
 0x103   : > { %v3332_v39 = vsub.f32 %v545_v26, %v630_v38  ;;  %v2673_v40 = vpop.f32.mrb[1].mxu0 }
 0x104   : > { %v978_v40 = vld [vmem:[%s3983_s7 + $0x8] sm:$0xff] }
 0x105   : > { %v635_v42 = vmul.f32 %v3332_v39, %v3332_v39 }
 0x107   : > { %2707 = vmatmul.mubr.f32.vlgmr.msra.gmra.mrb[0].mxu1 %v635_v42 }
 0x108   : > { %2930 = vmatpush3.bf16.msra.mxu1 %v2929_v41  ;;  %2776 = vmatprep.mubr.msk.f32.mxu1 %vm3119_vm0, %v3120_v6  ;;  %v979_v41 = vld [vmem:[%s3983_s7 + $0x10] sm:$0xff] }
 0x109   : > { %2931 = vmatprep.subr.bf16.mxu1 %v3118_v3 }
 0x10c   : > { %2933 = vmatpush3.bf16.msra.mxu1 %v2932_v45  ;;  %v982_v45 = vld [vmem:[%s3983_s7 + $0x28] sm:$0xff] }
 0x10d   : > { %2934 = vmatprep.subr.bf16.mxu1 %v3118_v3  ;;  %v2962_v46 = vpack.c.bf16 %v982_v45, %v981_v44 }
 0x110   : > { %2936 = vmatpush3.bf16.msra.mxu1 %v2935_v48  ;;  %v984_v48 = vld [vmem:[%s3983_s7 + $0x38] sm:$0xff] }
 0x111   : > { %2937 = vmatprep.subr.bf16.mxu1 %v3118_v3  ;;  %v2965_v49 = vpack.c.bf16 %v984_v48, %v983_v47 }
 0x114   : > { %2939 = vmatpush3.bf16.msra.mxu1 %v2938_v54  ;;  %v988_v54 = vld [vmem:[%s3983_s7 + $0x58] sm:$0xff] }
 0x115   : > { %2940 = vmatprep.subr.bf16.mxu1 %v3118_v3  ;;  %v2971_v55 = vpack.c.bf16 %v988_v54, %v987_v53 }
 0x118   : > { %2942 = vmatpush3.bf16.msra.mxu1 %v2941_v62  ;;  %v1011_v62 = vlaneseq }
 0x119   : > { %2943 = vmatprep.subr.bf16.mxu1 %v3118_v3 }
 0x11a   : > { %v1012_v63 = vshrl.u32 %v1011_v62, 7 }
 0x11c   : > { %2945 = vmatpush3.bf16.msra.mxu1 %v2944_v2  ;;  %v3517_v0 = vsub.s32 7, %v1012_v63  ;;  %v3524_v2 = vsub.s32 0, %v1012_v63  ;;  %v3528_v5 = vsub.s32 6, %v1012_v63  ;;  %v3530_v7 = vsub.s32 5, %v1012_v63 }
 0x11d   : > { %2946 = vmatprep.subr.bf16.mxu1 %v3118_v3  ;;  %v3537_v8 = vsub.s32 4, %v1012_v63 }
 0x11e   : > { %v1020_v4 = vrot.slane %v3522_v1, %v3517_v0  ;;  %v1014_v11 = vrot.slane %v3522_v1, %v3524_v2  ;;  %v1038_v13 = vrot.slane %v3542_v9, %v3530_v7 }
 0x120   : > { %2948 = vmatpush3.bf16.msra.mxu1 %v2947_v10 }
 0x121   : > { %2949 = vmatprep.subr.bf16.mxu1 %v3118_v3 }
 0x124   : > { %2951 = vmatpush3.bf16.msra.mxu1 %v2950_v16  ;;  %v3558_v16 = vsub.s32 3, %v1012_v63 }
 0x125   : > { %2955 = vmatprep.subr.bf16.mxu1 %v3118_v3 }
 0x1da   : > { %v702_v17 = vpop.f32.mrb[0].mxu1 }
 0x1db   : > { %v703_v18 = vadd.f32 1e-06, %v702_v17  ;;  %v2708_v19 = vpop.f32.mrb[1].mxu1  ;;  %v1047_v17 = vrot.slane %v3555_v14, %v3537_v8 }
 0x1dd   : > { %3098 = vrsqrt.f32 %v703_v18 }
 0x1e7   : > { %v3099_v20 = vpop.eup %3098 }
 0x1e8   : > { %v707_v22 = vmul.f32 %v3099_v20, %v3332_v39  ;;  %v977_v39 = vld [vmem:[%s3983_s7] sm:$0xff] }
 0x1e9   : > { %v2956_v42 = vpack.c.bf16 %v978_v40, %v977_v39 }
 0x1ea   : > { %v714_v24 = vmul.f32 %v2398_v21, %v707_v22  ;;  %v3568_v22 = vld [vmem:[%s3984_s8 + $0x20] sm:$0xff] }
 0x1eb   : > { %v1129_v60 = vrot.slane %v3568_v22, %v3537_v8 }
 0x1ec   : > { %v721_v25 = vadd.f32 %v2399_v23, %v714_v24  ;;  %v3570_v23 = vsub.s32 2, %v1012_v63 }
 0x1ee   : > { %2742 = vmatmul.mubr.f32.vlgmr.msra.gmra.mrb[2].mxu0 %v721_v25  ;;  %2777 = vmatmul.mubr.f32.vlgmr.msra.gmra.mrb[2].mxu1 %v721_v25 }
 0x1ef   : > { %2783 = vmatprep.mubr.msk.f32.mxu0 %vm3119_vm0, %v3120_v6  ;;  %2818 = vmatprep.mubr.msk.f32.mxu1 %vm3119_vm0, %v3120_v6 }
 0x1f0   : > { %2957 = vmatpush3.bf16.msra.mxu1 %v2956_v42 }
 0x1f1   : > { %2958 = vmatprep.subr.bf16.mxu1 %v3118_v3 }
 0x2c1   : > { %v804_v26 = vpop.f32.mrb[2].mxu0  ;;  %v891_v27 = vpop.f32.mrb[2].mxu1 }
 0x2c2   : > { %v2953_v28 = vpack.c.bf16 %v891_v27, %v804_v26  ;;  %v2743_v29 = vpop.f32.mrb[3].mxu0  ;;  %v2778_v30 = vpop.f32.mrb[3].mxu1  ;;  %v1056_v26 = vrot.slane %v3568_v22, %v3558_v16  ;;  %v3577_v27 = vld [vmem:[%s3984_s8 + $0x28] sm:$0xff] }
 0x2c4   : > { %2954 = vmatpush3.bf16.msra.mxu0 %v2953_v28 }
 0x2c5   : > { %2979 = vmatprep.subr.bf16.mxu0 %v3118_v3 }
 0x2c7   : > { %2784 = vmatmul.mubr.msk.f32.vlgmr.msra.gmra.mrb[4].mxu0 %vm903_vm1, %v895_v31  ;;  %v1069_v31 = vrot.slane %v3577_v27, %v3570_v23 }
 0x2c8   : > { %2853 = vmatprep.mubr.msk.f32.mxu0 %vm3119_vm0, %v3120_v6  ;;  %2981 = vmatpush3.bf16.msra.mxu0 %v2956_v42  ;;  %v3589_v42 = vsub.s32 1, %v1012_v63 }
 0x2c9   : > { %2982 = vmatprep.subr.bf16.mxu0 %v3118_v3 }
 0x39a   : > { %v973_v33 = vpop.f32.mrb[4].mxu0 }
 0x39b   : > { %v3443_v34 = vadd.f32 %v2416_v32, %v973_v33  ;;  %v2785_v35 = vpop.f32.mrb[5].mxu0 }
 0x39d   : > { %v994_v36 = vrot.slane %v3443_v34, 5 }
 0x39f   : > { %v997_v37 = vsel %vm996_vm2, 0.0, %v994_v36 }
 0x3a0   : > { %v3447_v38 = vsel %vm998_vm3, %v997_v37, 0.0 }
 0x3a1   : > { %1080 = vrot.lane.b32.xlu1 %v3447_v38, %s3121_s29  ;;  %1007 = vrot.lane.b32.xlu0 %v3447_v38, %s3122_s26 }
 0x3a5   : > { %1082 = vrot.lane.b32.xlu1 %v3120_v6, %s3121_s29  ;;  %1009 = vrot.lane.b32.xlu0 %v3120_v6, %s3122_s26  ;;  %s543_s29 = scalar_lea.vmem %s3993_s17, %s2397_s22 }
 0x3a9   : > { %1154 = vrot.lane.b32.xlu1 %v3120_v6, %s3123_s0  ;;  %1152 = vrot.lane.b32.xlu0 %v3447_v38, %s3123_s0  ;;  %v2959_v6 = vpack.c.bf16 %v980_v43, %v979_v41 }
 0x3ab   : > { %2960 = vmatpush3.bf16.msra.mxu1 %v2959_v6  ;;  %2984 = vmatpush3.bf16.msra.mxu0 %v2959_v6 }
 0x3ac   : > { %2961 = vmatprep.subr.bf16.mxu1 %v3118_v3  ;;  %2985 = vmatprep.subr.bf16.mxu0 %v3118_v3 }
 0x3af   : > { %2963 = vmatpush3.bf16.msra.mxu1 %v2962_v46  ;;  %2987 = vmatpush3.bf16.msra.mxu0 %v2962_v46  ;;  %v1087_v46 = vrot.slane %v3522_v1, %v3589_v42 }
 0x3b0   : > { %2964 = vmatprep.subr.bf16.mxu1 %v3118_v3  ;;  %2988 = vmatprep.subr.bf16.mxu0 %v3118_v3 }
 0x3b3   : > { %2966 = vmatpush3.bf16.msra.mxu1 %v2965_v49  ;;  %2990 = vmatpush3.bf16.msra.mxu0 %v2965_v49 }
 0x3b4   : > { %2967 = vmatprep.subr.bf16.mxu1 %v3118_v3  ;;  %2991 = vmatprep.subr.bf16.mxu0 %v3118_v3 }
 0x3b7   : > { %2969 = vmatpush3.bf16.msra.mxu1 %v2968_v52  ;;  %2993 = vmatpush3.bf16.msra.mxu0 %v2968_v52  ;;  %v1111_v52 = vrot.slane %v3542_v9, %v3528_v5 }
 0x3b8   : > { %2970 = vmatprep.subr.bf16.mxu1 %v3118_v3  ;;  %2994 = vmatprep.subr.bf16.mxu0 %v3118_v3 }
 0x3bb   : > { %2972 = vmatpush3.bf16.msra.mxu1 %v2971_v55  ;;  %2996 = vmatpush3.bf16.msra.mxu0 %v2971_v55 }
 0x3bc   : > { %2973 = vmatprep.subr.bf16.mxu1 %v3118_v3  ;;  %2997 = vmatprep.subr.bf16.mxu0 %v3118_v3 }
 0x3bf   : > { %2975 = vmatpush3.bf16.msra.mxu1 %v2974_v58  ;;  %2999 = vmatpush3.bf16.msra.mxu0 %v2974_v58  ;;  %v1120_v58 = vrot.slane %v3555_v14, %v3530_v7 }
 0x3c0   : > { %2976 = vmatprep.subr.bf16.mxu1 %v3118_v3  ;;  %3000 = vmatprep.subr.bf16.mxu0 %v3118_v3  ;;  %v3535_v3 = vld [vmem:[%s3984_s8 + $0x8] sm:$0xff] }
 0x3c1   : > { %v1029_v12 = vrot.slane %v3535_v3, %v3528_v5  ;;  %v1093_v43 = vrot.slane %v3535_v3, %v3524_v2  ;;  %v1102_v47 = vrot.slane %v3535_v3, %v3517_v0 }
 0x3c3   : > { %2978 = vmatpush3.bf16.msra.mxu1 %v2977_v61  ;;  %3002 = vmatpush3.bf16.msra.mxu0 %v2977_v61 }
 0x413   : > { %v3544_v10 = vpop.permute.xlu0 %1007  ;;  %v3587_v40 = vpop.permute.xlu1 %1080 }
 0x414   : > { %v1021_v15 = vmul.f32 %v1020_v4, %v3544_v10  ;;  %v1015_v18 = vmul.f32 %v1014_v11, %v3544_v10  ;;  %v1030_v20 = vmul.f32 %v1029_v12, %v3544_v10  ;;  %v1039_v21 = vmul.f32 %v1038_v13, %v3544_v10 }
 0x415   : > { %v1048_v28 = vmul.f32 %v1047_v17, %v3544_v10  ;;  %v1057_v35 = vmul.f32 %v1056_v26, %v3544_v10  ;;  %v1070_v37 = vmul.f32 %v1069_v31, %v3544_v10  ;;  %v1094_v51 = vmul.f32 %v1093_v43, %v3587_v40 }
 0x416   : > { %v1023_v19 = vrot.slane %v1021_v15, 1  ;;  %v1032_v25 = vrot.slane %v1030_v20, 2  ;;  %v1041_v30 = vrot.slane %v1039_v21, 3  ;;  %v1088_v56 = vmul.f32 %v1087_v46, %v3587_v40 }
 0x417   : > { %v3582_v32 = vpop.permute.xlu0 %1009  ;;  %v1050_v36 = vrot.slane %v1048_v28, 4  ;;  %v1061_v6 = vrot.slane %v1057_v35, 5  ;;  %v1075_v48 = vrot.slane %v1070_v37, 6  ;;  %v3603_v55 = vpop.permute.xlu1 %1082  ;;  %v1103_v57 = vmul.f32 %v1102_v47, %v3587_v40 }
 0x418   : > { %v1025_v24 = vadd.f32 %v1023_v19, %v1015_v18  ;;  %v1058_v39 = vmul.f32 %v1056_v26, %v3582_v32  ;;  %v1071_v45 = vmul.f32 %v1069_v31, %v3582_v32  ;;  %v1096_v61 = vrot.slane %v1094_v51, 1 }
 0x419   : > { %v1112_v62 = vmul.f32 %v1111_v52, %v3587_v40  ;;  %v1142_v4 = vrot.slane %v3577_v27, %v3558_v16  ;;  %v1131_v11 = vmul.f32 %v1129_v60, %v3603_v55  ;;  %v1105_v12 = vrot.slane %v1103_v57, 2 }
 0x41a   : > { %v1034_v29 = vadd.f32 %v1032_v25, %v1025_v24  ;;  %v1062_v44 = vrot.slane %v1058_v39, 5  ;;  %v1076_v50 = vrot.slane %v1071_v45, 6  ;;  %v1121_v13 = vmul.f32 %v1120_v58, %v3587_v40 }
 0x41b   : > { %v1130_v17 = vmul.f32 %v1129_v60, %v3587_v40  ;;  %v1144_v18 = vmul.f32 %v1142_v4, %v3603_v55  ;;  %v1114_v19 = vrot.slane %v1112_v62, 3  ;;  %v1143_v21 = vmul.f32 %v1142_v4, %v3587_v40  ;;  %v3621_v31 = vpop.permute.xlu0 %1152 }
 0x41c   : > { %v1043_v33 = vadd.f32 %v1041_v30, %v1034_v29  ;;  %v1063_v49 = vsel %vm996_vm2, %v1061_v6, %v1062_v44  ;;  %v1077_v54 = vsel %vm1074_vm4, %v1075_v48, %v1076_v50  ;;  %v1135_v24 = vrot.slane %v1131_v11, 5  ;;  %v3636_v48 = vpop.permute.xlu1 %1154 }
 0x41d   : > { %v1123_v25 = vrot.slane %v1121_v13, 4  ;;  %v1165_v28 = vrot.slane %v3535_v3, %v3589_v42  ;;  %v1134_v29 = vrot.slane %v1130_v17, 5  ;;  %v1148_v30 = vrot.slane %v1144_v18, 6 }
 0x41e   : > { %v1052_v41 = vadd.f32 %v1050_v36, %v1043_v33  ;;  %v1159_v35 = vrot.slane %v3522_v1, %v3570_v23  ;;  %v1174_v36 = vrot.slane %v3542_v9, %v3524_v2  ;;  %v1147_v37 = vrot.slane %v1143_v21, 6 }
 0x41f   : > { %v1136_v39 = vsel %vm996_vm2, %v1134_v29, %v1135_v24  ;;  %v1166_v6 = vmul.f32 %v1165_v28, %v3621_v31  ;;  %v1201_v45 = vrot.slane %v3568_v22, %v3530_v7  ;;  %v1192_v46 = vrot.slane %v3555_v14, %v3528_v5 }
 0x420   : > { %v1065_v53 = vadd.f32 %v1063_v49, %v1052_v41  ;;  %v1183_v41 = vrot.slane %v3542_v9, %v3517_v0  ;;  %v1149_v44 = vsel %vm1074_vm4, %v1147_v37, %v1148_v30  ;;  %v1160_v49 = vmul.f32 %v1159_v35, %v3621_v31 }
 0x421   : > { %v1175_v50 = vmul.f32 %v1174_v36, %v3621_v31  ;;  %v1214_v51 = vrot.slane %v3577_v27, %v3537_v8  ;;  %v1202_v57 = vmul.f32 %v1201_v45, %v3621_v31  ;;  %v1193_v60 = vmul.f32 %v1192_v46, %v3621_v31 }
 0x422   : > { %v1079_v59 = vadd.f32 %v1077_v54, %v1065_v53  ;;  %v1168_v53 = vrot.slane %v1166_v6, 1  ;;  %v1184_v54 = vmul.f32 %v1183_v41, %v3621_v31  ;;  %v1233_v13 = vrot.slane %v3535_v3, %v3570_v23 }
 0x423   : > { %v1215_v62 = vmul.f32 %v1214_v51, %v3621_v31  ;;  %v1195_v17 = vrot.slane %v1193_v60, 4  ;;  %v1242_v21 = vrot.slane %v3542_v9, %v3589_v42  ;;  %v1251_v28 = vrot.slane %v3555_v14, %v3524_v2 }
 0x424   : > { %v1089_v63 = vadd.f32 %v1088_v56, %v1079_v59  ;;  %v1203_v56 = vmul.f32 %v1201_v45, %v3636_v48  ;;  %v1177_v59 = vrot.slane %v1175_v50, 2  ;;  %v1186_v4 = vrot.slane %v1184_v54, 3 }
 0x425   : > { %v1269_v30 = vrot.slane %v3568_v22, %v3528_v5  ;;  %v1260_v36 = vrot.slane %v3555_v14, %v3517_v0  ;;  %v1282_v41 = vrot.slane %v3577_v27, %v3530_v7  ;;  %v1252_v6 = vmul.f32 %v1251_v28, %v3447_v38 }
 0x426   : > { %v1098_v15 = vadd.f32 %v1096_v61, %v1089_v63  ;;  %v1216_v61 = vmul.f32 %v1214_v51, %v3636_v48  ;;  %v1207_v11 = vrot.slane %v1203_v56, 5  ;;  %v1301_v60 = vrot.slane %v3535_v3, %v3558_v16 }
 0x427   : > { %v1271_v45 = vmul.f32 0.0, %v1269_v30  ;;  %v1270_v46 = vmul.f32 %v1269_v30, %v3447_v38  ;;  %v1283_v51 = vmul.f32 %v1282_v41, %v3447_v38 }
 0x428   : > { %v1107_v20 = vadd.f32 %v1105_v12, %v1098_v15  ;;  %v1206_v12 = vrot.slane %v1202_v57, 5  ;;  %v1220_v18 = vrot.slane %v1216_v61, 6 }
 0x429   : > { %v1275_v56 = vrot.slane %v1271_v45, 5  ;;  %v1274_v57 = vrot.slane %v1270_v46, 5  ;;  %v1287_v61 = vrot.slane %v1283_v51, 6 }
 0x42a   : > { %v1116_v26 = vadd.f32 %v1114_v19, %v1107_v20  ;;  %v1219_v19 = vrot.slane %v1215_v62, 6  ;;  %v1227_v20 = vrot.slane %v3522_v1, %v3558_v16 }
 0x42c   : > { %v1125_v33 = vadd.f32 %v1123_v25, %v1116_v26  ;;  %v1208_v25 = vsel %vm996_vm2, %v1206_v12, %v1207_v11  ;;  %v1234_v26 = vmul.f32 %v1233_v13, %v3447_v38  ;;  %v1228_v35 = vmul.f32 %v1227_v20, %v3447_v38 }
 0x42d   : > { %v1310_v11 = vrot.slane %v3542_v9, %v3570_v23  ;;  %v1302_v13 = vmul.f32 %v1301_v60, %v3544_v10 }
 0x42e   : > { %v1138_v43 = vadd.f32 %v1136_v39, %v1125_v33  ;;  %v1221_v33 = vsel %vm1074_vm4, %v1219_v19, %v1220_v18  ;;  %v1243_v39 = vmul.f32 %v1242_v21, %v3447_v38  ;;  %v1328_v18 = vrot.slane %v3568_v22, %v3524_v2 }
 0x42f   : > { %v1311_v21 = vmul.f32 %v1310_v11, %v3544_v10 }
 0x430   : > { %v1151_v47 = vadd.f32 %v1149_v44, %v1138_v43  ;;  %v1236_v43 = vrot.slane %v1234_v26, 1  ;;  %v1245_v50 = vrot.slane %v1243_v39, 2  ;;  %v1304_v26 = vrot.slane %v1302_v13, 1 }
 0x432   : > { %v1161_v52 = vadd.f32 %v1160_v49, %v1151_v47  ;;  %v1261_v47 = vmul.f32 %v1260_v36, %v3447_v38  ;;  %v1276_v38 = vsel %vm996_vm2, %v1274_v57, %v1275_v56  ;;  %v1313_v36 = vrot.slane %v1311_v21, 2 }
 0x433   : > { %v1387_v57 = vrot.slane %v3555_v14, %v3570_v23 }
 0x434   : > { %v1170_v58 = vadd.f32 %v1168_v53, %v1161_v52  ;;  %v1284_v52 = vmul.f32 0.0, %v1282_v41  ;;  %v1254_v53 = vrot.slane %v1252_v6, 3 }
 0x436   : > { %v1179_v63 = vadd.f32 %v1177_v59, %v1170_v58  ;;  %v1263_v58 = vrot.slane %v1261_v47, 4  ;;  %v1288_v62 = vrot.slane %v1284_v52, 6  ;;  %v1369_v47 = vrot.slane %v3535_v3, %v3537_v8 }
 0x437   : > { %v1363_v52 = vrot.slane %v3522_v1, %v3530_v7 }
 0x438   : > { %v1188_v15 = vadd.f32 %v1186_v4, %v1179_v63  ;;  %v1295_v63 = vrot.slane %v3522_v1, %v3537_v8 }
 0x439   : > { %v1364_v60 = vmul.f32 %v1363_v52, %v3587_v40 }
 0x43a   : > { %v1197_v24 = vadd.f32 %v1195_v17, %v1188_v15  ;;  %v1319_v15 = vrot.slane %v3555_v14, %v3589_v42  ;;  %v1289_v17 = vsel %vm1074_vm4, %v1287_v61, %v1288_v62  ;;  %v1296_v19 = vmul.f32 %v1295_v63, %v3544_v10 }
 0x43b   : > { %v1396_v62 = vrot.slane %v3568_v22, %v3589_v42  ;;  %v1405_v63 = vrot.slane %v3577_v27, %v3524_v2 }
 0x43c   : > { %v1210_v29 = vadd.f32 %v1208_v25, %v1197_v24  ;;  %v1337_v24 = vrot.slane %v3568_v22, %v3517_v0  ;;  %v1320_v28 = vmul.f32 %v1319_v15, %v3544_v10 }
 0x43d   : > { %v1407_v13 = vmul.f32 %v1405_v63, %v3603_v55 }
 0x43e   : > { %v1223_v37 = vadd.f32 %v1221_v33, %v1210_v29  ;;  %v1350_v29 = vrot.slane %v3577_v27, %v3528_v5  ;;  %v1339_v30 = vmul.f32 %v1337_v24, %v3582_v32  ;;  %v1329_v33 = vmul.f32 %v1328_v18, %v3544_v10 }
 0x43f   : > { %v1397_v18 = vmul.f32 %v1396_v62, %v3587_v40 }
 0x440   : > { %v1229_v44 = vadd.f32 %v1228_v35, %v1223_v37  ;;  %v1338_v37 = vmul.f32 %v1337_v24, %v3544_v10  ;;  %v1352_v39 = vmul.f32 %v1350_v29, %v3582_v32  ;;  %v1351_v6 = vmul.f32 %v1350_v29, %v3544_v10 }
 0x441   : > { %v1331_v45 = vrot.slane %v1329_v33, 4  ;;  %v1370_v10 = vmul.f32 %v1369_v47, %v3587_v40  ;;  %v1399_v29 = vrot.slane %v1397_v18, 4 }
 0x442   : > { %v1238_v49 = vadd.f32 %v1236_v43, %v1229_v44  ;;  %v1322_v43 = vrot.slane %v1320_v28, 3  ;;  %v1343_v44 = vrot.slane %v1339_v30, 5  ;;  %v1355_v32 = vrot.slane %v1351_v6, 6 }
 0x443   : > { %v1372_v11 = vrot.slane %v1370_v10, 1 }
 0x444   : > { %v1247_v54 = vadd.f32 %v1245_v50, %v1238_v49  ;;  %v1342_v49 = vrot.slane %v1338_v37, 5  ;;  %v1356_v50 = vrot.slane %v1352_v39, 6  ;;  %v1446_v37 = vrot.slane %v3542_v9, %v3537_v8 }
 0x445   : > { %v1464_v8 = vrot.slane %v3568_v22, %v3570_v23 }
 0x446   : > { %v1256_v59 = vadd.f32 %v1254_v53, %v1247_v54  ;;  %v1378_v53 = vrot.slane %v3542_v9, %v3558_v16  ;;  %v1344_v54 = vsel %vm996_vm2, %v1342_v49, %v1343_v44  ;;  %v2418_v9 = vld [vmem:[%s3984_s8 + $0x30] ss:$0 sm:$0xff] }
 0x447   : > { %v1487_v22 = vmul.f32 %v2418_v9, %v3621_v31 }
 0x448   : > { %v1265_v4 = vadd.f32 %v1263_v58, %v1256_v59  ;;  %v1357_v58 = vsel %vm1074_vm4, %v1355_v32, %v1356_v50  ;;  %v1379_v61 = vmul.f32 %v1378_v53, %v3587_v40  ;;  %v1465_v50 = vmul.f32 %v1464_v8, %v3621_v31  ;;  %v3057_v8 = vld [vmem:[%s3988_s12 + $0xc8] ss:$16 sps:$4 sm:$0xff]  }
 0x44a   : > { %v1278_v12 = vadd.f32 %v1276_v38, %v1265_v4  ;;  %v1388_v38 = vmul.f32 %v1387_v57, %v3587_v40  ;;  %v1467_v10 = vrot.slane %v1465_v50, 4 }
 0x44c   : > { %v1291_v20 = vadd.f32 %v1289_v17, %v1278_v12  ;;  %v1418_v12 = vrot.slane %v3577_v27, %v3517_v0  ;;  %v1381_v17 = vrot.slane %v1379_v61, 2  ;;  %v1390_v24 = vrot.slane %v1388_v38, 3  ;;  %v3023_v38 = vld [vmem:[%s3988_s12 + $0xc] ss:$16 sps:$4 sm:$0xff]  }
 0x44d   : > { %v1437_v0 = vrot.slane %v3535_v3, %v3530_v7  ;;  %v1473_v3 = vrot.slane %v3577_v27, %v3589_v42  ;;  %1920 = vmatprep.subr.bf16.mxu0 %v3023_v38  ;;  %v3080_v38 = vld [vmem:[%s3990_s14 + $0x18] sm:$0xff]  }
 0x44e   : > { %v1297_v25 = vadd.f32 %v1296_v19, %v1291_v20  ;;  %v1406_v19 = vmul.f32 %v1405_v63, %v3587_v40  ;;  %v1420_v20 = vmul.f32 %v1418_v12, %v3603_v55 }
 0x44f   : > { %v1474_v27 = vmul.f32 %v1473_v3, %v3621_v31 }
 0x450   : > { %v1306_v35 = vadd.f32 %v1304_v26, %v1297_v25  ;;  %v1419_v25 = vmul.f32 %v1418_v12, %v3587_v40  ;;  %v1411_v26 = vrot.slane %v1407_v13, 5  ;;  %v1410_v30 = vrot.slane %v1406_v19, 5  ;;  %v3026_v12 = vld [vmem:[%s3988_s12 + $0x24] ss:$16 sps:$4 sm:$0xff]   ;;  %v3024_v13 = vld [vmem:[%s3988_s12 + $0x20] ss:$16 sps:$4 sm:$0xff]  }
 0x451   : > { %v1424_v33 = vrot.slane %v1420_v20, 6  ;;  %v1438_v40 = vmul.f32 %v1437_v0, %v3621_v31  ;;  %v3036_v0 = vld [vmem:[%s3988_s12 + $0x60] ss:$16 sps:$4 sm:$0xff]  }
 0x452   : > { %v1315_v41 = vadd.f32 %v1313_v36, %v1306_v35  ;;  %v1431_v36 = vrot.slane %v3522_v1, %v3528_v5  ;;  %v1423_v55 = vrot.slane %v1419_v25, 6  ;;  %v1412_v39 = vsel %vm996_vm2, %v1410_v30, %v1411_v26  ;;  %v3029_v25 = vld [vmem:[%s3988_s12 + $0x2c] ss:$16 sps:$4 sm:$0xff]   ;;  %v3027_v26 = vld [vmem:[%s3988_s12 + $0x28] ss:$16 sps:$4 sm:$0xff]  }
 0x453   : > { %v1447_v5 = vmul.f32 %v1446_v37, %v3621_v31  ;;  %v3038_v30 = vld [vmem:[%s3988_s12 + $0x64] ss:$16 sps:$4 sm:$0xff]   ;;  %v3047_v37 = vld [vmem:[%s3988_s12 + $0x8c] ss:$16 sps:$4 sm:$0xff]  }
 0x454   : > { %v1324_v46 = vadd.f32 %v1322_v43, %v1315_v41  ;;  %v1455_v43 = vrot.slane %v3555_v14, %v3558_v16  ;;  %v1425_v7 = vsel %vm1074_vm4, %v1423_v55, %v1424_v33  ;;  %v1432_v1 = vmul.f32 %v1431_v36, %v3621_v31  ;;  %v3039_v33 = vld [vmem:[%s3988_s12 + $0x68] ss:$16 sps:$4 sm:$0xff]   ;;  %v3044_v36 = vld [vmem:[%s3988_s12 + $0x84] ss:$16 sps:$4 sm:$0xff]   ;;  %v3042_v55 = vld [vmem:[%s3988_s12 + $0x80] ss:$16 sps:$4 sm:$0xff]  }
 0x455   : > { %v1449_v49 = vrot.slane %v1447_v5, 2  ;;  %v3054_v5 = vld [vmem:[%s3988_s12 + $0xc0] ss:$16 sps:$4 sm:$0xff]  }
 0x456   : > { %v1333_v51 = vadd.f32 %v1331_v45, %v1324_v46  ;;  %v1440_v45 = vrot.slane %v1438_v40, 1  ;;  %v1456_v14 = vmul.f32 %v1455_v43, %v3621_v31  ;;  %v1475_v46 = vmul.f32 %v1473_v3, %v3636_v48  ;;  %v3053_v40 = vld [vmem:[%s3988_s12 + $0xac] ss:$16 sps:$4 sm:$0xff]   ;;  %v3048_v43 = vld [vmem:[%s3988_s12 + $0xa0] ss:$16 sps:$4 sm:$0xff]  }
 0x457   : > { %v3051_v3 = vld [vmem:[%s3988_s12 + $0xa8] ss:$16 sps:$4 sm:$0xff]  }
 0x458   : > { %v1346_v56 = vadd.f32 %v1344_v54, %v1333_v51  ;;  %v1488_v51 = vmul.f32 %v2418_v9, %v3636_v48  ;;  %v1458_v53 = vrot.slane %v1456_v14, 3  ;;  %v1479_v32 = vrot.slane %v1475_v46, 5  ;;  %v2419_v48 = vld [vmem:[%s3985_s9] ss:$0 sm:$0xff]  ;;  %v3062_v9 = vld [vmem:[%s3988_s12 + $0xe4] ss:$16 sps:$4 sm:$0xff]  }
 0x459   : > { %v1478_v54 = vrot.slane %v1474_v27, 5  ;;  %v3063_v14 = vld [vmem:[%s3988_s12 + $0xe8] ss:$16 sps:$4 sm:$0xff]   ;;  %v3066_v46 = vld [vmem:[%s3990_s14 + $0x40] sm:$0xff]  }
 0x45a   : > { %v1359_v59 = vadd.f32 %v1357_v58, %v1346_v56  ;;  %v1492_v57 = vrot.slane %v1488_v51, 6  ;;  %v1491_v58 = vrot.slane %v1487_v22, 6  ;;  %v3067_v27 = vld [vmem:[%s3990_s14 + $0xc0] sm:$0xff]  }
 0x45b   : > { %v2420_v22 = vld [vmem:[%s3986_s10] ss:$0 sm:$0xff] }
 0x45c   : > { %v1365_v4 = vadd.f32 %v1364_v60, %v1359_v59  ;;  %v1480_v60 = vsel %vm996_vm2, %v1478_v54, %v1479_v32  ;;  %v1493_v62 = vsel %vm1074_vm4, %v1491_v58, %v1492_v57  ;;  %v3070_v58 = vld [vmem:[%s3990_s14 + $0x48] sm:$0xff]  }
 0x45e   : > { %v1374_v15 = vadd.f32 %v1372_v11, %v1365_v4  ;;  %v3018_v4 = vld [vmem:[%s3988_s12] ss:$16 sps:$4 sm:$0xff]   ;;  %v3020_v11 = vld [vmem:[%s3988_s12 + $0x4] ss:$16 sps:$4 sm:$0xff]  }
 0x45f   : > { %1879 = vmatprep.subr.bf16.mxu1 %v3020_v11  ;;  %v3079_v11 = vld [vmem:[%s3990_s14 + $0xd8] sm:$0xff]  }
 0x460   : > { %v1383_v21 = vadd.f32 %v1381_v17, %v1374_v15  ;;  %v3032_v15 = vld [vmem:[%s3988_s12 + $0x44] ss:$16 sps:$4 sm:$0xff]   ;;  %v3030_v17 = vld [vmem:[%s3988_s12 + $0x40] ss:$16 sps:$4 sm:$0xff]  }
 0x462   : > { %v1392_v28 = vadd.f32 %v1390_v24, %v1383_v21  ;;  %v3021_v21 = vld [vmem:[%s3988_s12 + $0x8] ss:$16 sps:$4 sm:$0xff]  }
 0x464   : > { %v1401_v35 = vadd.f32 %v1399_v29, %v1392_v28  ;;  %v3035_v28 = vld [vmem:[%s3988_s12 + $0x4c] ss:$16 sps:$4 sm:$0xff]   ;;  %v3033_v29 = vld [vmem:[%s3988_s12 + $0x48] ss:$16 sps:$4 sm:$0xff]  }
 0x466   : > { %v1414_v41 = vadd.f32 %v1412_v39, %v1401_v35  ;;  %v3041_v35 = vld [vmem:[%s3988_s12 + $0x6c] ss:$16 sps:$4 sm:$0xff]   ;;  %v3045_v39 = vld [vmem:[%s3988_s12 + $0x88] ss:$16 sps:$4 sm:$0xff]  }
 0x468   : > { %v1427_v6 = vadd.f32 %v1425_v7, %v1414_v41  ;;  %v3050_v41 = vld [vmem:[%s3988_s12 + $0xa4] ss:$16 sps:$4 sm:$0xff]   ;;  %v3124_v7 = vmov 0  }
 0x46a   : > { %v1433_v44 = vadd.f32 %v1432_v1, %v1427_v6  ;;  %v3056_v6 = vld [vmem:[%s3988_s12 + $0xc4] ss:$16 sps:$4 sm:$0xff]   ;;  %v3059_v1 = vld [vmem:[%s3988_s12 + $0xcc] ss:$16 sps:$4 sm:$0xff]  }
 0x46c   : > { %v1442_v47 = vadd.f32 %v1440_v45, %v1433_v44  ;;  %v3065_v44 = vld [vmem:[%s3988_s12 + $0xec] ss:$16 sps:$4 sm:$0xff]   ;;  %v3060_v45 = vld [vmem:[%s3988_s12 + $0xe0] ss:$16 sps:$4 sm:$0xff]  }
 0x46e   : > { %v1451_v52 = vadd.f32 %v1449_v49, %v1442_v47 }
 0x470   : > { %v1460_v56 = vadd.f32 %v1458_v53, %v1451_v52  ;;  %v2421_v53 = vld [vmem:[%s3987_s11] ss:$0 sm:$0xff] }
 0x472   : > { %v1469_v59 = vadd.f32 %v1467_v10, %v1460_v56  ;;  %v3068_v56 = vld [vmem:[%s3990_s14] sm:$0xff]  }
 0x473   : > { %v3069_v10 = vld [vmem:[%s3990_s14 + $0x80] sm:$0xff]  }
 0x474   : > { %v1482_v61 = vadd.f32 %v1480_v60, %v1469_v59  ;;  %v3071_v59 = vld [vmem:[%s3990_s14 + $0xc8] sm:$0xff]  }
 0x475   : > { %v3072_v60 = vld [vmem:[%s3990_s14 + $0x8] sm:$0xff]  }
 0x476   : > { %v1495_v63 = vadd.f32 %v1493_v62, %v1482_v61  ;;  %v3073_v61 = vld [vmem:[%s3990_s14 + $0x88] sm:$0xff]   ;;  %v3074_v62 = vld [vmem:[%s3990_s14 + $0x50] sm:$0xff]  }
 0x478   : > { %v1503_v31 = vadd.f32 %v2419_v48, %v1495_v63  ;;  %v3075_v48 = vld [vmem:[%s3990_s14 + $0xd0] sm:$0xff]  }
 0x479   : > { %v3076_v63 = vld [vmem:[%s3990_s14 + $0x10] sm:$0xff]  }
 0x47a   : > { %2819 = vmatmul.mubr.f32.vlgmr.msra.gmra.mrb[4].mxu1 %v1503_v31 }
 0x47b   : > { %1880 = vmatpush1.bf16.msra.mxu1 %v3018_v4  ;;  %1911 = vmatprep.mubr.bf16.mxu1 %v3124_v7  ;;  %v3078_v4 = vld [vmem:[%s3990_s14 + $0x58] sm:$0xff]  }
 0x47c   : > { %1881 = vmatprep.subr.bf16.mxu1 %v3026_v12  ;;  %v3081_v12 = vld [vmem:[%s3990_s14 + $0x98] sm:$0xff]  }
 0x47f   : > { %1882 = vmatpush1.bf16.msra.mxu1 %v3024_v13  ;;  %v3082_v13 = vld [vmem:[%s3990_s14 + $0x60] sm:$0xff]  }
 0x480   : > { %1883 = vmatprep.subr.bf16.mxu1 %v3032_v15  ;;  %v3083_v15 = vld [vmem:[%s3990_s14 + $0xe0] sm:$0xff]  }
 0x483   : > { %1884 = vmatpush1.bf16.msra.mxu1 %v3030_v17  ;;  %v3084_v17 = vld [vmem:[%s3990_s14 + $0x20] sm:$0xff]  }
 0x484   : > { %1885 = vmatprep.subr.bf16.mxu1 %v3038_v30  ;;  %v3095_v30 = vld [vmem:[%s3990_s14 + $0xf8] sm:$0xff]  }
 0x487   : > { %1886 = vmatpush1.bf16.msra.mxu1 %v3036_v0  ;;  %v3094_v0 = vld [vmem:[%s3990_s14 + $0x78] sm:$0xff]  }
 0x488   : > { %1887 = vmatprep.subr.bf16.mxu1 %v3044_v36  ;;  %v1697_v36 = vld [vmem:[%s3989_s13] sm:$0xf] }
 0x48b   : > { %1888 = vmatpush1.bf16.msra.mxu1 %v3042_v55  ;;  %v1710_v55 = vrot.slane %v1697_v36, %v3570_v23 }
 0x48c   : > { %1889 = vmatprep.subr.bf16.mxu1 %v3050_v41  ;;  %v1714_v41 = vrot.slane %v1697_v36, %v3558_v16 }
 0x48f   : > { %1890 = vmatpush1.bf16.msra.mxu1 %v3048_v43 }
 0x490   : > { %1891 = vmatprep.subr.bf16.mxu1 %v3056_v6 }
 0x493   : > { %1892 = vmatpush1.bf16.msra.mxu1 %v3054_v5 }
 0x494   : > { %1893 = vmatprep.subr.bf16.mxu1 %v3062_v9 }
 0x497   : > { %1894 = vmatpush1.bf16.msra.mxu1 %v3060_v45 }
 0x498   : > { %2595 = vmatprep.subr.bf16.mxu1 %v3066_v46 }
 0x54d   : > { %v1572_v18 = vpop.f32.mrb[4].mxu1 }
 0x54e   : > { %v3773_v19 = vsub.f32 %v1503_v31, %v1572_v18  ;;  %v2820_v20 = vpop.f32.mrb[5].mxu1  ;;  %v3077_v31 = vld [vmem:[%s3990_s14 + $0x90] sm:$0xff]   ;;  %v3085_v18 = vld [vmem:[%s3990_s14 + $0xa0] sm:$0xff]  }
 0x54f   : > { %v3087_v20 = vld [vmem:[%s3990_s14 + $0xe8] sm:$0xff]  }
 0x550   : > { %v1577_v24 = vmul.f32 %v3773_v19, %v3773_v19 }
 0x552   : > { %2854 = vmatmul.mubr.f32.vlgmr.msra.gmra.mrb[6].mxu0 %v1577_v24  ;;  %v3089_v24 = vld [vmem:[%s3990_s14 + $0xa8] sm:$0xff]  }
 0x553   : > { %1921 = vmatpush1.bf16.msra.mxu0 %v3021_v21  ;;  %1952 = vmatprep.mubr.bf16.mxu0 %v3124_v7  ;;  %v3088_v21 = vld [vmem:[%s3990_s14 + $0x28] sm:$0xff]  }
 0x554   : > { %1922 = vmatprep.subr.bf16.mxu0 %v3029_v25  ;;  %v3090_v25 = vld [vmem:[%s3990_s14 + $0x70] sm:$0xff]  }
 0x557   : > { %1923 = vmatpush1.bf16.msra.mxu0 %v3027_v26  ;;  %v3091_v26 = vld [vmem:[%s3990_s14 + $0xf0] sm:$0xff]  }
 0x558   : > { %1924 = vmatprep.subr.bf16.mxu0 %v3035_v28  ;;  %v3092_v28 = vld [vmem:[%s3990_s14 + $0x30] sm:$0xff]  }
 0x55b   : > { %1925 = vmatpush1.bf16.msra.mxu0 %v3033_v29  ;;  %v3093_v29 = vld [vmem:[%s3990_s14 + $0xb0] sm:$0xff]  }
 0x55c   : > { %1926 = vmatprep.subr.bf16.mxu0 %v3041_v35  ;;  %v3097_v35 = vld [vmem:[%s3990_s14 + $0xb8] sm:$0xff]  }
 0x55f   : > { %1927 = vmatpush1.bf16.msra.mxu0 %v3039_v33  ;;  %v3096_v33 = vld [vmem:[%s3990_s14 + $0x38] sm:$0xff]  }
 0x560   : > { %1928 = vmatprep.subr.bf16.mxu0 %v3047_v37  ;;  %v1702_v37 = vrot.slane %v1697_v36, %v3524_v2 }
 0x563   : > { %1929 = vmatpush1.bf16.msra.mxu0 %v3045_v39  ;;  %v1706_v39 = vrot.slane %v1697_v36, %v3589_v42 }
 0x564   : > { %1930 = vmatprep.subr.bf16.mxu0 %v3053_v40 }
 0x567   : > { %1931 = vmatpush1.bf16.msra.mxu0 %v3051_v3 }
 0x568   : > { %1932 = vmatprep.subr.bf16.mxu0 %v3059_v1 }
 0x56b   : > { %1933 = vmatpush1.bf16.msra.mxu0 %v3057_v8 }
 0x56c   : > { %1934 = vmatprep.subr.bf16.mxu0 %v3065_v44 }
 0x56f   : > { %1935 = vmatpush1.bf16.msra.mxu0 %v3063_v14 }
 0x570   : > { %2617 = vmatprep.subr.bf16.mxu0 %v3067_v27 }
 0x625   : > { %v1644_v47 = vpop.f32.mrb[6].mxu0 }
 0x626   : > { %v1645_v49 = vadd.f32 1e-06, %v1644_v47  ;;  %v2855_v50 = vpop.f32.mrb[7].mxu0 }
 0x628   : > { %3100 = vrsqrt.f32 %v1645_v49 }
 0x632   : > { %v3101_v51 = vpop.eup %3100 }
 0x633   : > { %v1649_v52 = vmul.f32 %v3101_v51, %v3773_v19  ;;  %v3086_v19 = vld [vmem:[%s3990_s14 + $0x68] sm:$0xff]  }
 0x635   : > { %v1656_v32 = vmul.f32 %v2420_v22, %v1649_v52 }
 0x637   : > { %v1663_v54 = vadd.f32 %v2421_v53, %v1656_v32 }
 0x639   : > { %v1664_v57 = vpack.c.bf16 %v1663_v54, %v1663_v54 }
 0x63b   : > { %1912 = vmatmul.mubr.bf16.vlgmr.msra.gmra.mrb[8].mxu1 %v1664_v57  ;;  %1953 = vmatmul.mubr.bf16.vlgmr.msra.gmra.mrb[8].mxu0 %v1664_v57 }
 0x63c   : > { %2596 = vmatpush3.bf16.msra.mxu1 %v3068_v56  ;;  %2618 = vmatpush3.bf16.msra.mxu0 %v3069_v10 }
 0x63d   : > { %2597 = vmatprep.subr.bf16.mxu1 %v3070_v58  ;;  %2619 = vmatprep.subr.bf16.mxu0 %v3071_v59 }
 0x640   : > { %2598 = vmatpush3.bf16.msra.mxu1 %v3072_v60  ;;  %2620 = vmatpush3.bf16.msra.mxu0 %v3073_v61 }
 0x641   : > { %2599 = vmatprep.subr.bf16.mxu1 %v3074_v62  ;;  %2621 = vmatprep.subr.bf16.mxu0 %v3075_v48 }
 0x644   : > { %2600 = vmatpush3.bf16.msra.mxu1 %v3076_v63  ;;  %2622 = vmatpush3.bf16.msra.mxu0 %v3077_v31 }
 0x645   : > { %2601 = vmatprep.subr.bf16.mxu1 %v3078_v4  ;;  %2623 = vmatprep.subr.bf16.mxu0 %v3079_v11  ;;  %v2454_v4 = vld [vmem:[%s3991_s15] ss:$0 sm:$0xff] }
 0x648   : > { %2602 = vmatpush3.bf16.msra.mxu1 %v3080_v38  ;;  %2624 = vmatpush3.bf16.msra.mxu0 %v3081_v12 }
 0x649   : > { %2603 = vmatprep.subr.bf16.mxu1 %v3082_v13  ;;  %2625 = vmatprep.subr.bf16.mxu0 %v3083_v15 }
 0x64c   : > { %2604 = vmatpush3.bf16.msra.mxu1 %v3084_v17  ;;  %2626 = vmatpush3.bf16.msra.mxu0 %v3085_v18 }
 0x64d   : > { %2605 = vmatprep.subr.bf16.mxu1 %v3086_v19  ;;  %2627 = vmatprep.subr.bf16.mxu0 %v3087_v20 }
 0x650   : > { %2606 = vmatpush3.bf16.msra.mxu1 %v3088_v21  ;;  %2628 = vmatpush3.bf16.msra.mxu0 %v3089_v24  ;;  %v2487_v21 = vld [vmem:[%s3992_s16] ss:$0 sm:$0xff] }
 0x651   : > { %2607 = vmatprep.subr.bf16.mxu1 %v3090_v25  ;;  %2629 = vmatprep.subr.bf16.mxu0 %v3091_v26 }
 0x654   : > { %2608 = vmatpush3.bf16.msra.mxu1 %v3092_v28  ;;  %2630 = vmatpush3.bf16.msra.mxu0 %v3093_v29 }
 0x655   : > { %2609 = vmatprep.subr.bf16.mxu1 %v3094_v0  ;;  %2631 = vmatprep.subr.bf16.mxu0 %v3095_v30 }
 0x658   : > { %2610 = vmatpush3.bf16.msra.mxu1 %v3096_v33  ;;  %2632 = vmatpush3.bf16.msra.mxu0 %v3097_v35 }
 0x70e   : > { %v1913_v40 = vpop.f32.mrb[8].mxu1  ;;  %v1954_v43 = vpop.f32.mrb[8].mxu0 }
 0x70f   : > { %v1914_v7 = vadd.f32 %v1913_v40, %v1702_v37  ;;  %v1955_v3 = vadd.f32 %v1954_v43, %v1710_v55  ;;  %v1915_v6 = vpop.f32.mrb[9].mxu1  ;;  %v1956_v1 = vpop.f32.mrb[9].mxu0 }
 0x710   : > { %v1916_v5 = vadd.f32 %v1915_v6, %v1706_v39  ;;  %v1957_v8 = vadd.f32 %v1956_v1, %v1714_v41  ;;  %v1917_v9 = vpop.f32.mrb[10].mxu1  ;;  %v1958_v44 = vpop.f32.mrb[10].mxu0 }
 0x711   : > { %v1965_v45 = vmul.f32 0.70710677, %v1914_v7  ;;  %v1967_v14 = vmul.f32 0.70710677, %v1955_v3  ;;  %v1918_v23 = vpop.f32.mrb[11].mxu1  ;;  %v1959_v27 = vpop.f32.mrb[11].mxu0 }
 0x712   : > { %v1966_v46 = vmul.f32 0.70710677, %v1916_v5  ;;  %v1968_v2 = vmul.f32 0.70710677, %v1957_v8  ;;  %v1961_v50 = vmul.f32 0.5, %v1914_v7  ;;  %v1963_v52 = vmul.f32 0.5, %v1955_v3 }
 0x713   : > { %3102 = verf.f32 %v1965_v45  ;;  %v1962_v53 = vmul.f32 0.5, %v1916_v5  ;;  %v1964_v56 = vmul.f32 0.5, %v1957_v8 }
 0x714   : > { %3104 = verf.f32 %v1967_v14 }
 0x715   : > { %3106 = verf.f32 %v1966_v46 }
 0x716   : > { %3108 = verf.f32 %v1968_v2 }
 0x71d   : > { %v3103_v16 = vpop.eup %3102 }
 0x71e   : > { %v3105_v42 = vpop.eup %3104  ;;  %v1973_v47 = vadd.f32 1.0, %v3103_v16 }
 0x71f   : > { %v3107_v49 = vpop.eup %3106  ;;  %v1975_v51 = vadd.f32 1.0, %v3105_v42 }
 0x720   : > { %v3109_v22 = vpop.eup %3108  ;;  %v1974_v32 = vadd.f32 1.0, %v3107_v49  ;;  %v1977_v54 = vmul.f32 %v1973_v47, %v1961_v50 }
 0x721   : > { %v1976_v10 = vadd.f32 1.0, %v3109_v22  ;;  %v1979_v57 = vmul.f32 %v1975_v51, %v1963_v52 }
 0x722   : > { %v1978_v58 = vmul.f32 %v1974_v32, %v1962_v53  ;;  %v1981_v61 = vpack.c.bf16 %v1977_v54, %v1977_v54 }
 0x723   : > { %v1980_v59 = vmul.f32 %v1976_v10, %v1964_v56  ;;  %v1983_v48 = vpack.c.bf16 %v1979_v57, %v1979_v57 }
 0x724   : > { %v1982_v60 = vpack.c.bf16 %v1978_v58, %v1978_v58 }
 0x725   : > { %v1984_v62 = vpack.c.bf16 %v1980_v59, %v1980_v59 }
 0x726   : > { %2280 = vmatprep.mubr.bf16.mxu1 %v1982_v60 }
 0x727   : > { %2320 = vmatprep.mubr.bf16.mxu0 %v1984_v62  ;;  %2281 = vmatmul.mubr.bf16.vlgmr.msra.gmra.mrb[12].mxu1 %v1981_v61 }
 0x728   : > { %2321 = vmatmul.mubr.bf16.vlgmr.msra.gmra.mrb[12].mxu0 %v1983_v48 }
 0x7fa   : > { %v2611_v63 = vpop.f32.mrb[12].mxu1 }
 0x7fb   : > { %v2633_v31 = vpop.f32.mrb[12].mxu0  ;;  %v2612_v11 = vpop.f32.mrb[13].mxu1 }
 0x7fc   : > { %v2613_v38 = vadd.f32 %v2612_v11, %v2611_v63  ;;  %v2634_v12 = vpop.f32.mrb[13].mxu0  ;;  %v2614_v13 = vpop.f32.mrb[14].mxu1 }
 0x7fd   : > { %v2635_v15 = vadd.f32 %v2634_v12, %v2633_v31  ;;  %v2636_v17 = vpop.f32.mrb[14].mxu0  ;;  %v2615_v18 = vpop.f32.mrb[15].mxu1 }
 0x7fe   : > { %v2283_v19 = vadd.f32 %v2613_v38, %v2454_v4  ;;  %v2637_v20 = vpop.f32.mrb[15].mxu0 }
 0x800   : > { %v2323_v24 = vadd.f32 %v2635_v15, %v2283_v19 }
 0x802   : > { %v2335_v25 = vmul.f32 %v2487_v21, %v2323_v24 }
 0x804   : > { %v2336_v26 = vadd.f32 %v2335_v25, %v3443_v34 }
 0x806   : > { %2337 = vst [vmem:[%s543_s29] sm:$0xf] %v2336_v26 }
 0x807 PF: > { %s27_s24 = sadd.s32 1, %s3116_s24  }
 0x808   : > { %p24_p4 = scmp.ge.s32.totalorder %s27_s24, 4  }
 0x80a   :  { %26 = sbr.rel (!%p24_p4) target bundleno = 3 (0x3), region = 119 }

// kernel: _lambda_.7
= control target key start
LH: loop header
LB: loop body
LE: loop exit
PB: predicated region body
PF: predicated region fallthrough
CT: control target
= control target key end

     0   :  { %s2901_s24 = smov 0   ;;  %s3532_s0 = inlined_call_operand.vmem [shape: f32[2,4,128], index: 0, kind: input, shape index: {}]   ;;  %s3533_s1 = inlined_call_operand.vmem [shape: f32[128,128], index: 1, kind: input, shape index: {}]   ;;  %s3534_s2 = inlined_call_operand.vmem [shape: f32[1,128], index: 2, kind: input, shape index: {}]   ;;  %s3535_s3 = inlined_call_operand.vmem [shape: f32[1,128], index: 3, kind: input, shape index: {}]   ;;  %s3536_s4 = inlined_call_operand.vmem [shape: f32[2,128,128], index: 4, kind: input, shape index: {}]   ;;  %s3537_s5 = inlined_call_operand.vmem [shape: f32[2,8], index: 5, kind: input, shape index: {}]   ;;  %s3538_s6 = inlined_call_operand.vmem [shape: f32[1,128], index: 6, kind: input, shape index: {}]   ;;  %s3539_s7 = inlined_call_operand.vmem [shape: f32[128,128], index: 7, kind: input, shape index: {}]   ;;  %s3540_s8 = inlined_call_operand.vmem [shape: f32[49,128], index: 8, kind: input, shape index: {}]   ;;  %s3541_s9 = inlined_call_operand.vmem [shape: f32[1,128], index: 9, kind: input, shape index: {}]   ;;  %s3542_s10 = inlined_call_operand.vmem [shape: f32[1,128], index: 10, kind: input, shape index: {}]   ;;  %s3543_s11 = inlined_call_operand.vmem [shape: f32[1,128], index: 11, kind: input, shape index: {}]   ;;  %s3544_s12 = inlined_call_operand.vmem [shape: bf16[128,512], index: 12, kind: input, shape index: {}]   ;;  %s3545_s13 = inlined_call_operand.vmem [shape: f32[1,512], index: 13, kind: input, shape index: {}]   ;;  %s3546_s14 = inlined_call_operand.vmem [shape: bf16[512,128], index: 14, kind: input, shape index: {}]   ;;  %s3547_s15 = inlined_call_operand.vmem [shape: f32[1,128], index: 15, kind: input, shape index: {}]   ;;  %s3548_s16 = inlined_call_operand.vmem [shape: f32[1,128], index: 16, kind: input, shape index: {}]   ;;  %s3549_s17 = inlined_call_operand.vmem [shape: f32[2,2,128], index: 17, kind: output, shape index: {}]  }
   0x1   :  { %3551 = sst [smem:[#allocation2_spill]] %s3532_s0 }
   0x2   :  { %3552 = sst [smem:[#allocation3_spill]] %s3533_s1 }
   0x3 LB: > { %s2088_s25 = sadd.s32 4294967295, %s2804_s24   ;;  %p2092_p0 = scmp.ge.s32.totalorder %s2804_s24, 1  ;;  %s2804_s24 = sphi %s2901_s24, %s27_s24  }
   0x4   : > { %p486_p1 = scmp.lt.s32.totalorder %s2804_s24, 3 }
   0x6   : > { %p487_p2 = pnand %p2092_p0, %p486_p1 }
   0x7   : > { %s3553_s28 = sld [smem:[#allocation3_spill]] (!%p487_p2)  ;;  %v2806_v3 = vmov (!%p487_p2), 0.0|0.0   ;;  %vm2807_vm0 = vmmov (!%p487_p2), 0   ;;  %v2808_v6 = vmov (!%p487_p2), 0.0   ;;  %p536_p3 = scmp.lt.s32.totalorder (!%p487_p2), %s2088_s25, 1  ;;  %v722_v27 = vld [vmem:[%s3536_s4] sm:$0xff] (!%p487_p2) }
   0x8   : > { %490 = sbr.rel (%p487_p2) target bundleno = 1998 (0x7ce), region = 88  ;;  %2549 = vmatprep.subr.bf16.mxu0 (!%p487_p2), %v2806_v3  ;;  %2366 = vmatprep.mubr.msk.f32.mxu0 (!%p487_p2), %vm2807_vm0, %v2808_v6  ;;  %s3554_s23 = sld [smem:[#allocation2_spill]] (!%p487_p2)  ;;  %v723_v28 = vld [vmem:[%s3536_s4 + $0x8] sm:$0xff] (!%p487_p2)  ;;  %v724_v30 = vld [vmem:[%s3536_s4 + $0x10] sm:$0xff] (!%p487_p2)  ;;  %v725_v31 = vld [vmem:[%s3536_s4 + $0x18] sm:$0xff] (!%p487_p2)  ;;  %vm898_vm1 = vcmask (!%p487_p2), 1043456  }
   0x9   : > { %2573 = vmatprep.subr.bf16.mxu1 (!%p487_p2), %v2806_v3  ;;  %2401 = vmatprep.mubr.msk.f32.mxu1 (!%p487_p2), %vm2807_vm0, %v2808_v6  ;;  %v2598_v29 = vpack.c.bf16 (!%p487_p2), %v723_v28, %v722_v27  ;;  %v2601_v32 = vpack.c.bf16 (!%p487_p2), %v725_v31, %v724_v30  ;;  %v726_v33 = vld [vmem:[%s3536_s4 + $0x20] sm:$0xff] (!%p487_p2)  ;;  %v727_v34 = vld [vmem:[%s3536_s4 + $0x28] sm:$0xff] (!%p487_p2)  ;;  %v2099_v43 = vld [vmem:[%s3536_s4 + $0x90] sm:$0xff] (!%p487_p2)  ;;  %vm908_vm2 = vcmask (!%p487_p2), 64512   ;;  %vm1001_vm3 = vcmask (!%p487_p2), 1042432   ;;  %s2809_s21 = smov (!%p487_p2), 64  }
   0xa   : > { %v2604_v35 = vpack.c.bf16 (!%p487_p2), %v727_v34, %v726_v33  ;;  %v2097_v36 = vld [vmem:[%s3536_s4 + $0x80] sm:$0xff] (!%p487_p2)  ;;  %v2098_v37 = vld [vmem:[%s3536_s4 + $0x88] sm:$0xff] (!%p487_p2)  ;;  %v2100_v44 = vld [vmem:[%s3536_s4 + $0x98] sm:$0xff] (!%p487_p2)  ;;  %vm1003_vm4 = vcmask (!%p487_p2), 1044480  }
   0xb   : > { %v2622_v41 = vpack.c.bf16 (!%p487_p2), %v2098_v37, %v2097_v36  ;;  %v2625_v45 = vpack.c.bf16 (!%p487_p2), %v2100_v44, %v2099_v43  ;;  %v2101_v46 = vld [vmem:[%s3536_s4 + $0xa0] sm:$0xff] (!%p487_p2)  ;;  %v2102_v47 = vld [vmem:[%s3536_s4 + $0xa8] sm:$0xff] (!%p487_p2)  ;;  %v728_v49 = vld [vmem:[%s3536_s4 + $0x30] sm:$0xff] (!%p487_p2) }
   0xc   : > { %v2628_v48 = vpack.c.bf16 (!%p487_p2), %v2102_v47, %v2101_v46  ;;  %v729_v50 = vld [vmem:[%s3536_s4 + $0x38] sm:$0xff] (!%p487_p2)  ;;  %v2103_v51 = vld [vmem:[%s3536_s4 + $0xb0] sm:$0xff] (!%p487_p2)  ;;  %v730_v55 = vld [vmem:[%s3536_s4 + $0x40] sm:$0xff] (!%p487_p2) }
   0xd   : > { %v546_v0 = vld [vmem:[%s3553_s28] sm:$0xff] (!%p487_p2)  ;;  %v547_v1 = vld [vmem:[%s3553_s28 + $0x8] sm:$0xff] (!%p487_p2)  ;;  %v548_v2 = vld [vmem:[%s3553_s28 + $0x10] sm:$0xff] (!%p487_p2)  ;;  %v2607_v52 = vpack.c.bf16 (!%p487_p2), %v729_v50, %v728_v49 }
   0xe   : > { %v2550_v4 = vpack.c.bf16 (!%p487_p2), %v547_v1, %v546_v0  ;;  %v549_v5 = vld [vmem:[%s3553_s28 + $0x18] sm:$0xff] (!%p487_p2)  ;;  %v550_v8 = vld [vmem:[%s3553_s28 + $0x20] sm:$0xff] (!%p487_p2)  ;;  %v551_v9 = vld [vmem:[%s3553_s28 + $0x28] sm:$0xff] (!%p487_p2) }
   0xf   : > { %v2553_v7 = vpack.c.bf16 %v549_v5, %v548_v2  ;;  %v552_v10 = vld [vmem:[%s3553_s28 + $0x30] sm:$0xff]  ;;  %v2556_v11 = vpack.c.bf16 %v551_v9, %v550_v8  ;;  %v553_v12 = vld [vmem:[%s3553_s28 + $0x38] sm:$0xff]  ;;  %v554_v13 = vld [vmem:[%s3553_s28 + $0x40] sm:$0xff]  ;;  %s3556_s25 = smov (!%p536_p3, %s2088_s25), 1 }
  0x10   : > { %2551 = vmatpush3.bf16.msra.mxu0 %v2550_v4  ;;  %2575 = vmatpush3.bf16.msra.mxu1 %v2550_v4  ;;  %v555_v14 = vld [vmem:[%s3553_s28 + $0x48] sm:$0xff]  ;;  %v2559_v15 = vpack.c.bf16 %v553_v12, %v552_v10  ;;  %v556_v16 = vld [vmem:[%s3553_s28 + $0x50] sm:$0xff]  ;;  %v557_v17 = vld [vmem:[%s3553_s28 + $0x58] sm:$0xff]  ;;  %s2093_s26 = sshll.u32 %s3556_s25, 2  ;;  %s2094_s19 = sshll.u32 %s3556_s25, 1 }
  0x11   : > { %2552 = vmatprep.subr.bf16.mxu0 %v2806_v3  ;;  %2576 = vmatprep.subr.bf16.mxu1 %v2806_v3  ;;  %v2562_v18 = vpack.c.bf16 %v555_v14, %v554_v13  ;;  %v558_v19 = vld [vmem:[%s3553_s28 + $0x60] sm:$0xff]  ;;  %v559_v20 = vld [vmem:[%s3553_s28 + $0x68] sm:$0xff]  ;;  %v2565_v21 = vpack.c.bf16 %v557_v17, %v556_v16  ;;  %v560_v22 = vld [vmem:[%s3553_s28 + $0x70] sm:$0xff]  ;;  %s539_s27 = scalar_lea.vmem %s3554_s23, %s2093_s26 }
  0x12   : > { %v561_v23 = vld [vmem:[%s3553_s28 + $0x78] sm:$0xff]  ;;  %v2568_v24 = vpack.c.bf16 %v559_v20, %v558_v19  ;;  %v545_v26 = vld [vmem:[%s539_s27] sm:$0xf]  ;;  %v731_v56 = vld [vmem:[%s3536_s4 + $0x48] sm:$0xff] }
  0x13   : > { %v2571_v25 = vpack.c.bf16 %v561_v23, %v560_v22  ;;  %v2104_v53 = vld [vmem:[%s3536_s4 + $0xb8] sm:$0xff]  ;;  %v2105_v57 = vld [vmem:[%s3536_s4 + $0xc0] sm:$0xff]  ;;  %v2610_v58 = vpack.c.bf16 %v731_v56, %v730_v55  ;;  %v2106_v59 = vld [vmem:[%s3536_s4 + $0xc8] sm:$0xff] }
  0x14   : > { %2554 = vmatpush3.bf16.msra.mxu0 %v2553_v7  ;;  %2578 = vmatpush3.bf16.msra.mxu1 %v2553_v7  ;;  %v2631_v54 = vpack.c.bf16 %v2104_v53, %v2103_v51  ;;  %v732_v60 = vld [vmem:[%s3536_s4 + $0x50] sm:$0xff]  ;;  %v733_v61 = vld [vmem:[%s3536_s4 + $0x58] sm:$0xff]  ;;  %v2634_v62 = vpack.c.bf16 %v2106_v59, %v2105_v57  ;;  %v734_v4 = vld [vmem:[%s3536_s4 + $0x60] sm:$0xff] }
  0x15   : > { %2555 = vmatprep.subr.bf16.mxu0 %v2806_v3  ;;  %2579 = vmatprep.subr.bf16.mxu1 %v2806_v3  ;;  %v2107_v63 = vld [vmem:[%s3536_s4 + $0xd0] sm:$0xff]  ;;  %v2108_v0 = vld [vmem:[%s3536_s4 + $0xd8] sm:$0xff]  ;;  %v2613_v1 = vpack.c.bf16 %v733_v61, %v732_v60  ;;  %v735_v5 = vld [vmem:[%s3536_s4 + $0x68] sm:$0xff] }
  0x16   : > { %v2637_v2 = vpack.c.bf16 %v2108_v0, %v2107_v63  ;;  %v2109_v7 = vld [vmem:[%s3536_s4 + $0xe0] sm:$0xff]  ;;  %v2110_v8 = vld [vmem:[%s3536_s4 + $0xe8] sm:$0xff]  ;;  %v2616_v9 = vpack.c.bf16 %v735_v5, %v734_v4  ;;  %v737_v12 = vld [vmem:[%s3536_s4 + $0x78] sm:$0xff]  ;;  %v1013_v63 = vlaneseq }
  0x17   : > { %v2640_v10 = vpack.c.bf16 %v2110_v8, %v2109_v7  ;;  %v2111_v13 = vld [vmem:[%s3536_s4 + $0xf0] sm:$0xff]  ;;  %v2112_v14 = vld [vmem:[%s3536_s4 + $0xf8] sm:$0xff]  ;;  %v2096_v23 = vld [vmem:[%s3535_s3] ss:$0 sm:$0xff] }
  0x18   : > { %2557 = vmatpush3.bf16.msra.mxu0 %v2556_v11  ;;  %2581 = vmatpush3.bf16.msra.mxu1 %v2556_v11  ;;  %v736_v11 = vld [vmem:[%s3536_s4 + $0x70] sm:$0xff]  ;;  %v2643_v16 = vpack.c.bf16 %v2112_v14, %v2111_v13  ;;  %v900_v31 = vld [vmem:[%s3537_s5] sm:$0x3]  ;;  %v983_v34 = vld [vmem:[%s3539_s7 + $0x8] sm:$0xff]  ;;  %v3197_v0 = vshrl.u32 %v1013_v63, 7 }
  0x19   : > { %2558 = vmatprep.subr.bf16.mxu0 %v2806_v3  ;;  %2582 = vmatprep.subr.bf16.mxu1 %v2806_v3  ;;  %v982_v33 = vld [vmem:[%s3539_s7] sm:$0xff]  ;;  %v985_v37 = vld [vmem:[%s3539_s7 + $0x18] sm:$0xff]  ;;  %v991_v51 = vld [vmem:[%s3539_s7 + $0x48] sm:$0xff] }
  0x1a   : > { %v2646_v36 = vpack.c.bf16 %v983_v34, %v982_v33  ;;  %v989_v46 = vld [vmem:[%s3539_s7 + $0x38] sm:$0xff]  ;;  %v990_v50 = vld [vmem:[%s3539_s7 + $0x40] sm:$0xff]  ;;  %v996_v60 = vld [vmem:[%s3539_s7 + $0x70] sm:$0xff]  ;;  %v3216_v5 = vsub.s32 2, %v3197_v0  ;;  %v3232_v13 = vsub.s32 6, %v3197_v0 }
  0x1b   : > { %v2658_v53 = vpack.c.bf16 %v991_v51, %v990_v50  ;;  %v993_v55 = vld [vmem:[%s3539_s7 + $0x58] sm:$0xff]  ;;  %v994_v57 = vld [vmem:[%s3539_s7 + $0x60] sm:$0xff]  ;;  %v3208_v4 = vld [vmem:[%s3540_s8 + $0x8] sm:$0xff] }
  0x1c   : > { %2560 = vmatpush3.bf16.msra.mxu0 %v2559_v15  ;;  %2584 = vmatpush3.bf16.msra.mxu1 %v2559_v15  ;;  %v2619_v15 = vpack.c.bf16 %v737_v12, %v736_v11  ;;  %v997_v61 = vld [vmem:[%s3539_s7 + $0x78] sm:$0xff] }
  0x1d   : > { %2561 = vmatprep.subr.bf16.mxu0 %v2806_v3  ;;  %2585 = vmatprep.subr.bf16.mxu1 %v2806_v3  ;;  %v3237_v14 = vld [vmem:[%s3540_s8 + $0x18] sm:$0xff] }
  0x20   : > { %2563 = vmatpush3.bf16.msra.mxu0 %v2562_v18  ;;  %2587 = vmatpush3.bf16.msra.mxu1 %v2562_v18 }
  0x21   : > { %2564 = vmatprep.subr.bf16.mxu0 %v2806_v3  ;;  %2588 = vmatprep.subr.bf16.mxu1 %v2806_v3 }
  0x24   : > { %2566 = vmatpush3.bf16.msra.mxu0 %v2565_v21  ;;  %2590 = vmatpush3.bf16.msra.mxu1 %v2565_v21  ;;  %v2095_v21 = vld [vmem:[%s3534_s2] ss:$0 sm:$0xff] }
  0x25   : > { %2567 = vmatprep.subr.bf16.mxu0 %v2806_v3  ;;  %2591 = vmatprep.subr.bf16.mxu1 %v2806_v3 }
  0x28   : > { %2569 = vmatpush3.bf16.msra.mxu0 %v2568_v24  ;;  %2593 = vmatpush3.bf16.msra.mxu1 %v2568_v24 }
  0x29   : > { %2570 = vmatprep.subr.bf16.mxu0 %v2806_v3  ;;  %2594 = vmatprep.subr.bf16.mxu1 %v2806_v3 }
  0x2c   : > { %2572 = vmatpush3.bf16.msra.mxu0 %v2571_v25  ;;  %2596 = vmatpush3.bf16.msra.mxu1 %v2571_v25 }
  0x2d   : > { %2597 = vmatprep.subr.bf16.mxu0 %v2806_v3  ;;  %2621 = vmatprep.subr.bf16.mxu1 %v2806_v3 }
  0x2f   : > { %2367 = vmatmul.mubr.f32.vlgmr.msra.gmra.mrb[0].mxu0 %v545_v26 }
  0x30   : > { %2436 = vmatprep.mubr.msk.f32.mxu0 %vm2807_vm0, %v2808_v6  ;;  %2599 = vmatpush3.bf16.msra.mxu0 %v2598_v29 }
  0x31   : > { %2600 = vmatprep.subr.bf16.mxu0 %v2806_v3 }
  0x34   : > { %2602 = vmatpush3.bf16.msra.mxu0 %v2601_v32 }
  0x35   : > { %2603 = vmatprep.subr.bf16.mxu0 %v2806_v3 }
  0x38   : > { %2605 = vmatpush3.bf16.msra.mxu0 %v2604_v35  ;;  %v984_v35 = vld [vmem:[%s3539_s7 + $0x10] sm:$0xff] }
  0x39   : > { %2606 = vmatprep.subr.bf16.mxu0 %v2806_v3 }
  0x3c   : > { %2608 = vmatpush3.bf16.msra.mxu0 %v2607_v52 }
  0x3d   : > { %2609 = vmatprep.subr.bf16.mxu0 %v2806_v3 }
  0x40   : > { %2611 = vmatpush3.bf16.msra.mxu0 %v2610_v58  ;;  %v995_v58 = vld [vmem:[%s3539_s7 + $0x68] sm:$0xff] }
  0x41   : > { %2612 = vmatprep.subr.bf16.mxu0 %v2806_v3  ;;  %v2664_v59 = vpack.c.bf16 %v995_v58, %v994_v57 }
  0x44   : > { %2614 = vmatpush3.bf16.msra.mxu0 %v2613_v1  ;;  %v3200_v1 = vsub.s32 1, %v3197_v0 }
  0x45   : > { %2615 = vmatprep.subr.bf16.mxu0 %v2806_v3 }
  0x46   : > { %v1022_v7 = vrot.slane %v3208_v4, %v3200_v1 }
  0x48   : > { %2617 = vmatpush3.bf16.msra.mxu0 %v2616_v9  ;;  %v3223_v9 = vsub.s32 7, %v3197_v0 }
  0x49   : > { %2618 = vmatprep.subr.bf16.mxu0 %v2806_v3 }
  0x4a   : > { %v1109_v50 = vrot.slane %v3237_v14, %v3223_v9 }
  0x4c   : > { %2620 = vmatpush3.bf16.msra.mxu0 %v2619_v15 }
  0x4d   : > { %2474 = vmatprep.subr.mxu0 %v2808_v6 }
 0x102   : > { %v630_v38 = vpop.f32.mrb[0].mxu0 }
 0x103   : > { %v3018_v39 = vsub.f32 %v545_v26, %v630_v38  ;;  %v2368_v40 = vpop.f32.mrb[1].mxu0  ;;  %v2649_v38 = vpack.c.bf16 %v985_v37, %v984_v35  ;;  %v1082_v35 = vrot.slane %v3208_v4, %v3216_v5 }
 0x104   : > { %v2113_v40 = vld [vmem:[%s3538_s6] ss:$0 sm:$0xff] }
 0x105   : > { %v635_v42 = vmul.f32 %v3018_v39, %v3018_v39 }
 0x107   : > { %2402 = vmatmul.mubr.f32.vlgmr.msra.gmra.mrb[0].mxu1 %v635_v42 }
 0x108   : > { %2623 = vmatpush3.bf16.msra.mxu1 %v2622_v41  ;;  %2471 = vmatprep.mubr.msk.f32.mxu1 %vm2807_vm0, %v2808_v6 }
 0x109   : > { %2624 = vmatprep.subr.bf16.mxu1 %v2806_v3 }
 0x10c   : > { %2626 = vmatpush3.bf16.msra.mxu1 %v2625_v45  ;;  %v988_v45 = vld [vmem:[%s3539_s7 + $0x30] sm:$0xff] }
 0x10d   : > { %2627 = vmatprep.subr.bf16.mxu1 %v2806_v3 }
 0x110   : > { %2629 = vmatpush3.bf16.msra.mxu1 %v2628_v48  ;;  %v2655_v48 = vpack.c.bf16 %v989_v46, %v988_v45 }
 0x111   : > { %2630 = vmatprep.subr.bf16.mxu1 %v2806_v3 }
 0x114   : > { %2632 = vmatpush3.bf16.msra.mxu1 %v2631_v54  ;;  %v992_v54 = vld [vmem:[%s3539_s7 + $0x50] sm:$0xff] }
 0x115   : > { %2633 = vmatprep.subr.bf16.mxu1 %v2806_v3  ;;  %v2661_v56 = vpack.c.bf16 %v993_v55, %v992_v54 }
 0x118   : > { %2635 = vmatpush3.bf16.msra.mxu1 %v2634_v62  ;;  %v2667_v62 = vpack.c.bf16 %v997_v61, %v996_v60 }
 0x119   : > { %2636 = vmatprep.subr.bf16.mxu1 %v2806_v3 }
 0x11c   : > { %2638 = vmatpush3.bf16.msra.mxu1 %v2637_v2  ;;  %v3203_v2 = vsub.s32 0, %v3197_v0 }
 0x11d   : > { %2639 = vmatprep.subr.bf16.mxu1 %v2806_v3 }
 0x120   : > { %2641 = vmatpush3.bf16.msra.mxu1 %v2640_v10  ;;  %v1005_v10 = vld [vmem:[%s3540_s8] sm:$0xff] }
 0x121   : > { %2642 = vmatprep.subr.bf16.mxu1 %v2806_v3  ;;  %v1016_v11 = vrot.slane %v1005_v10, %v3216_v5 }
 0x124   : > { %2644 = vmatpush3.bf16.msra.mxu1 %v2643_v16  ;;  %v1057_v16 = vsub.s32 5, %v3197_v0 }
 0x125   : > { %2645 = vmatprep.subr.bf16.mxu1 %v2806_v3 }
 0x1da   : > { %v702_v17 = vpop.f32.mrb[0].mxu1 }
 0x1db   : > { %v703_v18 = vadd.f32 1e-06, %v702_v17  ;;  %v2403_v19 = vpop.f32.mrb[1].mxu1 }
 0x1dc   : > { %v1049_v19 = vrot.slane %v3237_v14, %v3232_v13 }
 0x1dd   : > { %2786 = vrsqrt.f32 %v703_v18 }
 0x1e7   : > { %v2787_v20 = vpop.eup %2786 }
 0x1e8   : > { %v707_v22 = vmul.f32 %v2787_v20, %v3018_v39  ;;  %v987_v39 = vld [vmem:[%s3539_s7 + $0x28] sm:$0xff]  ;;  %v1066_v20 = vsub.s32 4, %v3197_v0 }
 0x1ea   : > { %v714_v24 = vmul.f32 %v2095_v21, %v707_v22  ;;  %v3250_v21 = vld [vmem:[%s3540_s8 + $0x20] sm:$0xff] }
 0x1eb   : > { %v1118_v55 = vrot.slane %v3250_v21, %v3232_v13 }
 0x1ec   : > { %v721_v25 = vadd.f32 %v2096_v23, %v714_v24 }
 0x1ee   : > { %2437 = vmatmul.mubr.f32.vlgmr.msra.gmra.mrb[2].mxu0 %v721_v25  ;;  %2472 = vmatmul.mubr.f32.vlgmr.msra.gmra.mrb[2].mxu1 %v721_v25  ;;  %v1058_v25 = vrot.slane %v3250_v21, %v1057_v16 }
 0x1ef   : > { %2476 = vmatprep.mubr.msk.f32.mxu0 %vm2807_vm0, %v2808_v6  ;;  %2511 = vmatprep.mubr.msk.f32.mxu1 %vm2807_vm0, %v2808_v6 }
 0x1f0   : > { %2647 = vmatpush3.bf16.msra.mxu1 %v2646_v36 }
 0x1f1   : > { %2648 = vmatprep.subr.bf16.mxu1 %v2806_v3 }
 0x1f4   : > { %2650 = vmatpush3.bf16.msra.mxu1 %v2649_v38 }
 0x1f5   : > { %2651 = vmatprep.subr.bf16.mxu1 %v2806_v3 }
 0x2c1   : > { %v804_v26 = vpop.f32.mrb[2].mxu0  ;;  %v891_v27 = vpop.f32.mrb[2].mxu1 }
 0x2c2   : > { %v896_v28 = vrot.slane %v891_v27, 4  ;;  %v2438_v29 = vpop.f32.mrb[3].mxu0  ;;  %v2473_v30 = vpop.f32.mrb[3].mxu1 }
 0x2c4   : > { %v899_v32 = vsel %vm898_vm1, %v804_v26, %v896_v28  ;;  %v3258_v26 = vld [vmem:[%s3540_s8 + $0x28] sm:$0xff] }
 0x2c5   : > { %2475 = vmatpush3.msra.mxu0 %v899_v32  ;;  %v1067_v30 = vrot.slane %v3258_v26, %v1066_v20 }
 0x2c6   : > { %2477 = vmatmul.mubr.msk.f32.vlgmr.msra.gmra.mrb[4].mxu0 %vm908_vm2, %v900_v31  ;;  %2669 = vmatprep.subr.bf16.mxu0 %v2806_v3  ;;  %v3263_v31 = vsub.s32 3, %v3197_v0 }
 0x2c7   : > { %2546 = vmatprep.mubr.msk.f32.mxu0 %vm2807_vm0, %v2808_v6  ;;  %2671 = vmatpush3.bf16.msra.mxu0 %v2646_v36  ;;  %v986_v6 = vld [vmem:[%s3539_s7 + $0x20] sm:$0xff] }
 0x2c8   : > { %2672 = vmatprep.subr.bf16.mxu0 %v2806_v3  ;;  %v2652_v42 = vpack.c.bf16 %v987_v39, %v986_v6  ;;  %v1076_v6 = vrot.slane %v1005_v10, %v3263_v31 }
 0x2ca   : > { %2653 = vmatpush3.bf16.msra.mxu1 %v2652_v42 }
 0x2cb   : > { %2674 = vmatpush3.bf16.msra.mxu0 %v2649_v38  ;;  %2654 = vmatprep.subr.bf16.mxu1 %v2806_v3 }
 0x2cc   : > { %2675 = vmatprep.subr.bf16.mxu0 %v2806_v3 }
 0x2ce   : > { %2656 = vmatpush3.bf16.msra.mxu1 %v2655_v48 }
 0x2cf   : > { %2677 = vmatpush3.bf16.msra.mxu0 %v2652_v42  ;;  %2657 = vmatprep.subr.bf16.mxu1 %v2806_v3 }
 0x2d0   : > { %2678 = vmatprep.subr.bf16.mxu0 %v2806_v3 }
 0x2d2   : > { %2659 = vmatpush3.bf16.msra.mxu1 %v2658_v53 }
 0x2d3   : > { %2680 = vmatpush3.bf16.msra.mxu0 %v2655_v48  ;;  %2660 = vmatprep.subr.bf16.mxu1 %v2806_v3 }
 0x2d4   : > { %2681 = vmatprep.subr.bf16.mxu0 %v2806_v3 }
 0x2d6   : > { %2662 = vmatpush3.bf16.msra.mxu1 %v2661_v56 }
 0x2d7   : > { %2683 = vmatpush3.bf16.msra.mxu0 %v2658_v53  ;;  %2663 = vmatprep.subr.bf16.mxu1 %v2806_v3 }
 0x2d8   : > { %2684 = vmatprep.subr.bf16.mxu0 %v2806_v3 }
 0x2da   : > { %2665 = vmatpush3.bf16.msra.mxu1 %v2664_v59 }
 0x2db   : > { %2686 = vmatpush3.bf16.msra.mxu0 %v2661_v56  ;;  %2666 = vmatprep.subr.bf16.mxu1 %v2806_v3 }
 0x2dc   : > { %2687 = vmatprep.subr.bf16.mxu0 %v2806_v3 }
 0x2de   : > { %2668 = vmatpush3.bf16.msra.mxu1 %v2667_v62 }
 0x2df   : > { %2689 = vmatpush3.bf16.msra.mxu0 %v2664_v59  ;;  %v1127_v59 = vrot.slane %v3258_v26, %v1057_v16 }
 0x2e0   : > { %2690 = vmatprep.subr.bf16.mxu0 %v2806_v3  ;;  %v3213_v3 = vld [vmem:[%s3540_s8 + $0x10] sm:$0xff] }
 0x2e1   : > { %v1031_v8 = vrot.slane %v3213_v3, %v3203_v2  ;;  %v1040_v12 = vrot.slane %v3213_v3, %v3223_v9  ;;  %v1091_v39 = vrot.slane %v3213_v3, %v3200_v1 }
 0x2e3   : > { %2692 = vmatpush3.bf16.msra.mxu0 %v2667_v62 }
 0x399   : > { %v978_v41 = vpop.f32.mrb[4].mxu0 }
 0x39a   : > { %v3149_v43 = vadd.f32 %v2113_v40, %v978_v41  ;;  %v2478_v44 = vpop.f32.mrb[5].mxu0 }
 0x39b   : > { %v1100_v44 = vrot.slane %v3237_v14, %v3203_v2 }
 0x39c   : > { %v999_v47 = vrot.slane %v3149_v43, 5 }
 0x39e   : > { %v1002_v49 = vsel %vm1001_vm3, 0.0, %v999_v47 }
 0x39f   : > { %v3168_v52 = vsel %vm1003_vm4, %v1002_v49, 0.0 }
 0x3a0   : > { %1011 = vrot.lane.b32.xlu0 %v3168_v52, %s2809_s21  ;;  %v1083_v42 = vmul.f32 %v1082_v35, %v3168_v52  ;;  %v1077_v47 = vmul.f32 %v1076_v6, %v3168_v52  ;;  %v1092_v48 = vmul.f32 %v1091_v39, %v3168_v52  ;;  %v1101_v53 = vmul.f32 %v1100_v44, %v3168_v52  ;;  %v2712_v44 = vld [vmem:[%s3544_s12 + $0x20] ss:$16 sps:$4 sm:$0xff]   ;;  %s543_s21 = scalar_lea.vmem %s3549_s17, %s2094_s19 }
 0x3a1   : > { %v1110_v58 = vmul.f32 %v1109_v50, %v3168_v52  ;;  %v1119_v62 = vmul.f32 %v1118_v55, %v3168_v52  ;;  %v2709_v50 = vld [vmem:[%s3544_s12 + $0x8] ss:$16 sps:$4 sm:$0xff]   ;;  %v2723_v55 = vld [vmem:[%s3544_s12 + $0x4c] ss:$16 sps:$4 sm:$0xff]  }
 0x3a2   : > { %v1085_v51 = vrot.slane %v1083_v42, 1  ;;  %v1094_v56 = vrot.slane %v1092_v48, 2  ;;  %v1103_v60 = vrot.slane %v1101_v53, 3  ;;  %v2714_v42 = vld [vmem:[%s3544_s12 + $0x24] ss:$16 sps:$4 sm:$0xff]  }
 0x3a3   : > { %v1112_v0 = vrot.slane %v1110_v58, 4  ;;  %v2717_v53 = vld [vmem:[%s3544_s12 + $0x2c] ss:$16 sps:$4 sm:$0xff]   ;;  %v2726_v58 = vld [vmem:[%s3544_s12 + $0x64] ss:$16 sps:$4 sm:$0xff]  }
 0x412   : > { %v3239_v15 = vpop.permute.xlu0 %1011 }
 0x413   : > { %v1023_v17 = vmul.f32 %v1022_v7, %v3239_v15  ;;  %v1032_v18 = vmul.f32 %v1031_v8, %v3239_v15  ;;  %v1017_v22 = vmul.f32 %v1016_v11, %v3239_v15  ;;  %v1041_v24 = vmul.f32 %v1040_v12, %v3239_v15 }
 0x414   : > { %v1050_v29 = vmul.f32 %v1049_v19, %v3239_v15  ;;  %v1059_v34 = vmul.f32 %v1058_v25, %v3239_v15  ;;  %v1068_v38 = vmul.f32 %v1067_v30, %v3239_v15  ;;  %v1128_v7 = vmul.f32 %v1127_v59, %v3168_v52  ;;  %v2727_v59 = vld [vmem:[%s3544_s12 + $0x68] ss:$16 sps:$4 sm:$0xff]  }
 0x415   : > { %v1025_v23 = vrot.slane %v1023_v17, 1  ;;  %v1034_v28 = vrot.slane %v1032_v18, 2  ;;  %v1043_v33 = vrot.slane %v1041_v24, 3  ;;  %v1142_v8 = vrot.slane %v3208_v4, %v3263_v31 }
 0x416   : > { %v1052_v37 = vrot.slane %v1050_v29, 4  ;;  %v1061_v41 = vrot.slane %v1059_v34, 5  ;;  %v1070_v46 = vrot.slane %v1068_v38, 6  ;;  %v1121_v12 = vrot.slane %v1119_v62, 5  ;;  %v2735_v62 = vld [vmem:[%s3544_s12 + $0x8c] ss:$16 sps:$4 sm:$0xff]  }
 0x417   : > { %v1027_v27 = vadd.f32 %v1025_v23, %v1017_v22  ;;  %v1136_v17 = vrot.slane %v1005_v10, %v1066_v20  ;;  %v1151_v18 = vrot.slane %v3213_v3, %v3216_v5  ;;  %v1130_v22 = vrot.slane %v1128_v7, 6  ;;  %v2738_v7 = vld [vmem:[%s3544_s12 + $0xa4] ss:$16 sps:$4 sm:$0xff]  }
 0x418   : > { %v1143_v16 = vmul.f32 %v1142_v8, %v3239_v15  ;;  %v1160_v23 = vrot.slane %v3237_v14, %v3200_v1  ;;  %v1169_v4 = vrot.slane %v3250_v21, %v3203_v2  ;;  %v1178_v3 = vrot.slane %v3250_v21, %v3223_v9  ;;  %v2115_v9 = vld [vmem:[%s3541_s9] ss:$0 sm:$0xff]  ;;  %v2741_v8 = vld [vmem:[%s3544_s12 + $0xac] ss:$16 sps:$4 sm:$0xff]  }
 0x419   : > { %v1036_v32 = vadd.f32 %v1034_v28, %v1027_v27  ;;  %v1137_v25 = vmul.f32 %v1136_v17, %v3239_v15  ;;  %v1152_v52 = vmul.f32 %v1151_v18, %v3239_v15  ;;  %v1187_v14 = vrot.slane %v3258_v26, %v3232_v13  ;;  %v2706_v13 = vld [vmem:[%s3544_s12] ss:$16 sps:$4 sm:$0xff]   ;;  %v2708_v26 = vld [vmem:[%s3544_s12 + $0x4] ss:$16 sps:$4 sm:$0xff]   ;;  %v2739_v17 = vld [vmem:[%s3544_s12 + $0xa8] ss:$16 sps:$4 sm:$0xff]  }
 0x41a   : > { %v1145_v10 = vrot.slane %v1143_v16, 1  ;;  %v1161_v20 = vmul.f32 %v1160_v23, %v3239_v15  ;;  %v1170_v30 = vmul.f32 %v1169_v4, %v3239_v15  ;;  %v1179_v34 = vmul.f32 %v1178_v3, %v3239_v15  ;;  %1576 = vmatprep.subr.bf16.mxu1 %v2708_v26  ;;  %v2744_v18 = vld [vmem:[%s3544_s12 + $0xc4] ss:$16 sps:$4 sm:$0xff]   ;;  %v2745_v16 = vld [vmem:[%s3544_s12 + $0xc8] ss:$16 sps:$4 sm:$0xff]  }
 0x41b   : > { %v1045_v36 = vadd.f32 %v1043_v33, %v1036_v32  ;;  %v1154_v29 = vrot.slane %v1152_v52, 2  ;;  %v2750_v23 = vld [vmem:[%s3544_s12 + $0xe4] ss:$16 sps:$4 sm:$0xff]   ;;  %v2751_v52 = vld [vmem:[%s3544_s12 + $0xe8] ss:$16 sps:$4 sm:$0xff]  }
 0x41c   : > { %v1163_v33 = vrot.slane %v1161_v20, 3  ;;  %v1181_v6 = vrot.slane %v1179_v34, 5  ;;  %v2754_v4 = vld [vmem:[%s3546_s14 + $0x40] sm:$0xff]   ;;  %v2767_v26 = vld [vmem:[%s3546_s14 + $0xd8] sm:$0xff]  }
 0x41d   : > { %v1054_v40 = vadd.f32 %v1052_v37, %v1045_v36  ;;  %v1172_v36 = vrot.slane %v1170_v30, 4  ;;  %v1188_v37 = vmul.f32 %v1187_v14, %v3239_v15  ;;  %v2711_v15 = vld [vmem:[%s3544_s12 + $0xc] ss:$16 sps:$4 sm:$0xff]   ;;  %v2117_v14 = vld [vmem:[%s3543_s11] ss:$0 sm:$0xff] }
 0x41e   : > { %1617 = vmatprep.subr.bf16.mxu0 %v2711_v15  ;;  %v2756_v34 = vld [vmem:[%s3546_s14] sm:$0xff]   ;;  %v2768_v15 = vld [vmem:[%s3546_s14 + $0x18] sm:$0xff]  }
 0x41f   : > { %v1063_v45 = vadd.f32 %v1061_v41, %v1054_v40  ;;  %v1190_v40 = vrot.slane %v1188_v37, 6  ;;  %v2758_v37 = vld [vmem:[%s3546_s14 + $0x48] sm:$0xff]  }
 0x421   : > { %v1072_v49 = vadd.f32 %v1070_v46, %v1063_v45  ;;  %v2720_v45 = vld [vmem:[%s3544_s12 + $0x44] ss:$16 sps:$4 sm:$0xff]   ;;  %v2718_v46 = vld [vmem:[%s3544_s12 + $0x40] ss:$16 sps:$4 sm:$0xff]  }
 0x423   : > { %v1078_v54 = vadd.f32 %v1077_v47, %v1072_v49 }
 0x425   : > { %v1087_v57 = vadd.f32 %v1085_v51, %v1078_v54  ;;  %v2715_v54 = vld [vmem:[%s3544_s12 + $0x28] ss:$16 sps:$4 sm:$0xff]  }
 0x427   : > { %v1096_v61 = vadd.f32 %v1094_v56, %v1087_v57  ;;  %v2721_v56 = vld [vmem:[%s3544_s12 + $0x48] ss:$16 sps:$4 sm:$0xff]   ;;  %v2724_v57 = vld [vmem:[%s3544_s12 + $0x60] ss:$16 sps:$4 sm:$0xff]  }
 0x429   : > { %v1105_v63 = vadd.f32 %v1103_v60, %v1096_v61  ;;  %v2729_v60 = vld [vmem:[%s3544_s12 + $0x6c] ss:$16 sps:$4 sm:$0xff]   ;;  %v2732_v61 = vld [vmem:[%s3544_s12 + $0x84] ss:$16 sps:$4 sm:$0xff]  }
 0x42b   : > { %v1114_v11 = vadd.f32 %v1112_v0, %v1105_v63  ;;  %v2730_v63 = vld [vmem:[%s3544_s12 + $0x80] ss:$16 sps:$4 sm:$0xff]   ;;  %v2733_v0 = vld [vmem:[%s3544_s12 + $0x88] ss:$16 sps:$4 sm:$0xff]  }
 0x42d   : > { %v1123_v19 = vadd.f32 %v1121_v12, %v1114_v11  ;;  %v2736_v11 = vld [vmem:[%s3544_s12 + $0xa0] ss:$16 sps:$4 sm:$0xff]   ;;  %v2810_v12 = vmov 0  }
 0x42f   : > { %v1132_v24 = vadd.f32 %v1130_v22, %v1123_v19  ;;  %v2747_v19 = vld [vmem:[%s3544_s12 + $0xcc] ss:$16 sps:$4 sm:$0xff]   ;;  %v2742_v22 = vld [vmem:[%s3544_s12 + $0xc0] ss:$16 sps:$4 sm:$0xff]  }
 0x431   : > { %v1138_v27 = vadd.f32 %v1137_v25, %v1132_v24  ;;  %v2753_v24 = vld [vmem:[%s3544_s12 + $0xec] ss:$16 sps:$4 sm:$0xff]   ;;  %v2748_v25 = vld [vmem:[%s3544_s12 + $0xe0] ss:$16 sps:$4 sm:$0xff]  }
 0x433   : > { %v1147_v28 = vadd.f32 %v1145_v10, %v1138_v27  ;;  %v2755_v27 = vld [vmem:[%s3546_s14 + $0xc0] sm:$0xff]  }
 0x435   : > { %v1156_v32 = vadd.f32 %v1154_v29, %v1147_v28  ;;  %v2116_v29 = vld [vmem:[%s3542_s10] ss:$0 sm:$0xff] }
 0x437   : > { %v1165_v35 = vadd.f32 %v1163_v33, %v1156_v32 }
 0x439   : > { %v1174_v38 = vadd.f32 %v1172_v36, %v1165_v35  ;;  %v2757_v35 = vld [vmem:[%s3546_s14 + $0x80] sm:$0xff]  }
 0x43b   : > { %v1183_v39 = vadd.f32 %v1181_v6, %v1174_v38  ;;  %v2759_v38 = vld [vmem:[%s3546_s14 + $0xc8] sm:$0xff]  }
 0x43c   : > { %v2760_v6 = vld [vmem:[%s3546_s14 + $0x8] sm:$0xff]  }
 0x43d   : > { %v1192_v21 = vadd.f32 %v1190_v40, %v1183_v39  ;;  %v2761_v39 = vld [vmem:[%s3546_s14 + $0x88] sm:$0xff]   ;;  %v2762_v40 = vld [vmem:[%s3546_s14 + $0x50] sm:$0xff]  }
 0x43f   : > { %v1200_v41 = vadd.f32 %v2115_v9, %v1192_v21  ;;  %v2763_v9 = vld [vmem:[%s3546_s14 + $0xd0] sm:$0xff]  }
 0x440   : > { %v2764_v21 = vld [vmem:[%s3546_s14 + $0x10] sm:$0xff]  }
 0x441   : > { %2512 = vmatmul.mubr.f32.vlgmr.msra.gmra.mrb[4].mxu1 %v1200_v41 }
 0x442   : > { %1577 = vmatpush1.bf16.msra.mxu1 %v2706_v13  ;;  %1608 = vmatprep.mubr.bf16.mxu1 %v2810_v12  ;;  %v2766_v13 = vld [vmem:[%s3546_s14 + $0x58] sm:$0xff]  }
 0x443   : > { %1578 = vmatprep.subr.bf16.mxu1 %v2714_v42  ;;  %v2769_v42 = vld [vmem:[%s3546_s14 + $0x98] sm:$0xff]  }
 0x446   : > { %1579 = vmatpush1.bf16.msra.mxu1 %v2712_v44  ;;  %v2770_v44 = vld [vmem:[%s3546_s14 + $0x60] sm:$0xff]  }
 0x447   : > { %1580 = vmatprep.subr.bf16.mxu1 %v2720_v45  ;;  %v2771_v45 = vld [vmem:[%s3546_s14 + $0xe0] sm:$0xff]  }
 0x44a   : > { %1581 = vmatpush1.bf16.msra.mxu1 %v2718_v46  ;;  %v2772_v46 = vld [vmem:[%s3546_s14 + $0x20] sm:$0xff]  }
 0x44b   : > { %1582 = vmatprep.subr.bf16.mxu1 %v2726_v58  ;;  %v2783_v58 = vld [vmem:[%s3546_s14 + $0xf8] sm:$0xff]  }
 0x44e   : > { %1583 = vmatpush1.bf16.msra.mxu1 %v2724_v57  ;;  %v2782_v57 = vld [vmem:[%s3546_s14 + $0x78] sm:$0xff]  }
 0x44f   : > { %1584 = vmatprep.subr.bf16.mxu1 %v2732_v61  ;;  %v1394_v61 = vld [vmem:[%s3545_s13] sm:$0xf] }
 0x452   : > { %1585 = vmatpush1.bf16.msra.mxu1 %v2730_v63  ;;  %v1407_v63 = vrot.slane %v1394_v61, %v3216_v5 }
 0x453   : > { %1586 = vmatprep.subr.bf16.mxu1 %v2738_v7  ;;  %v1411_v7 = vrot.slane %v1394_v61, %v3263_v31 }
 0x456   : > { %1587 = vmatpush1.bf16.msra.mxu1 %v2736_v11 }
 0x457   : > { %1588 = vmatprep.subr.bf16.mxu1 %v2744_v18 }
 0x45a   : > { %1589 = vmatpush1.bf16.msra.mxu1 %v2742_v22 }
 0x45b   : > { %1590 = vmatprep.subr.bf16.mxu1 %v2750_v23 }
 0x45e   : > { %1591 = vmatpush1.bf16.msra.mxu1 %v2748_v25 }
 0x45f   : > { %2290 = vmatprep.subr.bf16.mxu1 %v2754_v4 }
 0x514   : > { %v1269_v47 = vpop.f32.mrb[4].mxu1 }
 0x515   : > { %v3329_v48 = vsub.f32 %v1200_v41, %v1269_v47  ;;  %v2513_v49 = vpop.f32.mrb[5].mxu1  ;;  %v2765_v41 = vld [vmem:[%s3546_s14 + $0x90] sm:$0xff]   ;;  %v2773_v47 = vld [vmem:[%s3546_s14 + $0xa0] sm:$0xff]  }
 0x516   : > { %v2775_v49 = vld [vmem:[%s3546_s14 + $0xe8] sm:$0xff]  }
 0x517   : > { %v1274_v51 = vmul.f32 %v3329_v48, %v3329_v48 }
 0x519   : > { %2547 = vmatmul.mubr.f32.vlgmr.msra.gmra.mrb[6].mxu0 %v1274_v51  ;;  %v2777_v51 = vld [vmem:[%s3546_s14 + $0xa8] sm:$0xff]  }
 0x51a   : > { %1618 = vmatpush1.bf16.msra.mxu0 %v2709_v50  ;;  %1649 = vmatprep.mubr.bf16.mxu0 %v2810_v12  ;;  %v2776_v50 = vld [vmem:[%s3546_s14 + $0x28] sm:$0xff]  }
 0x51b   : > { %1619 = vmatprep.subr.bf16.mxu0 %v2717_v53  ;;  %v2778_v53 = vld [vmem:[%s3546_s14 + $0x70] sm:$0xff]  }
 0x51e   : > { %1620 = vmatpush1.bf16.msra.mxu0 %v2715_v54  ;;  %v2779_v54 = vld [vmem:[%s3546_s14 + $0xf0] sm:$0xff]  }
 0x51f   : > { %1621 = vmatprep.subr.bf16.mxu0 %v2723_v55  ;;  %v2780_v55 = vld [vmem:[%s3546_s14 + $0x30] sm:$0xff]  }
 0x522   : > { %1622 = vmatpush1.bf16.msra.mxu0 %v2721_v56  ;;  %v2781_v56 = vld [vmem:[%s3546_s14 + $0xb0] sm:$0xff]  }
 0x523   : > { %1623 = vmatprep.subr.bf16.mxu0 %v2729_v60  ;;  %v2785_v60 = vld [vmem:[%s3546_s14 + $0xb8] sm:$0xff]  }
 0x526   : > { %1624 = vmatpush1.bf16.msra.mxu0 %v2727_v59  ;;  %v2784_v59 = vld [vmem:[%s3546_s14 + $0x38] sm:$0xff]  }
 0x527   : > { %1625 = vmatprep.subr.bf16.mxu0 %v2735_v62  ;;  %v1399_v62 = vrot.slane %v1394_v61, %v3203_v2 }
 0x52a   : > { %1626 = vmatpush1.bf16.msra.mxu0 %v2733_v0  ;;  %v1403_v0 = vrot.slane %v1394_v61, %v3200_v1 }
 0x52b   : > { %1627 = vmatprep.subr.bf16.mxu0 %v2741_v8 }
 0x52e   : > { %1628 = vmatpush1.bf16.msra.mxu0 %v2739_v17 }
 0x52f   : > { %1629 = vmatprep.subr.bf16.mxu0 %v2747_v19 }
 0x532   : > { %1630 = vmatpush1.bf16.msra.mxu0 %v2745_v16 }
 0x533   : > { %1631 = vmatprep.subr.bf16.mxu0 %v2753_v24 }
 0x536   : > { %1632 = vmatpush1.bf16.msra.mxu0 %v2751_v52 }
 0x537   : > { %2312 = vmatprep.subr.bf16.mxu0 %v2755_v27 }
 0x5ec   : > { %v1341_v10 = vpop.f32.mrb[6].mxu0 }
 0x5ed   : > { %v1342_v20 = vadd.f32 1e-06, %v1341_v10  ;;  %v2548_v3 = vpop.f32.mrb[7].mxu0 }
 0x5ef   : > { %2788 = vrsqrt.f32 %v1342_v20 }
 0x5f9   : > { %v2789_v28 = vpop.eup %2788 }
 0x5fa   : > { %v1346_v30 = vmul.f32 %v2789_v28, %v3329_v48  ;;  %v2774_v48 = vld [vmem:[%s3546_s14 + $0x68] sm:$0xff]  }
 0x5fc   : > { %v1353_v32 = vmul.f32 %v2116_v29, %v1346_v30 }
 0x5fe   : > { %v1360_v33 = vadd.f32 %v2117_v14, %v1353_v32 }
 0x600   : > { %v1361_v36 = vpack.c.bf16 %v1360_v33, %v1360_v33 }
 0x602   : > { %1609 = vmatmul.mubr.bf16.vlgmr.msra.gmra.mrb[8].mxu1 %v1361_v36  ;;  %1650 = vmatmul.mubr.bf16.vlgmr.msra.gmra.mrb[8].mxu0 %v1361_v36 }
 0x603   : > { %2291 = vmatpush3.bf16.msra.mxu1 %v2756_v34  ;;  %2313 = vmatpush3.bf16.msra.mxu0 %v2757_v35 }
 0x604   : > { %2292 = vmatprep.subr.bf16.mxu1 %v2758_v37  ;;  %2314 = vmatprep.subr.bf16.mxu0 %v2759_v38 }
 0x607   : > { %2293 = vmatpush3.bf16.msra.mxu1 %v2760_v6  ;;  %2315 = vmatpush3.bf16.msra.mxu0 %v2761_v39 }
 0x608   : > { %2294 = vmatprep.subr.bf16.mxu1 %v2762_v40  ;;  %2316 = vmatprep.subr.bf16.mxu0 %v2763_v9 }
 0x60b   : > { %2295 = vmatpush3.bf16.msra.mxu1 %v2764_v21  ;;  %2317 = vmatpush3.bf16.msra.mxu0 %v2765_v41 }
 0x60c   : > { %2296 = vmatprep.subr.bf16.mxu1 %v2766_v13  ;;  %2318 = vmatprep.subr.bf16.mxu0 %v2767_v26  ;;  %v2150_v13 = vld [vmem:[%s3547_s15] ss:$0 sm:$0xff] }
 0x60f   : > { %2297 = vmatpush3.bf16.msra.mxu1 %v2768_v15  ;;  %2319 = vmatpush3.bf16.msra.mxu0 %v2769_v42 }
 0x610   : > { %2298 = vmatprep.subr.bf16.mxu1 %v2770_v44  ;;  %2320 = vmatprep.subr.bf16.mxu0 %v2771_v45 }
 0x613   : > { %2299 = vmatpush3.bf16.msra.mxu1 %v2772_v46  ;;  %2321 = vmatpush3.bf16.msra.mxu0 %v2773_v47 }
 0x614   : > { %2300 = vmatprep.subr.bf16.mxu1 %v2774_v48  ;;  %2322 = vmatprep.subr.bf16.mxu0 %v2775_v49 }
 0x617   : > { %2301 = vmatpush3.bf16.msra.mxu1 %v2776_v50  ;;  %2323 = vmatpush3.bf16.msra.mxu0 %v2777_v51  ;;  %v2183_v50 = vld [vmem:[%s3548_s16] ss:$0 sm:$0xff] }
 0x618   : > { %2302 = vmatprep.subr.bf16.mxu1 %v2778_v53  ;;  %2324 = vmatprep.subr.bf16.mxu0 %v2779_v54 }
 0x61b   : > { %2303 = vmatpush3.bf16.msra.mxu1 %v2780_v55  ;;  %2325 = vmatpush3.bf16.msra.mxu0 %v2781_v56 }
 0x61c   : > { %2304 = vmatprep.subr.bf16.mxu1 %v2782_v57  ;;  %2326 = vmatprep.subr.bf16.mxu0 %v2783_v58 }
 0x61f   : > { %2305 = vmatpush3.bf16.msra.mxu1 %v2784_v59  ;;  %2327 = vmatpush3.bf16.msra.mxu0 %v2785_v60 }
 0x6d5   : > { %v1610_v8 = vpop.f32.mrb[8].mxu1  ;;  %v1651_v11 = vpop.f32.mrb[8].mxu0 }
 0x6d6   : > { %v1611_v12 = vadd.f32 %v1610_v8, %v1399_v62  ;;  %v1652_v17 = vadd.f32 %v1651_v11, %v1407_v63  ;;  %v1612_v18 = vpop.f32.mrb[9].mxu1  ;;  %v1653_v19 = vpop.f32.mrb[9].mxu0 }
 0x6d7   : > { %v1613_v22 = vadd.f32 %v1612_v18, %v1403_v0  ;;  %v1654_v16 = vadd.f32 %v1653_v19, %v1411_v7  ;;  %v1614_v23 = vpop.f32.mrb[10].mxu1  ;;  %v1655_v24 = vpop.f32.mrb[10].mxu0 }
 0x6d8   : > { %v1662_v25 = vmul.f32 0.70710677, %v1611_v12  ;;  %v1664_v52 = vmul.f32 0.70710677, %v1652_v17  ;;  %v1615_v5 = vpop.f32.mrb[11].mxu1  ;;  %v1656_v27 = vpop.f32.mrb[11].mxu0 }
 0x6d9   : > { %v1663_v4 = vmul.f32 0.70710677, %v1613_v22  ;;  %v1665_v2 = vmul.f32 0.70710677, %v1654_v16  ;;  %v1658_v3 = vmul.f32 0.5, %v1611_v12  ;;  %v1660_v30 = vmul.f32 0.5, %v1652_v17 }
 0x6da   : > { %2790 = verf.f32 %v1662_v25  ;;  %v1659_v14 = vmul.f32 0.5, %v1613_v22  ;;  %v1661_v34 = vmul.f32 0.5, %v1654_v16 }
 0x6db   : > { %2792 = verf.f32 %v1664_v52 }
 0x6dc   : > { %2794 = verf.f32 %v1663_v4 }
 0x6dd   : > { %2796 = verf.f32 %v1665_v2 }
 0x6e4   : > { %v2791_v1 = vpop.eup %2790 }
 0x6e5   : > { %v2793_v31 = vpop.eup %2792  ;;  %v1670_v10 = vadd.f32 1.0, %v2791_v1 }
 0x6e6   : > { %v2795_v20 = vpop.eup %2794  ;;  %v1672_v28 = vadd.f32 1.0, %v2793_v31 }
 0x6e7   : > { %v2797_v29 = vpop.eup %2796  ;;  %v1671_v32 = vadd.f32 1.0, %v2795_v20  ;;  %v1674_v33 = vmul.f32 %v1670_v10, %v1658_v3 }
 0x6e8   : > { %v1673_v35 = vadd.f32 1.0, %v2797_v29  ;;  %v1676_v36 = vmul.f32 %v1672_v28, %v1660_v30 }
 0x6e9   : > { %v1675_v37 = vmul.f32 %v1671_v32, %v1659_v14  ;;  %v1678_v39 = vpack.c.bf16 %v1674_v33, %v1674_v33 }
 0x6ea   : > { %v1677_v38 = vmul.f32 %v1673_v35, %v1661_v34  ;;  %v1680_v9 = vpack.c.bf16 %v1676_v36, %v1676_v36 }
 0x6eb   : > { %v1679_v6 = vpack.c.bf16 %v1675_v37, %v1675_v37 }
 0x6ec   : > { %v1681_v40 = vpack.c.bf16 %v1677_v38, %v1677_v38 }
 0x6ed   : > { %1977 = vmatprep.mubr.bf16.mxu1 %v1679_v6 }
 0x6ee   : > { %2017 = vmatprep.mubr.bf16.mxu0 %v1681_v40  ;;  %1978 = vmatmul.mubr.bf16.vlgmr.msra.gmra.mrb[12].mxu1 %v1678_v39 }
 0x6ef   : > { %2018 = vmatmul.mubr.bf16.vlgmr.msra.gmra.mrb[12].mxu0 %v1680_v9 }
 0x7c1   : > { %v2306_v21 = vpop.f32.mrb[12].mxu1 }
 0x7c2   : > { %v2328_v41 = vpop.f32.mrb[12].mxu0  ;;  %v2307_v26 = vpop.f32.mrb[13].mxu1 }
 0x7c3   : > { %v2308_v15 = vadd.f32 %v2307_v26, %v2306_v21  ;;  %v2329_v42 = vpop.f32.mrb[13].mxu0  ;;  %v2309_v44 = vpop.f32.mrb[14].mxu1 }
 0x7c4   : > { %v2330_v45 = vadd.f32 %v2329_v42, %v2328_v41  ;;  %v2331_v46 = vpop.f32.mrb[14].mxu0  ;;  %v2310_v47 = vpop.f32.mrb[15].mxu1 }
 0x7c5   : > { %v1980_v48 = vadd.f32 %v2308_v15, %v2150_v13  ;;  %v2332_v49 = vpop.f32.mrb[15].mxu0 }
 0x7c7   : > { %v2020_v51 = vadd.f32 %v2330_v45, %v1980_v48 }
 0x7c9   : > { %v2032_v53 = vmul.f32 %v2183_v50, %v2020_v51 }
 0x7cb   : > { %v2033_v54 = vadd.f32 %v2032_v53, %v3149_v43 }
 0x7cd   : > { %2034 = vst [vmem:[%s543_s21] sm:$0x3] %v2033_v54 }
 0x7ce PF: > { %s27_s24 = sadd.s32 1, %s2804_s24  }
 0x7cf   : > { %p24_p4 = scmp.ge.s32.totalorder %s27_s24, 4  }
 0x7d1   :  { %26 = sbr.rel (!%p24_p4) target bundleno = 3 (0x3), region = 119 }

// kernel: _lambda_.5
= control target key start
LH: loop header
LB: loop body
LE: loop exit
PB: predicated region body
PF: predicated region fallthrough
CT: control target
= control target key end

     0   :  { %s3427_s24 = smov 0   ;;  %s4155_s0 = inlined_call_operand.vmem [shape: f32[2,16,128], index: 0, kind: input, shape index: {}]   ;;  %s4156_s1 = inlined_call_operand.vmem [shape: f32[128,128], index: 1, kind: input, shape index: {}]   ;;  %s4157_s2 = inlined_call_operand.vmem [shape: f32[1,128], index: 2, kind: input, shape index: {}]   ;;  %s4158_s3 = inlined_call_operand.vmem [shape: f32[1,128], index: 3, kind: input, shape index: {}]   ;;  %s4159_s4 = inlined_call_operand.vmem [shape: f32[2,128,128], index: 4, kind: input, shape index: {}]   ;;  %s4160_s5 = inlined_call_operand.vmem [shape: f32[8,32], index: 5, kind: input, shape index: {}]   ;;  %s4161_s6 = inlined_call_operand.vmem [shape: f32[1,128], index: 6, kind: input, shape index: {}]   ;;  %s4162_s7 = inlined_call_operand.vmem [shape: f32[128,128], index: 7, kind: input, shape index: {}]   ;;  %s4163_s8 = inlined_call_operand.vmem [shape: f32[49,128], index: 8, kind: input, shape index: {}]   ;;  %s4164_s9 = inlined_call_operand.vmem [shape: f32[1,128], index: 9, kind: input, shape index: {}]   ;;  %s4165_s10 = inlined_call_operand.vmem [shape: f32[1,128], index: 10, kind: input, shape index: {}]   ;;  %s4166_s11 = inlined_call_operand.vmem [shape: f32[1,128], index: 11, kind: input, shape index: {}]   ;;  %s4167_s12 = inlined_call_operand.vmem [shape: bf16[128,512], index: 12, kind: input, shape index: {}]   ;;  %s4168_s13 = inlined_call_operand.vmem [shape: f32[1,512], index: 13, kind: input, shape index: {}]   ;;  %s4169_s14 = inlined_call_operand.vmem [shape: bf16[512,128], index: 14, kind: input, shape index: {}]   ;;  %s4170_s15 = inlined_call_operand.vmem [shape: f32[1,128], index: 15, kind: input, shape index: {}]   ;;  %s4171_s16 = inlined_call_operand.vmem [shape: f32[1,128], index: 16, kind: input, shape index: {}]   ;;  %s4172_s17 = inlined_call_operand.vmem [shape: f32[2,8,128], index: 17, kind: output, shape index: {}]  }
   0x1   :  { %4174 = sst [smem:[#allocation2_spill]] %s4155_s0 }
   0x2   :  { %4175 = sst [smem:[#allocation3_spill]] %s4156_s1 }
   0x3 LB: > { %s2548_s25 = sadd.s32 4294967295, %s3325_s24   ;;  %p2552_p0 = scmp.ge.s32.totalorder %s3325_s24, 1  ;;  %s3325_s24 = sphi %s3427_s24, %s27_s24  }
   0x4   : > { %p487_p1 = scmp.lt.s32.totalorder %s3325_s24, 3 }
   0x6   : > { %p488_p2 = pnand %p2552_p0, %p487_p1 }
   0x7   : > { %s4176_s28 = sld [smem:[#allocation3_spill]] (!%p488_p2)  ;;  %p538_p3 = scmp.lt.s32.totalorder (!%p488_p2), %s2548_s25, 1  ;;  %v742_v26 = vld [vmem:[%s4159_s4] sm:$0xff] (!%p488_p2)  ;;  %v743_v27 = vld [vmem:[%s4159_s4 + $0x8] sm:$0xff] (!%p488_p2)  ;;  %v744_v31 = vld [vmem:[%s4159_s4 + $0x10] sm:$0xff] (!%p488_p2)  ;;  %vm3328_vm0 = vmmov (!%p488_p2), 0  }
   0x8   : > { %491 = sbr.rel (%p488_p2) target bundleno = 2069 (0x815), region = 88  ;;  %s4177_s18 = sld [smem:[#allocation2_spill]] (!%p488_p2)  ;;  %v2558_v28 = vld [vmem:[%s4159_s4 + $0x80] sm:$0xff] (!%p488_p2)  ;;  %v3089_v29 = vpack.c.bf16 (!%p488_p2), %v743_v27, %v742_v26  ;;  %v2559_v30 = vld [vmem:[%s4159_s4 + $0x88] sm:$0xff] (!%p488_p2)  ;;  %v745_v32 = vld [vmem:[%s4159_s4 + $0x18] sm:$0xff] (!%p488_p2)  ;;  %vm933_vm1 = vcmask (!%p488_p2), 261120  }
   0x9   : > { %v3121_v33 = vpack.c.bf16 (!%p488_p2), %v2559_v30, %v2558_v28  ;;  %v3093_v34 = vpack.c.bf16 (!%p488_p2), %v745_v32, %v744_v31  ;;  %v746_v35 = vld [vmem:[%s4159_s4 + $0x20] sm:$0xff] (!%p488_p2)  ;;  %v747_v36 = vld [vmem:[%s4159_s4 + $0x28] sm:$0xff] (!%p488_p2)  ;;  %v2560_v42 = vld [vmem:[%s4159_s4 + $0x90] sm:$0xff] (!%p488_p2)  ;;  %v3327_v30 = vmov (!%p488_p2), 0.0|0.0   ;;  %v3329_v31 = vmov (!%p488_p2), 0.0   ;;  %s3330_s27 = smov (!%p488_p2), 32  }
   0xa   : > { %v3097_v37 = vpack.c.bf16 (!%p488_p2), %v747_v36, %v746_v35  ;;  %v2561_v43 = vld [vmem:[%s4159_s4 + $0x98] sm:$0xff] (!%p488_p2)  ;;  %v2562_v47 = vld [vmem:[%s4159_s4 + $0xa0] sm:$0xff] (!%p488_p2)  ;;  %v2563_v48 = vld [vmem:[%s4159_s4 + $0xa8] sm:$0xff] (!%p488_p2)  ;;  %vm1026_vm2 = vcmask (!%p488_p2), 1042432   ;;  %vm1054_vm3 = vcmask (!%p488_p2), 1046528   ;;  %vm1068_vm4 = vcmask (!%p488_p2), 1045504  }
   0xb   : > { %v3125_v46 = vpack.c.bf16 (!%p488_p2), %v2561_v43, %v2560_v42  ;;  %v3129_v49 = vpack.c.bf16 (!%p488_p2), %v2563_v48, %v2562_v47  ;;  %v748_v50 = vld [vmem:[%s4159_s4 + $0x30] sm:$0xff] (!%p488_p2)  ;;  %v749_v51 = vld [vmem:[%s4159_s4 + $0x38] sm:$0xff] (!%p488_p2)  ;;  %v750_v56 = vld [vmem:[%s4159_s4 + $0x40] sm:$0xff] (!%p488_p2)  ;;  %vm1082_vm5 = vcmask (!%p488_p2), 1044480   ;;  %s3332_s29 = smov (!%p488_p2), 16   ;;  %vm1096_vm6 = vcmask (!%p488_p2), 1043456  }
   0xc   : > { %v2564_v52 = vld [vmem:[%s4159_s4 + $0xb0] sm:$0xff] (!%p488_p2)  ;;  %v3101_v53 = vpack.c.bf16 (!%p488_p2), %v749_v51, %v748_v50  ;;  %v2565_v54 = vld [vmem:[%s4159_s4 + $0xb8] sm:$0xff] (!%p488_p2)  ;;  %v751_v57 = vld [vmem:[%s4159_s4 + $0x48] sm:$0xff] (!%p488_p2)  ;;  %vm1123_vm7 = vcmask (!%p488_p2), 1041408   ;;  %s3333_s0 = smov (!%p488_p2), 112   ;;  %s3334_s30 = smov (!%p488_p2), 96  }
   0xd   : > { %v550_v0 = vld [vmem:[%s4176_s28] sm:$0xff] (!%p488_p2)  ;;  %v551_v1 = vld [vmem:[%s4176_s28 + $0x8] sm:$0xff] (!%p488_p2)  ;;  %v552_v2 = vld [vmem:[%s4176_s28 + $0x10] sm:$0xff] (!%p488_p2)  ;;  %v3133_v55 = vpack.c.bf16 (!%p488_p2), %v2565_v54, %v2564_v52  ;;  %v3105_v59 = vpack.c.bf16 (!%p488_p2), %v751_v57, %v750_v56 }
   0xe   : > { %v3025_v3 = vpack.c.bf16 (!%p488_p2), %v551_v1, %v550_v0  ;;  %v553_v4 = vld [vmem:[%s4176_s28 + $0x18] sm:$0xff] (!%p488_p2)  ;;  %v554_v6 = vld [vmem:[%s4176_s28 + $0x20] sm:$0xff] (!%p488_p2)  ;;  %v555_v7 = vld [vmem:[%s4176_s28 + $0x28] sm:$0xff] (!%p488_p2) }
   0xf   : > { %v3029_v5 = vpack.c.bf16 %v553_v4, %v552_v2  ;;  %s4179_s25 = smov (!%p538_p3, %s2548_s25), 1  ;;  %v3033_v8 = vpack.c.bf16 %v555_v7, %v554_v6  ;;  %v556_v9 = vld [vmem:[%s4176_s28 + $0x30] sm:$0xff]  ;;  %v557_v10 = vld [vmem:[%s4176_s28 + $0x38] sm:$0xff]  ;;  %v558_v12 = vld [vmem:[%s4176_s28 + $0x40] sm:$0xff] }
  0x10   : > { %3026 = vmatprep.subr.bf16.mxu0 %v3025_v3  ;;  %3058 = vmatprep.subr.bf16.mxu1 %v3025_v3  ;;  %s2648_s26 = sshll.u32 %s4179_s25, 4  ;;  %v559_v13 = vld [vmem:[%s4176_s28 + $0x48] sm:$0xff]  ;;  %v3037_v14 = vpack.c.bf16 %v557_v10, %v556_v9  ;;  %v560_v15 = vld [vmem:[%s4176_s28 + $0x50] sm:$0xff]  ;;  %v561_v16 = vld [vmem:[%s4176_s28 + $0x58] sm:$0xff] }
  0x11   : > { %3028 = vmatpush3.bf16.msra.mxu0 %v3025_v3  ;;  %3060 = vmatpush3.bf16.msra.mxu1 %v3025_v3  ;;  %s3462_s19 = scalar_lea.vmem %s4177_s18, %s2648_s26  ;;  %v3041_v17 = vpack.c.bf16 %v559_v13, %v558_v12  ;;  %v562_v18 = vld [vmem:[%s4176_s28 + $0x60] sm:$0xff]  ;;  %v563_v19 = vld [vmem:[%s4176_s28 + $0x68] sm:$0xff]  ;;  %v3045_v20 = vpack.c.bf16 %v561_v16, %v560_v15  ;;  %v564_v21 = vld [vmem:[%s4176_s28 + $0x70] sm:$0xff]  ;;  %s3331_s26 = smov 48  }
  0x12   : > { %3030 = vmatprep.subr.bf16.mxu0 %v3029_v5  ;;  %3062 = vmatprep.subr.bf16.mxu1 %v3029_v5  ;;  %v3468_v11 = vld [vmem:[%s3462_s19] sm:$0xff]  ;;  %v565_v22 = vld [vmem:[%s4176_s28 + $0x78] sm:$0xff]  ;;  %v3049_v23 = vpack.c.bf16 %v563_v19, %v562_v18  ;;  %v549_v25 = vld [vmem:[%s3462_s19 + $0x8] sm:$0xff]  ;;  %s3335_s18 = smov 80  }
  0x13   : > { %2836 = vmatprep.mubr.f32.mxu0 %v3468_v11  ;;  %v3053_v24 = vpack.c.bf16 %v565_v22, %v564_v21  ;;  %v2566_v58 = vld [vmem:[%s4159_s4 + $0xc0] sm:$0xff]  ;;  %v2567_v60 = vld [vmem:[%s4159_s4 + $0xc8] sm:$0xff]  ;;  %v752_v61 = vld [vmem:[%s4159_s4 + $0x50] sm:$0xff] }
  0x14   : > { %v753_v62 = vld [vmem:[%s4159_s4 + $0x58] sm:$0xff]  ;;  %v3137_v63 = vpack.c.bf16 %v2567_v60, %v2566_v58  ;;  %v2568_v1 = vld [vmem:[%s4159_s4 + $0xd0] sm:$0xff]  ;;  %v754_v3 = vld [vmem:[%s4159_s4 + $0x60] sm:$0xff] }
  0x15   : > { %3032 = vmatpush3.bf16.msra.mxu0 %v3029_v5  ;;  %3064 = vmatpush3.bf16.msra.mxu1 %v3029_v5  ;;  %v3109_v0 = vpack.c.bf16 %v753_v62, %v752_v61  ;;  %v2569_v2 = vld [vmem:[%s4159_s4 + $0xd8] sm:$0xff]  ;;  %v755_v5 = vld [vmem:[%s4159_s4 + $0x68] sm:$0xff]  ;;  %v2570_v6 = vld [vmem:[%s4159_s4 + $0xe0] sm:$0xff] }
  0x16   : > { %3034 = vmatprep.subr.bf16.mxu0 %v3033_v8  ;;  %3066 = vmatprep.subr.bf16.mxu1 %v3033_v8  ;;  %v3141_v4 = vpack.c.bf16 %v2569_v2, %v2568_v1  ;;  %v2571_v7 = vld [vmem:[%s4159_s4 + $0xe8] sm:$0xff]  ;;  %v756_v10 = vld [vmem:[%s4159_s4 + $0x70] sm:$0xff]  ;;  %v2573_v13 = vld [vmem:[%s4159_s4 + $0xf8] sm:$0xff] }
  0x17   : > { %v3145_v9 = vpack.c.bf16 %v2571_v7, %v2570_v6  ;;  %v2572_v12 = vld [vmem:[%s4159_s4 + $0xf0] sm:$0xff]  ;;  %v2556_v21 = vld [vmem:[%s4157_s2] ss:$0 sm:$0xff]  ;;  %v3648_v50 = vld [vmem:[%s4163_s8 + $0x18] sm:$0xff] }
  0x18   : > { %v3149_v15 = vpack.c.bf16 %v2573_v13, %v2572_v12  ;;  %v3641_v47 = vld [vmem:[%s4163_s8 + $0x10] sm:$0xff]  ;;  %v3670_v57 = vld [vmem:[%s4163_s8 + $0x28] sm:$0xff] }
  0x19   : > { %3036 = vmatpush3.bf16.msra.mxu0 %v3033_v8  ;;  %3068 = vmatpush3.bf16.msra.mxu1 %v3033_v8  ;;  %v3113_v8 = vpack.c.bf16 %v755_v5, %v754_v3 }
  0x1a   : > { %3038 = vmatprep.subr.bf16.mxu0 %v3037_v14  ;;  %3070 = vmatprep.subr.bf16.mxu1 %v3037_v14 }
  0x1d   : > { %3040 = vmatpush3.bf16.msra.mxu0 %v3037_v14  ;;  %3072 = vmatpush3.bf16.msra.mxu1 %v3037_v14 }
  0x1e   : > { %3042 = vmatprep.subr.bf16.mxu0 %v3041_v17  ;;  %3074 = vmatprep.subr.bf16.mxu1 %v3041_v17 }
  0x21   : > { %3044 = vmatpush3.bf16.msra.mxu0 %v3041_v17  ;;  %3076 = vmatpush3.bf16.msra.mxu1 %v3041_v17 }
  0x22   : > { %3046 = vmatprep.subr.bf16.mxu0 %v3045_v20  ;;  %3078 = vmatprep.subr.bf16.mxu1 %v3045_v20 }
  0x25   : > { %3048 = vmatpush3.bf16.msra.mxu0 %v3045_v20  ;;  %3080 = vmatpush3.bf16.msra.mxu1 %v3045_v20 }
  0x26   : > { %3050 = vmatprep.subr.bf16.mxu0 %v3049_v23  ;;  %3082 = vmatprep.subr.bf16.mxu1 %v3049_v23 }
  0x29   : > { %3052 = vmatpush3.bf16.msra.mxu0 %v3049_v23  ;;  %3084 = vmatpush3.bf16.msra.mxu1 %v3049_v23 }
  0x2a   : > { %3054 = vmatprep.subr.bf16.mxu0 %v3053_v24  ;;  %3086 = vmatprep.subr.bf16.mxu1 %v3053_v24 }
  0x2d   : > { %3056 = vmatpush3.bf16.msra.mxu0 %v3053_v24  ;;  %3088 = vmatpush3.bf16.msra.mxu1 %v3053_v24 }
  0x2e   : > { %3090 = vmatprep.subr.bf16.mxu0 %v3089_v29  ;;  %3122 = vmatprep.subr.bf16.mxu1 %v3121_v33 }
  0x30   : > { %2837 = vmatmul.mubr.f32.vlgmr.msra.gmra.mrb[0].mxu0 %v549_v25 }
  0x31   : > { %3092 = vmatpush3.bf16.msra.mxu0 %v3089_v29 }
  0x32   : > { %3094 = vmatprep.subr.bf16.mxu0 %v3093_v34 }
  0x35   : > { %3096 = vmatpush3.bf16.msra.mxu0 %v3093_v34 }
  0x36   : > { %3098 = vmatprep.subr.bf16.mxu0 %v3097_v37 }
  0x39   : > { %3100 = vmatpush3.bf16.msra.mxu0 %v3097_v37 }
  0x3a   : > { %3102 = vmatprep.subr.bf16.mxu0 %v3101_v53 }
  0x3d   : > { %3104 = vmatpush3.bf16.msra.mxu0 %v3101_v53  ;;  %v3659_v53 = vld [vmem:[%s4163_s8 + $0x20] sm:$0xff] }
  0x3e   : > { %3106 = vmatprep.subr.bf16.mxu0 %v3105_v59 }
  0x41   : > { %3108 = vmatpush3.bf16.msra.mxu0 %v3105_v59 }
  0x42   : > { %3110 = vmatprep.subr.bf16.mxu0 %v3109_v0 }
  0x45   : > { %3112 = vmatpush3.bf16.msra.mxu0 %v3109_v0 }
  0x46   : > { %3114 = vmatprep.subr.bf16.mxu0 %v3113_v8 }
  0x49   : > { %3116 = vmatpush3.bf16.msra.mxu0 %v3113_v8 }
 0x103   : > { %v2838_v38 = vpop.f32.mrb[0].mxu0 }
 0x104   : > { %v3520_v39 = vsub.f32 %v549_v25, %v2838_v38  ;;  %v634_v40 = vpop.f32.mrb[1].mxu0  ;;  %v2557_v25 = vld [vmem:[%s4158_s3] ss:$0 sm:$0xff] }
 0x105   : > { %v3523_v41 = vsub.f32 %v3468_v11, %v634_v40  ;;  %v757_v11 = vld [vmem:[%s4159_s4 + $0x78] sm:$0xff]  ;;  %v925_v38 = vld [vmem:[%s4160_s5] sm:$0xff] }
 0x106   : > { %v646_v45 = vmul.f32 %v3520_v39, %v3520_v39  ;;  %v3117_v14 = vpack.c.bf16 %v757_v11, %v756_v10 }
 0x107   : > { %v645_v44 = vmul.f32 %v3523_v41, %v3523_v41 }
 0x108   : > { %3118 = vmatprep.subr.bf16.mxu0 %v3117_v14 }
 0x109   : > { %2871 = vmatprep.mubr.f32.mxu1 %v645_v44  ;;  %3120 = vmatpush3.bf16.msra.mxu0 %v3117_v14  ;;  %v3633_v44 = vld [vmem:[%s4163_s8 + $0x8] sm:$0xff] }
 0x10a   : > { %2872 = vmatmul.mubr.f32.vlgmr.msra.gmra.mrb[0].mxu1 %v646_v45  ;;  %3153 = vmatprep.subr.bf16.mxu0 %v3327_v30 }
 0x10b   : > { %3124 = vmatpush3.bf16.msra.mxu1 %v3121_v33 }
 0x10c   : > { %3126 = vmatprep.subr.bf16.mxu1 %v3125_v46 }
 0x10f   : > { %3128 = vmatpush3.bf16.msra.mxu1 %v3125_v46 }
 0x110   : > { %3130 = vmatprep.subr.bf16.mxu1 %v3129_v49 }
 0x113   : > { %3132 = vmatpush3.bf16.msra.mxu1 %v3129_v49 }
 0x114   : > { %3134 = vmatprep.subr.bf16.mxu1 %v3133_v55 }
 0x117   : > { %3136 = vmatpush3.bf16.msra.mxu1 %v3133_v55 }
 0x118   : > { %3138 = vmatprep.subr.bf16.mxu1 %v3137_v63 }
 0x11b   : > { %3140 = vmatpush3.bf16.msra.mxu1 %v3137_v63 }
 0x11c   : > { %3142 = vmatprep.subr.bf16.mxu1 %v3141_v4 }
 0x11f   : > { %3144 = vmatpush3.bf16.msra.mxu1 %v3141_v4 }
 0x120   : > { %3146 = vmatprep.subr.bf16.mxu1 %v3145_v9 }
 0x123   : > { %3148 = vmatpush3.bf16.msra.mxu1 %v3145_v9 }
 0x124   : > { %3150 = vmatprep.subr.bf16.mxu1 %v3149_v15 }
 0x127   : > { %3152 = vmatpush3.bf16.msra.mxu1 %v3149_v15 }
 0x128   : > { %3159 = vmatprep.subr.bf16.mxu1 %v3327_v30 }
 0x1dd   : > { %v2873_v16 = vpop.f32.mrb[0].mxu1 }
 0x1de   : > { %v719_v17 = vadd.f32 1e-06, %v2873_v16  ;;  %v713_v18 = vpop.f32.mrb[1].mxu1 }
 0x1df   : > { %v714_v19 = vadd.f32 1e-06, %v713_v18 }
 0x1e0   : > { %3305 = vrsqrt.f32 %v719_v17 }
 0x1e1   : > { %3307 = vrsqrt.f32 %v714_v19 }
 0x1ea   : > { %v3306_v20 = vpop.eup %3305 }
 0x1eb   : > { %v3308_v22 = vpop.eup %3307  ;;  %v725_v23 = vmul.f32 %v3306_v20, %v3520_v39  ;;  %v1040_v39 = vlaneseq }
 0x1ec   : > { %v724_v24 = vmul.f32 %v3308_v22, %v3523_v41  ;;  %v2574_v41 = vld [vmem:[%s4161_s6] ss:$0 sm:$0xff] }
 0x1ed   : > { %v733_v26 = vmul.f32 %v2556_v21, %v725_v23  ;;  %v3619_v40 = vshrl.u32 %v1040_v39, 7  ;;  %v1012_v39 = vld [vmem:[%s4162_s7 + $0x28] sm:$0xff] }
 0x1ee   : > { %v732_v27 = vmul.f32 %v2556_v21, %v724_v24 }
 0x1ef   : > { %v741_v29 = vadd.f32 %v2557_v25, %v733_v26  ;;  %v3625_v42 = vsub.s32 2, %v3619_v40  ;;  %v3628_v43 = vsub.s32 1, %v3619_v40  ;;  %v3636_v46 = vsub.s32 0, %v3619_v40 }
 0x1f0   : > { %v740_v28 = vadd.f32 %v2557_v25, %v732_v27  ;;  %v3651_v51 = vsub.s32 7, %v3619_v40  ;;  %v3654_v52 = vsub.s32 6, %v3619_v40  ;;  %v3662_v54 = vsub.s32 5, %v3619_v40 }
 0x1f1   : > { %v1314_v55 = vrot.slane %v3633_v44, %v3625_v42  ;;  %v1327_v58 = vrot.slane %v3641_v47, %v3628_v43  ;;  %v1340_v59 = vrot.slane %v3648_v50, %v3636_v46 }
 0x1f2   : > { %2906 = vmatprep.mubr.f32.mxu0 %v740_v28  ;;  %2941 = vmatprep.mubr.f32.mxu1 %v740_v28  ;;  %v1353_v62 = vrot.slane %v3648_v50, %v3651_v51  ;;  %v1366_v63 = vrot.slane %v3659_v53, %v3654_v52  ;;  %v1379_v2 = vrot.slane %v3670_v57, %v3662_v54 }
 0x1f3   : > { %2907 = vmatmul.mubr.f32.vlgmr.msra.gmra.mrb[2].mxu0 %v741_v29  ;;  %2942 = vmatmul.mubr.f32.vlgmr.msra.gmra.mrb[2].mxu1 %v741_v29 }
 0x1f4   : > { %2952 = vmatprep.mubr.msk.f32.mxu0 %vm3328_vm0, %v3329_v31  ;;  %2987 = vmatprep.mubr.msk.f32.mxu1 %vm3328_vm0, %v3329_v31 }
 0x2c6   : > { %v2908_v32 = vpop.f32.mrb[2].mxu0  ;;  %v2943_v33 = vpop.f32.mrb[2].mxu1 }
 0x2c7   : > { %v824_v34 = vpop.f32.mrb[3].mxu0  ;;  %v916_v35 = vpop.f32.mrb[3].mxu1 }
 0x2c8   : > { %v3154_v36 = vpack.c.bf16 %v2908_v32, %v824_v34  ;;  %v3157_v37 = vpack.c.bf16 %v2943_v33, %v916_v35  ;;  %v1007_v32 = vld [vmem:[%s4162_s7] sm:$0xff]  ;;  %v1008_v33 = vld [vmem:[%s4162_s7 + $0x8] sm:$0xff]  ;;  %v1009_v34 = vld [vmem:[%s4162_s7 + $0x10] sm:$0xff] }
 0x2c9   : > { %v3160_v35 = vpack.c.bf16 %v1008_v33, %v1007_v32 }
 0x2ca   : > { %3155 = vmatpush3.bf16.msra.mxu0 %v3154_v36  ;;  %v1010_v36 = vld [vmem:[%s4162_s7 + $0x18] sm:$0xff] }
 0x2cb   : > { %3156 = vmatprep.subr.bf16.mxu0 %v3327_v30  ;;  %3161 = vmatpush3.bf16.msra.mxu1 %v3160_v35 }
 0x2cc   : > { %3162 = vmatprep.subr.bf16.mxu1 %v3327_v30 }
 0x2ce   : > { %3158 = vmatpush3.bf16.msra.mxu0 %v3157_v37  ;;  %v3163_v37 = vpack.c.bf16 %v1010_v36, %v1009_v34 }
 0x2cf   : > { %3183 = vmatprep.subr.bf16.mxu0 %v3327_v30 }
 0x2d0   : > { %3164 = vmatpush3.bf16.msra.mxu1 %v3163_v37 }
 0x2d1   : > { %2953 = vmatmul.mubr.msk.f32.vlgmr.msra.gmra.mrb[4].mxu0 %vm933_vm1, %v925_v38  ;;  %v1011_v38 = vld [vmem:[%s4162_s7 + $0x20] sm:$0xff]  ;;  %3165 = vmatprep.subr.bf16.mxu1 %v3327_v30 }
 0x2d2   : > { %3022 = vmatprep.mubr.msk.f32.mxu0 %vm3328_vm0, %v3329_v31  ;;  %3185 = vmatpush3.bf16.msra.mxu0 %v3160_v35  ;;  %v1118_v35 = vrot.slane %v3670_v57, %v3625_v42 }
 0x2d3   : > { %3186 = vmatprep.subr.bf16.mxu0 %v3327_v30 }
 0x2d6   : > { %3188 = vmatpush3.bf16.msra.mxu0 %v3163_v37 }
 0x2d7   : > { %3189 = vmatprep.subr.bf16.mxu0 %v3327_v30 }
 0x3a4   : > { %v1003_v45 = vpop.f32.mrb[4].mxu0 }
 0x3a5   : > { %v3643_v48 = vadd.f32 %v2574_v41, %v1003_v45  ;;  %v2954_v49 = vpop.f32.mrb[5].mxu0  ;;  %v3166_v41 = vpack.c.bf16 %v1012_v39, %v1011_v38  ;;  %v1013_v45 = vld [vmem:[%s4162_s7 + $0x30] sm:$0xff] }
 0x3a6   : > { %v1014_v49 = vld [vmem:[%s4162_s7 + $0x38] sm:$0xff] }
 0x3a7   : > { %v1024_v56 = vrot.slane %v3643_v48, 5  ;;  %3167 = vmatpush3.bf16.msra.mxu1 %v3166_v41  ;;  %3191 = vmatpush3.bf16.msra.mxu0 %v3166_v41 }
 0x3a8   : > { %3168 = vmatprep.subr.bf16.mxu1 %v3327_v30  ;;  %3192 = vmatprep.subr.bf16.mxu0 %v3327_v30 }
 0x3a9   : > { %v3677_v60 = vsel %vm1026_vm2, 0.0, %v1024_v56  ;;  %v1028_v61 = vsel %vm1026_vm2, %v1024_v56, 0.0  ;;  %v1015_v56 = vld [vmem:[%s4162_s7 + $0x40] sm:$0xff] }
 0x3aa   : > { %1129 = vrot.lane.b32.xlu1 %v3677_v60, %s3330_s27  ;;  %1036 = vrot.lane.b32.xlu0 %v3677_v60, %s3331_s26  ;;  %v1316_v0 = vmul.f32 %v1314_v55, %v1028_v61  ;;  %v1315_v1 = vmul.f32 %v1314_v55, %v3677_v60  ;;  %v1329_v3 = vmul.f32 %v1327_v58, %v1028_v61 }
 0x3ab   : > { %v1342_v6 = vmul.f32 %v1340_v59, %v1028_v61  ;;  %v1328_v7 = vmul.f32 %v1327_v58, %v3677_v60  ;;  %v1355_v8 = vmul.f32 %v1353_v62, %v1028_v61  ;;  %v1368_v9 = vmul.f32 %v1366_v63, %v1028_v61  ;;  %v1016_v58 = vld [vmem:[%s4162_s7 + $0x48] sm:$0xff] }
 0x3ac   : > { %v1320_v4 = vrot.slane %v1316_v0, 1  ;;  %v1319_v5 = vrot.slane %v1315_v1, 1  ;;  %v1333_v10 = vrot.slane %v1329_v3, 2  ;;  %v1381_v11 = vmul.f32 %v1379_v2, %v1028_v61  ;;  %v1019_v0 = vld [vmem:[%s4162_s7 + $0x60] sm:$0xff]  ;;  %v1020_v1 = vld [vmem:[%s4162_s7 + $0x68] sm:$0xff]  ;;  %v1021_v3 = vld [vmem:[%s4162_s7 + $0x70] sm:$0xff] }
 0x3ad   : > { %v1346_v13 = vrot.slane %v1342_v6, 3  ;;  %v1332_v14 = vrot.slane %v1328_v7, 2  ;;  %v1341_v15 = vmul.f32 %v1340_v59, %v3677_v60  ;;  %v1354_v16 = vmul.f32 %v1353_v62, %v3677_v60  ;;  %v1018_v62 = vld [vmem:[%s4162_s7 + $0x58] sm:$0xff]  ;;  %v3781_v7 = vld [vmem:[%s4163_s8] sm:$0xff] }
 0x3ae   : > { %1131 = vrot.lane.b32.xlu1 %v1028_v61, %s3330_s27  ;;  %1038 = vrot.lane.b32.xlu0 %v1028_v61, %s3331_s26  ;;  %v3691_v12 = vsel %vm1054_vm3, %v1319_v5, %v1320_v4  ;;  %v1359_v17 = vrot.slane %v1355_v8, 4  ;;  %v1372_v18 = vrot.slane %v1368_v9, 5  ;;  %v1367_v19 = vmul.f32 %v1366_v63, %v3677_v60  ;;  %v1022_v4 = vld [vmem:[%s4162_s7 + $0x78] sm:$0xff] }
 0x3af   : > { %v1380_v20 = vmul.f32 %v1379_v2, %v3677_v60  ;;  %v1385_v21 = vrot.slane %v1381_v11, 6  ;;  %v3699_v22 = vsel %vm1068_vm4, %v1332_v14, %v1333_v10  ;;  %v1345_v23 = vrot.slane %v1341_v15, 3 }
 0x3b0   : > { %v1358_v24 = vrot.slane %v1354_v16, 4  ;;  %v1371_v25 = vrot.slane %v1367_v19, 5  ;;  %v3169_v55 = vpack.c.bf16 %v1014_v49, %v1013_v45  ;;  %v3172_v59 = vpack.c.bf16 %v1016_v58, %v1015_v56 }
 0x3b1   : > { %v1384_v26 = vrot.slane %v1380_v20, 6  ;;  %v3702_v27 = vsel %vm1082_vm5, %v1345_v23, %v1346_v13  ;;  %v3178_v2 = vpack.c.bf16 %v1020_v1, %v1019_v0  ;;  %v3181_v5 = vpack.c.bf16 %v1022_v4, %v1021_v3 }
 0x3b2   : > { %1219 = vrot.lane.b32.xlu1 %v1028_v61, %s3332_s29  ;;  %1217 = vrot.lane.b32.xlu0 %v3677_v60, %s3332_s29  ;;  %v3706_v28 = vsel %vm1096_vm6, %v1358_v24, %v1359_v17  ;;  %v3709_v29 = vsel %vm1026_vm2, %v1371_v25, %v1372_v18  ;;  %v1049_v8 = vrot.slane %v3781_v7, %v3651_v51  ;;  %v3788_v10 = vsub.s32 4, %v3619_v40  ;;  %s2555_s29 = sshll.u32 %s4179_s25, 3 }
 0x3b3   : > { %v3712_v31 = vsel %vm1123_vm7, %v1384_v26, %v1385_v21  ;;  %3170 = vmatpush3.bf16.msra.mxu1 %v3169_v55  ;;  %3194 = vmatpush3.bf16.msra.mxu0 %v3169_v55  ;;  %v1063_v9 = vrot.slane %v3633_v44, %v3654_v52  ;;  %v1043_v14 = vrot.slane %v3781_v7, %v3636_v46  ;;  %v3795_v15 = vsub.s32 3, %v3619_v40 }
 0x3b4   : > { %3171 = vmatprep.subr.bf16.mxu1 %v3327_v30  ;;  %3195 = vmatprep.subr.bf16.mxu0 %v3327_v30  ;;  %v1091_v17 = vrot.slane %v3648_v50, %v3788_v10  ;;  %v1155_v3 = vrot.slane %v3633_v44, %v3651_v51 }
 0x3b5   : > { %v1105_v23 = vrot.slane %v3659_v53, %v3795_v15 }
 0x3b6   : > { %1391 = vrot.lane.b32.xlu1 %v1028_v61, %s3333_s0  ;;  %1389 = vrot.lane.b32.xlu0 %v3677_v60, %s3333_s0 }
 0x3b7   : > { %3173 = vmatpush3.bf16.msra.mxu1 %v3172_v59  ;;  %3197 = vmatpush3.bf16.msra.mxu0 %v3172_v59  ;;  %v1142_v59 = vrot.slane %v3633_v44, %v3636_v46 }
 0x3b8   : > { %3174 = vmatprep.subr.bf16.mxu1 %v3327_v30  ;;  %3198 = vmatprep.subr.bf16.mxu0 %v3327_v30 }
 0x3ba   : > { %1479 = vrot.lane.b32.xlu1 %v1028_v61, %s3334_s30  ;;  %1477 = vrot.lane.b32.xlu0 %v3677_v60, %s3334_s30 }
 0x3be   : > { %1567 = vrot.lane.b32.xlu1 %v1028_v61, %s3335_s18  ;;  %1565 = vrot.lane.b32.xlu0 %v3677_v60, %s3335_s18  ;;  %v1017_v61 = vld [vmem:[%s4162_s7 + $0x50] sm:$0xff]  ;;  %s546_s18 = scalar_lea.vmem %s4172_s17, %s2555_s29 }
 0x3bf   : > { %v3175_v63 = vpack.c.bf16 %v1018_v62, %v1017_v61 }
 0x3c1   : > { %3176 = vmatpush3.bf16.msra.mxu1 %v3175_v63  ;;  %3200 = vmatpush3.bf16.msra.mxu0 %v3175_v63 }
 0x3c2   : > { %3177 = vmatprep.subr.bf16.mxu1 %v3327_v30  ;;  %3201 = vmatprep.subr.bf16.mxu0 %v3327_v30 }
 0x3c5   : > { %3179 = vmatpush3.bf16.msra.mxu1 %v3178_v2  ;;  %3203 = vmatpush3.bf16.msra.mxu0 %v3178_v2 }
 0x3c6   : > { %3180 = vmatprep.subr.bf16.mxu1 %v3327_v30  ;;  %3204 = vmatprep.subr.bf16.mxu0 %v3327_v30  ;;  %v1077_v30 = vrot.slane %v3641_v47, %v3662_v54 }
 0x3c9   : > { %3182 = vmatpush3.bf16.msra.mxu1 %v3181_v5  ;;  %3206 = vmatpush3.bf16.msra.mxu0 %v3181_v5 }
 0x41c   : > { %v1037_v6 = vpop.permute.xlu0 %1036  ;;  %v3799_v20 = vpop.permute.xlu1 %1129 }
 0x41d   : > { %v1050_v13 = vmul.f32 %v1049_v8, %v1037_v6  ;;  %v1064_v16 = vmul.f32 %v1063_v9, %v1037_v6  ;;  %v1078_v21 = vmul.f32 %v1077_v30, %v1037_v6  ;;  %v1044_v34 = vmul.f32 %v1043_v14, %v1037_v6 }
 0x41e   : > { %v1092_v36 = vmul.f32 %v1091_v17, %v1037_v6  ;;  %v1106_v49 = vmul.f32 %v1105_v23, %v1037_v6  ;;  %v1119_v0 = vmul.f32 %v1118_v35, %v1037_v6  ;;  %v1143_v6 = vmul.f32 %v1142_v59, %v3799_v20 }
 0x41f   : > { %v1055_v25 = vrot.slane %v1050_v13, 1  ;;  %v1069_v40 = vrot.slane %v1064_v16, 2  ;;  %v1083_v41 = vrot.slane %v1078_v21, 3  ;;  %v1168_v13 = vrot.slane %v3641_v47, %v3654_v52 }
 0x420   : > { %v1039_v11 = vpop.permute.xlu0 %1038  ;;  %v1132_v61 = vpop.permute.xlu1 %1131  ;;  %v1097_v63 = vrot.slane %v1092_v36, 4 }
 0x421   : > { %v1051_v18 = vmul.f32 %v1049_v8, %v1039_v11  ;;  %v1065_v19 = vmul.f32 %v1063_v9, %v1039_v11  ;;  %v1079_v24 = vmul.f32 %v1077_v30, %v1039_v11  ;;  %v1093_v33 = vmul.f32 %v1091_v17, %v1039_v11 }
 0x422   : > { %v1107_v39 = vmul.f32 %v1105_v23, %v1039_v11  ;;  %v1120_v58 = vmul.f32 %v1118_v35, %v1039_v11  ;;  %v1144_v5 = vmul.f32 %v1142_v59, %v1132_v61  ;;  %v1110_v8 = vrot.slane %v1106_v49, 5 }
 0x423   : > { %v1056_v26 = vrot.slane %v1051_v18, 1  ;;  %v1070_v32 = vrot.slane %v1065_v19, 2  ;;  %v1084_v38 = vrot.slane %v1079_v24, 3  ;;  %v1098_v56 = vrot.slane %v1093_v33, 4 }
 0x424   : > { %v1111_v2 = vrot.slane %v1107_v39, 5  ;;  %v1125_v30 = vrot.slane %v1120_v58, 6  ;;  %v1136_v11 = vrot.slane %v3781_v7, %v3628_v43  ;;  %v1157_v16 = vmul.f32 %v1155_v3, %v1132_v61 }
 0x425   : > { %v1057_v37 = vsel %vm1054_vm3, %v1055_v25, %v1056_v26  ;;  %v1071_v55 = vsel %vm1068_vm4, %v1069_v40, %v1070_v32  ;;  %v1085_v1 = vsel %vm1082_vm5, %v1083_v41, %v1084_v38  ;;  %v1099_v9 = vsel %vm1096_vm6, %v1097_v63, %v1098_v56 }
 0x426   : > { %v1059_v45 = vadd.f32 %v1057_v37, %v1044_v34  ;;  %v1124_v17 = vrot.slane %v1119_v0, 6  ;;  %v1112_v18 = vsel %vm1026_vm2, %v1110_v8, %v1111_v2  ;;  %v1181_v19 = vrot.slane %v3648_v50, %v3662_v54  ;;  %v1218_v8 = vpop.permute.xlu0 %1217 }
 0x427   : > { %v1156_v23 = vmul.f32 %v1155_v3, %v3799_v20  ;;  %v1148_v24 = vrot.slane %v1144_v5, 1  ;;  %v1170_v25 = vmul.f32 %v1168_v13, %v1132_v61  ;;  %v1137_v32 = vmul.f32 %v1136_v11, %v3799_v20  ;;  %v1220_v5 = vpop.permute.xlu1 %1219 }
 0x428   : > { %v1073_v62 = vadd.f32 %v1071_v55, %v1059_v45  ;;  %v1126_v26 = vsel %vm1123_vm7, %v1124_v17, %v1125_v30  ;;  %v1194_v33 = vrot.slane %v3659_v53, %v3788_v10  ;;  %v1147_v40 = vrot.slane %v1143_v6, 1 }
 0x429   : > { %v1169_v35 = vmul.f32 %v1168_v13, %v3799_v20  ;;  %v1161_v36 = vrot.slane %v1157_v16, 2  ;;  %v1183_v37 = vmul.f32 %v1181_v19, %v1132_v61  ;;  %v1182_v38 = vmul.f32 %v1181_v19, %v3799_v20 }
 0x42a   : > { %v1087_v4 = vadd.f32 %v1085_v1, %v1073_v62  ;;  %v1207_v39 = vrot.slane %v3670_v57, %v3795_v15  ;;  %v1160_v45 = vrot.slane %v1156_v23, 2  ;;  %v1149_v49 = vsel %vm1054_vm3, %v1147_v40, %v1148_v24 }
 0x42b   : > { %v1174_v55 = vrot.slane %v1170_v25, 3  ;;  %v1196_v56 = vmul.f32 %v1194_v33, %v1132_v61  ;;  %v1230_v62 = vrot.slane %v3633_v44, %v3628_v43  ;;  %v1173_v63 = vrot.slane %v1169_v35, 3 }
 0x42c   : > { %v1101_v14 = vadd.f32 %v1099_v9, %v1087_v4  ;;  %v1209_v58 = vmul.f32 %v1207_v39, %v1132_v61  ;;  %v1195_v0 = vmul.f32 %v1194_v33, %v3799_v20  ;;  %v1162_v1 = vsel %vm1068_vm4, %v1160_v45, %v1161_v36 }
 0x42d   : > { %v1187_v2 = vrot.slane %v1183_v37, 4  ;;  %v1208_v3 = vmul.f32 %v1207_v39, %v3799_v20  ;;  %v1186_v9 = vrot.slane %v1182_v38, 4  ;;  %v1175_v30 = vsel %vm1082_vm5, %v1173_v63, %v1174_v55 }
 0x42e   : > { %v1114_v21 = vadd.f32 %v1112_v18, %v1101_v14  ;;  %v1200_v11 = vrot.slane %v1196_v56, 5  ;;  %v1243_v61 = vrot.slane %v3641_v47, %v3636_v46  ;;  %v1213_v13 = vrot.slane %v1209_v58, 6 }
 0x42f   : > { %v1256_v14 = vrot.slane %v3641_v47, %v3651_v51  ;;  %v1199_v16 = vrot.slane %v1195_v0, 5  ;;  %v1188_v17 = vsel %vm1096_vm6, %v1186_v9, %v1187_v2  ;;  %v1232_v18 = vmul.f32 %v1230_v62, %v1220_v5 }
 0x430   : > { %v1128_v34 = vadd.f32 %v1126_v26, %v1114_v21  ;;  %v1231_v20 = vmul.f32 %v1230_v62, %v1218_v8  ;;  %v1212_v19 = vrot.slane %v1208_v3, 6  ;;  %v1224_v23 = vrot.slane %v3781_v7, %v3625_v42 }
 0x431   : > { %v1201_v24 = vsel %vm1026_vm2, %v1199_v16, %v1200_v11  ;;  %v1269_v25 = vrot.slane %v3648_v50, %v3654_v52  ;;  %v1245_v26 = vmul.f32 %v1243_v61, %v1220_v5  ;;  %v1236_v35 = vrot.slane %v1232_v18, 1 }
 0x432   : > { %v1138_v41 = vadd.f32 %v1137_v32, %v1128_v34  ;;  %v1244_v32 = vmul.f32 %v1243_v61, %v1218_v8  ;;  %v1214_v33 = vsel %vm1123_vm7, %v1212_v19, %v1213_v13  ;;  %v1282_v34 = vrot.slane %v3659_v53, %v3662_v54 }
 0x433   : > { %v1258_v36 = vmul.f32 %v1256_v14, %v1220_v5  ;;  %v1235_v37 = vrot.slane %v1231_v20, 1  ;;  %v1257_v38 = vmul.f32 %v1256_v14, %v1218_v8  ;;  %v1295_v39 = vrot.slane %v3670_v57, %v3788_v10 }
 0x434   : > { %v1151_v59 = vadd.f32 %v1149_v49, %v1138_v41  ;;  %v1225_v45 = vmul.f32 %v1224_v23, %v1218_v8  ;;  %v1249_v49 = vrot.slane %v1245_v26, 2  ;;  %v1271_v55 = vmul.f32 %v1269_v25, %v1220_v5 }
 0x435   : > { %v1248_v56 = vrot.slane %v1244_v32, 2  ;;  %v1270_v58 = vmul.f32 %v1269_v25, %v1218_v8  ;;  %v1262_v63 = vrot.slane %v1258_v36, 3  ;;  %v1237_v0 = vsel %vm1054_vm3, %v1235_v37, %v1236_v35  ;;  %v1390_v35 = vpop.permute.xlu0 %1389 }
 0x436   : > { %v1164_v4 = vadd.f32 %v1162_v1, %v1151_v59  ;;  %v1284_v59 = vmul.f32 %v1282_v34, %v1220_v5  ;;  %v1261_v1 = vrot.slane %v1257_v38, 3  ;;  %v1283_v2 = vmul.f32 %v1282_v34, %v1218_v8 }
 0x437   : > { %v1297_v3 = vmul.f32 %v1295_v39, %v1220_v5  ;;  %v1275_v9 = vrot.slane %v1271_v55, 4  ;;  %v1274_v11 = vrot.slane %v1270_v58, 4  ;;  %v1296_v61 = vmul.f32 %v1295_v39, %v1218_v8 }
 0x438   : > { %v1177_v6 = vadd.f32 %v1175_v30, %v1164_v4  ;;  %v1250_v30 = vsel %vm1068_vm4, %v1248_v56, %v1249_v49  ;;  %v1288_v14 = vrot.slane %v1284_v59, 5  ;;  %v1287_v16 = vrot.slane %v1283_v2, 5 }
 0x439   : > { %v1301_v18 = vrot.slane %v1297_v3, 6  ;;  %v1276_v20 = vsel %vm1096_vm6, %v1274_v11, %v1275_v9  ;;  %v1300_v19 = vrot.slane %v1296_v61, 6  ;;  %v1402_v34 = vrot.slane %v3633_v44, %v3795_v15 }
 0x43a   : > { %v1190_v21 = vadd.f32 %v1188_v17, %v1177_v6  ;;  %v1263_v6 = vsel %vm1082_vm5, %v1261_v1, %v1262_v63  ;;  %v1289_v23 = vsel %vm1026_vm2, %v1287_v16, %v1288_v14  ;;  %v1415_v37 = vrot.slane %v3641_v47, %v3625_v42 }
 0x43b   : > { %v1302_v25 = vsel %vm1123_vm7, %v1300_v19, %v1301_v18  ;;  %v1428_v38 = vrot.slane %v3648_v50, %v3628_v43  ;;  %v1441_v49 = vrot.slane %v3659_v53, %v3636_v46  ;;  %v1454_v59 = vrot.slane %v3659_v53, %v3651_v51 }
 0x43c   : > { %v1203_v40 = vadd.f32 %v1201_v24, %v1190_v21  ;;  %v1308_v21 = vrot.slane %v3781_v7, %v3795_v15 }
 0x43d   : > { %v1429_v63 = vmul.f32 %v1428_v38, %v1390_v35  ;;  %v1442_v9 = vmul.f32 %v1441_v49, %v1390_v35  ;;  %v1455_v14 = vmul.f32 %v1454_v59, %v1390_v35 }
 0x43e   : > { %v1216_v41 = vadd.f32 %v1214_v33, %v1203_v40  ;;  %v1309_v26 = vmul.f32 %v1308_v21, %v3677_v60  ;;  %v1392_v40 = vpop.permute.xlu1 %1391  ;;  %v1403_v60 = vmul.f32 %v1402_v34, %v1390_v35 }
 0x43f   : > { %v1417_v55 = vmul.f32 %v1415_v37, %v1392_v40  ;;  %v1430_v56 = vmul.f32 %v1428_v38, %v1392_v40  ;;  %v1443_v3 = vmul.f32 %v1441_v49, %v1392_v40  ;;  %v1456_v61 = vmul.f32 %v1454_v59, %v1392_v40 }
 0x440   : > { %v1226_v62 = vadd.f32 %v1225_v45, %v1216_v41  ;;  %v1404_v41 = vmul.f32 %v1402_v34, %v1392_v40  ;;  %v1542_v49 = vrot.slane %v3670_v57, %v3636_v46 }
 0x441   : > { %v1421_v2 = vrot.slane %v1417_v55, 2  ;;  %v1447_v18 = vrot.slane %v1443_v3, 4 }
 0x442   : > { %v1239_v4 = vadd.f32 %v1237_v0, %v1226_v62  ;;  %v1408_v62 = vrot.slane %v1404_v41, 1  ;;  %v1467_v0 = vrot.slane %v3670_v57, %v3654_v52  ;;  %v1480_v21 = vpop.permute.xlu1 %1479 }
 0x444   : > { %v1252_v13 = vadd.f32 %v1250_v30, %v1239_v4  ;;  %v1434_v30 = vrot.slane %v1430_v56, 3  ;;  %v1468_v19 = vmul.f32 %v1467_v0, %v1390_v35 }
 0x446   : > { %v1265_v17 = vadd.f32 %v1263_v6, %v1252_v13  ;;  %v1433_v13 = vrot.slane %v1429_v63, 3  ;;  %v1469_v6 = vmul.f32 %v1467_v0, %v1392_v40 }
 0x448   : > { %v1278_v5 = vadd.f32 %v1276_v20, %v1265_v17  ;;  %v1490_v17 = vrot.slane %v3633_v44, %v3788_v10  ;;  %v1446_v20 = vrot.slane %v1442_v9, 4  ;;  %v1473_v40 = vrot.slane %v1469_v6, 6 }
 0x449   : > { %v1578_v6 = vrot.slane %v3633_v44, %v3662_v54 }
 0x44a   : > { %v1291_v24 = vadd.f32 %v1289_v23, %v1278_v5  ;;  %v1478_v23 = vpop.permute.xlu0 %1477  ;;  %v1492_v34 = vmul.f32 %v1490_v17, %v1480_v21 }
 0x44c   : > { %v1304_v8 = vadd.f32 %v1302_v25, %v1291_v24  ;;  %v1460_v24 = vrot.slane %v1456_v61, 5  ;;  %v1435_v25 = vsel %vm1082_vm5, %v1433_v13, %v1434_v30  ;;  %v1496_v55 = vrot.slane %v1492_v34, 1 }
 0x44d   : > { %v1572_v34 = vrot.slane %v3781_v7, %v3654_v52 }
 0x44e   : > { %v1310_v32 = vadd.f32 %v1309_v26, %v1304_v8  ;;  %v1459_v8 = vrot.slane %v1455_v14, 5  ;;  %v1503_v26 = vrot.slane %v3641_v47, %v3795_v15 }
 0x450   : > { %v1323_v33 = vadd.f32 %v3691_v12, %v1310_v32  ;;  %v1396_v12 = vrot.slane %v3781_v7, %v3788_v10  ;;  %v1461_v41 = vsel %vm1026_vm2, %v1459_v8, %v1460_v24  ;;  %v1591_v8 = vrot.slane %v3641_v47, %v3788_v10 }
 0x452   : > { %v1336_v36 = vadd.f32 %v3699_v22, %v1323_v33  ;;  %v1416_v22 = vmul.f32 %v1415_v37, %v1390_v35  ;;  %v1516_v33 = vrot.slane %v3648_v50, %v3625_v42  ;;  %v1472_v37 = vrot.slane %v1468_v19, 6  ;;  %v1566_v19 = vpop.permute.xlu0 %1565 }
 0x453   : > { %v1592_v10 = vmul.f32 %v1591_v8, %v1566_v19  ;;  %v1573_v52 = vmul.f32 %v1572_v34, %v1566_v19  ;;  %v3236_v34 = vld [vmem:[%s4167_s12 + $0x2c] ss:$16 sps:$4 sm:$0xff]  }
 0x454   : > { %v1349_v39 = vadd.f32 %v3702_v27, %v1336_v36  ;;  %v1407_v27 = vrot.slane %v1403_v60, 1  ;;  %v1420_v4 = vrot.slane %v1416_v22, 2  ;;  %v1448_v36 = vsel %vm1096_vm6, %v1446_v20, %v1447_v18 }
 0x455   : > { %v1529_v60 = vrot.slane %v3659_v53, %v3628_v43  ;;  %v1518_v56 = vmul.f32 %v1516_v33, %v1480_v21 }
 0x456   : > { %v1362_v45 = vadd.f32 %v3706_v28, %v1349_v39  ;;  %v1397_v28 = vmul.f32 %v1396_v12, %v1390_v35  ;;  %v1491_v35 = vmul.f32 %v1490_v17, %v1478_v23  ;;  %v1484_v39 = vrot.slane %v3781_v7, %v3662_v54 }
 0x457   : > { %v1505_v12 = vmul.f32 %v1503_v26, %v1480_v21  ;;  %v1530_v3 = vmul.f32 %v1529_v60, %v1478_v23  ;;  %v1522_v30 = vrot.slane %v1518_v56, 3 }
 0x458   : > { %v1375_v58 = vadd.f32 %v3709_v29, %v1362_v45  ;;  %v1409_v29 = vsel %vm1054_vm3, %v1407_v27, %v1408_v62  ;;  %v1504_v45 = vmul.f32 %v1503_v26, %v1478_v23  ;;  %v1495_v59 = vrot.slane %v1491_v35, 1 }
 0x459   : > { %v1517_v62 = vmul.f32 %v1516_v33, %v1478_v23  ;;  %v1555_v27 = vrot.slane %v3670_v57, %v3651_v51  ;;  %v1485_v0 = vmul.f32 %v1484_v39, %v1478_v23  ;;  %v1534_v17 = vrot.slane %v1530_v3, 4 }
 0x45a   : > { %v1388_v1 = vadd.f32 %v3712_v31, %v1375_v58  ;;  %v1422_v31 = vsel %vm1068_vm4, %v1420_v4, %v1421_v2  ;;  %v1474_v58 = vsel %vm1123_vm7, %v1472_v37, %v1473_v40  ;;  %v1508_v2 = vrot.slane %v1504_v45, 2 }
 0x45b   : > { %v1544_v4 = vmul.f32 %v1542_v49, %v1480_v21  ;;  %v1521_v61 = vrot.slane %v1517_v62, 3  ;;  %v1557_v13 = vmul.f32 %v1555_v27, %v1480_v21  ;;  %v1556_v18 = vmul.f32 %v1555_v27, %v1478_v23 }
 0x45c   : > { %v1398_v11 = vadd.f32 %v1397_v28, %v1388_v1  ;;  %v1509_v1 = vrot.slane %v1505_v12, 2  ;;  %v1531_v28 = vmul.f32 %v1529_v60, %v1480_v21  ;;  %v1604_v26 = vrot.slane %v3648_v50, %v3795_v15 }
 0x45d   : > { %v1523_v24 = vsel %vm1082_vm5, %v1521_v61, %v1522_v30  ;;  %v1561_v54 = vrot.slane %v1557_v13, 6  ;;  %v1560_v33 = vrot.slane %v1556_v18, 6  ;;  %v1630_v50 = vrot.slane %v3670_v57, %v3628_v43  ;;  %v2577_v18 = vld [vmem:[%s4164_s9] ss:$0 sm:$0xff] }
 0x45e   : > { %v1411_v16 = vadd.f32 %v1409_v29, %v1398_v11  ;;  %v1497_v11 = vsel %vm1054_vm3, %v1495_v59, %v1496_v55  ;;  %v1543_v29 = vmul.f32 %v1542_v49, %v1478_v23  ;;  %v1510_v51 = vsel %vm1068_vm4, %v1508_v2, %v1509_v1 }
 0x45f   : > { %v1579_v23 = vmul.f32 %v1578_v6, %v1566_v19  ;;  %v1605_v12 = vmul.f32 %v1604_v26, %v1566_v19  ;;  %v1596_v55 = vrot.slane %v1592_v10, 2  ;;  %v1631_v27 = vmul.f32 %v1630_v50, %v1566_v19  ;;  %v3245_v10 = vld [vmem:[%s4167_s12 + $0x64] ss:$16 sps:$4 sm:$0xff]  }
 0x460   : > { %v1424_v5 = vadd.f32 %v1422_v31, %v1411_v16  ;;  %v1535_v16 = vrot.slane %v1531_v28, 4  ;;  %v1568_v31 = vpop.permute.xlu1 %1567 }
 0x461   : > { %v1580_v44 = vmul.f32 %v1578_v6, %v1568_v31  ;;  %v1593_v37 = vmul.f32 %v1591_v8, %v1568_v31  ;;  %v1606_v39 = vmul.f32 %v1604_v26, %v1568_v31  ;;  %v1583_v60 = vrot.slane %v1579_v23, 1  ;;  %v3231_v8 = vld [vmem:[%s4167_s12 + $0x20] ss:$16 sps:$4 sm:$0xff]  }
 0x462   : > { %v1437_v32 = vadd.f32 %v1435_v25, %v1424_v5  ;;  %v1548_v5 = vrot.slane %v1544_v4, 5  ;;  %v1547_v25 = vrot.slane %v1543_v29, 5  ;;  %v1632_v56 = vmul.f32 %v1630_v50, %v1568_v31  ;;  %v3237_v26 = vld [vmem:[%s4167_s12 + $0x40] ss:$16 sps:$4 sm:$0xff]   ;;  %v3246_v50 = vld [vmem:[%s4167_s12 + $0x68] ss:$16 sps:$4 sm:$0xff]  }
 0x463   : > { %v1584_v35 = vrot.slane %v1580_v44, 1  ;;  %v1597_v7 = vrot.slane %v1593_v37, 2  ;;  %v1610_v57 = vrot.slane %v1606_v39, 3  ;;  %v1609_v62 = vrot.slane %v1605_v12, 3  ;;  %v3240_v37 = vld [vmem:[%s4167_s12 + $0x48] ss:$16 sps:$4 sm:$0xff]  }
 0x464   : > { %v1450_v38 = vadd.f32 %v1448_v36, %v1437_v32  ;;  %v1536_v32 = vsel %vm1096_vm6, %v1534_v17, %v1535_v16  ;;  %v1617_v36 = vrot.slane %v3659_v53, %v3625_v42  ;;  %v1549_v47 = vsel %vm1026_vm2, %v1547_v25, %v1548_v5  ;;  %v2576_v53 = vld [vmem:[%s4163_s8 + $0x30] ss:$0 sm:$0xff]  ;;  %v3227_v5 = vld [vmem:[%s4167_s12 + $0x4] ss:$16 sps:$4 sm:$0xff]   ;;  %v3254_v39 = vld [vmem:[%s4167_s12 + $0x8c] ss:$16 sps:$4 sm:$0xff]  }
 0x465   : > { %v1585_v59 = vsel %vm1054_vm3, %v1583_v60, %v1584_v35  ;;  %v1598_v28 = vsel %vm1068_vm4, %v1596_v55, %v1597_v7  ;;  %v1644_v3 = vmul.f32 %v2576_v53, %v1566_v19  ;;  %v1635_v30 = vrot.slane %v1631_v27, 5  ;;  %v3233_v25 = vld [vmem:[%s4167_s12 + $0x24] ss:$16 sps:$4 sm:$0xff]   ;;  %2036 = vmatprep.subr.bf16.mxu1 %v3227_v5  ;;  %v3248_v35 = vld [vmem:[%s4167_s12 + $0x6c] ss:$16 sps:$4 sm:$0xff]  }
 0x466   : > { %v1463_v22 = vadd.f32 %v1461_v41, %v1450_v38  ;;  %v1562_v41 = vsel %vm1123_vm7, %v1560_v33, %v1561_v54  ;;  %v1619_v49 = vmul.f32 %v1617_v36, %v1568_v31  ;;  %v3228_v33 = vld [vmem:[%s4167_s12 + $0x8] ss:$16 sps:$4 sm:$0xff]   ;;  %v3257_v12 = vld [vmem:[%s4167_s12 + $0xa4] ss:$16 sps:$4 sm:$0xff]   ;;  %v3266_v55 = vld [vmem:[%s4167_s12 + $0xcc] ss:$16 sps:$4 sm:$0xff]  }
 0x467   : > { %v1648_v13 = vrot.slane %v1644_v3, 6  ;;  %v3252_v60 = vld [vmem:[%s4167_s12 + $0x88] ss:$16 sps:$4 sm:$0xff]   ;;  %v3273_v27 = vld [vmem:[%s4169_s14 + $0x40] sm:$0xff]  }
 0x468   : > { %v1476_v63 = vadd.f32 %v1474_v58, %v1463_v22  ;;  %v1618_v22 = vmul.f32 %v1617_v36, %v1566_v19  ;;  %v1623_v1 = vrot.slane %v1619_v49, 4  ;;  %v3225_v19 = vld [vmem:[%s4167_s12] ss:$16 sps:$4 sm:$0xff]   ;;  %v3242_v36 = vld [vmem:[%s4167_s12 + $0x4c] ss:$16 sps:$4 sm:$0xff]  }
 0x469   : > { %v3258_v7 = vld [vmem:[%s4167_s12 + $0xa8] ss:$16 sps:$4 sm:$0xff]   ;;  %v3263_v49 = vld [vmem:[%s4167_s12 + $0xc4] ss:$16 sps:$4 sm:$0xff]   ;;  %v2578_v3 = vld [vmem:[%s4165_s10] ss:$0 sm:$0xff] }
 0x46a   : > { %v1486_v9 = vadd.f32 %v1485_v0, %v1476_v63  ;;  %v1645_v63 = vmul.f32 %v2576_v53, %v1568_v31  ;;  %v1622_v2 = vrot.slane %v1618_v22, 4  ;;  %v3336_v53 = vmov 0   ;;  %v3261_v22 = vld [vmem:[%s4167_s12 + $0xc0] ss:$16 sps:$4 sm:$0xff]   ;;  %v3286_v5 = vld [vmem:[%s4169_s14 + $0xd8] sm:$0xff]  }
 0x46c   : > { %v1499_v14 = vadd.f32 %v1497_v11, %v1486_v9  ;;  %v1636_v9 = vrot.slane %v1632_v56, 5  ;;  %v1611_v11 = vsel %vm1082_vm5, %v1609_v62, %v1610_v57  ;;  %v1649_v29 = vrot.slane %v1645_v63, 6  ;;  %v3264_v56 = vld [vmem:[%s4167_s12 + $0xc8] ss:$16 sps:$4 sm:$0xff]   ;;  %v3272_v57 = vld [vmem:[%s4167_s12 + $0xec] ss:$16 sps:$4 sm:$0xff]  }
 0x46d   : > { %v3270_v62 = vld [vmem:[%s4167_s12 + $0xe8] ss:$16 sps:$4 sm:$0xff]   ;;  %v3274_v63 = vld [vmem:[%s4169_s14 + $0xc0] sm:$0xff]  }
 0x46e   : > { %v1512_v20 = vadd.f32 %v1510_v51, %v1499_v14  ;;  %v1624_v14 = vsel %vm1096_vm6, %v1622_v2, %v1623_v1  ;;  %v1637_v16 = vsel %vm1026_vm2, %v1635_v30, %v1636_v9  ;;  %v1650_v17 = vsel %vm1123_vm7, %v1648_v13, %v1649_v29  ;;  %v2579_v9 = vld [vmem:[%s4166_s11] ss:$0 sm:$0xff] }
 0x46f   : > { %v3276_v29 = vld [vmem:[%s4169_s14 + $0x80] sm:$0xff]  }
 0x470   : > { %v1525_v21 = vadd.f32 %v1523_v24, %v1512_v20  ;;  %v3230_v24 = vld [vmem:[%s4167_s12 + $0xc] ss:$16 sps:$4 sm:$0xff]  }
 0x471   : > { %2077 = vmatprep.subr.bf16.mxu0 %v3230_v24  ;;  %v3287_v24 = vld [vmem:[%s4169_s14 + $0x18] sm:$0xff]  }
 0x472   : > { %v1538_v40 = vadd.f32 %v1536_v32, %v1525_v21  ;;  %v3239_v21 = vld [vmem:[%s4167_s12 + $0x44] ss:$16 sps:$4 sm:$0xff]  }
 0x474   : > { %v1551_v38 = vadd.f32 %v1549_v47, %v1538_v40  ;;  %v3234_v40 = vld [vmem:[%s4167_s12 + $0x28] ss:$16 sps:$4 sm:$0xff]   ;;  %v3243_v47 = vld [vmem:[%s4167_s12 + $0x60] ss:$16 sps:$4 sm:$0xff]  }
 0x476   : > { %v1564_v45 = vadd.f32 %v1562_v41, %v1551_v38  ;;  %v3251_v38 = vld [vmem:[%s4167_s12 + $0x84] ss:$16 sps:$4 sm:$0xff]   ;;  %v3249_v41 = vld [vmem:[%s4167_s12 + $0x80] ss:$16 sps:$4 sm:$0xff]  }
 0x478   : > { %v1574_v58 = vadd.f32 %v1573_v52, %v1564_v45  ;;  %v3260_v45 = vld [vmem:[%s4167_s12 + $0xac] ss:$16 sps:$4 sm:$0xff]   ;;  %v3255_v52 = vld [vmem:[%s4167_s12 + $0xa0] ss:$16 sps:$4 sm:$0xff]  }
 0x47a   : > { %v1587_v0 = vadd.f32 %v1585_v59, %v1574_v58  ;;  %v3269_v58 = vld [vmem:[%s4167_s12 + $0xe4] ss:$16 sps:$4 sm:$0xff]   ;;  %v3267_v59 = vld [vmem:[%s4167_s12 + $0xe0] ss:$16 sps:$4 sm:$0xff]  }
 0x47c   : > { %v1600_v4 = vadd.f32 %v1598_v28, %v1587_v0 }
 0x47e   : > { %v1613_v61 = vadd.f32 %v1611_v11, %v1600_v4 }
 0x480   : > { %v1626_v6 = vadd.f32 %v1624_v14, %v1613_v61  ;;  %v3275_v61 = vld [vmem:[%s4169_s14] sm:$0xff]   ;;  %v3277_v14 = vld [vmem:[%s4169_s14 + $0x48] sm:$0xff]  }
 0x482   : > { %v1639_v51 = vadd.f32 %v1637_v16, %v1626_v6  ;;  %v3278_v6 = vld [vmem:[%s4169_s14 + $0xc8] sm:$0xff]  }
 0x483   : > { %v3279_v16 = vld [vmem:[%s4169_s14 + $0x8] sm:$0xff]  }
 0x484   : > { %v1652_v31 = vadd.f32 %v1650_v17, %v1639_v51  ;;  %v3280_v51 = vld [vmem:[%s4169_s14 + $0x88] sm:$0xff]   ;;  %v3281_v17 = vld [vmem:[%s4169_s14 + $0x50] sm:$0xff]  }
 0x486   : > { %v1660_v20 = vadd.f32 %v2577_v18, %v1652_v31  ;;  %v3282_v18 = vld [vmem:[%s4169_s14 + $0xd0] sm:$0xff]  }
 0x487   : > { %v3283_v31 = vld [vmem:[%s4169_s14 + $0x10] sm:$0xff]  }
 0x488   : > { %2988 = vmatmul.mubr.f32.vlgmr.msra.gmra.mrb[4].mxu1 %v1660_v20 }
 0x489   : > { %2037 = vmatpush1.bf16.msra.mxu1 %v3225_v19  ;;  %2068 = vmatprep.mubr.bf16.mxu1 %v3336_v53  ;;  %v3285_v19 = vld [vmem:[%s4169_s14 + $0x58] sm:$0xff]  }
 0x48a   : > { %2038 = vmatprep.subr.bf16.mxu1 %v3233_v25  ;;  %v3288_v25 = vld [vmem:[%s4169_s14 + $0x98] sm:$0xff]  }
 0x48d   : > { %2039 = vmatpush1.bf16.msra.mxu1 %v3231_v8  ;;  %v3289_v8 = vld [vmem:[%s4169_s14 + $0x60] sm:$0xff]  }
 0x48e   : > { %2040 = vmatprep.subr.bf16.mxu1 %v3239_v21  ;;  %v3290_v21 = vld [vmem:[%s4169_s14 + $0xe0] sm:$0xff]  }
 0x491   : > { %2041 = vmatpush1.bf16.msra.mxu1 %v3237_v26  ;;  %v3291_v26 = vld [vmem:[%s4169_s14 + $0x20] sm:$0xff]  }
 0x492   : > { %2042 = vmatprep.subr.bf16.mxu1 %v3245_v10  ;;  %v3302_v10 = vld [vmem:[%s4169_s14 + $0xf8] sm:$0xff]  }
 0x495   : > { %2043 = vmatpush1.bf16.msra.mxu1 %v3243_v47  ;;  %v3301_v47 = vld [vmem:[%s4169_s14 + $0x78] sm:$0xff]  }
 0x496   : > { %2044 = vmatprep.subr.bf16.mxu1 %v3251_v38  ;;  %v1854_v38 = vld [vmem:[%s4168_s13] sm:$0xf] }
 0x499   : > { %2045 = vmatpush1.bf16.msra.mxu1 %v3249_v41  ;;  %v1867_v41 = vrot.slane %v1854_v38, %v3625_v42 }
 0x49a   : > { %2046 = vmatprep.subr.bf16.mxu1 %v3257_v12  ;;  %v1871_v12 = vrot.slane %v1854_v38, %v3795_v15 }
 0x49d   : > { %2047 = vmatpush1.bf16.msra.mxu1 %v3255_v52 }
 0x49e   : > { %2048 = vmatprep.subr.bf16.mxu1 %v3263_v49 }
 0x4a1   : > { %2049 = vmatpush1.bf16.msra.mxu1 %v3261_v22 }
 0x4a2   : > { %2050 = vmatprep.subr.bf16.mxu1 %v3269_v58 }
 0x4a5   : > { %2051 = vmatpush1.bf16.msra.mxu1 %v3267_v59 }
 0x4a6   : > { %2760 = vmatprep.subr.bf16.mxu1 %v3273_v27 }
 0x55b   : > { %v1729_v44 = vpop.f32.mrb[4].mxu1 }
 0x55c   : > { %v3952_v54 = vsub.f32 %v1660_v20, %v1729_v44  ;;  %v2989_v32 = vpop.f32.mrb[5].mxu1  ;;  %v3284_v20 = vld [vmem:[%s4169_s14 + $0x90] sm:$0xff]   ;;  %v3292_v44 = vld [vmem:[%s4169_s14 + $0xa0] sm:$0xff]  }
 0x55d   : > { %v3294_v32 = vld [vmem:[%s4169_s14 + $0xe8] sm:$0xff]  }
 0x55e   : > { %v1734_v23 = vmul.f32 %v3952_v54, %v3952_v54 }
 0x560   : > { %3023 = vmatmul.mubr.f32.vlgmr.msra.gmra.mrb[6].mxu0 %v1734_v23  ;;  %v3296_v23 = vld [vmem:[%s4169_s14 + $0xa8] sm:$0xff]  }
 0x561   : > { %2078 = vmatpush1.bf16.msra.mxu0 %v3228_v33  ;;  %2109 = vmatprep.mubr.bf16.mxu0 %v3336_v53  ;;  %v3295_v33 = vld [vmem:[%s4169_s14 + $0x28] sm:$0xff]  }
 0x562   : > { %2079 = vmatprep.subr.bf16.mxu0 %v3236_v34  ;;  %v3297_v34 = vld [vmem:[%s4169_s14 + $0x70] sm:$0xff]  }
 0x565   : > { %2080 = vmatpush1.bf16.msra.mxu0 %v3234_v40  ;;  %v3298_v40 = vld [vmem:[%s4169_s14 + $0xf0] sm:$0xff]  }
 0x566   : > { %2081 = vmatprep.subr.bf16.mxu0 %v3242_v36  ;;  %v3299_v36 = vld [vmem:[%s4169_s14 + $0x30] sm:$0xff]  }
 0x569   : > { %2082 = vmatpush1.bf16.msra.mxu0 %v3240_v37  ;;  %v3300_v37 = vld [vmem:[%s4169_s14 + $0xb0] sm:$0xff]  }
 0x56a   : > { %2083 = vmatprep.subr.bf16.mxu0 %v3248_v35  ;;  %v3304_v35 = vld [vmem:[%s4169_s14 + $0xb8] sm:$0xff]  }
 0x56d   : > { %2084 = vmatpush1.bf16.msra.mxu0 %v3246_v50  ;;  %v3303_v50 = vld [vmem:[%s4169_s14 + $0x38] sm:$0xff]  }
 0x56e   : > { %2085 = vmatprep.subr.bf16.mxu0 %v3254_v39  ;;  %v1859_v39 = vrot.slane %v1854_v38, %v3636_v46 }
 0x571   : > { %2086 = vmatpush1.bf16.msra.mxu0 %v3252_v60  ;;  %v1863_v60 = vrot.slane %v1854_v38, %v3628_v43 }
 0x572   : > { %2087 = vmatprep.subr.bf16.mxu0 %v3260_v45 }
 0x575   : > { %2088 = vmatpush1.bf16.msra.mxu0 %v3258_v7 }
 0x576   : > { %2089 = vmatprep.subr.bf16.mxu0 %v3266_v55 }
 0x579   : > { %2090 = vmatpush1.bf16.msra.mxu0 %v3264_v56 }
 0x57a   : > { %2091 = vmatprep.subr.bf16.mxu0 %v3272_v57 }
 0x57d   : > { %2092 = vmatpush1.bf16.msra.mxu0 %v3270_v62 }
 0x57e   : > { %2782 = vmatprep.subr.bf16.mxu0 %v3274_v63 }
 0x633   : > { %v1801_v0 = vpop.f32.mrb[6].mxu0 }
 0x634   : > { %v1802_v1 = vadd.f32 1e-06, %v1801_v0  ;;  %v3024_v28 = vpop.f32.mrb[7].mxu0 }
 0x636   : > { %3309 = vrsqrt.f32 %v1802_v1 }
 0x640   : > { %v3310_v2 = vpop.eup %3309 }
 0x641   : > { %v1806_v4 = vmul.f32 %v3310_v2, %v3952_v54  ;;  %v3293_v54 = vld [vmem:[%s4169_s14 + $0x68] sm:$0xff]  }
 0x643   : > { %v1813_v30 = vmul.f32 %v2578_v3, %v1806_v4 }
 0x645   : > { %v1820_v11 = vadd.f32 %v2579_v9, %v1813_v30 }
 0x647   : > { %v1821_v13 = vpack.c.bf16 %v1820_v11, %v1820_v11 }
 0x649   : > { %2069 = vmatmul.mubr.bf16.vlgmr.msra.gmra.mrb[8].mxu1 %v1821_v13  ;;  %2110 = vmatmul.mubr.bf16.vlgmr.msra.gmra.mrb[8].mxu0 %v1821_v13 }
 0x64a   : > { %2761 = vmatpush3.bf16.msra.mxu1 %v3275_v61  ;;  %2783 = vmatpush3.bf16.msra.mxu0 %v3276_v29 }
 0x64b   : > { %2762 = vmatprep.subr.bf16.mxu1 %v3277_v14  ;;  %2784 = vmatprep.subr.bf16.mxu0 %v3278_v6 }
 0x64e   : > { %2763 = vmatpush3.bf16.msra.mxu1 %v3279_v16  ;;  %2785 = vmatpush3.bf16.msra.mxu0 %v3280_v51 }
 0x64f   : > { %2764 = vmatprep.subr.bf16.mxu1 %v3281_v17  ;;  %2786 = vmatprep.subr.bf16.mxu0 %v3282_v18 }
 0x652   : > { %2765 = vmatpush3.bf16.msra.mxu1 %v3283_v31  ;;  %2787 = vmatpush3.bf16.msra.mxu0 %v3284_v20 }
 0x653   : > { %2766 = vmatprep.subr.bf16.mxu1 %v3285_v19  ;;  %2788 = vmatprep.subr.bf16.mxu0 %v3286_v5  ;;  %v2612_v19 = vld [vmem:[%s4170_s15] ss:$0 sm:$0xff] }
 0x656   : > { %2767 = vmatpush3.bf16.msra.mxu1 %v3287_v24  ;;  %2789 = vmatpush3.bf16.msra.mxu0 %v3288_v25 }
 0x657   : > { %2768 = vmatprep.subr.bf16.mxu1 %v3289_v8  ;;  %2790 = vmatprep.subr.bf16.mxu0 %v3290_v21 }
 0x65a   : > { %2769 = vmatpush3.bf16.msra.mxu1 %v3291_v26  ;;  %2791 = vmatpush3.bf16.msra.mxu0 %v3292_v44 }
 0x65b   : > { %2770 = vmatprep.subr.bf16.mxu1 %v3293_v54  ;;  %2792 = vmatprep.subr.bf16.mxu0 %v3294_v32 }
 0x65e   : > { %2771 = vmatpush3.bf16.msra.mxu1 %v3295_v33  ;;  %2793 = vmatpush3.bf16.msra.mxu0 %v3296_v23  ;;  %v2645_v33 = vld [vmem:[%s4171_s16] ss:$0 sm:$0xff] }
 0x65f   : > { %2772 = vmatprep.subr.bf16.mxu1 %v3297_v34  ;;  %2794 = vmatprep.subr.bf16.mxu0 %v3298_v40 }
 0x662   : > { %2773 = vmatpush3.bf16.msra.mxu1 %v3299_v36  ;;  %2795 = vmatpush3.bf16.msra.mxu0 %v3300_v37 }
 0x663   : > { %2774 = vmatprep.subr.bf16.mxu1 %v3301_v47  ;;  %2796 = vmatprep.subr.bf16.mxu0 %v3302_v10 }
 0x666   : > { %2775 = vmatpush3.bf16.msra.mxu1 %v3303_v50  ;;  %2797 = vmatpush3.bf16.msra.mxu0 %v3304_v35 }
 0x71c   : > { %v2070_v45 = vpop.f32.mrb[8].mxu1  ;;  %v2111_v52 = vpop.f32.mrb[8].mxu0 }
 0x71d   : > { %v2071_v53 = vadd.f32 %v2070_v45, %v1859_v39  ;;  %v2112_v7 = vadd.f32 %v2111_v52, %v1867_v41  ;;  %v2072_v49 = vpop.f32.mrb[9].mxu1  ;;  %v2113_v55 = vpop.f32.mrb[9].mxu0 }
 0x71e   : > { %v2073_v22 = vadd.f32 %v2072_v49, %v1863_v60  ;;  %v2114_v56 = vadd.f32 %v2113_v55, %v1871_v12  ;;  %v2074_v58 = vpop.f32.mrb[10].mxu1  ;;  %v2115_v57 = vpop.f32.mrb[10].mxu0 }
 0x71f   : > { %v2122_v59 = vmul.f32 0.70710677, %v2071_v53  ;;  %v2124_v62 = vmul.f32 0.70710677, %v2112_v7  ;;  %v2075_v42 = vpop.f32.mrb[11].mxu1  ;;  %v2116_v63 = vpop.f32.mrb[11].mxu0 }
 0x720   : > { %v2123_v27 = vmul.f32 0.70710677, %v2073_v22  ;;  %v2125_v46 = vmul.f32 0.70710677, %v2114_v56  ;;  %v2118_v28 = vmul.f32 0.5, %v2071_v53  ;;  %v2120_v4 = vmul.f32 0.5, %v2112_v7 }
 0x721   : > { %3311 = verf.f32 %v2122_v59  ;;  %v2119_v9 = vmul.f32 0.5, %v2073_v22  ;;  %v2121_v61 = vmul.f32 0.5, %v2114_v56 }
 0x722   : > { %3313 = verf.f32 %v2124_v62 }
 0x723   : > { %3315 = verf.f32 %v2123_v27 }
 0x724   : > { %3317 = verf.f32 %v2125_v46 }
 0x72b   : > { %v3312_v43 = vpop.eup %3311 }
 0x72c   : > { %v3314_v15 = vpop.eup %3313  ;;  %v2130_v0 = vadd.f32 1.0, %v3312_v43 }
 0x72d   : > { %v3316_v1 = vpop.eup %3315  ;;  %v2132_v2 = vadd.f32 1.0, %v3314_v15 }
 0x72e   : > { %v3318_v3 = vpop.eup %3317  ;;  %v2131_v30 = vadd.f32 1.0, %v3316_v1  ;;  %v2134_v11 = vmul.f32 %v2130_v0, %v2118_v28 }
 0x72f   : > { %v2133_v29 = vadd.f32 1.0, %v3318_v3  ;;  %v2136_v13 = vmul.f32 %v2132_v2, %v2120_v4 }
 0x730   : > { %v2135_v14 = vmul.f32 %v2131_v30, %v2119_v9  ;;  %v2138_v51 = vpack.c.bf16 %v2134_v11, %v2134_v11 }
 0x731   : > { %v2137_v6 = vmul.f32 %v2133_v29, %v2121_v61  ;;  %v2140_v18 = vpack.c.bf16 %v2136_v13, %v2136_v13 }
 0x732   : > { %v2139_v16 = vpack.c.bf16 %v2135_v14, %v2135_v14 }
 0x733   : > { %v2141_v17 = vpack.c.bf16 %v2137_v6, %v2137_v6 }
 0x734   : > { %2437 = vmatprep.mubr.bf16.mxu1 %v2139_v16 }
 0x735   : > { %2477 = vmatprep.mubr.bf16.mxu0 %v2141_v17  ;;  %2438 = vmatmul.mubr.bf16.vlgmr.msra.gmra.mrb[12].mxu1 %v2138_v51 }
 0x736   : > { %2478 = vmatmul.mubr.bf16.vlgmr.msra.gmra.mrb[12].mxu0 %v2140_v18 }
 0x808   : > { %v2776_v31 = vpop.f32.mrb[12].mxu1 }
 0x809   : > { %v2798_v20 = vpop.f32.mrb[12].mxu0  ;;  %v2777_v5 = vpop.f32.mrb[13].mxu1 }
 0x80a   : > { %v2778_v24 = vadd.f32 %v2777_v5, %v2776_v31  ;;  %v2799_v25 = vpop.f32.mrb[13].mxu0  ;;  %v2779_v8 = vpop.f32.mrb[14].mxu1 }
 0x80b   : > { %v2800_v21 = vadd.f32 %v2799_v25, %v2798_v20  ;;  %v2801_v26 = vpop.f32.mrb[14].mxu0  ;;  %v2780_v44 = vpop.f32.mrb[15].mxu1 }
 0x80c   : > { %v2440_v54 = vadd.f32 %v2778_v24, %v2612_v19  ;;  %v2802_v32 = vpop.f32.mrb[15].mxu0 }
 0x80e   : > { %v2480_v23 = vadd.f32 %v2800_v21, %v2440_v54 }
 0x810   : > { %v2492_v34 = vmul.f32 %v2645_v33, %v2480_v23 }
 0x812   : > { %v2493_v40 = vadd.f32 %v2492_v34, %v3643_v48 }
 0x814   : > { %2494 = vst [vmem:[%s546_s18] sm:$0xff] %v2493_v40 }
 0x815 PF: > { %s27_s24 = sadd.s32 1, %s3325_s24  }
 0x816   : > { %p24_p4 = scmp.ge.s32.totalorder %s27_s24, 4  }
 0x818   :  { %26 = sbr.rel (!%p24_p4) target bundleno = 3 (0x3), region = 119 }

// kernel: _lambda_.4
= control target key start
LH: loop header
LB: loop body
LE: loop exit
PB: predicated region body
PF: predicated region fallthrough
CT: control target
= control target key end

     0   :  { %s4226_s21 = smov 0   ;;  %s5683_s0 = inlined_call_operand.vmem [shape: f32[2,64,192], index: 0, kind: input, shape index: {}]   ;;  %s5684_s1 = inlined_call_operand.vmem [shape: f32[4,192,128], index: 1, kind: input, shape index: {}]   ;;  %s5685_s2 = inlined_call_operand.vmem [shape: f32[16,256], index: 2, kind: input, shape index: {}]   ;;  %s5686_s3 = inlined_call_operand.vmem [shape: f32[1,128], index: 3, kind: input, shape index: {}]   ;;  %s5687_s4 = inlined_call_operand.vmem [shape: f32[128,128], index: 4, kind: input, shape index: {}]   ;;  %s5688_s5 = inlined_call_operand.vmem [shape: f32[1,128], index: 5, kind: input, shape index: {}]   ;;  %s5689_s6 = inlined_call_operand.vmem [shape: f32[1,128], index: 6, kind: input, shape index: {}]   ;;  %s5690_s7 = inlined_call_operand.vmem [shape: f32[49,128], index: 7, kind: input, shape index: {}]   ;;  %s5691_s8 = inlined_call_operand.vmem [shape: f32[1,128], index: 8, kind: input, shape index: {}]   ;;  %s5692_s9 = inlined_call_operand.vmem [shape: f32[1,128], index: 9, kind: input, shape index: {}]   ;;  %s5693_s10 = inlined_call_operand.vmem [shape: f32[1,128], index: 10, kind: input, shape index: {}]   ;;  %s5694_s11 = inlined_call_operand.vmem [shape: bf16[128,512], index: 11, kind: input, shape index: {}]   ;;  %s5695_s12 = inlined_call_operand.vmem [shape: f32[1,512], index: 12, kind: input, shape index: {}]   ;;  %s5696_s13 = inlined_call_operand.vmem [shape: bf16[512,128], index: 13, kind: input, shape index: {}]   ;;  %s5697_s14 = inlined_call_operand.vmem [shape: f32[1,128], index: 14, kind: input, shape index: {}]   ;;  %s5698_s15 = inlined_call_operand.vmem [shape: f32[1,128], index: 15, kind: input, shape index: {}]   ;;  %s5699_s16 = inlined_call_operand.vmem [shape: f32[2,16,128], index: 16, kind: output, shape index: {}]  }
   0x1   :  { %5714 = sst [smem:[#allocation23_spill]] %s5683_s0 }
   0x2 LB: > { %s3217_s22 = sadd.s32 4294967295, %s4131_s21   ;;  %p3221_p0 = scmp.ge.s32.totalorder %s4131_s21, 1  ;;  %s4131_s21 = sphi %s4226_s21, %s26_s21  }
   0x3   : > { %p462_p1 = scmp.lt.s32.totalorder %s4131_s21, 3 }
   0x5   : > { %p463_p2 = pnand %p3221_p0, %p462_p1 }
   0x7   : > { %466 = sbr.rel (%p463_p2) target bundleno = 2194 (0x892), region = 84 }
   0xe   : > { %v539_v0 = vld [vmem:[%s5684_s1] sm:$0xff]  ;;  %v540_v1 = vld [vmem:[%s5684_s1 + $0x8] sm:$0xff]  ;;  %v541_v2 = vld [vmem:[%s5684_s1 + $0x10] sm:$0xff]  ;;  %p4243_p3 = scmp.lt.s32.totalorder %s3217_s22, 1  ;;  %v4133_v3 = vmov 0.0|0.0   ;;  %s5716_s19 = sld [smem:[#allocation23_spill]] }
   0xf   : > { %3701 = vmatprep.subr.bf16.mxu0 %v4133_v3  ;;  %v3702_v4 = vpack.c.bf16 %v540_v1, %v539_v0  ;;  %v542_v5 = vld [vmem:[%s5684_s1 + $0x18] sm:$0xff]  ;;  %3737 = vmatprep.subr.bf16.mxu1 %v4133_v3  ;;  %v3234_v6 = vld [vmem:[%s5684_s1 + $0xc0] sm:$0xff]  ;;  %v3235_v9 = vld [vmem:[%s5684_s1 + $0xc8] sm:$0xff]  ;;  %vm563_vm0 = vcmask 523264   ;;  %vm1363_vm1 = vcmask 1042432   ;;  %vm1403_vm2 = vcmask 1046528  }
  0x10   : > { %v3705_v7 = vpack.c.bf16 %v542_v5, %v541_v2  ;;  %v543_v8 = vld [vmem:[%s5684_s1 + $0x20] sm:$0xff]  ;;  %v544_v10 = vld [vmem:[%s5684_s1 + $0x28] sm:$0xff]  ;;  %v3738_v11 = vpack.c.bf16 %v3235_v9, %v3234_v6  ;;  %v3236_v12 = vld [vmem:[%s5684_s1 + $0xd0] sm:$0xff]  ;;  %s5761_s22 = smov (!%p4243_p3, %s3217_s22), 1  ;;  %vm1423_vm3 = vcmask 1045504   ;;  %vm1443_vm4 = vcmask 1044480  }
  0x11   : > { %3703 = vmatpush1.bf16.msra.mxu0 %v3702_v4  ;;  %v3237_v13 = vld [vmem:[%s5684_s1 + $0xd8] sm:$0xff]  ;;  %v3708_v15 = vpack.c.bf16 %v544_v10, %v543_v8  ;;  %v3238_v16 = vld [vmem:[%s5684_s1 + $0xe0] sm:$0xff]  ;;  %v3239_v17 = vld [vmem:[%s5684_s1 + $0xe8] sm:$0xff]  ;;  %s3405_s26 = sshll.u32 %s5761_s22, 7  ;;  %s4134_s27 = smov 24   ;;  %vm1463_vm5 = vcmask 1043456  }
  0x12   : > { %3704 = vmatprep.subr.bf16.mxu0 %v4133_v3  ;;  %3739 = vmatpush1.bf16.msra.mxu1 %v3738_v11  ;;  %v3741_v14 = vpack.c.bf16 %v3237_v13, %v3236_v12  ;;  %v545_v18 = vld [vmem:[%s5684_s1 + $0x30] sm:$0xff]  ;;  %v546_v19 = vld [vmem:[%s5684_s1 + $0x38] sm:$0xff]  ;;  %v3744_v20 = vpack.c.bf16 %v3239_v17, %v3238_v16  ;;  %v547_v24 = vld [vmem:[%s5684_s1 + $0x40] sm:$0xff]  ;;  %s4135_s28 = smov 16   ;;  %vm1502_vm6 = vcmask 1041408   ;;  %s4136_s30 = smov 8  }
  0x13   : > { %3740 = vmatprep.subr.bf16.mxu1 %v4133_v3  ;;  %v3711_v21 = vpack.c.bf16 %v546_v19, %v545_v18  ;;  %v3240_v22 = vld [vmem:[%s5684_s1 + $0xf0] sm:$0xff]  ;;  %v3241_v23 = vld [vmem:[%s5684_s1 + $0xf8] sm:$0xff]  ;;  %v548_v25 = vld [vmem:[%s5684_s1 + $0x48] sm:$0xff]  ;;  %s4137_s0 = smov 120   ;;  %s4138_s17 = smov 112  }
  0x14   : > { %s4300_s20 = scalar_lea.vmem %s5716_s19, %s3405_s26  ;;  %v3747_v26 = vpack.c.bf16 %v3241_v23, %v3240_v22  ;;  %v3714_v28 = vpack.c.bf16 %v548_v25, %v547_v24  ;;  %v3242_v29 = vld [vmem:[%s5684_s1 + $0x100] sm:$0xff]  ;;  %v3243_v30 = vld [vmem:[%s5684_s1 + $0x108] sm:$0xff]  ;;  %v549_v31 = vld [vmem:[%s5684_s1 + $0x50] sm:$0xff]  ;;  %s4139_s18 = smov 104  }
  0x15   : > { %3706 = vmatpush1.bf16.msra.mxu0 %v3705_v7  ;;  %v4310_v27 = vld [vmem:[%s4300_s20 + $0x8] sm:$0xff]  ;;  %v550_v32 = vld [vmem:[%s5684_s1 + $0x58] sm:$0xff]  ;;  %v3750_v33 = vpack.c.bf16 %v3243_v30, %v3242_v29  ;;  %v3244_v35 = vld [vmem:[%s5684_s1 + $0x110] sm:$0xff] }
  0x16   : > { %3707 = vmatprep.subr.bf16.mxu0 %v4133_v3  ;;  %3742 = vmatpush1.bf16.msra.mxu1 %v3741_v14  ;;  %v3717_v34 = vpack.c.bf16 %v550_v32, %v549_v31  ;;  %v3245_v36 = vld [vmem:[%s5684_s1 + $0x118] sm:$0xff]  ;;  %v551_v37 = vld [vmem:[%s5684_s1 + $0x60] sm:$0xff]  ;;  %v552_v38 = vld [vmem:[%s5684_s1 + $0x68] sm:$0xff] }
  0x17   : > { %3743 = vmatprep.subr.bf16.mxu1 %v4133_v3  ;;  %3226 = vmatprep.mubr.msk.f32.mxu0 %vm563_vm0, %v4310_v27  ;;  %v3753_v39 = vpack.c.bf16 %v3245_v36, %v3244_v35  ;;  %v3720_v40 = vpack.c.bf16 %v552_v38, %v551_v37  ;;  %v3246_v41 = vld [vmem:[%s5684_s1 + $0x120] sm:$0xff]  ;;  %v3247_v42 = vld [vmem:[%s5684_s1 + $0x128] sm:$0xff]  ;;  %v553_v43 = vld [vmem:[%s5684_s1 + $0x70] sm:$0xff] }
  0x18   : > { %3258 = vmatprep.mubr.msk.f32.mxu1 %vm563_vm0, %v4310_v27  ;;  %v554_v44 = vld [vmem:[%s5684_s1 + $0x78] sm:$0xff]  ;;  %v3756_v45 = vpack.c.bf16 %v3247_v42, %v3246_v41  ;;  %v3248_v47 = vld [vmem:[%s5684_s1 + $0x130] sm:$0xff]  ;;  %v555_v49 = vld [vmem:[%s5684_s1 + $0x80] sm:$0xff] }
  0x19   : > { %3709 = vmatpush1.bf16.msra.mxu0 %v3708_v15  ;;  %v3723_v46 = vpack.c.bf16 %v554_v44, %v553_v43  ;;  %v3249_v48 = vld [vmem:[%s5684_s1 + $0x138] sm:$0xff]  ;;  %v556_v50 = vld [vmem:[%s5684_s1 + $0x88] sm:$0xff]  ;;  %v3250_v53 = vld [vmem:[%s5684_s1 + $0x140] sm:$0xff] }
  0x1a   : > { %3710 = vmatprep.subr.bf16.mxu0 %v4133_v3  ;;  %3745 = vmatpush1.bf16.msra.mxu1 %v3744_v20  ;;  %v3759_v51 = vpack.c.bf16 %v3249_v48, %v3248_v47  ;;  %v3726_v52 = vpack.c.bf16 %v556_v50, %v555_v49  ;;  %v3251_v54 = vld [vmem:[%s5684_s1 + $0x148] sm:$0xff]  ;;  %v557_v55 = vld [vmem:[%s5684_s1 + $0x90] sm:$0xff]  ;;  %v558_v56 = vld [vmem:[%s5684_s1 + $0x98] sm:$0xff] }
  0x1b   : > { %3746 = vmatprep.subr.bf16.mxu1 %v4133_v3  ;;  %v3762_v57 = vpack.c.bf16 %v3251_v54, %v3250_v53  ;;  %v3729_v58 = vpack.c.bf16 %v558_v56, %v557_v55  ;;  %v3252_v59 = vld [vmem:[%s5684_s1 + $0x150] sm:$0xff]  ;;  %v3253_v60 = vld [vmem:[%s5684_s1 + $0x158] sm:$0xff]  ;;  %v559_v61 = vld [vmem:[%s5684_s1 + $0xa0] sm:$0xff] }
  0x1c   : > { %v560_v62 = vld [vmem:[%s5684_s1 + $0xa8] sm:$0xff]  ;;  %v3254_v63 = vld [vmem:[%s5684_s1 + $0x160] sm:$0xff]  ;;  %v561_v1 = vld [vmem:[%s5684_s1 + $0xb0] sm:$0xff]  ;;  %v3765_v4 = vpack.c.bf16 %v3253_v60, %v3252_v59 }
  0x1d   : > { %3712 = vmatpush1.bf16.msra.mxu0 %v3711_v21  ;;  %v3255_v0 = vld [vmem:[%s5684_s1 + $0x168] sm:$0xff]  ;;  %v562_v2 = vld [vmem:[%s5684_s1 + $0xb8] sm:$0xff]  ;;  %v3732_v5 = vpack.c.bf16 %v560_v62, %v559_v61  ;;  %v3256_v6 = vld [vmem:[%s5684_s1 + $0x170] sm:$0xff] }
  0x1e   : > { %3713 = vmatprep.subr.bf16.mxu0 %v4133_v3  ;;  %3748 = vmatpush1.bf16.msra.mxu1 %v3747_v26  ;;  %v3257_v7 = vld [vmem:[%s5684_s1 + $0x178] sm:$0xff]  ;;  %v3266_v8 = vld [vmem:[%s5684_s1 + $0x180] sm:$0xff]  ;;  %v3267_v9 = vld [vmem:[%s5684_s1 + $0x188] sm:$0xff]  ;;  %v3768_v10 = vpack.c.bf16 %v3255_v0, %v3254_v63  ;;  %v3735_v11 = vpack.c.bf16 %v562_v2, %v561_v1 }
  0x1f   : > { %3749 = vmatprep.subr.bf16.mxu1 %v4133_v3  ;;  %v4429_v12 = vld [vmem:[%s4300_s20] sm:$0xff]  ;;  %v3299_v14 = vld [vmem:[%s5684_s1 + $0x248] sm:$0xff]  ;;  %v4438_v15 = vld [vmem:[%s4300_s20 + $0x18] sm:$0xff]  ;;  %v3771_v18 = vpack.c.bf16 %v3257_v7, %v3256_v6  ;;  %v3774_v19 = vpack.c.bf16 %v3267_v9, %v3266_v8 }
  0x20   : > { %v3298_v13 = vld [vmem:[%s5684_s1 + $0x240] sm:$0xff]  ;;  %v3268_v16 = vld [vmem:[%s5684_s1 + $0x190] sm:$0xff]  ;;  %v3269_v17 = vld [vmem:[%s5684_s1 + $0x198] sm:$0xff] }
  0x21   : > { %3715 = vmatpush1.bf16.msra.mxu0 %v3714_v28  ;;  %v4449_v20 = vld [vmem:[%s4300_s20 + $0x10] sm:$0xff]  ;;  %v3301_v22 = vld [vmem:[%s5684_s1 + $0x258] sm:$0xff]  ;;  %v3270_v23 = vld [vmem:[%s5684_s1 + $0x1a0] sm:$0xff]  ;;  %v3810_v25 = vpack.c.bf16 %v3299_v14, %v3298_v13  ;;  %v3777_v26 = vpack.c.bf16 %v3269_v17, %v3268_v16 }
  0x22   : > { %3716 = vmatprep.subr.bf16.mxu0 %v4133_v3  ;;  %3751 = vmatpush1.bf16.msra.mxu1 %v3750_v33  ;;  %v3300_v21 = vld [vmem:[%s5684_s1 + $0x250] sm:$0xff]  ;;  %v3271_v24 = vld [vmem:[%s5684_s1 + $0x1a8] sm:$0xff]  ;;  %v4473_v29 = vld [vmem:[%s4300_s20 + $0x20] sm:$0xff] }
  0x23   : > { %3752 = vmatprep.subr.bf16.mxu1 %v4133_v3  ;;  %v4469_v28 = vld [vmem:[%s4300_s20 + $0x28] sm:$0xff]  ;;  %v3302_v30 = vld [vmem:[%s5684_s1 + $0x260] sm:$0xff]  ;;  %v3272_v32 = vld [vmem:[%s5684_s1 + $0x1b0] sm:$0xff]  ;;  %v3780_v35 = vpack.c.bf16 %v3271_v24, %v3270_v23 }
  0x24   : > { %v3303_v31 = vld [vmem:[%s5684_s1 + $0x268] sm:$0xff]  ;;  %v3273_v33 = vld [vmem:[%s5684_s1 + $0x1b8] sm:$0xff]  ;;  %v4499_v37 = vld [vmem:[%s4300_s20 + $0x30] sm:$0xff] }
  0x25   : > { %3718 = vmatpush1.bf16.msra.mxu0 %v3717_v34  ;;  %v3813_v34 = vpack.c.bf16 %v3301_v22, %v3300_v21  ;;  %v4491_v36 = vld [vmem:[%s4300_s20 + $0x38] sm:$0xff]  ;;  %v3304_v38 = vld [vmem:[%s5684_s1 + $0x270] sm:$0xff]  ;;  %v3275_v41 = vld [vmem:[%s5684_s1 + $0x1c8] sm:$0xff]  ;;  %v3816_v42 = vpack.c.bf16 %v3303_v31, %v3302_v30  ;;  %v3783_v43 = vpack.c.bf16 %v3273_v33, %v3272_v32 }
  0x26   : > { %3719 = vmatprep.subr.bf16.mxu0 %v4133_v3  ;;  %3754 = vmatpush1.bf16.msra.mxu1 %v3753_v39  ;;  %v3305_v39 = vld [vmem:[%s5684_s1 + $0x278] sm:$0xff]  ;;  %v4516_v44 = vld [vmem:[%s4300_s20 + $0x48] sm:$0xff]  ;;  %v3276_v48 = vld [vmem:[%s5684_s1 + $0x1d0] sm:$0xff] }
  0x27   : > { %3755 = vmatprep.subr.bf16.mxu1 %v4133_v3  ;;  %v3307_v47 = vld [vmem:[%s5684_s1 + $0x288] sm:$0xff]  ;;  %v3277_v49 = vld [vmem:[%s5684_s1 + $0x1d8] sm:$0xff]  ;;  %v3819_v50 = vpack.c.bf16 %v3305_v39, %v3304_v38  ;;  %v4547_v53 = vld [vmem:[%s4300_s20 + $0x50] sm:$0xff] }
  0x28   : > { %v3308_v54 = vld [vmem:[%s5684_s1 + $0x290] sm:$0xff]  ;;  %v3309_v55 = vld [vmem:[%s5684_s1 + $0x298] sm:$0xff]  ;;  %v3278_v56 = vld [vmem:[%s5684_s1 + $0x1e0] sm:$0xff]  ;;  %v3789_v59 = vpack.c.bf16 %v3277_v49, %v3276_v48 }
  0x29   : > { %3721 = vmatpush1.bf16.msra.mxu0 %v3720_v40  ;;  %v3274_v40 = vld [vmem:[%s5684_s1 + $0x1c0] sm:$0xff]  ;;  %v4568_v60 = vld [vmem:[%s4300_s20 + $0x68] sm:$0xff]  ;;  %v3825_v61 = vpack.c.bf16 %v3309_v55, %v3308_v54  ;;  %v3280_v2 = vld [vmem:[%s5684_s1 + $0x1f0] sm:$0xff] }
  0x2a   : > { %3722 = vmatprep.subr.bf16.mxu0 %v4133_v3  ;;  %3757 = vmatpush1.bf16.msra.mxu1 %v3756_v45  ;;  %v4522_v45 = vld [vmem:[%s4300_s20 + $0x40] sm:$0xff]  ;;  %v3311_v1 = vld [vmem:[%s5684_s1 + $0x2a8] sm:$0xff]  ;;  %v4599_v8 = vld [vmem:[%s4300_s20 + $0x70] sm:$0xff] }
  0x2b   : > { %3758 = vmatprep.subr.bf16.mxu1 %v4133_v3  ;;  %v4575_v63 = vld [vmem:[%s4300_s20 + $0x60] sm:$0xff]  ;;  %v3312_v9 = vld [vmem:[%s5684_s1 + $0x2b0] sm:$0xff]  ;;  %v3283_v13 = vld [vmem:[%s5684_s1 + $0x208] sm:$0xff] }
  0x2c   : > { %v3310_v0 = vld [vmem:[%s5684_s1 + $0x2a0] sm:$0xff]  ;;  %v3285_v21 = vld [vmem:[%s5684_s1 + $0x218] sm:$0xff]  ;;  %v3316_v24 = vld [vmem:[%s5684_s1 + $0x2d0] sm:$0xff] }
  0x2d   : > { %3724 = vmatpush1.bf16.msra.mxu0 %v3723_v46  ;;  %v3306_v46 = vld [vmem:[%s5684_s1 + $0x280] sm:$0xff]  ;;  %v3828_v6 = vpack.c.bf16 %v3311_v1, %v3310_v0  ;;  %v3287_v30 = vld [vmem:[%s5684_s1 + $0x228] sm:$0xff]  ;;  %v3289_v38 = vld [vmem:[%s5684_s1 + $0x238] sm:$0xff] }
  0x2e   : > { %3725 = vmatprep.subr.bf16.mxu0 %v4133_v3  ;;  %3760 = vmatpush1.bf16.msra.mxu1 %v3759_v51  ;;  %v3786_v51 = vpack.c.bf16 %v3275_v41, %v3274_v40  ;;  %v3314_v17 = vld [vmem:[%s5684_s1 + $0x2c0] sm:$0xff]  ;;  %v3320_v41 = vld [vmem:[%s5684_s1 + $0x2f0] sm:$0xff]  ;;  %v1178_v49 = vld [vmem:[%s5687_s4 + $0x48] sm:$0xff] }
  0x2f   : > { %3761 = vmatprep.subr.bf16.mxu1 %v4133_v3  ;;  %v3318_v33 = vld [vmem:[%s5684_s1 + $0x2e0] sm:$0xff] }
  0x30   : > { %v1177_v48 = vld [vmem:[%s5687_s4 + $0x40] sm:$0xff] }
  0x31   : > { %3727 = vmatpush1.bf16.msra.mxu0 %v3726_v52  ;;  %v4541_v52 = vld [vmem:[%s4300_s20 + $0x58] sm:$0xff] }
  0x32   : > { %3728 = vmatprep.subr.bf16.mxu0 %v4133_v3  ;;  %3763 = vmatpush1.bf16.msra.mxu1 %v3762_v57  ;;  %v3279_v57 = vld [vmem:[%s5684_s1 + $0x1e8] sm:$0xff] }
  0x33   : > { %3764 = vmatprep.subr.bf16.mxu1 %v4133_v3  ;;  %v3792_v62 = vpack.c.bf16 %v3279_v57, %v3278_v56 }
  0x35   : > { %3730 = vmatpush1.bf16.msra.mxu0 %v3729_v58  ;;  %v3822_v58 = vpack.c.bf16 %v3307_v47, %v3306_v46  ;;  %v1176_v46 = vld [vmem:[%s5687_s4 + $0x38] sm:$0xff] }
  0x36   : > { %3731 = vmatprep.subr.bf16.mxu0 %v4133_v3  ;;  %3766 = vmatpush1.bf16.msra.mxu1 %v3765_v4  ;;  %v3281_v4 = vld [vmem:[%s5684_s1 + $0x1f8] sm:$0xff] }
  0x37   : > { %3767 = vmatprep.subr.bf16.mxu1 %v4133_v3  ;;  %v3795_v7 = vpack.c.bf16 %v3281_v4, %v3280_v2 }
  0x39   : > { %3733 = vmatpush1.bf16.msra.mxu0 %v3732_v5  ;;  %v4593_v5 = vld [vmem:[%s4300_s20 + $0x78] sm:$0xff]  ;;  %s3406_s20 = sshll.u32 %s5761_s22, 4 }
  0x3a   : > { %3734 = vmatprep.subr.bf16.mxu0 %v4133_v3  ;;  %3769 = vmatpush1.bf16.msra.mxu1 %v3768_v10  ;;  %v3313_v10 = vld [vmem:[%s5684_s1 + $0x2b8] sm:$0xff]  ;;  %s521_s24 = scalar_lea.vmem %s5699_s16, %s3406_s20 }
  0x3b   : > { %3770 = vmatprep.subr.bf16.mxu1 %v4133_v3  ;;  %v3831_v14 = vpack.c.bf16 %v3313_v10, %v3312_v9 }
  0x3d   : > { %3736 = vmatpush1.bf16.msra.mxu0 %v3735_v11  ;;  %v3282_v11 = vld [vmem:[%s5684_s1 + $0x200] sm:$0xff] }
  0x3e   : > { %3773 = vmatprep.subr.bf16.mxu0 %v4133_v3  ;;  %3772 = vmatpush1.bf16.msra.mxu1 %v3771_v18  ;;  %v3798_v16 = vpack.c.bf16 %v3283_v13, %v3282_v11  ;;  %v3315_v18 = vld [vmem:[%s5684_s1 + $0x2c8] sm:$0xff] }
  0x3f   : > { %3809 = vmatprep.subr.bf16.mxu1 %v4133_v3  ;;  %v3834_v22 = vpack.c.bf16 %v3315_v18, %v3314_v17 }
  0x40   : > { %653 = vmatmul.mubr.f32.vlgmr.msra.gmra.mrb[0].mxu0 %v4429_v12 }
  0x41   : > { %3775 = vmatpush1.bf16.msra.mxu0 %v3774_v19  ;;  %3227 = vmatprep.mubr.msk.f32.mxu0 %vm563_vm0, %v4438_v15  ;;  %v3284_v19 = vld [vmem:[%s5684_s1 + $0x210] sm:$0xff] }
  0x42   : > { %3776 = vmatprep.subr.bf16.mxu0 %v4133_v3  ;;  %783 = vmatmul.mubr.f32.vlgmr.msra.gmra.mrb[0].mxu1 %v4429_v12  ;;  %v3801_v23 = vpack.c.bf16 %v3285_v21, %v3284_v19 }
  0x43   : > { %3811 = vmatpush1.bf16.msra.mxu1 %v3810_v25  ;;  %3259 = vmatprep.mubr.msk.f32.mxu1 %vm563_vm0, %v4438_v15  ;;  %v3317_v25 = vld [vmem:[%s5684_s1 + $0x2d8] sm:$0xff] }
  0x44   : > { %658 = vmatmul.mubr.f32.gmra.mrb[2].mxu0 %v4449_v20  ;;  %3812 = vmatprep.subr.bf16.mxu1 %v4133_v3  ;;  %v3837_v31 = vpack.c.bf16 %v3317_v25, %v3316_v24 }
  0x45   : > { %3778 = vmatpush1.bf16.msra.mxu0 %v3777_v26  ;;  %3228 = vmatprep.mubr.msk.f32.mxu0 %vm563_vm0, %v4469_v28  ;;  %v3286_v26 = vld [vmem:[%s5684_s1 + $0x220] sm:$0xff] }
  0x46   : > { %3779 = vmatprep.subr.bf16.mxu0 %v4133_v3  ;;  %788 = vmatmul.mubr.f32.gmra.mrb[2].mxu1 %v4449_v20  ;;  %v3804_v32 = vpack.c.bf16 %v3287_v30, %v3286_v26 }
  0x47   : > { %3814 = vmatpush1.bf16.msra.mxu1 %v3813_v34  ;;  %3260 = vmatprep.mubr.msk.f32.mxu1 %vm563_vm0, %v4469_v28  ;;  %v3319_v34 = vld [vmem:[%s5684_s1 + $0x2e8] sm:$0xff] }
  0x48   : > { %663 = vmatmul.mubr.f32.gmra.mrb[4].mxu0 %v4473_v29  ;;  %3815 = vmatprep.subr.bf16.mxu1 %v4133_v3  ;;  %v3840_v39 = vpack.c.bf16 %v3319_v34, %v3318_v33 }
  0x49   : > { %3781 = vmatpush1.bf16.msra.mxu0 %v3780_v35  ;;  %3229 = vmatprep.mubr.msk.f32.mxu0 %vm563_vm0, %v4491_v36  ;;  %v3288_v35 = vld [vmem:[%s5684_s1 + $0x230] sm:$0xff] }
  0x4a   : > { %3782 = vmatprep.subr.bf16.mxu0 %v4133_v3  ;;  %793 = vmatmul.mubr.f32.gmra.mrb[4].mxu1 %v4473_v29  ;;  %v3807_v40 = vpack.c.bf16 %v3289_v38, %v3288_v35 }
  0x4b   : > { %3817 = vmatpush1.bf16.msra.mxu1 %v3816_v42  ;;  %3261 = vmatprep.mubr.msk.f32.mxu1 %vm563_vm0, %v4491_v36  ;;  %v3321_v42 = vld [vmem:[%s5684_s1 + $0x2f8] sm:$0xff] }
  0x4c   : > { %668 = vmatmul.mubr.f32.gmra.mrb[6].mxu0 %v4499_v37  ;;  %3818 = vmatprep.subr.bf16.mxu1 %v4133_v3 }
  0x4d   : > { %3784 = vmatpush1.bf16.msra.mxu0 %v3783_v43  ;;  %3230 = vmatprep.mubr.msk.f32.mxu0 %vm563_vm0, %v4516_v44  ;;  %v3843_v43 = vpack.c.bf16 %v3321_v42, %v3320_v41 }
  0x4e   : > { %3785 = vmatprep.subr.bf16.mxu0 %v4133_v3  ;;  %798 = vmatmul.mubr.f32.gmra.mrb[6].mxu1 %v4499_v37 }
  0x4f   : > { %3820 = vmatpush1.bf16.msra.mxu1 %v3819_v50  ;;  %3262 = vmatprep.mubr.msk.f32.mxu1 %vm563_vm0, %v4516_v44  ;;  %v4776_v50 = vpack.c.bf16 %v1178_v49, %v1177_v48 }
  0x50   : > { %673 = vmatmul.mubr.f32.gmra.mrb[8].mxu0 %v4522_v45  ;;  %3821 = vmatprep.subr.bf16.mxu1 %v4133_v3 }
  0x51   : > { %3787 = vmatpush1.bf16.msra.mxu0 %v3786_v51  ;;  %3231 = vmatprep.mubr.msk.f32.mxu0 %vm563_vm0, %v4541_v52  ;;  %v1179_v51 = vld [vmem:[%s5687_s4 + $0x50] sm:$0xff] }
  0x52   : > { %3788 = vmatprep.subr.bf16.mxu0 %v4133_v3  ;;  %803 = vmatmul.mubr.f32.gmra.mrb[8].mxu1 %v4522_v45 }
  0x53   : > { %3823 = vmatpush1.bf16.msra.mxu1 %v3822_v58  ;;  %3263 = vmatprep.mubr.msk.f32.mxu1 %vm563_vm0, %v4541_v52 }
  0x54   : > { %678 = vmatmul.mubr.f32.gmra.mrb[10].mxu0 %v4547_v53  ;;  %3824 = vmatprep.subr.bf16.mxu1 %v4133_v3 }
  0x55   : > { %3790 = vmatpush1.bf16.msra.mxu0 %v3789_v59  ;;  %3232 = vmatprep.mubr.msk.f32.mxu0 %vm563_vm0, %v4568_v60 }
  0x56   : > { %3791 = vmatprep.subr.bf16.mxu0 %v4133_v3  ;;  %808 = vmatmul.mubr.f32.gmra.mrb[10].mxu1 %v4547_v53 }
  0x57   : > { %3826 = vmatpush1.bf16.msra.mxu1 %v3825_v61  ;;  %3264 = vmatprep.mubr.msk.f32.mxu1 %vm563_vm0, %v4568_v60 }
  0x58   : > { %683 = vmatmul.mubr.f32.gmra.mrb[12].mxu0 %v4575_v63  ;;  %3827 = vmatprep.subr.bf16.mxu1 %v4133_v3 }
  0x59   : > { %3793 = vmatpush1.bf16.msra.mxu0 %v3792_v62  ;;  %3233 = vmatprep.mubr.msk.f32.mxu0 %vm563_vm0, %v4593_v5 }
  0x5a   : > { %3794 = vmatprep.subr.bf16.mxu0 %v4133_v3  ;;  %813 = vmatmul.mubr.f32.gmra.mrb[12].mxu1 %v4575_v63 }
  0x5b   : > { %3829 = vmatpush1.bf16.msra.mxu1 %v3828_v6  ;;  %3265 = vmatprep.mubr.msk.f32.mxu1 %vm563_vm0, %v4593_v5 }
  0x5c   : > { %688 = vmatmul.mubr.f32.gmra.mrb[14].mxu0 %v4599_v8  ;;  %3830 = vmatprep.subr.bf16.mxu1 %v4133_v3 }
  0x5d   : > { %3796 = vmatpush1.bf16.msra.mxu0 %v3795_v7  ;;  %3290 = vmatprep.mubr.msk.f32.mxu0 %vm563_vm0, %v4310_v27 }
  0x5e   : > { %3797 = vmatprep.subr.bf16.mxu0 %v4133_v3  ;;  %818 = vmatmul.mubr.f32.gmra.mrb[14].mxu1 %v4599_v8 }
  0x5f   : > { %3832 = vmatpush1.bf16.msra.mxu1 %v3831_v14  ;;  %3322 = vmatprep.mubr.msk.f32.mxu1 %vm563_vm0, %v4310_v27  ;;  %v1169_v27 = vld [vmem:[%s5687_s4] sm:$0xff] }
  0x60   : > { %3833 = vmatprep.subr.bf16.mxu1 %v4133_v3 }
  0x61   : > { %3799 = vmatpush1.bf16.msra.mxu0 %v3798_v16 }
  0x62   : > { %3800 = vmatprep.subr.bf16.mxu0 %v4133_v3 }
  0x63   : > { %3835 = vmatpush1.bf16.msra.mxu1 %v3834_v22 }
  0x64   : > { %3836 = vmatprep.subr.bf16.mxu1 %v4133_v3 }
  0x65   : > { %3802 = vmatpush1.bf16.msra.mxu0 %v3801_v23 }
  0x66   : > { %3803 = vmatprep.subr.bf16.mxu0 %v4133_v3 }
  0x67   : > { %3838 = vmatpush1.bf16.msra.mxu1 %v3837_v31 }
  0x68   : > { %3839 = vmatprep.subr.bf16.mxu1 %v4133_v3 }
  0x69   : > { %3805 = vmatpush1.bf16.msra.mxu0 %v3804_v32 }
  0x6a   : > { %3806 = vmatprep.subr.bf16.mxu0 %v4133_v3 }
  0x6b   : > { %3841 = vmatpush1.bf16.msra.mxu1 %v3840_v39 }
  0x6c   : > { %3842 = vmatprep.subr.bf16.mxu1 %v4133_v3  ;;  %v1084_v3 = vld [vmem:[%s5685_s2 + $0x8] sm:$0xff] }
  0x6d   : > { %3808 = vmatpush1.bf16.msra.mxu0 %v3807_v40 }
  0x6f   : > { %3844 = vmatpush1.bf16.msra.mxu1 %v3843_v43 }
  0x70   : > { %913 = vmatmul.mubr.f32.vlgmr.msra.gmra.mrb[16].mxu0 %v4429_v12 }
  0x71   : > { %3291 = vmatprep.mubr.msk.f32.mxu0 %vm563_vm0, %v4438_v15 }
  0x72   : > { %1043 = vmatmul.mubr.f32.vlgmr.msra.gmra.mrb[16].mxu1 %v4429_v12  ;;  %v1170_v12 = vld [vmem:[%s5687_s4 + $0x8] sm:$0xff] }
  0x73   : > { %3323 = vmatprep.mubr.msk.f32.mxu1 %vm563_vm0, %v4438_v15  ;;  %v1171_v15 = vld [vmem:[%s5687_s4 + $0x10] sm:$0xff] }
  0x74   : > { %918 = vmatmul.mubr.f32.gmra.mrb[18].mxu0 %v4449_v20 }
  0x75   : > { %3292 = vmatprep.mubr.msk.f32.mxu0 %vm563_vm0, %v4469_v28 }
  0x76   : > { %1048 = vmatmul.mubr.f32.gmra.mrb[18].mxu1 %v4449_v20  ;;  %v4740_v20 = vpack.c.bf16 %v1170_v12, %v1169_v27 }
  0x77   : > { %3324 = vmatprep.mubr.msk.f32.mxu1 %vm563_vm0, %v4469_v28  ;;  %v1172_v28 = vld [vmem:[%s5687_s4 + $0x18] sm:$0xff] }
  0x78   : > { %923 = vmatmul.mubr.f32.gmra.mrb[20].mxu0 %v4473_v29  ;;  %3878 = vmatprep.subr.bf16.mxu1 %v4740_v20 }
  0x79   : > { %3293 = vmatprep.mubr.msk.f32.mxu0 %vm563_vm0, %v4491_v36  ;;  %3880 = vmatpush3.bf16.msra.mxu1 %v4740_v20 }
  0x7a   : > { %1053 = vmatmul.mubr.f32.gmra.mrb[20].mxu1 %v4473_v29  ;;  %v4745_v29 = vpack.c.bf16 %v1172_v28, %v1171_v15 }
  0x7b   : > { %3325 = vmatprep.mubr.msk.f32.mxu1 %vm563_vm0, %v4491_v36  ;;  %v1173_v36 = vld [vmem:[%s5687_s4 + $0x20] sm:$0xff] }
  0x7c   : > { %928 = vmatmul.mubr.f32.gmra.mrb[22].mxu0 %v4499_v37  ;;  %3882 = vmatprep.subr.bf16.mxu1 %v4745_v29 }
  0x7d   : > { %3294 = vmatprep.mubr.msk.f32.mxu0 %vm563_vm0, %v4516_v44  ;;  %3884 = vmatpush3.bf16.msra.mxu1 %v4745_v29 }
  0x7e   : > { %1058 = vmatmul.mubr.f32.gmra.mrb[22].mxu1 %v4499_v37  ;;  %v1174_v37 = vld [vmem:[%s5687_s4 + $0x28] sm:$0xff] }
  0x7f   : > { %3326 = vmatprep.mubr.msk.f32.mxu1 %vm563_vm0, %v4516_v44  ;;  %v4756_v44 = vpack.c.bf16 %v1174_v37, %v1173_v36 }
  0x80   : > { %933 = vmatmul.mubr.f32.gmra.mrb[24].mxu0 %v4522_v45 }
  0x81   : > { %3295 = vmatprep.mubr.msk.f32.mxu0 %vm563_vm0, %v4541_v52  ;;  %3886 = vmatprep.subr.bf16.mxu1 %v4756_v44 }
  0x82   : > { %1063 = vmatmul.mubr.f32.gmra.mrb[24].mxu1 %v4522_v45  ;;  %v1175_v45 = vld [vmem:[%s5687_s4 + $0x30] sm:$0xff] }
  0x83   : > { %3327 = vmatprep.mubr.msk.f32.mxu1 %vm563_vm0, %v4541_v52  ;;  %v4766_v47 = vpack.c.bf16 %v1176_v46, %v1175_v45  ;;  %3888 = vmatpush3.bf16.msra.mxu1 %v4756_v44  ;;  %v1180_v52 = vld [vmem:[%s5687_s4 + $0x58] sm:$0xff] }
  0x84   : > { %938 = vmatmul.mubr.f32.gmra.mrb[26].mxu0 %v4547_v53 }
  0x85   : > { %3296 = vmatprep.mubr.msk.f32.mxu0 %vm563_vm0, %v4568_v60  ;;  %3890 = vmatprep.subr.bf16.mxu1 %v4766_v47 }
  0x86   : > { %1068 = vmatmul.mubr.f32.gmra.mrb[26].mxu1 %v4547_v53  ;;  %v4786_v53 = vpack.c.bf16 %v1180_v52, %v1179_v51 }
  0x87   : > { %3328 = vmatprep.mubr.msk.f32.mxu1 %vm563_vm0, %v4568_v60  ;;  %3892 = vmatpush3.bf16.msra.mxu1 %v4766_v47 }
  0x88   : > { %943 = vmatmul.mubr.f32.gmra.mrb[28].mxu0 %v4575_v63  ;;  %3894 = vmatprep.subr.bf16.mxu1 %v4776_v50 }
  0x89   : > { %3297 = vmatprep.mubr.msk.f32.mxu0 %vm563_vm0, %v4593_v5 }
  0x8a   : > { %1073 = vmatmul.mubr.f32.gmra.mrb[28].mxu1 %v4575_v63 }
  0x8b   : > { %3329 = vmatprep.mubr.msk.f32.mxu1 %vm563_vm0, %v4593_v5  ;;  %3896 = vmatpush3.bf16.msra.mxu1 %v4776_v50 }
  0x8c   : > { %948 = vmatmul.mubr.f32.gmra.mrb[30].mxu0 %v4599_v8  ;;  %3898 = vmatprep.subr.bf16.mxu1 %v4786_v53 }
  0x8d   : > { %1158 = vmatprep.mubr.f32.mxu0 %v1084_v3 }
  0x8e   : > { %1078 = vmatmul.mubr.f32.gmra.mrb[30].mxu1 %v4599_v8 }
  0x8f   : > { %3900 = vmatpush3.bf16.msra.mxu1 %v4786_v53 }
 0x113   : > { %v654_v54 = vpop.f32.mrb[0].mxu0 }
 0x114   : > { %v656_v55 = vpop.f32.mrb[1].mxu0 }
 0x115   : > { %v4791_v56 = vpop.f32.mrb[0].mxu1 }
 0x116   : > { %v786_v58 = vpop.f32.mrb[1].mxu1 }
 0x117   : > { %v659_v57 = vpop.f32.mrb[2].mxu0 }
 0x118   : > { %v3847_v59 = vpack.c.bf16 %v659_v57, %v654_v54  ;;  %v661_v60 = vpop.f32.mrb[3].mxu0 }
 0x119   : > { %v4793_v61 = vpop.f32.mrb[2].mxu1 }
 0x11a   : > { %v3863_v62 = vpack.c.bf16 %v4793_v61, %v4791_v56  ;;  %v791_v0 = vpop.f32.mrb[3].mxu1  ;;  %v1085_v56 = vld [vmem:[%s5685_s2 + $0x10] sm:$0xff]  ;;  %v1181_v61 = vld [vmem:[%s5687_s4 + $0x60] sm:$0xff] }
 0x11b   : > { %v664_v63 = vpop.f32.mrb[4].mxu0 }
 0x11c   : > { %v666_v1 = vpop.f32.mrb[5].mxu0 }
 0x11d   : > { %v4797_v6 = vpop.f32.mrb[4].mxu1 }
 0x11e   : > { %v796_v8 = vpop.f32.mrb[5].mxu1 }
 0x11f   : > { %v669_v2 = vpop.f32.mrb[6].mxu0 }
 0x120   : > { %v3851_v4 = vpack.c.bf16 %v669_v2, %v664_v63  ;;  %v671_v5 = vpop.f32.mrb[7].mxu0 }
 0x121   : > { %v4799_v14 = vpop.f32.mrb[6].mxu1 }
 0x122   : > { %v3867_v17 = vpack.c.bf16 %v4799_v14, %v4797_v6  ;;  %v801_v18 = vpop.f32.mrb[7].mxu1  ;;  %v1183_v14 = vld [vmem:[%s5687_s4 + $0x70] sm:$0xff] }
 0x123   : > { %v674_v7 = vpop.f32.mrb[8].mxu0 }
 0x124   : > { %v676_v9 = vpop.f32.mrb[9].mxu0 }
 0x125   : > { %v4803_v24 = vpop.f32.mrb[8].mxu1 }
 0x126   : > { %v806_v25 = vpop.f32.mrb[9].mxu1 }
 0x127   : > { %v679_v10 = vpop.f32.mrb[10].mxu0 }
 0x128   : > { %v3855_v11 = vpack.c.bf16 %v679_v10, %v674_v7  ;;  %v681_v13 = vpop.f32.mrb[11].mxu0 }
 0x129   : > { %v809_v26 = vpop.f32.mrb[10].mxu1 }
 0x12a   : > { %v3871_v30 = vpack.c.bf16 %v809_v26, %v4803_v24  ;;  %v811_v31 = vpop.f32.mrb[11].mxu1  ;;  %v3330_v26 = vld [vmem:[%s5686_s3] ss:$0 sm:$0xff] }
 0x12b   : > { %v684_v16 = vpop.f32.mrb[12].mxu0 }
 0x12c   : > { %v686_v19 = vpop.f32.mrb[13].mxu0 }
 0x12d   : > { %v814_v32 = vpop.f32.mrb[12].mxu1 }
 0x12e   : > { %v816_v33 = vpop.f32.mrb[13].mxu1 }
 0x12f   : > { %v689_v21 = vpop.f32.mrb[14].mxu0 }
 0x130   : > { %v3859_v22 = vpack.c.bf16 %v689_v21, %v684_v16  ;;  %v691_v23 = vpop.f32.mrb[15].mxu0 }
 0x131   : > { %v819_v34 = vpop.f32.mrb[14].mxu1 }
 0x132   : > { %v3875_v35 = vpack.c.bf16 %v819_v34, %v814_v32  ;;  %v821_v38 = vpop.f32.mrb[15].mxu1 }
 0x143   : > { %v914_v39 = vpop.f32.mrb[16].mxu0 }
 0x144   : > { %v916_v40 = vpop.f32.mrb[17].mxu0 }
 0x145   : > { %v1044_v41 = vpop.f32.mrb[16].mxu1 }
 0x146   : > { %v1046_v43 = vpop.f32.mrb[17].mxu1 }
 0x147   : > { %v919_v42 = vpop.f32.mrb[18].mxu0 }
 0x148   : > { %v3845_v3 = vpack.c.bf16 %v919_v42, %v914_v39  ;;  %v921_v27 = vpop.f32.mrb[19].mxu0 }
 0x149   : > { %v1049_v12 = vpop.f32.mrb[18].mxu1 }
 0x14a   : > { %3846 = vmatprep.subr.bf16.mxu0 %v3845_v3  ;;  %v3861_v28 = vpack.c.bf16 %v1049_v12, %v1044_v41  ;;  %v1051_v36 = vpop.f32.mrb[19].mxu1  ;;  %v1385_v12 = vlaneseq }
 0x14b   : > { %v924_v15 = vpop.f32.mrb[20].mxu0  ;;  %3848 = vmatpush3.bf16.msra.mxu0 %v3847_v59  ;;  %v3332_v36 = vld [vmem:[%s5689_s6] ss:$0 sm:$0xff] }
 0x14c   : > { %v926_v37 = vpop.f32.mrb[21].mxu0 }
 0x14d   : > { %v1054_v45 = vpop.f32.mrb[20].mxu1 }
 0x14e   : > { %v1056_v48 = vpop.f32.mrb[21].mxu1 }
 0x14f   : > { %v929_v46 = vpop.f32.mrb[22].mxu0  ;;  %v4886_v48 = vld [vmem:[%s5690_s7 + $0x8] sm:$0xff] }
 0x150   : > { %v3849_v49 = vpack.c.bf16 %v929_v46, %v924_v15  ;;  %v931_v51 = vpop.f32.mrb[23].mxu0 }
 0x151   : > { %v1059_v52 = vpop.f32.mrb[22].mxu1 }
 0x152   : > { %3850 = vmatprep.subr.bf16.mxu0 %v3849_v49  ;;  %v3865_v55 = vpack.c.bf16 %v1059_v52, %v1054_v45  ;;  %v1061_v57 = vpop.f32.mrb[23].mxu1 }
 0x153   : > { %v934_v54 = vpop.f32.mrb[24].mxu0  ;;  %3852 = vmatpush3.bf16.msra.mxu0 %v3851_v4 }
 0x154   : > { %v936_v58 = vpop.f32.mrb[25].mxu0 }
 0x155   : > { %v1064_v60 = vpop.f32.mrb[24].mxu1 }
 0x156   : > { %v1066_v0 = vpop.f32.mrb[25].mxu1 }
 0x157   : > { %v939_v63 = vpop.f32.mrb[26].mxu0  ;;  %v4918_v0 = vld [vmem:[%s5690_s7 + $0x20] sm:$0xff] }
 0x158   : > { %v3853_v1 = vpack.c.bf16 %v939_v63, %v934_v54  ;;  %v941_v59 = vpop.f32.mrb[27].mxu0  ;;  %v4897_v54 = vld [vmem:[%s5690_s7 + $0x10] sm:$0xff]  ;;  %5723 = vst [vmem:[#allocation8_spill] sm:$0xff] %v4918_v0 }
 0x159   : > { %v1069_v2 = vpop.f32.mrb[26].mxu1 }
 0x15a   : > { %3854 = vmatprep.subr.bf16.mxu0 %v3853_v1  ;;  %v3869_v7 = vpack.c.bf16 %v1069_v2, %v1064_v60  ;;  %v1071_v8 = vpop.f32.mrb[27].mxu1  ;;  %v4923_v1 = vld [vmem:[%s5690_s7 + $0x28] sm:$0xff] }
 0x15b   : > { %v944_v5 = vpop.f32.mrb[28].mxu0  ;;  %3856 = vmatpush3.bf16.msra.mxu0 %v3855_v11  ;;  %v1083_v11 = vld [vmem:[%s5685_s2] sm:$0xff] }
 0x15c   : > { %v946_v9 = vpop.f32.mrb[29].mxu0 }
 0x15d   : > { %v1074_v10 = vpop.f32.mrb[28].mxu1 }
 0x15e   : > { %v1076_v16 = vpop.f32.mrb[29].mxu1 }
 0x15f   : > { %v949_v13 = vpop.f32.mrb[30].mxu0 }
 0x160   : > { %v3857_v18 = vpack.c.bf16 %v949_v13, %v944_v5  ;;  %v951_v4 = vpop.f32.mrb[31].mxu0 }
 0x161   : > { %v1079_v19 = vpop.f32.mrb[30].mxu1 }
 0x162   : > { %3858 = vmatprep.subr.bf16.mxu0 %v3857_v18  ;;  %v3873_v21 = vpack.c.bf16 %v1079_v19, %v1074_v10  ;;  %v1081_v23 = vpop.f32.mrb[31].mxu1 }
 0x163   : > { %3860 = vmatpush3.bf16.msra.mxu0 %v3859_v22  ;;  %v1086_v22 = vld [vmem:[%s5685_s2 + $0x18] sm:$0xff] }
 0x164   : > { %3862 = vmatprep.subr.bf16.mxu0 %v3861_v28 }
 0x167   : > { %3864 = vmatpush3.bf16.msra.mxu0 %v3863_v62  ;;  %v1182_v62 = vld [vmem:[%s5687_s4 + $0x68] sm:$0xff] }
 0x168   : > { %3866 = vmatprep.subr.bf16.mxu0 %v3865_v55  ;;  %v3901_v6 = vpack.c.bf16 %v1182_v62, %v1181_v61  ;;  %v4902_v55 = vld [vmem:[%s5690_s7 + $0x18] sm:$0xff] }
 0x169   : > { %5718 = vst [vmem:[#allocation3_spill] sm:$0xff] %v4902_v55 }
 0x16a   : > { %3902 = vmatprep.subr.bf16.mxu1 %v3901_v6 }
 0x16b   : > { %3868 = vmatpush3.bf16.msra.mxu0 %v3867_v17  ;;  %3904 = vmatpush3.bf16.msra.mxu1 %v3901_v6  ;;  %v1184_v17 = vld [vmem:[%s5687_s4 + $0x78] sm:$0xff] }
 0x16c   : > { %3870 = vmatprep.subr.bf16.mxu0 %v3869_v7  ;;  %v3905_v24 = vpack.c.bf16 %v1184_v17, %v1183_v14 }
 0x16e   : > { %3906 = vmatprep.subr.bf16.mxu1 %v3905_v24 }
 0x16f   : > { %3872 = vmatpush3.bf16.msra.mxu0 %v3871_v30  ;;  %3908 = vmatpush3.bf16.msra.mxu1 %v3905_v24 }
 0x170   : > { %3874 = vmatprep.subr.bf16.mxu0 %v3873_v21  ;;  %3942 = vmatprep.subr.bf16.mxu1 %v4740_v20 }
 0x173   : > { %3876 = vmatpush3.bf16.msra.mxu0 %v3875_v35 }
 0x174   : > { %3910 = vmatprep.subr.bf16.mxu0 %v4740_v20 }
 0x176   : > { %1159 = vmatmul.mubr.f32.vlgmr.msra.gmra.mrb[32].mxu0 %v1083_v11 }
 0x177   : > { %1163 = vmatprep.mubr.f32.mxu0 %v1086_v22  ;;  %3912 = vmatpush3.bf16.msra.mxu0 %v4740_v20 }
 0x178   : > { %3914 = vmatprep.subr.bf16.mxu0 %v4745_v29 }
 0x17a   : > { %1164 = vmatmul.mubr.f32.gmra.mrb[34].mxu0 %v1085_v56 }
 0x17b   : > { %3916 = vmatpush3.bf16.msra.mxu0 %v4745_v29 }
 0x17c   : > { %3918 = vmatprep.subr.bf16.mxu0 %v4756_v44 }
 0x17f   : > { %3920 = vmatpush3.bf16.msra.mxu0 %v4756_v44 }
 0x180   : > { %3922 = vmatprep.subr.bf16.mxu0 %v4766_v47 }
 0x183   : > { %3924 = vmatpush3.bf16.msra.mxu0 %v4766_v47 }
 0x184   : > { %3926 = vmatprep.subr.bf16.mxu0 %v4776_v50 }
 0x187   : > { %3928 = vmatpush3.bf16.msra.mxu0 %v4776_v50 }
 0x188   : > { %3930 = vmatprep.subr.bf16.mxu0 %v4786_v53 }
 0x18b   : > { %3932 = vmatpush3.bf16.msra.mxu0 %v4786_v53 }
 0x18c   : > { %3934 = vmatprep.subr.bf16.mxu0 %v3901_v6 }
 0x18f   : > { %3936 = vmatpush3.bf16.msra.mxu0 %v3901_v6 }
 0x190   : > { %3938 = vmatprep.subr.bf16.mxu0 %v3905_v24 }
 0x193   : > { %3940 = vmatpush3.bf16.msra.mxu0 %v3905_v24 }
 0x194   : > { %3974 = vmatprep.subr.bf16.mxu0 %v4740_v20 }
 0x249   : > { %v3439_v25 = vpop.f32.mrb[32].mxu0 }
 0x24a   : > { %v3440_v30 = vpop.f32.mrb[33].mxu0 }
 0x24b   : > { %v3441_v31 = vadd.f32 %v3440_v30, %v3439_v25 }
 0x24d   : > { %v1161_v32 = vadd.f32 %v3441_v31, %v3330_v26  ;;  %v3442_v33 = vpop.f32.mrb[34].mxu0 }
 0x24e   : > { %v3443_v34 = vpop.f32.mrb[35].mxu0 }
 0x24f   : > { %v3444_v35 = vadd.f32 %v3443_v34, %v3442_v33  ;;  %3593 = vmatprep.mubr.f32.mxu1 %v1161_v32 }
 0x251   : > { %v1166_v38 = vadd.f32 %v3444_v35, %v3330_v26 }
 0x253   : > { %3594 = vmatmul.mubr.f32.vlgmr.msra.gmra.mrb[32].mxu1 %v1166_v38 }
 0x254   : > { %3944 = vmatpush3.bf16.msra.mxu1 %v4740_v20 }
 0x255   : > { %3946 = vmatprep.subr.bf16.mxu1 %v4745_v29 }
 0x258   : > { %3948 = vmatpush3.bf16.msra.mxu1 %v4745_v29 }
 0x259   : > { %3950 = vmatprep.subr.bf16.mxu1 %v4756_v44 }
 0x25c   : > { %3952 = vmatpush3.bf16.msra.mxu1 %v4756_v44 }
 0x25d   : > { %3954 = vmatprep.subr.bf16.mxu1 %v4766_v47 }
 0x260   : > { %3956 = vmatpush3.bf16.msra.mxu1 %v4766_v47 }
 0x261   : > { %3958 = vmatprep.subr.bf16.mxu1 %v4776_v50 }
 0x264   : > { %3960 = vmatpush3.bf16.msra.mxu1 %v4776_v50 }
 0x265   : > { %3962 = vmatprep.subr.bf16.mxu1 %v4786_v53 }
 0x268   : > { %3964 = vmatpush3.bf16.msra.mxu1 %v4786_v53 }
 0x269   : > { %3966 = vmatprep.subr.bf16.mxu1 %v3901_v6 }
 0x26c   : > { %3968 = vmatpush3.bf16.msra.mxu1 %v3901_v6 }
 0x26d   : > { %3970 = vmatprep.subr.bf16.mxu1 %v3905_v24 }
 0x270   : > { %3972 = vmatpush3.bf16.msra.mxu1 %v3905_v24 }
 0x326   : > { %v3595_v39 = vpop.f32.mrb[32].mxu1 }
 0x327   : > { %v1263_v40 = vsub.f32 %v1166_v38, %v3595_v39  ;;  %v1253_v41 = vpop.f32.mrb[33].mxu1 }
 0x328   : > { %v1262_v42 = vsub.f32 %v1161_v32, %v1253_v41 }
 0x329   : > { %v1265_v3 = vmul.f32 %v1263_v40, %v1263_v40 }
 0x32a   : > { %v1264_v43 = vmul.f32 %v1262_v42, %v1262_v42 }
 0x32c   : > { %3628 = vmatprep.mubr.f32.mxu0 %v1264_v43 }
 0x32d   : > { %3629 = vmatmul.mubr.f32.vlgmr.msra.gmra.mrb[36].mxu0 %v1265_v3 }
 0x32e   : > { %3976 = vmatpush3.bf16.msra.mxu0 %v4740_v20 }
 0x32f   : > { %3978 = vmatprep.subr.bf16.mxu0 %v4745_v29 }
 0x332   : > { %3980 = vmatpush3.bf16.msra.mxu0 %v4745_v29 }
 0x333   : > { %3982 = vmatprep.subr.bf16.mxu0 %v4756_v44 }
 0x336   : > { %3984 = vmatpush3.bf16.msra.mxu0 %v4756_v44 }
 0x337   : > { %3986 = vmatprep.subr.bf16.mxu0 %v4766_v47 }
 0x33a   : > { %3988 = vmatpush3.bf16.msra.mxu0 %v4766_v47  ;;  %v4872_v47 = vshrl.u32 %v1385_v12, 7 }
 0x33b   : > { %3990 = vmatprep.subr.bf16.mxu0 %v4776_v50 }
 0x33c   : > { %v4881_v45 = vsub.s32 2, %v4872_v47  ;;  %v4889_v49 = vsub.s32 0, %v4872_v47  ;;  %v4892_v51 = vsub.s32 1, %v4872_v47  ;;  %v4905_v57 = vsub.s32 7, %v4872_v47 }
 0x33d   : > { %v4908_v58 = vsub.s32 6, %v4872_v47  ;;  %v4911_v60 = vsub.s32 5, %v4872_v47 }
 0x33e   : > { %3992 = vmatpush3.bf16.msra.mxu0 %v4776_v50  ;;  %v3331_v50 = vld [vmem:[%s5688_s5] ss:$0 sm:$0xff]  ;;  %5717 = vst [vmem:[#allocation2_spill] sm:$0xff] %v4889_v49  ;;  %5719 = vst [vmem:[#allocation4_spill] sm:$0xff] %v4905_v57  ;;  %v1779_v2 = vrot.slane %v4886_v48, %v4881_v45  ;;  %v1798_v7 = vrot.slane %v4897_v54, %v4892_v51  ;;  %v1817_v8 = vrot.slane %v4902_v55, %v4889_v49 }
 0x33f   : > { %3994 = vmatprep.subr.bf16.mxu0 %v4786_v53  ;;  %5720 = vst [vmem:[#allocation5_spill] sm:$0xff] %v4908_v58  ;;  %5721 = vst [vmem:[#allocation6_spill] sm:$0xff] %v4911_v60  ;;  %v1836_v10 = vrot.slane %v4902_v55, %v4905_v57  ;;  %v1855_v13 = vrot.slane %v4918_v0, %v4908_v58  ;;  %v1874_v16 = vrot.slane %v4923_v1, %v4911_v60 }
 0x342   : > { %3996 = vmatpush3.bf16.msra.mxu0 %v4786_v53 }
 0x343   : > { %3998 = vmatprep.subr.bf16.mxu0 %v3901_v6 }
 0x346   : > { %4000 = vmatpush3.bf16.msra.mxu0 %v3901_v6 }
 0x347   : > { %4002 = vmatprep.subr.bf16.mxu0 %v3905_v24 }
 0x34a   : > { %4004 = vmatpush3.bf16.msra.mxu0 %v3905_v24 }
 0x400   : > { %v3630_v20 = vpop.f32.mrb[36].mxu0 }
 0x401   : > { %v1338_v29 = vadd.f32 1e-06, %v3630_v20  ;;  %v1332_v27 = vpop.f32.mrb[37].mxu0 }
 0x402   : > { %v1333_v44 = vadd.f32 1e-06, %v1332_v27 }
 0x403   : > { %4101 = vrsqrt.f32 %v1338_v29 }
 0x404   : > { %4103 = vrsqrt.f32 %v1333_v44 }
 0x40d   : > { %v4102_v15 = vpop.eup %4101 }
 0x40e   : > { %v4104_v28 = vpop.eup %4103  ;;  %v1344_v53 = vmul.f32 %v4102_v15, %v1263_v40 }
 0x40f   : > { %v1343_v37 = vmul.f32 %v4104_v28, %v1262_v42 }
 0x410   : > { %v1352_v46 = vmul.f32 %v3331_v50, %v1344_v53 }
 0x411   : > { %v1351_v52 = vmul.f32 %v3331_v50, %v1343_v37 }
 0x412   : > { %v4913_v63 = vadd.f32 %v3332_v36, %v1352_v46 }
 0x413   : > { %v4925_v59 = vadd.f32 %v3332_v36, %v1351_v52 }
 0x414   : > { %5722 = vst [vmem:[#allocation7_spill] sm:$0xff] %v4913_v63  ;;  %v1365_v5 = vrot.slane %v4913_v63, 5 }
 0x415   : > { %5724 = vst [vmem:[#allocation9_spill] sm:$0xff] %v4925_v59  ;;  %v1364_v9 = vrot.slane %v4925_v59, 5 }
 0x416   : > { %v4942_v18 = vsel %vm1363_vm1, %v1365_v5, 0.0 }
 0x417   : > { %v4945_v4 = vsel %vm1363_vm1, %v1364_v9, %v1365_v5  ;;  %v4948_v19 = vsel %vm1363_vm1, 0.0, %v1364_v9  ;;  %1383 = vrot.lane.b32.xlu1 %v4942_v18, %s4134_s27  ;;  %v1782_v21 = vmul.f32 %v1779_v2, %v4942_v18  ;;  %v1801_v56 = vmul.f32 %v1798_v7, %v4942_v18 }
 0x418   : > { %1379 = vrot.lane.b32.xlu0 %v4948_v19, %s4134_s27  ;;  %v1780_v23 = vmul.f32 %v1779_v2, %v4948_v19  ;;  %v1781_v11 = vmul.f32 %v1779_v2, %v4945_v4  ;;  %v1799_v22 = vmul.f32 %v1798_v7, %v4948_v19  ;;  %v1818_v61 = vmul.f32 %v1817_v8, %v4948_v19 }
 0x419   : > { %v1837_v62 = vmul.f32 %v1836_v10, %v4948_v19  ;;  %v1856_v6 = vmul.f32 %v1855_v13, %v4948_v19  ;;  %v1875_v14 = vmul.f32 %v1874_v16, %v4948_v19  ;;  %v1800_v26 = vmul.f32 %v1798_v7, %v4945_v4 }
 0x41a   : > { %v1786_v17 = vrot.slane %v1780_v23, 1  ;;  %v1787_v24 = vrot.slane %v1781_v11, 1  ;;  %v1805_v25 = vrot.slane %v1799_v22, 2  ;;  %v1824_v30 = vrot.slane %v1818_v61, 3  ;;  %v5031_v22 = vld [vmem:[%s5690_s7] sm:$0xff] }
 0x41b   : > { %1512 = vrot.lane.b32.xlu1 %v4948_v19, %s4135_s28  ;;  %v1843_v31 = vrot.slane %v1837_v62, 4  ;;  %v1862_v32 = vrot.slane %v1856_v6, 5  ;;  %v1881_v33 = vrot.slane %v1875_v14, 6  ;;  %v1806_v35 = vrot.slane %v1800_v26, 2 }
 0x41c   : > { %1381 = vrot.lane.b32.xlu0 %v4945_v4, %s4134_s27  ;;  %v4965_v34 = vsel %vm1403_vm2, %v1786_v17, %v1787_v24  ;;  %v1819_v38 = vmul.f32 %v1817_v8, %v4945_v4  ;;  %v1838_v39 = vmul.f32 %v1836_v10, %v4945_v4  ;;  %v1857_v40 = vmul.f32 %v1855_v13, %v4945_v4 }
 0x41d   : > { %5725 = vst [vmem:[#allocation10_spill] sm:$0xff] %v4965_v34  ;;  %v1876_v41 = vmul.f32 %v1874_v16, %v4945_v4  ;;  %v1789_v42 = vrot.slane %v1782_v21, 1  ;;  %v1808_v43 = vrot.slane %v1801_v56, 2  ;;  %v4972_v3 = vsel %vm1423_vm3, %v1805_v25, %v1806_v35 }
 0x41e   : > { %5726 = vst [vmem:[#allocation11_spill] sm:$0xff] %v4972_v3  ;;  %v1825_v20 = vrot.slane %v1819_v38, 3  ;;  %v1844_v29 = vrot.slane %v1838_v39, 4  ;;  %v1863_v27 = vrot.slane %v1857_v40, 5  ;;  %v1820_v53 = vmul.f32 %v1817_v8, %v4942_v18 }
 0x41f   : > { %1516 = vrot.lane.b32.xlu1 %v4942_v18, %s4135_s28  ;;  %v1882_v44 = vrot.slane %v1876_v41, 6  ;;  %v4976_v12 = vsel %vm1403_vm2, %v1787_v24, %v1789_v42  ;;  %v4979_v15 = vsel %vm1423_vm3, %v1806_v35, %v1808_v43  ;;  %v1839_v36 = vmul.f32 %v1836_v10, %v4942_v18 }
 0x420   : > { %5727 = vst [vmem:[#allocation12_spill] sm:$0xff] %v4976_v12  ;;  %5728 = vst [vmem:[#allocation13_spill] sm:$0xff] %v4979_v15  ;;  %1514 = vrot.lane.b32.xlu0 %v4945_v4, %s4135_s28  ;;  %v4983_v50 = vsel %vm1443_vm4, %v1824_v30, %v1825_v20  ;;  %v4986_v28 = vsel %vm1463_vm5, %v1843_v31, %v1844_v29  ;;  %v4991_v37 = vsel %vm1363_vm1, %v1862_v32, %v1863_v27 }
 0x421   : > { %5729 = vst [vmem:[#allocation14_spill] sm:$0xff] %v4983_v50  ;;  %5730 = vst [vmem:[#allocation15_spill] sm:$0xff] %v4986_v28  ;;  %v4994_v46 = vsel %vm1502_vm6, %v1881_v33, %v1882_v44  ;;  %v1858_v52 = vmul.f32 %v1855_v13, %v4942_v18  ;;  %v1877_v2 = vmul.f32 %v1874_v16, %v4942_v18  ;;  %v1827_v5 = vrot.slane %v1820_v53, 3 }
 0x422   : > { %5731 = vst [vmem:[#allocation16_spill] sm:$0xff] %v4991_v37  ;;  %5732 = vst [vmem:[#allocation17_spill] sm:$0xff] %v4994_v46  ;;  %v1846_v7 = vrot.slane %v1839_v36, 4  ;;  %v5023_v16 = vsub.s32 4, %v4872_v47  ;;  %v5026_v11 = vsub.s32 3, %v4872_v47  ;;  %v1396_v56 = vrot.slane %v5031_v22, %v4905_v57 }
 0x423   : > { %1642 = vrot.lane.b32.xlu1 %v4945_v4, %s4136_s30  ;;  %v1865_v8 = vrot.slane %v1858_v52, 5  ;;  %v1884_v9 = vrot.slane %v1877_v2, 6  ;;  %v5001_v10 = vsel %vm1443_vm4, %v1825_v20, %v1827_v5  ;;  %v1416_v61 = vrot.slane %v4886_v48, %v4908_v58 }
 0x424   : > { %1640 = vrot.lane.b32.xlu0 %v4948_v19, %s4136_s30  ;;  %5733 = vst [vmem:[#allocation18_spill] sm:$0xff] %v5001_v10  ;;  %v5004_v21 = vsel %vm1463_vm5, %v1844_v29, %v1846_v7  ;;  %v1456_v62 = vrot.slane %v4902_v55, %v5023_v16  ;;  %v1476_v47 = vrot.slane %v4918_v0, %v5026_v11 }
 0x425   : > { %5734 = vst [vmem:[#allocation19_spill] sm:$0xff] %v5004_v21  ;;  %v5007_v23 = vsel %vm1363_vm1, %v1863_v27, %v1865_v8  ;;  %v5011_v13 = vsel %vm1502_vm6, %v1882_v44, %v1884_v9  ;;  %v5045_v6 = vrot.slane %v4923_v1, %v4881_v45  ;;  %v5049_v17 = vrot.slane %v5031_v22, %v5026_v11 }
 0x426   : > { %5735 = vst [vmem:[#allocation20_spill] sm:$0xff] %v5007_v23  ;;  %5736 = vst [vmem:[#allocation21_spill] sm:$0xff] %v5011_v13  ;;  %v1388_v24 = vrot.slane %v5031_v22, %v4889_v49  ;;  %v5055_v26 = vrot.slane %v5031_v22, %v4892_v51  ;;  %v5059_v30 = vrot.slane %v4886_v48, %v4889_v49 }
 0x427   : > { %1890 = vrot.lane.b32.xlu1 %v4948_v19, %s4137_s0  ;;  %v5063_v31 = vrot.slane %v4886_v48, %v4905_v57  ;;  %v5067_v32 = vrot.slane %v4897_v54, %v4908_v58  ;;  %v5071_v33 = vrot.slane %v4902_v55, %v4911_v60  ;;  %v5075_v35 = vrot.slane %v4918_v0, %v5023_v16 }
 0x428   : > { %1644 = vrot.lane.b32.xlu0 %v4942_v18, %s4136_s30  ;;  %v5079_v38 = vrot.slane %v4923_v1, %v5026_v11  ;;  %v5090_v29 = vrot.slane %v5031_v22, %v4881_v45  ;;  %v5094_v27 = vmul.f32 %v5049_v17, %v4948_v19  ;;  %v5098_v53 = vrot.slane %v4886_v48, %v4892_v51 }
 0x429   : > { %v5102_v36 = vrot.slane %v4897_v54, %v4889_v49  ;;  %v5106_v52 = vrot.slane %v4897_v54, %v4905_v57  ;;  %v5114_v8 = vrot.slane %v4918_v0, %v4911_v60 }
 0x42a   : > { %5737 = vst [vmem:[#allocation22_spill] sm:$0xff] %v5094_v27 }
 0x42b   : > { %1894 = vrot.lane.b32.xlu1 %v4942_v18, %s4137_s0 }
 0x42c   : > { %1892 = vrot.lane.b32.xlu0 %v4945_v4, %s4137_s0 }
 0x42f   : > { %2020 = vrot.lane.b32.xlu1 %v4945_v4, %s4138_s17 }
 0x430   : > { %2018 = vrot.lane.b32.xlu0 %v4948_v19, %s4138_s17 }
 0x433   : > { %2146 = vrot.lane.b32.xlu1 %v4948_v19, %s4139_s18  ;;  %v5110_v19 = vrot.slane %v4902_v55, %v4908_v58 }
 0x434   : > { %2022 = vrot.lane.b32.xlu0 %v4942_v18, %s4138_s17 }
 0x437   : > { %2150 = vrot.lane.b32.xlu1 %v4942_v18, %s4139_s18  ;;  %v1436_v18 = vrot.slane %v4897_v54, %v4911_v60 }
 0x438   : > { %2148 = vrot.lane.b32.xlu0 %v4945_v4, %s4139_s18 }
 0x489   : > { %v1384_v14 = vpop.permute.xlu1 %1383 }
 0x48a   : > { %v1380_v25 = vpop.permute.xlu0 %1379  ;;  %v1399_v39 = vmul.f32 %v1396_v56, %v1384_v14  ;;  %v1419_v40 = vmul.f32 %v1416_v61, %v1384_v14  ;;  %v1439_v41 = vmul.f32 %v1436_v18, %v1384_v14  ;;  %v5081_v42 = vmul.f32 %v1456_v62, %v1384_v14 }
 0x48b   : > { %v5083_v43 = vmul.f32 %v1476_v47, %v1384_v14  ;;  %v5086_v20 = vmul.f32 %v5045_v6, %v1384_v14  ;;  %v1397_v44 = vmul.f32 %v1396_v56, %v1380_v25  ;;  %v1389_v2 = vmul.f32 %v1388_v24, %v1380_v25 }
 0x48c   : > { %v1417_v5 = vmul.f32 %v1416_v61, %v1380_v25  ;;  %v1407_v9 = vrot.slane %v1399_v39, 1  ;;  %v1427_v14 = vrot.slane %v1419_v40, 2  ;;  %v1447_v63 = vrot.slane %v1439_v41, 3 }
 0x48d   : > { %v1467_v59 = vrot.slane %v5081_v42, 4  ;;  %v1513_v13 = vpop.permute.xlu1 %1512  ;;  %v1486_v23 = vrot.slane %v5083_v43, 5  ;;  %v1437_v10 = vmul.f32 %v1436_v18, %v1380_v25  ;;  %v1457_v46 = vmul.f32 %v1456_v62, %v1380_v25 }
 0x48e   : > { %v1382_v7 = vpop.permute.xlu0 %1381  ;;  %v1404_v15 = vrot.slane %v1397_v44, 1  ;;  %v1477_v37 = vmul.f32 %v1476_v47, %v1380_v25  ;;  %v1496_v12 = vmul.f32 %v5045_v6, %v1380_v25  ;;  %v1424_v50 = vrot.slane %v1417_v5, 2 }
 0x48f   : > { %v1398_v28 = vmul.f32 %v1396_v56, %v1382_v7  ;;  %v5121_v3 = vmul.f32 %v5055_v26, %v1513_v13  ;;  %v1418_v39 = vmul.f32 %v1416_v61, %v1382_v7  ;;  %v1438_v40 = vmul.f32 %v1436_v18, %v1382_v7 }
 0x490   : > { %v5124_v41 = vmul.f32 %v5059_v30, %v1513_v13  ;;  %v5127_v42 = vmul.f32 %v5063_v31, %v1513_v13  ;;  %v1458_v21 = vmul.f32 %v1456_v62, %v1382_v7  ;;  %v1444_v34 = vrot.slane %v1437_v10, 3 }
 0x491   : > { %v1405_v43 = vrot.slane %v1398_v28, 1  ;;  %v1464_v44 = vrot.slane %v1457_v46, 4  ;;  %v1390_v27 = vmul.f32 %v1388_v24, %v1382_v7  ;;  %v1425_v60 = vrot.slane %v1418_v39, 2  ;;  %v1517_v46 = vpop.permute.xlu1 %1516 }
 0x492   : > { %v1445_v5 = vrot.slane %v1438_v40, 3  ;;  %v1478_v58 = vmul.f32 %v1476_v47, %v1382_v7  ;;  %v1483_v61 = vrot.slane %v1477_v37, 5  ;;  %v1503_v18 = vrot.slane %v1496_v12, 6 }
 0x493   : > { %v1406_v56 = vsel %vm1403_vm2, %v1404_v15, %v1405_v43  ;;  %v1408_v25 = vsel %vm1403_vm2, %v1405_v43, %v1407_v9  ;;  %v1426_v49 = vsel %vm1423_vm3, %v1424_v50, %v1425_v60  ;;  %v1428_v55 = vsel %vm1423_vm3, %v1425_v60, %v1427_v14 }
 0x494   : > { %v1411_v57 = vadd.f32 %v1406_v56, %v1389_v2  ;;  %v1412_v0 = vadd.f32 %v1408_v25, %v1390_v27  ;;  %v1465_v28 = vrot.slane %v1458_v21, 4  ;;  %v1497_v10 = vmul.f32 %v5045_v6, %v1382_v7  ;;  %v1515_v2 = vpop.permute.xlu0 %1514 }
 0x495   : > { %v1536_v62 = vrot.slane %v5124_v41, 1  ;;  %v1555_v15 = vrot.slane %v5127_v42, 2  ;;  %v1568_v47 = vmul.f32 %v5067_v32, %v1513_v13  ;;  %v1446_v12 = vsel %vm1443_vm4, %v1444_v34, %v1445_v5 }
 0x496   : > { %v1431_v24 = vadd.f32 %v1426_v49, %v1411_v57  ;;  %v1432_v9 = vadd.f32 %v1428_v55, %v1412_v0  ;;  %v1448_v37 = vsel %vm1443_vm4, %v1445_v5, %v1447_v63  ;;  %v1484_v27 = vrot.slane %v1478_v58, 5 }
 0x497   : > { %v5140_v50 = vmul.f32 %v5071_v33, %v1513_v13  ;;  %v1532_v6 = vmul.f32 %v5059_v30, %v1517_v46  ;;  %v5144_v7 = vmul.f32 %v5075_v35, %v1513_v13  ;;  %v1466_v49 = vsel %vm1463_vm5, %v1464_v44, %v1465_v28 }
 0x498   : > { %v1451_v60 = vadd.f32 %v1446_v12, %v1431_v24  ;;  %v1452_v21 = vadd.f32 %v1448_v37, %v1432_v9  ;;  %v1468_v55 = vsel %vm1463_vm5, %v1465_v28, %v1467_v59  ;;  %v1504_v57 = vrot.slane %v1497_v10, 6 }
 0x499   : > { %v5149_v0 = vmul.f32 %v5079_v38, %v1513_v13  ;;  %v1551_v34 = vmul.f32 %v5063_v31, %v1517_v46  ;;  %v1485_v14 = vsel %vm1363_vm1, %v1483_v61, %v1484_v27  ;;  %v1487_v39 = vsel %vm1363_vm1, %v1484_v27, %v1486_v23 }
 0x49a   : > { %v1471_v58 = vadd.f32 %v1466_v49, %v1451_v60  ;;  %v1472_v63 = vadd.f32 %v1468_v55, %v1452_v21  ;;  %v1531_v40 = vmul.f32 %v5059_v30, %v1515_v2  ;;  %v1550_v41 = vmul.f32 %v5063_v31, %v1515_v2 }
 0x49b   : > { %v1539_v43 = vrot.slane %v1532_v6, 1  ;;  %v1570_v59 = vmul.f32 %v5067_v32, %v1517_v46  ;;  %v1505_v13 = vsel %vm1502_vm6, %v1503_v18, %v1504_v57  ;;  %v5738_v56 = vrot.slane %v5086_v20, 6 }
 0x49c   : > { %v1490_v42 = vadd.f32 %v1485_v14, %v1471_v58  ;;  %v1491_v44 = vadd.f32 %v1487_v39, %v1472_v63  ;;  %v1537_v5 = vrot.slane %v1531_v40, 1  ;;  %v1569_v61 = vmul.f32 %v5067_v32, %v1515_v2 }
 0x49d   : > { %v1507_v25 = vsel %vm1502_vm6, %v1504_v57, %v5738_v56  ;;  %v1589_v23 = vmul.f32 %v5071_v33, %v1517_v46  ;;  %v1523_v31 = vmul.f32 %v5055_v26, %v1515_v2  ;;  %v1574_v10 = vrot.slane %v1568_v47, 3 }
 0x49e   : > { %v1510_v28 = vadd.f32 %v1505_v13, %v1490_v42  ;;  %v1511_v30 = vadd.f32 %v1507_v25, %v1491_v44  ;;  %v1558_v24 = vrot.slane %v1551_v34, 2  ;;  %v1556_v9 = vrot.slane %v1550_v41, 2  ;;  %v1641_v44 = vpop.permute.xlu0 %1640 }
 0x49f   : > { %v1588_v12 = vmul.f32 %v5071_v33, %v1515_v2  ;;  %v1608_v18 = vmul.f32 %v5075_v35, %v1517_v46  ;;  %v1607_v27 = vmul.f32 %v5075_v35, %v1515_v2  ;;  %v1577_v60 = vrot.slane %v1570_v59, 3 }
 0x4a0   : > { %v1524_v20 = vadd.f32 %v5121_v3, %v1510_v28  ;;  %v1525_v37 = vadd.f32 %v1523_v31, %v1511_v30  ;;  %v1538_v32 = vsel %vm1403_vm2, %v1536_v62, %v1537_v5  ;;  %v1540_v21 = vsel %vm1403_vm2, %v1537_v5, %v1539_v43  ;;  %v1643_v62 = vpop.permute.xlu1 %1642 }
 0x4a1   : > { %v1575_v6 = vrot.slane %v1569_v61, 3  ;;  %v1596_v49 = vrot.slane %v1589_v23, 4  ;;  %v1627_v26 = vmul.f32 %v5079_v38, %v1517_v46  ;;  %v1557_v33 = vsel %vm1423_vm3, %v1555_v15, %v1556_v9 }
 0x4a2   : > { %v1543_v47 = vadd.f32 %v1538_v32, %v1524_v20  ;;  %v1544_v55 = vadd.f32 %v1540_v21, %v1525_v37  ;;  %v1559_v57 = vsel %vm1423_vm3, %v1556_v9, %v1558_v24  ;;  %v1594_v58 = vrot.slane %v1588_v12, 4 }
 0x4a3   : > { %v1626_v3 = vmul.f32 %v5079_v38, %v1515_v2  ;;  %v1615_v63 = vrot.slane %v1608_v18, 5  ;;  %v1613_v14 = vrot.slane %v1607_v27, 5  ;;  %v1593_v39 = vrot.slane %v5140_v50, 4 }
 0x4a4   : > { %v1562_v35 = vadd.f32 %v1557_v33, %v1543_v47  ;;  %v1563_v34 = vadd.f32 %v1559_v57, %v1544_v55  ;;  %v1612_v40 = vrot.slane %v5144_v7, 5  ;;  %v1576_v46 = vsel %vm1443_vm4, %v1574_v10, %v1575_v6 }
 0x4a5   : > { %v1578_v41 = vsel %vm1443_vm4, %v1575_v6, %v1577_v60  ;;  %v1631_v15 = vrot.slane %v5149_v0, 6  ;;  %v1634_v42 = vrot.slane %v1627_v26, 6  ;;  %v1595_v38 = vsel %vm1463_vm5, %v1593_v39, %v1594_v58 }
 0x4a6   : > { %v1581_v43 = vadd.f32 %v1576_v46, %v1562_v35  ;;  %v1582_v59 = vadd.f32 %v1578_v41, %v1563_v34  ;;  %v1597_v2 = vsel %vm1463_vm5, %v1594_v58, %v1596_v49  ;;  %v1632_v13 = vrot.slane %v1626_v3, 6  ;;  %v1645_v58 = vpop.permute.xlu0 %1644 }
 0x4a7   : > { %v1659_v56 = vmul.f32 %v5098_v53, %v1643_v62  ;;  %v1614_v7 = vsel %vm1363_vm1, %v1612_v40, %v1613_v14  ;;  %v1616_v5 = vsel %vm1363_vm1, %v1613_v14, %v1615_v63  ;;  %v1678_v61 = vmul.f32 %v5102_v36, %v1643_v62 }
 0x4a8   : > { %v1600_v50 = vadd.f32 %v1595_v38, %v1581_v43  ;;  %v1601_v25 = vadd.f32 %v1597_v2, %v1582_v59  ;;  %v5186_v0 = vmul.f32 %v5106_v52, %v1643_v62  ;;  %v1658_v28 = vmul.f32 %v5098_v53, %v1641_v44 }
 0x4a9   : > { %v1677_v23 = vmul.f32 %v5102_v36, %v1641_v44  ;;  %v1752_v30 = vrot.slane %v4923_v1, %v5023_v16  ;;  %v1696_v24 = vmul.f32 %v5106_v52, %v1641_v44  ;;  %v1635_v9 = vsel %vm1502_vm6, %v1632_v13, %v1634_v42 }
 0x4aa   : > { %v1620_v31 = vadd.f32 %v1616_v5, %v1601_v25  ;;  %v1619_v10 = vadd.f32 %v1614_v7, %v1600_v50  ;;  %v1665_v12 = vrot.slane %v1659_v56, 1  ;;  %v1633_v18 = vsel %vm1502_vm6, %v1631_v15, %v1632_v13 }
 0x4ab   : > { %v1664_v20 = vrot.slane %v1658_v28, 1  ;;  %v5196_v37 = vmul.f32 %v5110_v19, %v1643_v62  ;;  %v1650_v60 = vmul.f32 %v5090_v29, %v1641_v44  ;;  %v1715_v32 = vmul.f32 %v5110_v19, %v1641_v44 }
 0x4ac   : > { %v1638_v27 = vadd.f32 %v1633_v18, %v1619_v10  ;;  %v1684_v21 = vrot.slane %v1678_v61, 2  ;;  %v1703_v6 = vrot.slane %v5186_v0, 3  ;;  %v5202_v49 = vmul.f32 %v5114_v8, %v1643_v62  ;;  %v5741_v18 = vld [vmem:[#allocation8_spill] sm:$0xff] }
 0x4ad   : > { %v1683_v26 = vrot.slane %v1677_v23, 2  ;;  %v1639_v47 = vadd.f32 %v1635_v9, %v1620_v31  ;;  %v1702_v33 = vrot.slane %v1696_v24, 3  ;;  %v1734_v57 = vmul.f32 %v5114_v8, %v1641_v44  ;;  %v5739_v9 = vld [vmem:[#allocation3_spill] sm:$0xff] }
 0x4ae   : > { %v1652_v55 = vadd.f32 %v1650_v60, %v1638_v27  ;;  %v1651_v3 = vmul.f32 %v5090_v29, %v1643_v62  ;;  %v5206_v63 = vmul.f32 %v1752_v30, %v1643_v62  ;;  %v1666_v35 = vsel %vm1403_vm2, %v1664_v20, %v1665_v12  ;;  %v5742_v60 = vld [vmem:[#allocation4_spill] sm:$0xff] }
 0x4af   : > { %v5211_v34 = vmul.f32 %v5049_v17, %v4945_v4  ;;  %v1722_v14 = vrot.slane %v5196_v37, 4  ;;  %v1721_v40 = vrot.slane %v1715_v32, 4  ;;  %v1753_v46 = vmul.f32 %v1752_v30, %v1641_v44 }
 0x4b0   : > { %v1671_v39 = vadd.f32 %v1666_v35, %v1652_v55  ;;  %v1741_v41 = vrot.slane %v5202_v49, 5  ;;  %v1685_v15 = vsel %vm1423_vm3, %v1683_v26, %v1684_v21  ;;  %v5218_v29 = vrot.slane %v5031_v22, %v5023_v16  ;;  %v1891_v49 = vpop.permute.xlu1 %1890 }
 0x4b1   : > { %v1660_v62 = vmul.f32 %v5098_v53, %v1645_v58  ;;  %v1653_v42 = vadd.f32 %v1651_v3, %v1639_v47  ;;  %v1704_v4 = vsel %vm1443_vm4, %v1702_v33, %v1703_v6  ;;  %v1740_v17 = vrot.slane %v1734_v57, 5  ;;  %v5743_v47 = vld [vmem:[#allocation5_spill] sm:$0xff]  ;;  %v5744_v57 = vld [vmem:[#allocation6_spill] sm:$0xff] }
 0x4b2   : > { %v1690_v43 = vadd.f32 %v1685_v15, %v1671_v39  ;;  %v1679_v38 = vmul.f32 %v5102_v36, %v1645_v58  ;;  %v1698_v44 = vmul.f32 %v5106_v52, %v1645_v58  ;;  %v1717_v2 = vmul.f32 %v5110_v19, %v1645_v58  ;;  %v5745_v39 = vld [vmem:[#allocation22_spill] sm:$0xff] }
 0x4b3   : > { %v1667_v59 = vrot.slane %v1660_v62, 1  ;;  %v1760_v13 = vrot.slane %v5206_v63, 6  ;;  %v1723_v50 = vsel %vm1463_vm5, %v1721_v40, %v1722_v14  ;;  %v1759_v25 = vrot.slane %v1753_v46, 6 }
 0x4b4   : > { %v1709_v56 = vadd.f32 %v1704_v4, %v1690_v43  ;;  %v1686_v7 = vrot.slane %v1679_v38, 2  ;;  %v1705_v5 = vrot.slane %v1698_v44, 3  ;;  %v1736_v61 = vmul.f32 %v5114_v8, %v1645_v58  ;;  %v5740_v8 = vld [vmem:[#allocation2_spill] sm:$0xff] }
 0x4b5   : > { %v1668_v53 = vsel %vm1403_vm2, %v1665_v12, %v1667_v59  ;;  %v1907_v36 = vrot.slane %v4886_v48, %v5026_v11  ;;  %v5233_v52 = vrot.slane %v4897_v54, %v4881_v45  ;;  %v1742_v28 = vsel %vm1363_vm1, %v1740_v17, %v1741_v41  ;;  %v5746_v17 = vld [vmem:[#allocation10_spill] sm:$0xff] }
 0x4b6   : > { %v1728_v0 = vadd.f32 %v1723_v50, %v1709_v56  ;;  %v1672_v19 = vadd.f32 %v1668_v53, %v1653_v42  ;;  %v1687_v23 = vsel %vm1423_vm3, %v1684_v21, %v1686_v7  ;;  %v1724_v31 = vrot.slane %v1717_v2, 4  ;;  %v1895_v53 = vpop.permute.xlu1 %1894  ;;  %v5747_v7 = vld [vmem:[#allocation11_spill] sm:$0xff] }
 0x4b7   : > { %v1755_v10 = vmul.f32 %v1752_v30, %v1645_v58  ;;  %v1945_v12 = vrot.slane %v5739_v9, %v4892_v51  ;;  %v5241_v20 = vrot.slane %v5741_v18, %v5740_v8  ;;  %v1761_v27 = vsel %vm1502_vm6, %v1759_v25, %v1760_v13 }
 0x4b8   : > { %v1747_v24 = vadd.f32 %v1742_v28, %v1728_v0  ;;  %v1691_v37 = vadd.f32 %v1687_v23, %v1672_v19  ;;  %v5246_v32 = vrot.slane %v5741_v18, %v5742_v60  ;;  %v1706_v21 = vsel %vm1443_vm4, %v1703_v6, %v1705_v5  ;;  %v5748_v23 = vld [vmem:[#allocation14_spill] sm:$0xff] }
 0x4b9   : > { %v1743_v26 = vrot.slane %v1736_v61, 5  ;;  %v5251_v55 = vrot.slane %v4923_v1, %v5743_v47  ;;  %v5255_v58 = vrot.slane %v5031_v22, %v5744_v57  ;;  %v1725_v3 = vsel %vm1463_vm5, %v1722_v14, %v1724_v31 }
 0x4ba   : > { %v1766_v30 = vadd.f32 %v1761_v27, %v1747_v24  ;;  %v1710_v33 = vadd.f32 %v1706_v21, %v1691_v37  ;;  %v1762_v63 = vrot.slane %v1755_v10, 6  ;;  %v5260_v35 = vrot.slane %v4886_v48, %v5023_v16  ;;  %v5749_v21 = vld [vmem:[#allocation15_spill] sm:$0xff] }
 0x4bb   : > { %v5264_v6 = vrot.slane %v4897_v54, %v5026_v11  ;;  %v5269_v15 = vrot.slane %v5739_v9, %v4881_v45  ;;  %v5273_v62 = vrot.slane %v5741_v18, %v4892_v51  ;;  %v1744_v14 = vsel %vm1363_vm1, %v1741_v41, %v1743_v26 }
 0x4bc   : > { %v1774_v40 = vadd.f32 %v5745_v39, %v1766_v30  ;;  %v1729_v46 = vadd.f32 %v1725_v3, %v1710_v33  ;;  %v5278_v42 = vrot.slane %v4923_v1, %v5740_v8  ;;  %v5282_v43 = vrot.slane %v4923_v1, %v5742_v60  ;;  %v5750_v33 = vld [vmem:[#allocation12_spill] sm:$0xff] }
 0x4bd   : > { %v5286_v4 = vrot.slane %v4886_v48, %v5744_v57  ;;  %v1908_v38 = vmul.f32 %v1907_v36, %v1891_v49  ;;  %v5291_v2 = vrot.slane %v4897_v54, %v5023_v16  ;;  %v1927_v41 = vmul.f32 %v5233_v52, %v1891_v49  ;;  %v1893_v54 = vpop.permute.xlu0 %1892  ;;  %v5751_v39 = vld [vmem:[#allocation16_spill] sm:$0xff] }
 0x4be   : > { %v1793_v59 = vadd.f32 %v5746_v17, %v1774_v40  ;;  %v1748_v44 = vadd.f32 %v1744_v14, %v1729_v46  ;;  %v1946_v56 = vmul.f32 %v1945_v12, %v1891_v49  ;;  %v5295_v50 = vmul.f32 %v5241_v20, %v1891_v49  ;;  %v5752_v46 = vld [vmem:[#allocation13_spill] sm:$0xff] }
 0x4bf   : > { %v1763_v25 = vsel %vm1502_vm6, %v1760_v13, %v1762_v63  ;;  %v5300_v5 = vmul.f32 %v5246_v32, %v1891_v49  ;;  %v5303_v61 = vmul.f32 %v5251_v55, %v1891_v49  ;;  %v1900_v16 = vmul.f32 %v5218_v29, %v1891_v49 }
 0x4c0   : > { %v1812_v48 = vadd.f32 %v5747_v7, %v1793_v59  ;;  %v1767_v0 = vadd.f32 %v1763_v25, %v1748_v44  ;;  %v5308_v19 = vrot.slane %v5739_v9, %v5026_v11  ;;  %v5312_v13 = vrot.slane %v5741_v18, %v4881_v45  ;;  %v5754_v25 = vld [vmem:[#allocation18_spill] sm:$0xff] }
 0x4c1   : > { %v5316_v28 = vrot.slane %v4923_v1, %v4892_v51  ;;  %v1914_v10 = vrot.slane %v1908_v38, 1  ;;  %v1910_v37 = vmul.f32 %v1907_v36, %v1895_v53  ;;  %v1933_v27 = vrot.slane %v1927_v41, 2 }
 0x4c2   : > { %v1831_v31 = vadd.f32 %v5748_v23, %v1812_v48  ;;  %v1775_v24 = vadd.f32 %v5211_v34, %v1767_v0  ;;  %v1952_v60 = vrot.slane %v1946_v56, 3  ;;  %v1971_v49 = vrot.slane %v5295_v50, 4  ;;  %v5753_v56 = vld [vmem:[#allocation17_spill] sm:$0xff] }
 0x4c3   : > { %v1909_v9 = vmul.f32 %v1907_v36, %v1893_v54  ;;  %v1990_v18 = vrot.slane %v5300_v5, 5  ;;  %v2009_v30 = vrot.slane %v5303_v61, 6  ;;  %v1929_v57 = vmul.f32 %v5233_v52, %v1895_v53 }
 0x4c4   : > { %v1850_v26 = vadd.f32 %v5749_v21, %v1831_v31  ;;  %v1794_v1 = vadd.f32 %v5750_v33, %v1775_v24  ;;  %v1948_v3 = vmul.f32 %v1945_v12, %v1895_v53  ;;  %v1928_v63 = vmul.f32 %v5233_v52, %v1893_v54 }
 0x4c5   : > { %v1947_v34 = vmul.f32 %v1945_v12, %v1893_v54  ;;  %v1917_v17 = vrot.slane %v1910_v37, 1  ;;  %v1967_v36 = vmul.f32 %v5241_v20, %v1895_v53  ;;  %v1986_v59 = vmul.f32 %v5246_v32, %v1895_v53  ;;  %v5755_v37 = vld [vmem:[#allocation19_spill] sm:$0xff] }
 0x4c6   : > { %v1869_v40 = vadd.f32 %v5751_v39, %v1850_v26  ;;  %v1813_v14 = vadd.f32 %v5752_v46, %v1794_v1  ;;  %v2005_v38 = vmul.f32 %v5251_v55, %v1895_v53  ;;  %v1915_v44 = vrot.slane %v1909_v9, 1  ;;  %v2021_v1 = vpop.permute.xlu1 %2020  ;;  %v5756_v39 = vld [vmem:[#allocation20_spill] sm:$0xff] }
 0x4c7   : > { %v1966_v41 = vmul.f32 %v5241_v20, %v1893_v54  ;;  %v1901_v52 = vmul.f32 %v5218_v29, %v1893_v54  ;;  %v1985_v12 = vmul.f32 %v5246_v32, %v1893_v54  ;;  %v1936_v48 = vrot.slane %v1929_v57, 2 }
 0x4c8   : > { %v1888_v50 = vadd.f32 %v5753_v56, %v1869_v40  ;;  %v1832_v7 = vadd.f32 %v5754_v25, %v1813_v14  ;;  %v1955_v5 = vrot.slane %v1948_v3, 3  ;;  %v1934_v0 = vrot.slane %v1928_v63, 2 }
 0x4c9   : > { %v1953_v23 = vrot.slane %v1947_v34, 3  ;;  %v1974_v24 = vrot.slane %v1967_v36, 4  ;;  %v2004_v53 = vmul.f32 %v5251_v55, %v1893_v54  ;;  %v1993_v9 = vrot.slane %v1986_v59, 5  ;;  %v5757_v54 = vld [vmem:[#allocation21_spill] sm:$0xff]  ;;  %v2019_v36 = vpop.permute.xlu0 %2018 }
 0x4ca   : > { %v1902_v31 = vadd.f32 %v1900_v16, %v1888_v50  ;;  %v1851_v21 = vadd.f32 %v5755_v37, %v1832_v7  ;;  %v2012_v20 = vrot.slane %v2005_v38, 6  ;;  %v1916_v26 = vsel %vm1403_vm2, %v1914_v10, %v1915_v44 }
 0x4cb   : > { %v1972_v33 = vrot.slane %v1966_v41, 4  ;;  %v1918_v32 = vsel %vm1403_vm2, %v1915_v44, %v1917_v17  ;;  %v1991_v3 = vrot.slane %v1985_v12, 5  ;;  %v1935_v63 = vsel %vm1423_vm3, %v1933_v27, %v1934_v0 }
 0x4cc   : > { %v1870_v29 = vadd.f32 %v5756_v39, %v1851_v21  ;;  %v1921_v57 = vadd.f32 %v1916_v26, %v1902_v31  ;;  %v1937_v16 = vsel %vm1423_vm3, %v1934_v0, %v1936_v48  ;;  %v1954_v34 = vsel %vm1443_vm4, %v1952_v60, %v1953_v23 }
 0x4cd   : > { %v1956_v55 = vsel %vm1443_vm4, %v1953_v23, %v1955_v5  ;;  %v2010_v10 = vrot.slane %v2004_v53, 6  ;;  %v5348_v14 = vmul.f32 %v5260_v35, %v2021_v1  ;;  %v1973_v17 = vsel %vm1463_vm5, %v1971_v49, %v1972_v33 }
 0x4ce   : > { %v1889_v40 = vadd.f32 %v5757_v54, %v1870_v29  ;;  %v1940_v46 = vadd.f32 %v1935_v63, %v1921_v57  ;;  %v5352_v59 = vmul.f32 %v5264_v6, %v2021_v1  ;;  %v5355_v27 = vmul.f32 %v5269_v15, %v2021_v1 }
 0x4cf   : > { %v5358_v60 = vmul.f32 %v5273_v62, %v2021_v1  ;;  %v1975_v41 = vsel %vm1463_vm5, %v1972_v33, %v1974_v24  ;;  %v5362_v56 = vmul.f32 %v5278_v42, %v2021_v1  ;;  %v1992_v50 = vsel %vm1363_vm1, %v1990_v18, %v1991_v3 }
 0x4d0   : > { %v1903_v38 = vadd.f32 %v1901_v52, %v1889_v40  ;;  %v1959_v44 = vadd.f32 %v1954_v34, %v1940_v46  ;;  %v1994_v49 = vsel %vm1363_vm1, %v1991_v3, %v1993_v9  ;;  %v2029_v25 = vmul.f32 %v5255_v58, %v2021_v1  ;;  %v2023_v9 = vpop.permute.xlu0 %2022 }
 0x4d1   : > { %v2036_v7 = vmul.f32 %v5260_v35, %v2019_v36  ;;  %v2013_v5 = vsel %vm1502_vm6, %v2010_v10, %v2012_v20  ;;  %v2043_v52 = vrot.slane %v5348_v14, 1  ;;  %v2062_v0 = vrot.slane %v5352_v59, 2 }
 0x4d2   : > { %v1922_v12 = vadd.f32 %v1918_v32, %v1903_v38  ;;  %v1978_v48 = vadd.f32 %v1973_v17, %v1959_v44  ;;  %v2081_v23 = vrot.slane %v5355_v27, 3  ;;  %v2100_v31 = vrot.slane %v5358_v60, 4 }
 0x4d3   : > { %v2055_v18 = vmul.f32 %v5264_v6, %v2019_v36  ;;  %v2119_v37 = vrot.slane %v5362_v56, 5  ;;  %v5376_v21 = vmul.f32 %v5282_v43, %v2021_v1  ;;  %v2011_v20 = vsel %vm1502_vm6, %v2009_v30, %v2010_v10 }
 0x4d4   : > { %v1941_v24 = vadd.f32 %v1937_v16, %v1922_v12  ;;  %v1997_v53 = vadd.f32 %v1992_v50, %v1978_v48  ;;  %v2042_v26 = vrot.slane %v2036_v7, 1  ;;  %v2074_v33 = vmul.f32 %v5269_v15, %v2019_v36  ;;  %v2149_v50 = vpop.permute.xlu0 %2148 }
 0x4d5   : > { %v2093_v39 = vmul.f32 %v5273_v62, %v2019_v36  ;;  %v2028_v57 = vmul.f32 %v5255_v58, %v2019_v36  ;;  %v2112_v3 = vmul.f32 %v5278_v42, %v2019_v36  ;;  %v2061_v63 = vrot.slane %v2055_v18, 2  ;;  %v5391_v58 = vpop.permute.xlu1 %2146 }
 0x4d6   : > { %v1960_v29 = vadd.f32 %v1956_v55, %v1941_v24  ;;  %v2016_v32 = vadd.f32 %v2011_v20, %v1997_v53  ;;  %v2131_v1 = vmul.f32 %v5282_v43, %v2019_v36  ;;  %v2038_v16 = vmul.f32 %v5260_v35, %v2023_v9 }
 0x4d7   : > { %v2057_v61 = vmul.f32 %v5264_v6, %v2023_v9  ;;  %v2138_v30 = vrot.slane %v5376_v21, 6  ;;  %v2076_v40 = vmul.f32 %v5269_v15, %v2023_v9  ;;  %v2044_v55 = vsel %vm1403_vm2, %v2042_v26, %v2043_v52 }
 0x4d8   : > { %v1979_v34 = vadd.f32 %v1975_v41, %v1960_v29  ;;  %v2030_v54 = vadd.f32 %v2028_v57, %v2016_v32  ;;  %v2080_v46 = vrot.slane %v2074_v33, 3  ;;  %v2099_v10 = vrot.slane %v2093_v39, 4 }
 0x4d9   : > { %v2095_v14 = vmul.f32 %v5273_v62, %v2023_v9  ;;  %v2118_v59 = vrot.slane %v2112_v3, 5  ;;  %v2114_v35 = vmul.f32 %v5278_v42, %v2023_v9  ;;  %v2063_v6 = vsel %vm1423_vm3, %v2061_v63, %v2062_v0 }
 0x4da   : > { %v1998_v17 = vadd.f32 %v1994_v49, %v1979_v34  ;;  %v2049_v36 = vadd.f32 %v2044_v55, %v2030_v54  ;;  %v2137_v27 = vrot.slane %v2131_v1, 6  ;;  %v2045_v60 = vrot.slane %v2038_v16, 1 }
 0x4db   : > { %v2064_v38 = vrot.slane %v2057_v61, 2  ;;  %v2083_v41 = vrot.slane %v2076_v40, 3  ;;  %v2133_v56 = vmul.f32 %v5282_v43, %v2023_v9  ;;  %v2082_v7 = vsel %vm1443_vm4, %v2080_v46, %v2081_v23  ;;  %v2151_v9 = vpop.permute.xlu1 %2150 }
 0x4dc   : > { %v2017_v44 = vadd.f32 %v2013_v5, %v1998_v17  ;;  %v2068_v15 = vadd.f32 %v2063_v6, %v2049_v36  ;;  %v2101_v62 = vsel %vm1463_vm5, %v2099_v10, %v2100_v31  ;;  %v2102_v49 = vrot.slane %v2095_v14, 4 }
 0x4dd   : > { %v2155_v12 = vrot.slane %v5031_v22, %v5743_v47  ;;  %v2120_v18 = vsel %vm1363_vm1, %v2118_v59, %v2119_v37  ;;  %v2121_v24 = vrot.slane %v2114_v35, 5  ;;  %v2139_v5 = vsel %vm1502_vm6, %v2137_v27, %v2138_v30 }
 0x4de   : > { %v2031_v42 = vadd.f32 %v2029_v25, %v2017_v44  ;;  %v2087_v48 = vadd.f32 %v2082_v7, %v2068_v15  ;;  %v2046_v43 = vsel %vm1403_vm2, %v2043_v52, %v2045_v60  ;;  %v2065_v53 = vsel %vm1423_vm3, %v2062_v0, %v2064_v38 }
 0x4df   : > { %v2165_v20 = vmul.f32 %v5286_v4, %v2149_v50  ;;  %v2084_v22 = vsel %vm1443_vm4, %v2081_v23, %v2083_v41  ;;  %v2140_v47 = vrot.slane %v2133_v56, 6  ;;  %v2103_v25 = vsel %vm1463_vm5, %v2100_v31, %v2102_v49 }
 0x4e0   : > { %v2106_v26 = vadd.f32 %v2101_v62, %v2087_v48  ;;  %v2050_v33 = vadd.f32 %v2046_v43, %v2031_v42  ;;  %v2164_v39 = vmul.f32 %v5286_v4, %v5391_v58  ;;  %v2183_v29 = vmul.f32 %v5291_v2, %v5391_v58 }
 0x4e1   : > { %v2184_v52 = vmul.f32 %v5291_v2, %v2149_v50  ;;  %v2122_v57 = vsel %vm1363_vm1, %v2119_v37, %v2121_v24  ;;  %v2166_v3 = vmul.f32 %v5286_v4, %v2151_v9  ;;  %v2202_v23 = vmul.f32 %v5308_v19, %v5391_v58 }
 0x4e2   : > { %v2125_v32 = vadd.f32 %v2120_v18, %v2106_v26  ;;  %v2069_v0 = vadd.f32 %v2065_v53, %v2050_v33  ;;  %v2185_v63 = vmul.f32 %v5291_v2, %v2151_v9  ;;  %v2171_v31 = vrot.slane %v2165_v20, 1  ;;  %v3333_v2 = vld [vmem:[%s5690_s7 + $0x30] ss:$0 sm:$0xff] }
 0x4e3   : > { %v2203_v1 = vmul.f32 %v5308_v19, %v2149_v50  ;;  %v2204_v61 = vmul.f32 %v5308_v19, %v2151_v9  ;;  %v2156_v34 = vmul.f32 %v2155_v12, %v5391_v58  ;;  %v2170_v40 = vrot.slane %v2164_v39, 1 }
 0x4e4   : > { %v2088_v16 = vadd.f32 %v2084_v22, %v2069_v0  ;;  %v2144_v54 = vadd.f32 %v2139_v5, %v2125_v32  ;;  %v2189_v55 = vrot.slane %v2183_v29, 2  ;;  %v2190_v46 = vrot.slane %v2184_v52, 2 }
 0x4e5   : > { %v2222_v37 = vmul.f32 %v5312_v13, %v2149_v50  ;;  %v2173_v10 = vrot.slane %v2166_v3, 1  ;;  %v2223_v14 = vmul.f32 %v5312_v13, %v2151_v9  ;;  %v2172_v36 = vsel %vm1403_vm2, %v2170_v40, %v2171_v31 }
 0x4e6   : > { %v2107_v4 = vadd.f32 %v2103_v25, %v2088_v16  ;;  %v2158_v17 = vadd.f32 %v2156_v34, %v2144_v54  ;;  %v2209_v19 = vrot.slane %v2203_v1, 3  ;;  %v2241_v59 = vmul.f32 %v5316_v28, %v2149_v50 }
 0x4e7   : > { %v2221_v35 = vmul.f32 %v5312_v13, %v5391_v58  ;;  %v2141_v6 = vsel %vm1502_vm6, %v2138_v30, %v2140_v47  ;;  %v2260_v60 = vmul.f32 %v3333_v2, %v2149_v50  ;;  %v2228_v44 = vrot.slane %v2222_v37, 4  ;;  %v4026_v37 = vld [vmem:[%s5694_s11 + $0xc] ss:$16 sps:$4 sm:$0xff]  }
 0x4e8   : > { %v2126_v27 = vadd.f32 %v2122_v57, %v2107_v4  ;;  %v2177_v38 = vadd.f32 %v2172_v36, %v2158_v17  ;;  %v2191_v15 = vsel %vm1423_vm3, %v2189_v55, %v2190_v46  ;;  %v2208_v41 = vrot.slane %v2202_v23, 3  ;;  %v3334_v57 = vld [vmem:[%s5691_s8] ss:$0 sm:$0xff]  ;;  %v4029_v4 = vld [vmem:[%s5694_s11 + $0x24] ss:$16 sps:$4 sm:$0xff]   ;;  %2717 = vmatprep.subr.bf16.mxu0 %v4026_v37 }
 0x4e9   : > { %v2240_v56 = vmul.f32 %v5316_v28, %v5391_v58  ;;  %v2192_v7 = vrot.slane %v2185_v63, 2  ;;  %v2157_v49 = vmul.f32 %v2155_v12, %v2149_v50  ;;  %v2247_v48 = vrot.slane %v2241_v59, 5  ;;  %v4021_v55 = vld [vmem:[%s5694_s11] ss:$16 sps:$4 sm:$0xff]  }
 0x4ea   : > { %v2145_v62 = vadd.f32 %v2141_v6, %v2126_v27  ;;  %v2196_v42 = vadd.f32 %v2191_v15, %v2177_v38  ;;  %v2210_v13 = vsel %vm1443_vm4, %v2208_v41, %v2209_v19  ;;  %v2227_v21 = vrot.slane %v2221_v35, 4  ;;  %v4033_v17 = vld [vmem:[%s5694_s11 + $0x40] ss:$16 sps:$4 sm:$0xff]   ;;  %v4024_v6 = vld [vmem:[%s5694_s11 + $0x8] ss:$16 sps:$4 sm:$0xff]  }
 0x4eb   : > { %v2259_v30 = vmul.f32 %v3333_v2, %v5391_v58  ;;  %v2211_v18 = vrot.slane %v2204_v61, 3  ;;  %v2242_v24 = vmul.f32 %v5316_v28, %v2151_v9  ;;  %v2174_v53 = vsel %vm1403_vm2, %v2171_v31, %v2173_v10  ;;  %v4027_v10 = vld [vmem:[%s5694_s11 + $0x20] ss:$16 sps:$4 sm:$0xff]   ;;  %v4030_v38 = vld [vmem:[%s5694_s11 + $0x28] ss:$16 sps:$4 sm:$0xff]  }
 0x4ec   : > { %v2159_v5 = vadd.f32 %v2157_v49, %v2145_v62  ;;  %v2215_v43 = vadd.f32 %v2210_v13, %v2196_v42  ;;  %v2229_v20 = vsel %vm1463_vm5, %v2227_v21, %v2228_v44  ;;  %v2246_v26 = vrot.slane %v2240_v56, 5  ;;  %v4036_v15 = vld [vmem:[%s5694_s11 + $0x48] ss:$16 sps:$4 sm:$0xff]   ;;  %v4039_v41 = vld [vmem:[%s5694_s11 + $0x60] ss:$16 sps:$4 sm:$0xff]  }
 0x4ed   : > { %v2266_v33 = vrot.slane %v2260_v60, 6  ;;  %v2230_v22 = vrot.slane %v2223_v14, 4  ;;  %v2261_v47 = vmul.f32 %v3333_v2, %v2151_v9  ;;  %v2193_v25 = vsel %vm1423_vm3, %v2190_v46, %v2192_v7  ;;  %v4023_v46 = vld [vmem:[%s5694_s11 + $0x4] ss:$16 sps:$4 sm:$0xff]   ;;  %v4032_v60 = vld [vmem:[%s5694_s11 + $0x2c] ss:$16 sps:$4 sm:$0xff]  }
 0x4ee   : > { %v2178_v50 = vadd.f32 %v2174_v53, %v2159_v5  ;;  %v2234_v12 = vadd.f32 %v2229_v20, %v2215_v43  ;;  %v2248_v39 = vsel %vm1363_vm1, %v2246_v26, %v2247_v48  ;;  %v2265_v58 = vrot.slane %v2259_v30, 6  ;;  %2674 = vmatprep.subr.bf16.mxu1 %v4023_v46  ;;  %v4035_v14 = vld [vmem:[%s5694_s11 + $0x44] ss:$16 sps:$4 sm:$0xff]   ;;  %v4042_v7 = vld [vmem:[%s5694_s11 + $0x68] ss:$16 sps:$4 sm:$0xff]  }
 0x4ef   : > { %v2249_v28 = vrot.slane %v2242_v24, 5  ;;  %v2212_v32 = vsel %vm1443_vm4, %v2209_v19, %v2211_v18  ;;  %v2268_v63 = vrot.slane %v2261_v47, 6  ;;  %v2231_v9 = vsel %vm1463_vm5, %v2228_v44, %v2230_v22  ;;  %v4038_v44 = vld [vmem:[%s5694_s11 + $0x4c] ss:$16 sps:$4 sm:$0xff]   ;;  %v4041_v56 = vld [vmem:[%s5694_s11 + $0x64] ss:$16 sps:$4 sm:$0xff]  }
 0x4f0   : > { %v2197_v29 = vadd.f32 %v2193_v25, %v2178_v50  ;;  %v2253_v52 = vadd.f32 %v2248_v39, %v2234_v12  ;;  %v2267_v0 = vsel %vm1502_vm6, %v2265_v58, %v2266_v33  ;;  %v4044_v62 = vld [vmem:[%s5694_s11 + $0x6c] ss:$16 sps:$4 sm:$0xff]   ;;  %v4047_v49 = vld [vmem:[%s5694_s11 + $0x84] ss:$16 sps:$4 sm:$0xff]   ;;  %v4048_v13 = vld [vmem:[%s5694_s11 + $0x88] ss:$16 sps:$4 sm:$0xff]  }
 0x4f1   : > { %v2250_v16 = vsel %vm1363_vm1, %v2247_v48, %v2249_v28  ;;  %v2269_v34 = vsel %vm1502_vm6, %v2266_v33, %v2268_v63  ;;  %v4050_v42 = vld [vmem:[%s5694_s11 + $0x8c] ss:$16 sps:$4 sm:$0xff]   ;;  %v4045_v48 = vld [vmem:[%s5694_s11 + $0x80] ss:$16 sps:$4 sm:$0xff]   ;;  %v4053_v21 = vld [vmem:[%s5694_s11 + $0xa4] ss:$16 sps:$4 sm:$0xff]  }
 0x4f2   : > { %v2216_v3 = vadd.f32 %v2212_v32, %v2197_v29  ;;  %v2272_v23 = vadd.f32 %v2267_v0, %v2253_v52  ;;  %v4056_v30 = vld [vmem:[%s5694_s11 + $0xac] ss:$16 sps:$4 sm:$0xff]   ;;  %v4051_v18 = vld [vmem:[%s5694_s11 + $0xa0] ss:$16 sps:$4 sm:$0xff]   ;;  %v4140_v24 = vmov 0  }
 0x4f3   : > { %v4054_v5 = vld [vmem:[%s5694_s11 + $0xa8] ss:$16 sps:$4 sm:$0xff]   ;;  %v4059_v43 = vld [vmem:[%s5694_s11 + $0xc4] ss:$16 sps:$4 sm:$0xff]   ;;  %v4062_v53 = vld [vmem:[%s5694_s11 + $0xcc] ss:$16 sps:$4 sm:$0xff]  }
 0x4f4   : > { %v2235_v31 = vadd.f32 %v2231_v9, %v2216_v3  ;;  %v2281_v1 = vadd.f32 %v3334_v57, %v2272_v23  ;;  %v4057_v20 = vld [vmem:[%s5694_s11 + $0xc0] ss:$16 sps:$4 sm:$0xff]   ;;  %v4060_v26 = vld [vmem:[%s5694_s11 + $0xc8] ss:$16 sps:$4 sm:$0xff]   ;;  %v4065_v33 = vld [vmem:[%s5694_s11 + $0xe4] ss:$16 sps:$4 sm:$0xff]  }
 0x4f5   : > { %v4068_v22 = vld [vmem:[%s5694_s11 + $0xec] ss:$16 sps:$4 sm:$0xff]   ;;  %v4063_v50 = vld [vmem:[%s5694_s11 + $0xe0] ss:$16 sps:$4 sm:$0xff]   ;;  %v4066_v12 = vld [vmem:[%s5694_s11 + $0xe8] ss:$16 sps:$4 sm:$0xff]  }
 0x4f6   : > { %v2254_v61 = vadd.f32 %v2250_v16, %v2235_v31  ;;  %3663 = vmatprep.mubr.f32.mxu1 %v2281_v1  ;;  %v4069_v47 = vld [vmem:[%s5696_s13 + $0x40] sm:$0xff]   ;;  %v4076_v46 = vld [vmem:[%s5696_s13 + $0x88] sm:$0xff]   ;;  %v4077_v37 = vld [vmem:[%s5696_s13 + $0x50] sm:$0xff]  }
 0x4f7   : > { %v4070_v25 = vld [vmem:[%s5696_s13 + $0xc0] sm:$0xff]  }
 0x4f8   : > { %v2273_v54 = vadd.f32 %v2269_v34, %v2254_v61  ;;  %v3335_v32 = vld [vmem:[%s5692_s9] ss:$0 sm:$0xff] }
 0x4f9   : > { %v3336_v23 = vld [vmem:[%s5693_s10] ss:$0 sm:$0xff] }
 0x4fa   : > { %v2282_v40 = vadd.f32 %v3334_v57, %v2273_v54  ;;  %v4071_v16 = vld [vmem:[%s5696_s13] sm:$0xff]   ;;  %v4073_v54 = vld [vmem:[%s5696_s13 + $0x48] sm:$0xff]  }
 0x4fb   : > { %v4072_v61 = vld [vmem:[%s5696_s13 + $0x80] sm:$0xff]  }
 0x4fc   : > { %3664 = vmatmul.mubr.f32.vlgmr.msra.gmra.mrb[34].mxu1 %v2282_v40 }
 0x4fd   : > { %2675 = vmatpush1.bf16.msra.mxu1 %v4021_v55  ;;  %2706 = vmatprep.mubr.bf16.mxu1 %v4140_v24  ;;  %v4075_v55 = vld [vmem:[%s5696_s13 + $0x8] sm:$0xff]  }
 0x4fe   : > { %2676 = vmatprep.subr.bf16.mxu1 %v4029_v4  ;;  %v4078_v4 = vld [vmem:[%s5696_s13 + $0xd0] sm:$0xff]  }
 0x501   : > { %2677 = vmatpush1.bf16.msra.mxu1 %v4027_v10  ;;  %v4079_v10 = vld [vmem:[%s5696_s13 + $0x10] sm:$0xff]  }
 0x502   : > { %2678 = vmatprep.subr.bf16.mxu1 %v4035_v14  ;;  %v4080_v14 = vld [vmem:[%s5696_s13 + $0x90] sm:$0xff]  }
 0x505   : > { %2679 = vmatpush1.bf16.msra.mxu1 %v4033_v17  ;;  %v4081_v17 = vld [vmem:[%s5696_s13 + $0x58] sm:$0xff]  }
 0x506   : > { %2680 = vmatprep.subr.bf16.mxu1 %v4041_v56  ;;  %v4094_v56 = vld [vmem:[%s5696_s13 + $0xf0] sm:$0xff]  }
 0x509   : > { %2681 = vmatpush1.bf16.msra.mxu1 %v4039_v41  ;;  %v4093_v41 = vld [vmem:[%s5696_s13 + $0x70] sm:$0xff]  }
 0x50a   : > { %2682 = vmatprep.subr.bf16.mxu1 %v4047_v49  ;;  %v4097_v49 = vld [vmem:[%s5696_s13 + $0x78] sm:$0xff]  }
 0x50d   : > { %2683 = vmatpush1.bf16.msra.mxu1 %v4045_v48  ;;  %v4099_v48 = vld [vmem:[%s5696_s13 + $0x38] sm:$0xff]  }
 0x50e   : > { %2684 = vmatprep.subr.bf16.mxu1 %v4053_v21  ;;  %v2492_v21 = vld [vmem:[%s5695_s12] sm:$0xf] }
 0x511   : > { %2685 = vmatpush1.bf16.msra.mxu1 %v4051_v18  ;;  %v2505_v18 = vrot.slane %v2492_v21, %v4881_v45 }
 0x512   : > { %2686 = vmatprep.subr.bf16.mxu1 %v4059_v43 }
 0x515   : > { %2687 = vmatpush1.bf16.msra.mxu1 %v4057_v20 }
 0x516   : > { %2688 = vmatprep.subr.bf16.mxu1 %v4065_v33 }
 0x519   : > { %2689 = vmatpush1.bf16.msra.mxu1 %v4063_v50 }
 0x51a   : > { %3517 = vmatprep.subr.bf16.mxu1 %v4069_v47 }
 0x5cf   : > { %v3665_v2 = vpop.f32.mrb[34].mxu1 }
 0x5d0   : > { %v5474_v36 = vsub.f32 %v2282_v40, %v3665_v2  ;;  %v2351_v19 = vpop.f32.mrb[35].mxu1  ;;  %v4074_v40 = vld [vmem:[%s5696_s13 + $0xc8] sm:$0xff]   ;;  %v4082_v2 = vld [vmem:[%s5696_s13 + $0xd8] sm:$0xff]  }
 0x5d1   : > { %v5476_v59 = vsub.f32 %v2281_v1, %v2351_v19  ;;  %v4084_v19 = vld [vmem:[%s5696_s13 + $0x98] sm:$0xff]  }
 0x5d2   : > { %v2363_v27 = vmul.f32 %v5474_v36, %v5474_v36 }
 0x5d3   : > { %v2362_v35 = vmul.f32 %v5476_v59, %v5476_v59 }
 0x5d5   : > { %3698 = vmatprep.mubr.f32.mxu0 %v2362_v35  ;;  %v4086_v35 = vld [vmem:[%s5696_s13 + $0xe0] sm:$0xff]  }
 0x5d6   : > { %3699 = vmatmul.mubr.f32.vlgmr.msra.gmra.mrb[38].mxu0 %v2363_v27  ;;  %v4088_v27 = vld [vmem:[%s5696_s13 + $0xa0] sm:$0xff]  }
 0x5d7   : > { %2718 = vmatpush1.bf16.msra.mxu0 %v4024_v6  ;;  %2749 = vmatprep.mubr.bf16.mxu0 %v4140_v24  ;;  %v4087_v6 = vld [vmem:[%s5696_s13 + $0x20] sm:$0xff]   ;;  %v2501_v24 = vrot.slane %v2492_v21, %v4892_v51 }
 0x5d8   : > { %2719 = vmatprep.subr.bf16.mxu0 %v4032_v60  ;;  %v4089_v60 = vld [vmem:[%s5696_s13 + $0x68] sm:$0xff]  }
 0x5db   : > { %2720 = vmatpush1.bf16.msra.mxu0 %v4030_v38  ;;  %v4090_v38 = vld [vmem:[%s5696_s13 + $0xe8] sm:$0xff]  }
 0x5dc   : > { %2721 = vmatprep.subr.bf16.mxu0 %v4038_v44  ;;  %v4091_v44 = vld [vmem:[%s5696_s13 + $0x28] sm:$0xff]  }
 0x5df   : > { %2722 = vmatpush1.bf16.msra.mxu0 %v4036_v15  ;;  %v4092_v15 = vld [vmem:[%s5696_s13 + $0xa8] sm:$0xff]  }
 0x5e0   : > { %2723 = vmatprep.subr.bf16.mxu0 %v4044_v62  ;;  %v4096_v62 = vld [vmem:[%s5696_s13 + $0xb0] sm:$0xff]  }
 0x5e3   : > { %2724 = vmatpush1.bf16.msra.mxu0 %v4042_v7  ;;  %v4095_v7 = vld [vmem:[%s5696_s13 + $0x30] sm:$0xff]  }
 0x5e4   : > { %2725 = vmatprep.subr.bf16.mxu0 %v4050_v42  ;;  %v4098_v42 = vld [vmem:[%s5696_s13 + $0xf8] sm:$0xff]  }
 0x5e7   : > { %2726 = vmatpush1.bf16.msra.mxu0 %v4048_v13  ;;  %v4100_v13 = vld [vmem:[%s5696_s13 + $0xb8] sm:$0xff]  }
 0x5e8   : > { %2727 = vmatprep.subr.bf16.mxu0 %v4056_v30  ;;  %v2497_v30 = vrot.slane %v2492_v21, %v5740_v8 }
 0x5eb   : > { %2728 = vmatpush1.bf16.msra.mxu0 %v4054_v5  ;;  %v2509_v5 = vrot.slane %v2492_v21, %v5026_v11 }
 0x5ec   : > { %2729 = vmatprep.subr.bf16.mxu0 %v4062_v53 }
 0x5ef   : > { %2730 = vmatpush1.bf16.msra.mxu0 %v4060_v26 }
 0x5f0   : > { %2731 = vmatprep.subr.bf16.mxu0 %v4068_v22 }
 0x5f3   : > { %2732 = vmatpush1.bf16.msra.mxu0 %v4066_v12 }
 0x5f4   : > { %3539 = vmatprep.subr.bf16.mxu0 %v4070_v25 }
 0x6a9   : > { %v3700_v39 = vpop.f32.mrb[38].mxu0 }
 0x6aa   : > { %v2436_v58 = vadd.f32 1e-06, %v3700_v39  ;;  %v2430_v29 = vpop.f32.mrb[39].mxu0 }
 0x6ab   : > { %v2431_v52 = vadd.f32 1e-06, %v2430_v29 }
 0x6ac   : > { %4105 = vrsqrt.f32 %v2436_v58 }
 0x6ad   : > { %4107 = vrsqrt.f32 %v2431_v52 }
 0x6b6   : > { %v4106_v28 = vpop.eup %4105 }
 0x6b7   : > { %v4108_v0 = vpop.eup %4107  ;;  %v2442_v57 = vmul.f32 %v4106_v28, %v5474_v36  ;;  %v4083_v36 = vld [vmem:[%s5696_s13 + $0x18] sm:$0xff]  }
 0x6b8   : > { %v2441_v3 = vmul.f32 %v4108_v0, %v5476_v59  ;;  %v4085_v59 = vld [vmem:[%s5696_s13 + $0x60] sm:$0xff]  }
 0x6b9   : > { %v2450_v63 = vmul.f32 %v3335_v32, %v2442_v57 }
 0x6ba   : > { %v2449_v9 = vmul.f32 %v3335_v32, %v2441_v3 }
 0x6bb   : > { %v2458_v31 = vadd.f32 %v3336_v23, %v2450_v63 }
 0x6bc   : > { %v2457_v1 = vadd.f32 %v3336_v23, %v2449_v9 }
 0x6be   : > { %v2459_v34 = vpack.c.bf16 %v2458_v31, %v2457_v1 }
 0x6c0   : > { %2707 = vmatmul.mubr.bf16.vlgmr.msra.gmra.mrb[36].mxu1 %v2459_v34  ;;  %2750 = vmatmul.mubr.bf16.vlgmr.msra.gmra.mrb[40].mxu0 %v2459_v34 }
 0x6c1   : > { %3518 = vmatpush3.bf16.msra.mxu1 %v4071_v16  ;;  %3540 = vmatpush3.bf16.msra.mxu0 %v4072_v61 }
 0x6c2   : > { %3519 = vmatprep.subr.bf16.mxu1 %v4073_v54  ;;  %3541 = vmatprep.subr.bf16.mxu0 %v4074_v40 }
 0x6c5   : > { %3520 = vmatpush3.bf16.msra.mxu1 %v4075_v55  ;;  %3542 = vmatpush3.bf16.msra.mxu0 %v4076_v46 }
 0x6c6   : > { %3521 = vmatprep.subr.bf16.mxu1 %v4077_v37  ;;  %3543 = vmatprep.subr.bf16.mxu0 %v4078_v4 }
 0x6c9   : > { %3522 = vmatpush3.bf16.msra.mxu1 %v4079_v10  ;;  %3544 = vmatpush3.bf16.msra.mxu0 %v4080_v14 }
 0x6ca   : > { %3523 = vmatprep.subr.bf16.mxu1 %v4081_v17  ;;  %3545 = vmatprep.subr.bf16.mxu0 %v4082_v2 }
 0x6cd   : > { %3524 = vmatpush3.bf16.msra.mxu1 %v4083_v36  ;;  %3546 = vmatpush3.bf16.msra.mxu0 %v4084_v19 }
 0x6ce   : > { %3525 = vmatprep.subr.bf16.mxu1 %v4085_v59  ;;  %3547 = vmatprep.subr.bf16.mxu0 %v4086_v35 }
 0x6d1   : > { %3526 = vmatpush3.bf16.msra.mxu1 %v4087_v6  ;;  %3548 = vmatpush3.bf16.msra.mxu0 %v4088_v27 }
 0x6d2   : > { %3527 = vmatprep.subr.bf16.mxu1 %v4089_v60  ;;  %3549 = vmatprep.subr.bf16.mxu0 %v4090_v38 }
 0x6d5   : > { %3528 = vmatpush3.bf16.msra.mxu1 %v4091_v44  ;;  %3550 = vmatpush3.bf16.msra.mxu0 %v4092_v15 }
 0x6d6   : > { %3529 = vmatprep.subr.bf16.mxu1 %v4093_v41  ;;  %3551 = vmatprep.subr.bf16.mxu0 %v4094_v56 }
 0x6d9   : > { %3530 = vmatpush3.bf16.msra.mxu1 %v4095_v7  ;;  %3552 = vmatpush3.bf16.msra.mxu0 %v4096_v62 }
 0x6da   : > { %3531 = vmatprep.subr.bf16.mxu1 %v4097_v49  ;;  %3553 = vmatprep.subr.bf16.mxu0 %v4098_v42 }
 0x6dd   : > { %3532 = vmatpush3.bf16.msra.mxu1 %v4099_v48  ;;  %3554 = vmatpush3.bf16.msra.mxu0 %v4100_v13 }
 0x793   : > { %v2708_v43 = vpop.f32.mrb[36].mxu1  ;;  %v2751_v53 = vpop.f32.mrb[40].mxu0 }
 0x794   : > { %v2709_v20 = vadd.f32 %v2708_v43, %v2497_v30  ;;  %v2752_v26 = vadd.f32 %v2751_v53, %v2505_v18  ;;  %v2710_v33 = vpop.f32.mrb[37].mxu1  ;;  %v2753_v22 = vpop.f32.mrb[41].mxu0 }
 0x795   : > { %v2711_v50 = vadd.f32 %v2710_v33, %v2501_v24  ;;  %v2754_v12 = vadd.f32 %v2753_v22, %v2509_v5  ;;  %v2712_v47 = vpop.f32.mrb[38].mxu1  ;;  %v2755_v25 = vpop.f32.mrb[42].mxu0 }
 0x796   : > { %v2768_v39 = vmul.f32 0.70710677, %v2709_v20  ;;  %v2770_v58 = vmul.f32 0.70710677, %v2752_v26  ;;  %v2713_v45 = vadd.f32 %v2712_v47, %v2497_v30  ;;  %v2756_v52 = vadd.f32 %v2755_v25, %v2505_v18  ;;  %v2714_v51 = vpop.f32.mrb[39].mxu1  ;;  %v2757_v28 = vpop.f32.mrb[43].mxu0 }
 0x797   : > { %v2769_v29 = vmul.f32 0.70710677, %v2711_v50  ;;  %v2771_v8 = vmul.f32 0.70710677, %v2754_v12  ;;  %v2715_v11 = vadd.f32 %v2714_v51, %v2501_v24  ;;  %v2758_v32 = vadd.f32 %v2757_v28, %v2509_v5  ;;  %v3369_v24 = vld [vmem:[%s5697_s14] ss:$0 sm:$0xff] }
 0x798   : > { %4109 = verf.f32 %v2768_v39  ;;  %v2772_v0 = vmul.f32 0.70710677, %v2713_v45  ;;  %v2774_v57 = vmul.f32 0.70710677, %v2756_v52  ;;  %v2760_v34 = vmul.f32 0.5, %v2709_v20 }
 0x799   : > { %4111 = verf.f32 %v2770_v58  ;;  %v2773_v3 = vmul.f32 0.70710677, %v2715_v11  ;;  %v2775_v23 = vmul.f32 0.70710677, %v2758_v32  ;;  %v2762_v54 = vmul.f32 0.5, %v2752_v26 }
 0x79a   : > { %4113 = verf.f32 %v2769_v29  ;;  %v2761_v46 = vmul.f32 0.5, %v2711_v50  ;;  %v2764_v4 = vmul.f32 0.5, %v2713_v45  ;;  %v2763_v17 = vmul.f32 0.5, %v2754_v12  ;;  %v3402_v25 = vld [vmem:[%s5698_s15] ss:$0 sm:$0xff] }
 0x79b   : > { %4115 = verf.f32 %v2771_v8  ;;  %v2766_v36 = vmul.f32 0.5, %v2756_v52  ;;  %v2765_v27 = vmul.f32 0.5, %v2715_v11  ;;  %v2767_v15 = vmul.f32 0.5, %v2758_v32  ;;  %v5758_v52 = vld [vmem:[#allocation9_spill] sm:$0xff]  ;;  %v5759_v11 = vld [vmem:[#allocation7_spill] sm:$0xff] }
 0x79c   : > { %4117 = verf.f32 %v2772_v0 }
 0x79d   : > { %4119 = verf.f32 %v2774_v57 }
 0x79e   : > { %4121 = verf.f32 %v2773_v3 }
 0x79f   : > { %4123 = verf.f32 %v2775_v23 }
 0x7a2   : > { %v4110_v63 = vpop.eup %4109 }
 0x7a3   : > { %v4112_v9 = vpop.eup %4111  ;;  %v2784_v16 = vadd.f32 1.0, %v4110_v63 }
 0x7a4   : > { %v4114_v31 = vpop.eup %4113  ;;  %v2786_v40 = vadd.f32 1.0, %v4112_v9 }
 0x7a5   : > { %v4116_v1 = vpop.eup %4115  ;;  %v2785_v37 = vadd.f32 1.0, %v4114_v31  ;;  %v2792_v35 = vmul.f32 %v2784_v16, %v2760_v34 }
 0x7a6   : > { %v4118_v61 = vpop.eup %4117  ;;  %v2787_v2 = vadd.f32 1.0, %v4116_v1  ;;  %v2794_v38 = vmul.f32 %v2786_v40, %v2762_v54 }
 0x7a7   : > { %v4120_v55 = vpop.eup %4119  ;;  %v2788_v10 = vadd.f32 1.0, %v4118_v61  ;;  %v2793_v56 = vmul.f32 %v2785_v37, %v2761_v46 }
 0x7a8   : > { %v4122_v14 = vpop.eup %4121  ;;  %v2790_v19 = vadd.f32 1.0, %v4120_v55  ;;  %v2795_v49 = vmul.f32 %v2787_v2, %v2763_v17 }
 0x7a9   : > { %v4124_v59 = vpop.eup %4123  ;;  %v2796_v6 = vmul.f32 %v2788_v10, %v2764_v4  ;;  %v2789_v60 = vadd.f32 1.0, %v4122_v14 }
 0x7aa   : > { %v2798_v44 = vmul.f32 %v2790_v19, %v2766_v36  ;;  %v2791_v41 = vadd.f32 1.0, %v4124_v59 }
 0x7ab   : > { %v2800_v7 = vpack.c.bf16 %v2796_v6, %v2792_v35  ;;  %v2797_v62 = vmul.f32 %v2789_v60, %v2765_v27 }
 0x7ac   : > { %v2802_v42 = vpack.c.bf16 %v2798_v44, %v2794_v38  ;;  %v2799_v48 = vmul.f32 %v2791_v41, %v2767_v15 }
 0x7ad   : > { %v2801_v13 = vpack.c.bf16 %v2797_v62, %v2793_v56 }
 0x7ae   : > { %v2803_v21 = vpack.c.bf16 %v2799_v48, %v2795_v49 }
 0x7af   : > { %3099 = vmatprep.mubr.bf16.mxu1 %v2801_v13 }
 0x7b0   : > { %3140 = vmatprep.mubr.bf16.mxu0 %v2803_v21  ;;  %3100 = vmatmul.mubr.bf16.vlgmr.msra.gmra.mrb[40].mxu1 %v2800_v7 }
 0x7b1   : > { %3141 = vmatmul.mubr.bf16.vlgmr.msra.gmra.mrb[44].mxu0 %v2802_v42 }
 0x883   : > { %v3533_v30 = vpop.f32.mrb[40].mxu1 }
 0x884   : > { %v3555_v18 = vpop.f32.mrb[44].mxu0  ;;  %v3534_v5 = vpop.f32.mrb[41].mxu1 }
 0x885   : > { %v3535_v43 = vadd.f32 %v3534_v5, %v3533_v30  ;;  %v3556_v53 = vpop.f32.mrb[45].mxu0  ;;  %v3536_v20 = vpop.f32.mrb[42].mxu1 }
 0x886   : > { %v3557_v26 = vadd.f32 %v3556_v53, %v3555_v18  ;;  %v3558_v33 = vpop.f32.mrb[46].mxu0  ;;  %v3537_v22 = vpop.f32.mrb[43].mxu1 }
 0x887   : > { %v3102_v50 = vadd.f32 %v3535_v43, %v3369_v24  ;;  %v3538_v12 = vadd.f32 %v3537_v22, %v3536_v20  ;;  %v3559_v47 = vpop.f32.mrb[47].mxu0 }
 0x888   : > { %v3560_v39 = vadd.f32 %v3559_v47, %v3558_v33 }
 0x889   : > { %v3143_v58 = vadd.f32 %v3557_v26, %v3102_v50  ;;  %v3105_v29 = vadd.f32 %v3538_v12, %v3369_v24 }
 0x88b   : > { %v3156_v8 = vmul.f32 %v3402_v25, %v3143_v58  ;;  %v3146_v45 = vadd.f32 %v3560_v39, %v3105_v29 }
 0x88d   : > { %v3158_v51 = vadd.f32 %v3156_v8, %v5758_v52  ;;  %v3157_v28 = vmul.f32 %v3402_v25, %v3146_v45 }
 0x88f   : > { %3160 = vst [vmem:[%s521_s24] sm:$0xff] %v3158_v51  ;;  %v3159_v32 = vadd.f32 %v3157_v28, %v5759_v11 }
 0x891   : > { %3161 = vst [vmem:[%s521_s24 + $0x8] sm:$0xff] %v3159_v32 }
 0x892 PF: > { %s26_s21 = sadd.s32 1, %s4131_s21  }
 0x893   : > { %p23_p4 = scmp.ge.s32.totalorder %s26_s21, 4  }
 0x895   :  { %25 = sbr.rel (!%p23_p4) target bundleno = 2 (0x2), region = 117 }

</bundles_post_ra>
